<compile_context>
chip_gen: v5e
topology: v5e:2x2
jax: 0.10.0
libtpu: 0.0.40
codegen_flags: <defaults>
</compile_context>

<pallas_src>
import functools

import jax
import jax.numpy as jnp
from jax.experimental import pallas as pl
from jax.experimental.pallas import tpu as pltpu

_VMEM_LIMIT = 32 * 1024 * 1024  # safe explicit scoped-VMEM limit on v5e/v6e/v7x


# ----------------------------------------------------------------------------
# Fused ReflectionPad2d(1) + Conv2d(3x3, stride 1) + bias + ReLU
# ----------------------------------------------------------------------------
def _conv3x3_kernel(x_ref, w_ref, b_ref, o_ref, *, H, W, Wp, relu):
    # x_ref: (1, Hp*Wp + 2, Cin) bf16  -- flattened reflect-padded image
    #                                     (+2 guard rows for the last tap)
    # w_ref: (9, Cin, Cout) bf16 ; b_ref: (1, Cout) f32 ; o_ref: (1, H, W, Cout) f32
    Mrow = H * Wp                      # rows computed per image (incl. 2 junk cols/row)
    cout = o_ref.shape[-1]
    xv = x_ref[0]                      # (Hp*Wp + 2, Cin), loaded once
    acc = jnp.zeros((Mrow, cout), jnp.float32)
    for tap in range(9):               # 9 shifted bf16 MXU matmuls, fp32 accumulation
        di, dj = divmod(tap, 3)
        start = di * Wp + dj
        patch = xv[start:start + Mrow, :]                       # (Mrow, Cin)
        acc = acc + jnp.dot(patch, w_ref[tap],
                            preferred_element_type=jnp.float32)
    acc = acc + b_ref[...]             # fp32 epilogue
    if relu:
        acc = jnp.maximum(acc, 0.0)
    # Store only the W valid columns of each output row (junk columns dropped).
    for h in range(H):
        o_ref[0, h] = acc[h * Wp:h * Wp + W, :].astype(o_ref.dtype)


def conv3x3_relu(x, w9, b):
    """x: (B,H,W,Cin) NHWC.  w9: (9,Cin,Cout) bf16 tap-major.  b: (Cout,) f32."""
    B, H, W, Cin = x.shape
    assert H >= 2 and W >= 2  # reflect pad requirement
    Cout = w9.shape[-1]
    Hp, Wp = H + 2, W + 2
    xp = jnp.pad(x, ((0, 0), (1, 1), (1, 1), (0, 0)), mode="reflect")
    xflat = xp.reshape(B, Hp * Wp, Cin)                   # free reshape
    xflat = jnp.pad(xflat, ((0, 0), (0, 2), (0, 0)))      # guard rows for tap (2,2)
    xflat = xflat.astype(jnp.bfloat16)                    # bf16 MXU operand
    b2 = b.reshape(1, Cout).astype(jnp.float32)
    kernel = functools.partial(_conv3x3_kernel, H=H, W=W, Wp=Wp, relu=True)
    return pl.pallas_call(
        kernel,
        out_shape=jax.ShapeDtypeStruct((B, H, W, Cout), jnp.float32),
        grid=(B,),
        in_specs=[
            pl.BlockSpec((1, Hp * Wp + 2, Cin), lambda i: (i, 0, 0)),
            pl.BlockSpec((9, Cin, Cout), lambda i: (0, 0, 0)),
            pl.BlockSpec((1, Cout), lambda i: (0, 0)),
        ],
        out_specs=pl.BlockSpec((1, H, W, Cout), lambda i: (i, 0, 0, 0)),
        compiler_params=pltpu.CompilerParams(
            dimension_semantics=("parallel",),
            vmem_limit_bytes=_VMEM_LIMIT),
    )(xflat, w9, b2)


# ----------------------------------------------------------------------------
# MaxPool2d(kernel=2, stride=2) — single pass, contiguous slices only
# ----------------------------------------------------------------------------
def _maxpool_kernel(x_ref, o_ref, *, W, Wo, C):
    # x_ref: (1, Ho, 2*W*C): each row holds two adjacent input rows [h'=0 | h'=1]
    x = x_ref[0]
    rowlen = W * C
    m = jnp.maximum(x[:, :rowlen], x[:, rowlen:])     # pool the H pair: (Ho, W*C)
    pieces = []
    for wo in range(Wo):                              # pool adjacent W pairs
        left = m[:, (2 * wo) * C:(2 * wo) * C + C]
        right = m[:, (2 * wo + 1) * C:(2 * wo + 1) * C + C]
        pieces.append(jnp.maximum(left, right))
    o_ref[0] = jnp.concatenate(pieces, axis=-1)       # single lane-dense store


def maxpool2x2(x):
    """x: (B,H,W,C) NHWC -> (B,H/2,W/2,C)."""
    B, H, W, C = x.shape
    assert H % 2 == 0 and W % 2 == 0
    Ho, Wo = H // 2, W // 2
    xr = x.reshape(B, Ho, 2 * W * C)                  # free reshape of contiguous NHWC
    kernel = functools.partial(_maxpool_kernel, W=W, Wo=Wo, C=C)
    out = pl.pallas_call(
        kernel,
        out_shape=jax.ShapeDtypeStruct((B, Ho, Wo * C), x.dtype),
        grid=(B,),
        in_specs=[pl.BlockSpec((1, Ho, 2 * W * C), lambda i: (i, 0, 0))],
        out_specs=pl.BlockSpec((1, Ho, Wo * C), lambda i: (i, 0, 0)),
        compiler_params=pltpu.CompilerParams(
            dimension_semantics=("parallel",),
            vmem_limit_bytes=_VMEM_LIMIT),
    )(xr)
    return out.reshape(B, Ho, Wo, C)


# ----------------------------------------------------------------------------
# Linear: y = x @ w + b, M-tiled, bf16 operands / fp32 accumulation
# ----------------------------------------------------------------------------
def _matmul_bias_kernel(x_ref, w_ref, b_ref, o_ref, *, relu):
    acc = jnp.dot(x_ref[...], w_ref[...], preferred_element_type=jnp.float32)
    acc = acc + b_ref[...]             # (1, N) broadcasts over rows, fp32 epilogue
    if relu:
        acc = jnp.maximum(acc, 0.0)
    o_ref[...] = acc.astype(o_ref.dtype)


def matmul_bias(x, w, b, *, relu=False, block_m=512):
    """x:(M,K), w:(K,N) (pre-transposed), b:(N,) -> (M,N) f32."""
    M, K = x.shape
    K2, N = w.shape
    assert K == K2
    tm = M if M <= block_m else block_m
    assert M % tm == 0
    b2 = b.reshape(1, N).astype(jnp.float32)
    # TODO(synk): K never exceeds 1152 in this model, so no K-tiling is needed;
    # add a K grid axis + VMEM accumulator for much larger reductions.
    return pl.pallas_call(
        functools.partial(_matmul_bias_kernel, relu=relu),
        out_shape=jax.ShapeDtypeStruct((M, N), jnp.float32),
        grid=(M // tm,),
        in_specs=[
            pl.BlockSpec((tm, K), lambda i: (i, 0)),
            pl.BlockSpec((K, N), lambda i: (0, 0)),
            pl.BlockSpec((1, N), lambda i: (0, 0)),
        ],
        out_specs=pl.BlockSpec((tm, N), lambda i: (i, 0)),
        compiler_params=pltpu.CompilerParams(
            dimension_semantics=("parallel",),
            vmem_limit_bytes=_VMEM_LIMIT),
    )(x.astype(jnp.bfloat16), w.astype(jnp.bfloat16), b2)


# ----------------------------------------------------------------------------
# Parameter init (deterministic; shapes as in the PyTorch __init__)
# ----------------------------------------------------------------------------
def _conv_to_tap_layout(w):
    # (Cout, Cin, 3, 3) PyTorch -> (9, Cin, Cout) tap-major (tap = kh*3 + kw), bf16.
    cout, cin = w.shape[0], w.shape[1]
    return jnp.transpose(w, (2, 3, 1, 0)).reshape(9, cin, cout).astype(jnp.bfloat16)


def init_params(key):
    ks = iter(jax.random.split(key, 20))

    def conv_w(k, cout, cin):
        fan_in = cin * 9
        return jax.random.normal(k, (cout, cin, 3, 3), jnp.float32) * (2.0 / fan_in) ** 0.5

    def bias(k, n):
        return jax.random.normal(k, (n,), jnp.float32) * 0.01

    params = {}
    # conv1: VGG16 conv1 is (64,3,3,3); module does weight.repeat(1,2,1,1) -> (64,6,3,3)
    w0 = jnp.tile(conv_w(next(ks), 64, 3), (1, 2, 1, 1))
    w0 = jnp.pad(w0, ((0, 0), (0, 2), (0, 0), (0, 0)))   # pad Cin 6 -> 8 (zero planes)
    params["conv1_w"] = _conv_to_tap_layout(w0)
    params["conv1_b"] = bias(next(ks), 64)
    params["conv2_w"] = _conv_to_tap_layout(conv_w(next(ks), 64, 64))
    params["conv2_b"] = bias(next(ks), 64)
    params["conv3_w"] = _conv_to_tap_layout(conv_w(next(ks), 128, 64))
    params["conv3_b"] = bias(next(ks), 128)
    params["conv4_w"] = _conv_to_tap_layout(conv_w(next(ks), 128, 128))
    params["conv4_b"] = bias(next(ks), 128)
    params["conv5_w"] = _conv_to_tap_layout(conv_w(next(ks), 256, 128))
    params["conv5_b"] = bias(next(ks), 256)
    # classifiers: stored pre-transposed (K, N) in bf16 (PyTorch Linear keeps (N, K))
    params["fc1_w"] = (jax.random.normal(next(ks), (1024, 512), jnp.float32)
                       * (1.0 / 1024.0) ** 0.5).astype(jnp.bfloat16)
    params["fc1_b"] = bias(next(ks), 512)
    params["fc2_w"] = (jax.random.normal(next(ks), (512, 2), jnp.float32)
                       * (1.0 / 512.0) ** 0.5).astype(jnp.bfloat16)
    params["fc2_b"] = bias(next(ks), 2)
    # TODO(synk): slice4 (256->256, 256->256, 256->512 convs) exists in __init__
    # but is never used in forward(); omitted here.
    return params


# ----------------------------------------------------------------------------
# Forward pass (matches VGG.forward semantics)
# ----------------------------------------------------------------------------
def vgg_forward(params, x_nchw):
    x = jnp.transpose(x_nchw, (0, 2, 3, 1))               # NCHW -> NHWC
    # conv1's Cin was padded to 8; pad input channels with zeros to match.
    cpad = params["conv1_w"].shape[1] - x.shape[-1]
    x = jnp.pad(x, ((0, 0), (0, 0), (0, 0), (0, cpad)))

    # slice1: RefPad + Conv(6->64) + ReLU
    x = conv3x3_relu(x, params["conv1_w"], params["conv1_b"])
    out1 = x
    # slice2: RefPad + Conv(64->64) + ReLU + MaxPool + RefPad + Conv(64->128) + ReLU
    x = conv3x3_relu(x, params["conv2_w"], params["conv2_b"])
    x = maxpool2x2(x)
    x = conv3x3_relu(x, params["conv3_w"], params["conv3_b"])
    out2 = x
    # slice3: RefPad + Conv(128->128) + ReLU + MaxPool + RefPad + Conv(128->256) + ReLU
    x = conv3x3_relu(x, params["conv4_w"], params["conv4_b"])
    x = maxpool2x2(x)
    x = conv3x3_relu(x, params["conv5_w"], params["conv5_b"])
    out3 = x

    # PyTorch x.view(B, -1) flattens NCHW -> transpose back first.
    B = x.shape[0]
    flat = jnp.transpose(x, (0, 3, 1, 2)).reshape(B, -1)   # (B, 256*2*2) = (B, 1024)
    y = matmul_bias(flat, params["fc1_w"], params["fc1_b"], relu=False)
    y = matmul_bias(y, params["fc2_w"], params["fc2_b"], relu=False)

    outs = tuple(jnp.transpose(o, (0, 3, 1, 2)) for o in (out1, out2, out3))  # NCHW
    return outs, y


if __name__ == "__main__":
    key = jax.random.PRNGKey(0)
    pkey, xkey = jax.random.split(key)
    params = init_params(pkey)

    # Input must flatten to 1024 features after slice3 => 256 * (H/4) * (W/4) = 1024
    # => H = W = 8.  Input has 6 channels (the module's dual-image input).
    x = jax.random.normal(xkey, (2, 6, 8, 8), jnp.float32)

    fwd = jax.jit(vgg_forward)
    (out1, out2, out3), logits = fwd(params, x)
    jax.block_until_ready((out1, out2, out3, logits))

    assert out1.shape == (2, 64, 8, 8)
    assert out2.shape == (2, 128, 4, 4)
    assert out3.shape == (2, 256, 2, 2)
    assert logits.shape == (2, 2)
    print("KERNEL_OK")
</pallas_src>

<mosaic_0001>
module attributes {stable_mosaic.version = 11 : i64} {
  func.func @_conv3x3_kernel(%arg0: i32, %arg1: memref<1x102x8xbf16, #tpu.memory_space<vmem>>, %arg2: memref<9x8x64xbf16, #tpu.memory_space<vmem>>, %arg3: memref<1x64xf32, #tpu.memory_space<vmem>>, %arg4: memref<1x8x8x64xf32, #tpu.memory_space<vmem>>) attributes {dimension_semantics = [#tpu.dimension_semantics<parallel>], iteration_bounds = array<i64: 2>, scalar_prefetch = 0 : i64, scratch_operands = 0 : i64, tpu.core_type = #tpu.core_type<tc>, window_params = [{transform_indices = @transform_0, window_bounds = array<i64: 1, 102, 8>}, {pipeline_mode = #tpu.pipeline_mode<synchronous>, transform_indices = @transform_1, window_bounds = array<i64: 9, 8, 64>}, {pipeline_mode = #tpu.pipeline_mode<synchronous>, transform_indices = @transform_2, window_bounds = array<i64: 1, 64>}, {transform_indices = @transform_3, window_bounds = array<i64: 1, 8, 8, 64>}]} {
    %c0 = arith.constant 0 : index
    %c0_0 = arith.constant 0 : index
    %c0_1 = arith.constant 0 : index
    %0 = vector.load %arg1[%c0, %c0_0, %c0_1] : memref<1x102x8xbf16, #tpu.memory_space<vmem>>, vector<1x102x8xbf16>
    %1 = vector.shape_cast %0 : vector<1x102x8xbf16> to vector<102x8xbf16>
    %cst = arith.constant 0.000000e+00 : f32
    %2 = vector.broadcast %cst : f32 to vector<80x64xf32>
    %3 = vector.extract_strided_slice %1 {offsets = [0, 0], sizes = [80, 8], strides = [1, 1]} : vector<102x8xbf16> to vector<80x8xbf16>
    %c0_2 = arith.constant 0 : index
    %c0_3 = arith.constant 0 : index
    %c0_4 = arith.constant 0 : index
    %4 = vector.load %arg2[%c0_2, %c0_3, %c0_4] : memref<9x8x64xbf16, #tpu.memory_space<vmem>>, vector<1x8x64xbf16>
    %5 = vector.shape_cast %4 : vector<1x8x64xbf16> to vector<8x64xbf16>
    %cst_5 = arith.constant dense<0.000000e+00> : vector<80x64xf32>
    %6 = tpu.matmul %3, %5, %cst_5 {dimension_numbers = #tpu.dot_dimension_numbers<[1], [0], [0], [1], [0, 0, 1, 1], [], []>} : vector<80x8xbf16>, vector<8x64xbf16>, vector<80x64xf32> -> vector<80x64xf32>
    %7 = arith.addf %2, %6 : vector<80x64xf32>
    %8 = vector.extract_strided_slice %1 {offsets = [1, 0], sizes = [80, 8], strides = [1, 1]} : vector<102x8xbf16> to vector<80x8xbf16>
    %c1 = arith.constant 1 : index
    %c0_6 = arith.constant 0 : index
    %c0_7 = arith.constant 0 : index
    %9 = vector.load %arg2[%c1, %c0_6, %c0_7] : memref<9x8x64xbf16, #tpu.memory_space<vmem>>, vector<1x8x64xbf16>
    %10 = vector.shape_cast %9 : vector<1x8x64xbf16> to vector<8x64xbf16>
    %cst_8 = arith.constant dense<0.000000e+00> : vector<80x64xf32>
    %11 = tpu.matmul %8, %10, %cst_8 {dimension_numbers = #tpu.dot_dimension_numbers<[1], [0], [0], [1], [0, 0, 1, 1], [], []>} : vector<80x8xbf16>, vector<8x64xbf16>, vector<80x64xf32> -> vector<80x64xf32>
    %12 = arith.addf %7, %11 : vector<80x64xf32>
    %13 = vector.extract_strided_slice %1 {offsets = [2, 0], sizes = [80, 8], strides = [1, 1]} : vector<102x8xbf16> to vector<80x8xbf16>
    %c2 = arith.constant 2 : index
    %c0_9 = arith.constant 0 : index
    %c0_10 = arith.constant 0 : index
    %14 = vector.load %arg2[%c2, %c0_9, %c0_10] : memref<9x8x64xbf16, #tpu.memory_space<vmem>>, vector<1x8x64xbf16>
    %15 = vector.shape_cast %14 : vector<1x8x64xbf16> to vector<8x64xbf16>
    %cst_11 = arith.constant dense<0.000000e+00> : vector<80x64xf32>
    %16 = tpu.matmul %13, %15, %cst_11 {dimension_numbers = #tpu.dot_dimension_numbers<[1], [0], [0], [1], [0, 0, 1, 1], [], []>} : vector<80x8xbf16>, vector<8x64xbf16>, vector<80x64xf32> -> vector<80x64xf32>
    %17 = arith.addf %12, %16 : vector<80x64xf32>
    %18 = vector.extract_strided_slice %1 {offsets = [10, 0], sizes = [80, 8], strides = [1, 1]} : vector<102x8xbf16> to vector<80x8xbf16>
    %c3 = arith.constant 3 : index
    %c0_12 = arith.constant 0 : index
    %c0_13 = arith.constant 0 : index
    %19 = vector.load %arg2[%c3, %c0_12, %c0_13] : memref<9x8x64xbf16, #tpu.memory_space<vmem>>, vector<1x8x64xbf16>
    %20 = vector.shape_cast %19 : vector<1x8x64xbf16> to vector<8x64xbf16>
    %cst_14 = arith.constant dense<0.000000e+00> : vector<80x64xf32>
    %21 = tpu.matmul %18, %20, %cst_14 {dimension_numbers = #tpu.dot_dimension_numbers<[1], [0], [0], [1], [0, 0, 1, 1], [], []>} : vector<80x8xbf16>, vector<8x64xbf16>, vector<80x64xf32> -> vector<80x64xf32>
    %22 = arith.addf %17, %21 : vector<80x64xf32>
    %23 = vector.extract_strided_slice %1 {offsets = [11, 0], sizes = [80, 8], strides = [1, 1]} : vector<102x8xbf16> to vector<80x8xbf16>
    %c4 = arith.constant 4 : index
    %c0_15 = arith.constant 0 : index
    %c0_16 = arith.constant 0 : index
    %24 = vector.load %arg2[%c4, %c0_15, %c0_16] : memref<9x8x64xbf16, #tpu.memory_space<vmem>>, vector<1x8x64xbf16>
    %25 = vector.shape_cast %24 : vector<1x8x64xbf16> to vector<8x64xbf16>
    %cst_17 = arith.constant dense<0.000000e+00> : vector<80x64xf32>
    %26 = tpu.matmul %23, %25, %cst_17 {dimension_numbers = #tpu.dot_dimension_numbers<[1], [0], [0], [1], [0, 0, 1, 1], [], []>} : vector<80x8xbf16>, vector<8x64xbf16>, vector<80x64xf32> -> vector<80x64xf32>
    %27 = arith.addf %22, %26 : vector<80x64xf32>
    %28 = vector.extract_strided_slice %1 {offsets = [12, 0], sizes = [80, 8], strides = [1, 1]} : vector<102x8xbf16> to vector<80x8xbf16>
    %c5 = arith.constant 5 : index
    %c0_18 = arith.constant 0 : index
    %c0_19 = arith.constant 0 : index
    %29 = vector.load %arg2[%c5, %c0_18, %c0_19] : memref<9x8x64xbf16, #tpu.memory_space<vmem>>, vector<1x8x64xbf16>
    %30 = vector.shape_cast %29 : vector<1x8x64xbf16> to vector<8x64xbf16>
    %cst_20 = arith.constant dense<0.000000e+00> : vector<80x64xf32>
    %31 = tpu.matmul %28, %30, %cst_20 {dimension_numbers = #tpu.dot_dimension_numbers<[1], [0], [0], [1], [0, 0, 1, 1], [], []>} : vector<80x8xbf16>, vector<8x64xbf16>, vector<80x64xf32> -> vector<80x64xf32>
    %32 = arith.addf %27, %31 : vector<80x64xf32>
    %33 = vector.extract_strided_slice %1 {offsets = [20, 0], sizes = [80, 8], strides = [1, 1]} : vector<102x8xbf16> to vector<80x8xbf16>
    %c6 = arith.constant 6 : index
    %c0_21 = arith.constant 0 : index
    %c0_22 = arith.constant 0 : index
    %34 = vector.load %arg2[%c6, %c0_21, %c0_22] : memref<9x8x64xbf16, #tpu.memory_space<vmem>>, vector<1x8x64xbf16>
    %35 = vector.shape_cast %34 : vector<1x8x64xbf16> to vector<8x64xbf16>
    %cst_23 = arith.constant dense<0.000000e+00> : vector<80x64xf32>
    %36 = tpu.matmul %33, %35, %cst_23 {dimension_numbers = #tpu.dot_dimension_numbers<[1], [0], [0], [1], [0, 0, 1, 1], [], []>} : vector<80x8xbf16>, vector<8x64xbf16>, vector<80x64xf32> -> vector<80x64xf32>
    %37 = arith.addf %32, %36 : vector<80x64xf32>
    %38 = vector.extract_strided_slice %1 {offsets = [21, 0], sizes = [80, 8], strides = [1, 1]} : vector<102x8xbf16> to vector<80x8xbf16>
    %c7 = arith.constant 7 : index
    %c0_24 = arith.constant 0 : index
    %c0_25 = arith.constant 0 : index
    %39 = vector.load %arg2[%c7, %c0_24, %c0_25] : memref<9x8x64xbf16, #tpu.memory_space<vmem>>, vector<1x8x64xbf16>
    %40 = vector.shape_cast %39 : vector<1x8x64xbf16> to vector<8x64xbf16>
    %cst_26 = arith.constant dense<0.000000e+00> : vector<80x64xf32>
    %41 = tpu.matmul %38, %40, %cst_26 {dimension_numbers = #tpu.dot_dimension_numbers<[1], [0], [0], [1], [0, 0, 1, 1], [], []>} : vector<80x8xbf16>, vector<8x64xbf16>, vector<80x64xf32> -> vector<80x64xf32>
    %42 = arith.addf %37, %41 : vector<80x64xf32>
    %43 = vector.extract_strided_slice %1 {offsets = [22, 0], sizes = [80, 8], strides = [1, 1]} : vector<102x8xbf16> to vector<80x8xbf16>
    %c8 = arith.constant 8 : index
    %c0_27 = arith.constant 0 : index
    %c0_28 = arith.constant 0 : index
    %44 = vector.load %arg2[%c8, %c0_27, %c0_28] : memref<9x8x64xbf16, #tpu.memory_space<vmem>>, vector<1x8x64xbf16>
    %45 = vector.shape_cast %44 : vector<1x8x64xbf16> to vector<8x64xbf16>
    %cst_29 = arith.constant dense<0.000000e+00> : vector<80x64xf32>
    %46 = tpu.matmul %43, %45, %cst_29 {dimension_numbers = #tpu.dot_dimension_numbers<[1], [0], [0], [1], [0, 0, 1, 1], [], []>} : vector<80x8xbf16>, vector<8x64xbf16>, vector<80x64xf32> -> vector<80x64xf32>
    %47 = arith.addf %42, %46 : vector<80x64xf32>
    %c0_30 = arith.constant 0 : index
    %c0_31 = arith.constant 0 : index
    %48 = vector.load %arg3[%c0_30, %c0_31] : memref<1x64xf32, #tpu.memory_space<vmem>>, vector<1x64xf32>
    %49 = vector.broadcast %48 : vector<1x64xf32> to vector<80x64xf32>
    %50 = arith.addf %47, %49 : vector<80x64xf32>
    %cst_32 = arith.constant 0.000000e+00 : f32
    %51 = vector.broadcast %cst_32 : f32 to vector<80x64xf32>
    %52 = arith.maximumf %50, %51 : vector<80x64xf32>
    %53 = vector.extract_strided_slice %52 {offsets = [0, 0], sizes = [8, 64], strides = [1, 1]} : vector<80x64xf32> to vector<8x64xf32>
    %c0_33 = arith.constant 0 : index
    %c0_34 = arith.constant 0 : index
    %c0_35 = arith.constant 0 : index
    %c0_36 = arith.constant 0 : index
    %54 = vector.load %arg4[%c0_33, %c0_34, %c0_35, %c0_36] : memref<1x8x8x64xf32, #tpu.memory_space<vmem>>, vector<1x1x8x64xf32>
    %55 = vector.shape_cast %54 : vector<1x1x8x64xf32> to vector<8x64xf32>
    %56 = vector.shape_cast %53 : vector<8x64xf32> to vector<1x1x8x64xf32>
    tpu.vector_store %arg4[%c0_33, %c0_34, %c0_35, %c0_36], %56 {strides = array<i32>} : memref<1x8x8x64xf32, #tpu.memory_space<vmem>>, vector<1x1x8x64xf32>,
    %57 = vector.extract_strided_slice %52 {offsets = [10, 0], sizes = [8, 64], strides = [1, 1]} : vector<80x64xf32> to vector<8x64xf32>
    %c0_37 = arith.constant 0 : index
    %c1_38 = arith.constant 1 : index
    %c0_39 = arith.constant 0 : index
    %c0_40 = arith.constant 0 : index
    %58 = vector.load %arg4[%c0_37, %c1_38, %c0_39, %c0_40] : memref<1x8x8x64xf32, #tpu.memory_space<vmem>>, vector<1x1x8x64xf32>
    %59 = vector.shape_cast %58 : vector<1x1x8x64xf32> to vector<8x64xf32>
    %60 = vector.shape_cast %57 : vector<8x64xf32> to vector<1x1x8x64xf32>
    tpu.vector_store %arg4[%c0_37, %c1_38, %c0_39, %c0_40], %60 {strides = array<i32>} : memref<1x8x8x64xf32, #tpu.memory_space<vmem>>, vector<1x1x8x64xf32>,
    %61 = vector.extract_strided_slice %52 {offsets = [20, 0], sizes = [8, 64], strides = [1, 1]} : vector<80x64xf32> to vector<8x64xf32>
    %c0_41 = arith.constant 0 : index
    %c2_42 = arith.constant 2 : index
    %c0_43 = arith.constant 0 : index
    %c0_44 = arith.constant 0 : index
    %62 = vector.load %arg4[%c0_41, %c2_42, %c0_43, %c0_44] : memref<1x8x8x64xf32, #tpu.memory_space<vmem>>, vector<1x1x8x64xf32>
    %63 = vector.shape_cast %62 : vector<1x1x8x64xf32> to vector<8x64xf32>
    %64 = vector.shape_cast %61 : vector<8x64xf32> to vector<1x1x8x64xf32>
    tpu.vector_store %arg4[%c0_41, %c2_42, %c0_43, %c0_44], %64 {strides = array<i32>} : memref<1x8x8x64xf32, #tpu.memory_space<vmem>>, vector<1x1x8x64xf32>,
    %65 = vector.extract_strided_slice %52 {offsets = [30, 0], sizes = [8, 64], strides = [1, 1]} : vector<80x64xf32> to vector<8x64xf32>
    %c0_45 = arith.constant 0 : index
    %c3_46 = arith.constant 3 : index
    %c0_47 = arith.constant 0 : index
    %c0_48 = arith.constant 0 : index
    %66 = vector.load %arg4[%c0_45, %c3_46, %c0_47, %c0_48] : memref<1x8x8x64xf32, #tpu.memory_space<vmem>>, vector<1x1x8x64xf32>
    %67 = vector.shape_cast %66 : vector<1x1x8x64xf32> to vector<8x64xf32>
    %68 = vector.shape_cast %65 : vector<8x64xf32> to vector<1x1x8x64xf32>
    tpu.vector_store %arg4[%c0_45, %c3_46, %c0_47, %c0_48], %68 {strides = array<i32>} : memref<1x8x8x64xf32, #tpu.memory_space<vmem>>, vector<1x1x8x64xf32>,
    %69 = vector.extract_strided_slice %52 {offsets = [40, 0], sizes = [8, 64], strides = [1, 1]} : vector<80x64xf32> to vector<8x64xf32>
    %c0_49 = arith.constant 0 : index
    %c4_50 = arith.constant 4 : index
    %c0_51 = arith.constant 0 : index
    %c0_52 = arith.constant 0 : index
    %70 = vector.load %arg4[%c0_49, %c4_50, %c0_51, %c0_52] : memref<1x8x8x64xf32, #tpu.memory_space<vmem>>, vector<1x1x8x64xf32>
    %71 = vector.shape_cast %70 : vector<1x1x8x64xf32> to vector<8x64xf32>
    %72 = vector.shape_cast %69 : vector<8x64xf32> to vector<1x1x8x64xf32>
    tpu.vector_store %arg4[%c0_49, %c4_50, %c0_51, %c0_52], %72 {strides = array<i32>} : memref<1x8x8x64xf32, #tpu.memory_space<vmem>>, vector<1x1x8x64xf32>,
    %73 = vector.extract_strided_slice %52 {offsets = [50, 0], sizes = [8, 64], strides = [1, 1]} : vector<80x64xf32> to vector<8x64xf32>
    %c0_53 = arith.constant 0 : index
    %c5_54 = arith.constant 5 : index
    %c0_55 = arith.constant 0 : index
    %c0_56 = arith.constant 0 : index
    %74 = vector.load %arg4[%c0_53, %c5_54, %c0_55, %c0_56] : memref<1x8x8x64xf32, #tpu.memory_space<vmem>>, vector<1x1x8x64xf32>
    %75 = vector.shape_cast %74 : vector<1x1x8x64xf32> to vector<8x64xf32>
    %76 = vector.shape_cast %73 : vector<8x64xf32> to vector<1x1x8x64xf32>
    tpu.vector_store %arg4[%c0_53, %c5_54, %c0_55, %c0_56], %76 {strides = array<i32>} : memref<1x8x8x64xf32, #tpu.memory_space<vmem>>, vector<1x1x8x64xf32>,
    %77 = vector.extract_strided_slice %52 {offsets = [60, 0], sizes = [8, 64], strides = [1, 1]} : vector<80x64xf32> to vector<8x64xf32>
    %c0_57 = arith.constant 0 : index
    %c6_58 = arith.constant 6 : index
    %c0_59 = arith.constant 0 : index
    %c0_60 = arith.constant 0 : index
    %78 = vector.load %arg4[%c0_57, %c6_58, %c0_59, %c0_60] : memref<1x8x8x64xf32, #tpu.memory_space<vmem>>, vector<1x1x8x64xf32>
    %79 = vector.shape_cast %78 : vector<1x1x8x64xf32> to vector<8x64xf32>
    %80 = vector.shape_cast %77 : vector<8x64xf32> to vector<1x1x8x64xf32>
    tpu.vector_store %arg4[%c0_57, %c6_58, %c0_59, %c0_60], %80 {strides = array<i32>} : memref<1x8x8x64xf32, #tpu.memory_space<vmem>>, vector<1x1x8x64xf32>,
    %81 = vector.extract_strided_slice %52 {offsets = [70, 0], sizes = [8, 64], strides = [1, 1]} : vector<80x64xf32> to vector<8x64xf32>
    %c0_61 = arith.constant 0 : index
    %c7_62 = arith.constant 7 : index
    %c0_63 = arith.constant 0 : index
    %c0_64 = arith.constant 0 : index
    %82 = vector.load %arg4[%c0_61, %c7_62, %c0_63, %c0_64] : memref<1x8x8x64xf32, #tpu.memory_space<vmem>>, vector<1x1x8x64xf32>
    %83 = vector.shape_cast %82 : vector<1x1x8x64xf32> to vector<8x64xf32>
    %84 = vector.shape_cast %81 : vector<8x64xf32> to vector<1x1x8x64xf32>
    tpu.vector_store %arg4[%c0_61, %c7_62, %c0_63, %c0_64], %84 {strides = array<i32>} : memref<1x8x8x64xf32, #tpu.memory_space<vmem>>, vector<1x1x8x64xf32>,
    return
  }
  func.func @transform_0(%arg0: i32) -> (i32, i32, i32) {
    %c0_i32 = arith.constant 0 : i32
    %c0_i32_0 = arith.constant 0 : i32
    %c0_i32_1 = arith.constant 0 : i32
    return %arg0, %c0_i32, %c0_i32_0 : i32, i32, i32
  }
  func.func @transform_1(%arg0: i32) -> (i32, i32, i32) {
    %c0_i32 = arith.constant 0 : i32
    %c0_i32_0 = arith.constant 0 : i32
    %c0_i32_1 = arith.constant 0 : i32
    %c0_i32_2 = arith.constant 0 : i32
    return %c0_i32, %c0_i32_0, %c0_i32_1 : i32, i32, i32
  }
  func.func @transform_2(%arg0: i32) -> (i32, i32) {
    %c0_i32 = arith.constant 0 : i32
    %c0_i32_0 = arith.constant 0 : i32
    %c0_i32_1 = arith.constant 0 : i32
    return %c0_i32, %c0_i32_0 : i32, i32
  }
  func.func @transform_3(%arg0: i32) -> (i32, i32, i32, i32) {
    %c0_i32 = arith.constant 0 : i32
    %c0_i32_0 = arith.constant 0 : i32
    %c0_i32_1 = arith.constant 0 : i32
    %c0_i32_2 = arith.constant 0 : i32
    return %arg0, %c0_i32, %c0_i32_0, %c0_i32_1 : i32, i32, i32, i32
  }
}

module attributes {stable_mosaic.version = 11 : i64} {
  func.func @_conv3x3_kernel(%arg0: i32, %arg1: memref<1x102x64xbf16, #tpu.memory_space<vmem>>, %arg2: memref<9x64x64xbf16, #tpu.memory_space<vmem>>, %arg3: memref<1x64xf32, #tpu.memory_space<vmem>>, %arg4: memref<1x8x8x64xf32, #tpu.memory_space<vmem>>) attributes {dimension_semantics = [#tpu.dimension_semantics<parallel>], iteration_bounds = array<i64: 2>, scalar_prefetch = 0 : i64, scratch_operands = 0 : i64, tpu.core_type = #tpu.core_type<tc>, window_params = [{transform_indices = @transform_0, window_bounds = array<i64: 1, 102, 64>}, {pipeline_mode = #tpu.pipeline_mode<synchronous>, transform_indices = @transform_1, window_bounds = array<i64: 9, 64, 64>}, {pipeline_mode = #tpu.pipeline_mode<synchronous>, transform_indices = @transform_2, window_bounds = array<i64: 1, 64>}, {transform_indices = @transform_3, window_bounds = array<i64: 1, 8, 8, 64>}]} {
    %c0 = arith.constant 0 : index
    %c0_0 = arith.constant 0 : index
    %c0_1 = arith.constant 0 : index
    %0 = vector.load %arg1[%c0, %c0_0, %c0_1] : memref<1x102x64xbf16, #tpu.memory_space<vmem>>, vector<1x102x64xbf16>
    %1 = vector.shape_cast %0 : vector<1x102x64xbf16> to vector<102x64xbf16>
    %cst = arith.constant 0.000000e+00 : f32
    %2 = vector.broadcast %cst : f32 to vector<80x64xf32>
    %3 = vector.extract_strided_slice %1 {offsets = [0, 0], sizes = [80, 64], strides = [1, 1]} : vector<102x64xbf16> to vector<80x64xbf16>
    %c0_2 = arith.constant 0 : index
    %c0_3 = arith.constant 0 : index
    %c0_4 = arith.constant 0 : index
    %4 = vector.load %arg2[%c0_2, %c0_3, %c0_4] : memref<9x64x64xbf16, #tpu.memory_space<vmem>>, vector<1x64x64xbf16>
    %5 = vector.shape_cast %4 : vector<1x64x64xbf16> to vector<64x64xbf16>
    %cst_5 = arith.constant dense<0.000000e+00> : vector<80x64xf32>
    %6 = tpu.matmul %3, %5, %cst_5 {dimension_numbers = #tpu.dot_dimension_numbers<[1], [0], [0], [1], [0, 0, 1, 1], [], []>} : vector<80x64xbf16>, vector<64x64xbf16>, vector<80x64xf32> -> vector<80x64xf32>
    %7 = arith.addf %2, %6 : vector<80x64xf32>
    %8 = vector.extract_strided_slice %1 {offsets = [1, 0], sizes = [80, 64], strides = [1, 1]} : vector<102x64xbf16> to vector<80x64xbf16>
    %c1 = arith.constant 1 : index
    %c0_6 = arith.constant 0 : index
    %c0_7 = arith.constant 0 : index
    %9 = vector.load %arg2[%c1, %c0_6, %c0_7] : memref<9x64x64xbf16, #tpu.memory_space<vmem>>, vector<1x64x64xbf16>
    %10 = vector.shape_cast %9 : vector<1x64x64xbf16> to vector<64x64xbf16>
    %cst_8 = arith.constant dense<0.000000e+00> : vector<80x64xf32>
    %11 = tpu.matmul %8, %10, %cst_8 {dimension_numbers = #tpu.dot_dimension_numbers<[1], [0], [0], [1], [0, 0, 1, 1], [], []>} : vector<80x64xbf16>, vector<64x64xbf16>, vector<80x64xf32> -> vector<80x64xf32>
    %12 = arith.addf %7, %11 : vector<80x64xf32>
    %13 = vector.extract_strided_slice %1 {offsets = [2, 0], sizes = [80, 64], strides = [1, 1]} : vector<102x64xbf16> to vector<80x64xbf16>
    %c2 = arith.constant 2 : index
    %c0_9 = arith.constant 0 : index
    %c0_10 = arith.constant 0 : index
    %14 = vector.load %arg2[%c2, %c0_9, %c0_10] : memref<9x64x64xbf16, #tpu.memory_space<vmem>>, vector<1x64x64xbf16>
    %15 = vector.shape_cast %14 : vector<1x64x64xbf16> to vector<64x64xbf16>
    %cst_11 = arith.constant dense<0.000000e+00> : vector<80x64xf32>
    %16 = tpu.matmul %13, %15, %cst_11 {dimension_numbers = #tpu.dot_dimension_numbers<[1], [0], [0], [1], [0, 0, 1, 1], [], []>} : vector<80x64xbf16>, vector<64x64xbf16>, vector<80x64xf32> -> vector<80x64xf32>
    %17 = arith.addf %12, %16 : vector<80x64xf32>
    %18 = vector.extract_strided_slice %1 {offsets = [10, 0], sizes = [80, 64], strides = [1, 1]} : vector<102x64xbf16> to vector<80x64xbf16>
    %c3 = arith.constant 3 : index
    %c0_12 = arith.constant 0 : index
    %c0_13 = arith.constant 0 : index
    %19 = vector.load %arg2[%c3, %c0_12, %c0_13] : memref<9x64x64xbf16, #tpu.memory_space<vmem>>, vector<1x64x64xbf16>
    %20 = vector.shape_cast %19 : vector<1x64x64xbf16> to vector<64x64xbf16>
    %cst_14 = arith.constant dense<0.000000e+00> : vector<80x64xf32>
    %21 = tpu.matmul %18, %20, %cst_14 {dimension_numbers = #tpu.dot_dimension_numbers<[1], [0], [0], [1], [0, 0, 1, 1], [], []>} : vector<80x64xbf16>, vector<64x64xbf16>, vector<80x64xf32> -> vector<80x64xf32>
    %22 = arith.addf %17, %21 : vector<80x64xf32>
    %23 = vector.extract_strided_slice %1 {offsets = [11, 0], sizes = [80, 64], strides = [1, 1]} : vector<102x64xbf16> to vector<80x64xbf16>
    %c4 = arith.constant 4 : index
    %c0_15 = arith.constant 0 : index
    %c0_16 = arith.constant 0 : index
    %24 = vector.load %arg2[%c4, %c0_15, %c0_16] : memref<9x64x64xbf16, #tpu.memory_space<vmem>>, vector<1x64x64xbf16>
    %25 = vector.shape_cast %24 : vector<1x64x64xbf16> to vector<64x64xbf16>
    %cst_17 = arith.constant dense<0.000000e+00> : vector<80x64xf32>
    %26 = tpu.matmul %23, %25, %cst_17 {dimension_numbers = #tpu.dot_dimension_numbers<[1], [0], [0], [1], [0, 0, 1, 1], [], []>} : vector<80x64xbf16>, vector<64x64xbf16>, vector<80x64xf32> -> vector<80x64xf32>
    %27 = arith.addf %22, %26 : vector<80x64xf32>
    %28 = vector.extract_strided_slice %1 {offsets = [12, 0], sizes = [80, 64], strides = [1, 1]} : vector<102x64xbf16> to vector<80x64xbf16>
    %c5 = arith.constant 5 : index
    %c0_18 = arith.constant 0 : index
    %c0_19 = arith.constant 0 : index
    %29 = vector.load %arg2[%c5, %c0_18, %c0_19] : memref<9x64x64xbf16, #tpu.memory_space<vmem>>, vector<1x64x64xbf16>
    %30 = vector.shape_cast %29 : vector<1x64x64xbf16> to vector<64x64xbf16>
    %cst_20 = arith.constant dense<0.000000e+00> : vector<80x64xf32>
    %31 = tpu.matmul %28, %30, %cst_20 {dimension_numbers = #tpu.dot_dimension_numbers<[1], [0], [0], [1], [0, 0, 1, 1], [], []>} : vector<80x64xbf16>, vector<64x64xbf16>, vector<80x64xf32> -> vector<80x64xf32>
    %32 = arith.addf %27, %31 : vector<80x64xf32>
    %33 = vector.extract_strided_slice %1 {offsets = [20, 0], sizes = [80, 64], strides = [1, 1]} : vector<102x64xbf16> to vector<80x64xbf16>
    %c6 = arith.constant 6 : index
    %c0_21 = arith.constant 0 : index
    %c0_22 = arith.constant 0 : index
    %34 = vector.load %arg2[%c6, %c0_21, %c0_22] : memref<9x64x64xbf16, #tpu.memory_space<vmem>>, vector<1x64x64xbf16>
    %35 = vector.shape_cast %34 : vector<1x64x64xbf16> to vector<64x64xbf16>
    %cst_23 = arith.constant dense<0.000000e+00> : vector<80x64xf32>
    %36 = tpu.matmul %33, %35, %cst_23 {dimension_numbers = #tpu.dot_dimension_numbers<[1], [0], [0], [1], [0, 0, 1, 1], [], []>} : vector<80x64xbf16>, vector<64x64xbf16>, vector<80x64xf32> -> vector<80x64xf32>
    %37 = arith.addf %32, %36 : vector<80x64xf32>
    %38 = vector.extract_strided_slice %1 {offsets = [21, 0], sizes = [80, 64], strides = [1, 1]} : vector<102x64xbf16> to vector<80x64xbf16>
    %c7 = arith.constant 7 : index
    %c0_24 = arith.constant 0 : index
    %c0_25 = arith.constant 0 : index
    %39 = vector.load %arg2[%c7, %c0_24, %c0_25] : memref<9x64x64xbf16, #tpu.memory_space<vmem>>, vector<1x64x64xbf16>
    %40 = vector.shape_cast %39 : vector<1x64x64xbf16> to vector<64x64xbf16>
    %cst_26 = arith.constant dense<0.000000e+00> : vector<80x64xf32>
    %41 = tpu.matmul %38, %40, %cst_26 {dimension_numbers = #tpu.dot_dimension_numbers<[1], [0], [0], [1], [0, 0, 1, 1], [], []>} : vector<80x64xbf16>, vector<64x64xbf16>, vector<80x64xf32> -> vector<80x64xf32>
    %42 = arith.addf %37, %41 : vector<80x64xf32>
    %43 = vector.extract_strided_slice %1 {offsets = [22, 0], sizes = [80, 64], strides = [1, 1]} : vector<102x64xbf16> to vector<80x64xbf16>
    %c8 = arith.constant 8 : index
    %c0_27 = arith.constant 0 : index
    %c0_28 = arith.constant 0 : index
    %44 = vector.load %arg2[%c8, %c0_27, %c0_28] : memref<9x64x64xbf16, #tpu.memory_space<vmem>>, vector<1x64x64xbf16>
    %45 = vector.shape_cast %44 : vector<1x64x64xbf16> to vector<64x64xbf16>
    %cst_29 = arith.constant dense<0.000000e+00> : vector<80x64xf32>
    %46 = tpu.matmul %43, %45, %cst_29 {dimension_numbers = #tpu.dot_dimension_numbers<[1], [0], [0], [1], [0, 0, 1, 1], [], []>} : vector<80x64xbf16>, vector<64x64xbf16>, vector<80x64xf32> -> vector<80x64xf32>
    %47 = arith.addf %42, %46 : vector<80x64xf32>
    %c0_30 = arith.constant 0 : index
    %c0_31 = arith.constant 0 : index
    %48 = vector.load %arg3[%c0_30, %c0_31] : memref<1x64xf32, #tpu.memory_space<vmem>>, vector<1x64xf32>
    %49 = vector.broadcast %48 : vector<1x64xf32> to vector<80x64xf32>
    %50 = arith.addf %47, %49 : vector<80x64xf32>
    %cst_32 = arith.constant 0.000000e+00 : f32
    %51 = vector.broadcast %cst_32 : f32 to vector<80x64xf32>
    %52 = arith.maximumf %50, %51 : vector<80x64xf32>
    %53 = vector.extract_strided_slice %52 {offsets = [0, 0], sizes = [8, 64], strides = [1, 1]} : vector<80x64xf32> to vector<8x64xf32>
    %c0_33 = arith.constant 0 : index
    %c0_34 = arith.constant 0 : index
    %c0_35 = arith.constant 0 : index
    %c0_36 = arith.constant 0 : index
    %54 = vector.load %arg4[%c0_33, %c0_34, %c0_35, %c0_36] : memref<1x8x8x64xf32, #tpu.memory_space<vmem>>, vector<1x1x8x64xf32>
    %55 = vector.shape_cast %54 : vector<1x1x8x64xf32> to vector<8x64xf32>
    %56 = vector.shape_cast %53 : vector<8x64xf32> to vector<1x1x8x64xf32>
    tpu.vector_store %arg4[%c0_33, %c0_34, %c0_35, %c0_36], %56 {strides = array<i32>} : memref<1x8x8x64xf32, #tpu.memory_space<vmem>>, vector<1x1x8x64xf32>,
    %57 = vector.extract_strided_slice %52 {offsets = [10, 0], sizes = [8, 64], strides = [1, 1]} : vector<80x64xf32> to vector<8x64xf32>
    %c0_37 = arith.constant 0 : index
    %c1_38 = arith.constant 1 : index
    %c0_39 = arith.constant 0 : index
    %c0_40 = arith.constant 0 : index
    %58 = vector.load %arg4[%c0_37, %c1_38, %c0_39, %c0_40] : memref<1x8x8x64xf32, #tpu.memory_space<vmem>>, vector<1x1x8x64xf32>
    %59 = vector.shape_cast %58 : vector<1x1x8x64xf32> to vector<8x64xf32>
    %60 = vector.shape_cast %57 : vector<8x64xf32> to vector<1x1x8x64xf32>
    tpu.vector_store %arg4[%c0_37, %c1_38, %c0_39, %c0_40], %60 {strides = array<i32>} : memref<1x8x8x64xf32, #tpu.memory_space<vmem>>, vector<1x1x8x64xf32>,
    %61 = vector.extract_strided_slice %52 {offsets = [20, 0], sizes = [8, 64], strides = [1, 1]} : vector<80x64xf32> to vector<8x64xf32>
    %c0_41 = arith.constant 0 : index
    %c2_42 = arith.constant 2 : index
    %c0_43 = arith.constant 0 : index
    %c0_44 = arith.constant 0 : index
    %62 = vector.load %arg4[%c0_41, %c2_42, %c0_43, %c0_44] : memref<1x8x8x64xf32, #tpu.memory_space<vmem>>, vector<1x1x8x64xf32>
    %63 = vector.shape_cast %62 : vector<1x1x8x64xf32> to vector<8x64xf32>
    %64 = vector.shape_cast %61 : vector<8x64xf32> to vector<1x1x8x64xf32>
    tpu.vector_store %arg4[%c0_41, %c2_42, %c0_43, %c0_44], %64 {strides = array<i32>} : memref<1x8x8x64xf32, #tpu.memory_space<vmem>>, vector<1x1x8x64xf32>,
    %65 = vector.extract_strided_slice %52 {offsets = [30, 0], sizes = [8, 64], strides = [1, 1]} : vector<80x64xf32> to vector<8x64xf32>
    %c0_45 = arith.constant 0 : index
    %c3_46 = arith.constant 3 : index
    %c0_47 = arith.constant 0 : index
    %c0_48 = arith.constant 0 : index
    %66 = vector.load %arg4[%c0_45, %c3_46, %c0_47, %c0_48] : memref<1x8x8x64xf32, #tpu.memory_space<vmem>>, vector<1x1x8x64xf32>
    %67 = vector.shape_cast %66 : vector<1x1x8x64xf32> to vector<8x64xf32>
    %68 = vector.shape_cast %65 : vector<8x64xf32> to vector<1x1x8x64xf32>
    tpu.vector_store %arg4[%c0_45, %c3_46, %c0_47, %c0_48], %68 {strides = array<i32>} : memref<1x8x8x64xf32, #tpu.memory_space<vmem>>, vector<1x1x8x64xf32>,
    %69 = vector.extract_strided_slice %52 {offsets = [40, 0], sizes = [8, 64], strides = [1, 1]} : vector<80x64xf32> to vector<8x64xf32>
    %c0_49 = arith.constant 0 : index
    %c4_50 = arith.constant 4 : index
    %c0_51 = arith.constant 0 : index
    %c0_52 = arith.constant 0 : index
    %70 = vector.load %arg4[%c0_49, %c4_50, %c0_51, %c0_52] : memref<1x8x8x64xf32, #tpu.memory_space<vmem>>, vector<1x1x8x64xf32>
    %71 = vector.shape_cast %70 : vector<1x1x8x64xf32> to vector<8x64xf32>
    %72 = vector.shape_cast %69 : vector<8x64xf32> to vector<1x1x8x64xf32>
    tpu.vector_store %arg4[%c0_49, %c4_50, %c0_51, %c0_52], %72 {strides = array<i32>} : memref<1x8x8x64xf32, #tpu.memory_space<vmem>>, vector<1x1x8x64xf32>,
    %73 = vector.extract_strided_slice %52 {offsets = [50, 0], sizes = [8, 64], strides = [1, 1]} : vector<80x64xf32> to vector<8x64xf32>
    %c0_53 = arith.constant 0 : index
    %c5_54 = arith.constant 5 : index
    %c0_55 = arith.constant 0 : index
    %c0_56 = arith.constant 0 : index
    %74 = vector.load %arg4[%c0_53, %c5_54, %c0_55, %c0_56] : memref<1x8x8x64xf32, #tpu.memory_space<vmem>>, vector<1x1x8x64xf32>
    %75 = vector.shape_cast %74 : vector<1x1x8x64xf32> to vector<8x64xf32>
    %76 = vector.shape_cast %73 : vector<8x64xf32> to vector<1x1x8x64xf32>
    tpu.vector_store %arg4[%c0_53, %c5_54, %c0_55, %c0_56], %76 {strides = array<i32>} : memref<1x8x8x64xf32, #tpu.memory_space<vmem>>, vector<1x1x8x64xf32>,
    %77 = vector.extract_strided_slice %52 {offsets = [60, 0], sizes = [8, 64], strides = [1, 1]} : vector<80x64xf32> to vector<8x64xf32>
    %c0_57 = arith.constant 0 : index
    %c6_58 = arith.constant 6 : index
    %c0_59 = arith.constant 0 : index
    %c0_60 = arith.constant 0 : index
    %78 = vector.load %arg4[%c0_57, %c6_58, %c0_59, %c0_60] : memref<1x8x8x64xf32, #tpu.memory_space<vmem>>, vector<1x1x8x64xf32>
    %79 = vector.shape_cast %78 : vector<1x1x8x64xf32> to vector<8x64xf32>
    %80 = vector.shape_cast %77 : vector<8x64xf32> to vector<1x1x8x64xf32>
    tpu.vector_store %arg4[%c0_57, %c6_58, %c0_59, %c0_60], %80 {strides = array<i32>} : memref<1x8x8x64xf32, #tpu.memory_space<vmem>>, vector<1x1x8x64xf32>,
    %81 = vector.extract_strided_slice %52 {offsets = [70, 0], sizes = [8, 64], strides = [1, 1]} : vector<80x64xf32> to vector<8x64xf32>
    %c0_61 = arith.constant 0 : index
    %c7_62 = arith.constant 7 : index
    %c0_63 = arith.constant 0 : index
    %c0_64 = arith.constant 0 : index
    %82 = vector.load %arg4[%c0_61, %c7_62, %c0_63, %c0_64] : memref<1x8x8x64xf32, #tpu.memory_space<vmem>>, vector<1x1x8x64xf32>
    %83 = vector.shape_cast %82 : vector<1x1x8x64xf32> to vector<8x64xf32>
    %84 = vector.shape_cast %81 : vector<8x64xf32> to vector<1x1x8x64xf32>
    tpu.vector_store %arg4[%c0_61, %c7_62, %c0_63, %c0_64], %84 {strides = array<i32>} : memref<1x8x8x64xf32, #tpu.memory_space<vmem>>, vector<1x1x8x64xf32>,
    return
  }
  func.func @transform_0(%arg0: i32) -> (i32, i32, i32) {
    %c0_i32 = arith.constant 0 : i32
    %c0_i32_0 = arith.constant 0 : i32
    %c0_i32_1 = arith.constant 0 : i32
    return %arg0, %c0_i32, %c0_i32_0 : i32, i32, i32
  }
  func.func @transform_1(%arg0: i32) -> (i32, i32, i32) {
    %c0_i32 = arith.constant 0 : i32
    %c0_i32_0 = arith.constant 0 : i32
    %c0_i32_1 = arith.constant 0 : i32
    %c0_i32_2 = arith.constant 0 : i32
    return %c0_i32, %c0_i32_0, %c0_i32_1 : i32, i32, i32
  }
  func.func @transform_2(%arg0: i32) -> (i32, i32) {
    %c0_i32 = arith.constant 0 : i32
    %c0_i32_0 = arith.constant 0 : i32
    %c0_i32_1 = arith.constant 0 : i32
    return %c0_i32, %c0_i32_0 : i32, i32
  }
  func.func @transform_3(%arg0: i32) -> (i32, i32, i32, i32) {
    %c0_i32 = arith.constant 0 : i32
    %c0_i32_0 = arith.constant 0 : i32
    %c0_i32_1 = arith.constant 0 : i32
    %c0_i32_2 = arith.constant 0 : i32
    return %arg0, %c0_i32, %c0_i32_0, %c0_i32_1 : i32, i32, i32, i32
  }
}

module attributes {stable_mosaic.version = 11 : i64} {
  func.func @_maxpool_kernel(%arg0: i32, %arg1: memref<1x4x1024xf32, #tpu.memory_space<vmem>>, %arg2: memref<1x4x256xf32, #tpu.memory_space<vmem>>) attributes {dimension_semantics = [#tpu.dimension_semantics<parallel>], iteration_bounds = array<i64: 2>, scalar_prefetch = 0 : i64, scratch_operands = 0 : i64, tpu.core_type = #tpu.core_type<tc>, window_params = [{transform_indices = @transform_0, window_bounds = array<i64: 1, 4, 1024>}, {transform_indices = @transform_1, window_bounds = array<i64: 1, 4, 256>}]} {
    %c0 = arith.constant 0 : index
    %c0_0 = arith.constant 0 : index
    %c0_1 = arith.constant 0 : index
    %0 = vector.load %arg1[%c0, %c0_0, %c0_1] : memref<1x4x1024xf32, #tpu.memory_space<vmem>>, vector<1x4x1024xf32>
    %1 = vector.shape_cast %0 : vector<1x4x1024xf32> to vector<4x1024xf32>
    %2 = vector.extract_strided_slice %1 {offsets = [0, 0], sizes = [4, 512], strides = [1, 1]} : vector<4x1024xf32> to vector<4x512xf32>
    %3 = vector.extract_strided_slice %1 {offsets = [0, 512], sizes = [4, 512], strides = [1, 1]} : vector<4x1024xf32> to vector<4x512xf32>
    %4 = arith.maximumf %2, %3 : vector<4x512xf32>
    %5 = vector.extract_strided_slice %4 {offsets = [0, 0], sizes = [4, 64], strides = [1, 1]} : vector<4x512xf32> to vector<4x64xf32>
    %6 = vector.extract_strided_slice %4 {offsets = [0, 64], sizes = [4, 64], strides = [1, 1]} : vector<4x512xf32> to vector<4x64xf32>
    %7 = arith.maximumf %5, %6 : vector<4x64xf32>
    %8 = vector.extract_strided_slice %4 {offsets = [0, 128], sizes = [4, 64], strides = [1, 1]} : vector<4x512xf32> to vector<4x64xf32>
    %9 = vector.extract_strided_slice %4 {offsets = [0, 192], sizes = [4, 64], strides = [1, 1]} : vector<4x512xf32> to vector<4x64xf32>
    %10 = arith.maximumf %8, %9 : vector<4x64xf32>
    %11 = vector.extract_strided_slice %4 {offsets = [0, 256], sizes = [4, 64], strides = [1, 1]} : vector<4x512xf32> to vector<4x64xf32>
    %12 = vector.extract_strided_slice %4 {offsets = [0, 320], sizes = [4, 64], strides = [1, 1]} : vector<4x512xf32> to vector<4x64xf32>
    %13 = arith.maximumf %11, %12 : vector<4x64xf32>
    %14 = vector.extract_strided_slice %4 {offsets = [0, 384], sizes = [4, 64], strides = [1, 1]} : vector<4x512xf32> to vector<4x64xf32>
    %15 = vector.extract_strided_slice %4 {offsets = [0, 448], sizes = [4, 64], strides = [1, 1]} : vector<4x512xf32> to vector<4x64xf32>
    %16 = arith.maximumf %14, %15 : vector<4x64xf32>
    %17 = tpu.concatenate %7, %10, %13, %16 in 1 : vector<4x64xf32>, vector<4x64xf32>, vector<4x64xf32>, vector<4x64xf32> -> vector<4x256xf32>
    %c0_2 = arith.constant 0 : index
    %c0_3 = arith.constant 0 : index
    %c0_4 = arith.constant 0 : index
    %18 = vector.load %arg2[%c0_2, %c0_3, %c0_4] : memref<1x4x256xf32, #tpu.memory_space<vmem>>, vector<1x4x256xf32>
    %19 = vector.shape_cast %18 : vector<1x4x256xf32> to vector<4x256xf32>
    %20 = vector.shape_cast %17 : vector<4x256xf32> to vector<1x4x256xf32>
    tpu.vector_store %arg2[%c0_2, %c0_3, %c0_4], %20 {strides = array<i32>} : memref<1x4x256xf32, #tpu.memory_space<vmem>>, vector<1x4x256xf32>,
    return
  }
  func.func @transform_0(%arg0: i32) -> (i32, i32, i32) {
    %c0_i32 = arith.constant 0 : i32
    %c0_i32_0 = arith.constant 0 : i32
    %c0_i32_1 = arith.constant 0 : i32
    return %arg0, %c0_i32, %c0_i32_0 : i32, i32, i32
  }
  func.func @transform_1(%arg0: i32) -> (i32, i32, i32) {
    %c0_i32 = arith.constant 0 : i32
    %c0_i32_0 = arith.constant 0 : i32
    %c0_i32_1 = arith.constant 0 : i32
    return %arg0, %c0_i32, %c0_i32_0 : i32, i32, i32
  }
}

module attributes {stable_mosaic.version = 11 : i64} {
  func.func @_conv3x3_kernel(%arg0: i32, %arg1: memref<1x38x64xbf16, #tpu.memory_space<vmem>>, %arg2: memref<9x64x128xbf16, #tpu.memory_space<vmem>>, %arg3: memref<1x128xf32, #tpu.memory_space<vmem>>, %arg4: memref<1x4x4x128xf32, #tpu.memory_space<vmem>>) attributes {dimension_semantics = [#tpu.dimension_semantics<parallel>], iteration_bounds = array<i64: 2>, scalar_prefetch = 0 : i64, scratch_operands = 0 : i64, tpu.core_type = #tpu.core_type<tc>, window_params = [{transform_indices = @transform_0, window_bounds = array<i64: 1, 38, 64>}, {pipeline_mode = #tpu.pipeline_mode<synchronous>, transform_indices = @transform_1, window_bounds = array<i64: 9, 64, 128>}, {pipeline_mode = #tpu.pipeline_mode<synchronous>, transform_indices = @transform_2, window_bounds = array<i64: 1, 128>}, {transform_indices = @transform_3, window_bounds = array<i64: 1, 4, 4, 128>}]} {
    %c0 = arith.constant 0 : index
    %c0_0 = arith.constant 0 : index
    %c0_1 = arith.constant 0 : index
    %0 = vector.load %arg1[%c0, %c0_0, %c0_1] : memref<1x38x64xbf16, #tpu.memory_space<vmem>>, vector<1x38x64xbf16>
    %1 = vector.shape_cast %0 : vector<1x38x64xbf16> to vector<38x64xbf16>
    %cst = arith.constant 0.000000e+00 : f32
    %2 = vector.broadcast %cst : f32 to vector<24x128xf32>
    %3 = vector.extract_strided_slice %1 {offsets = [0, 0], sizes = [24, 64], strides = [1, 1]} : vector<38x64xbf16> to vector<24x64xbf16>
    %c0_2 = arith.constant 0 : index
    %c0_3 = arith.constant 0 : index
    %c0_4 = arith.constant 0 : index
    %4 = vector.load %arg2[%c0_2, %c0_3, %c0_4] : memref<9x64x128xbf16, #tpu.memory_space<vmem>>, vector<1x64x128xbf16>
    %5 = vector.shape_cast %4 : vector<1x64x128xbf16> to vector<64x128xbf16>
    %cst_5 = arith.constant dense<0.000000e+00> : vector<24x128xf32>
    %6 = tpu.matmul %3, %5, %cst_5 {dimension_numbers = #tpu.dot_dimension_numbers<[1], [0], [0], [1], [0, 0, 1, 1], [], []>} : vector<24x64xbf16>, vector<64x128xbf16>, vector<24x128xf32> -> vector<24x128xf32>
    %7 = arith.addf %2, %6 : vector<24x128xf32>
    %8 = vector.extract_strided_slice %1 {offsets = [1, 0], sizes = [24, 64], strides = [1, 1]} : vector<38x64xbf16> to vector<24x64xbf16>
    %c1 = arith.constant 1 : index
    %c0_6 = arith.constant 0 : index
    %c0_7 = arith.constant 0 : index
    %9 = vector.load %arg2[%c1, %c0_6, %c0_7] : memref<9x64x128xbf16, #tpu.memory_space<vmem>>, vector<1x64x128xbf16>
    %10 = vector.shape_cast %9 : vector<1x64x128xbf16> to vector<64x128xbf16>
    %cst_8 = arith.constant dense<0.000000e+00> : vector<24x128xf32>
    %11 = tpu.matmul %8, %10, %cst_8 {dimension_numbers = #tpu.dot_dimension_numbers<[1], [0], [0], [1], [0, 0, 1, 1], [], []>} : vector<24x64xbf16>, vector<64x128xbf16>, vector<24x128xf32> -> vector<24x128xf32>
    %12 = arith.addf %7, %11 : vector<24x128xf32>
    %13 = vector.extract_strided_slice %1 {offsets = [2, 0], sizes = [24, 64], strides = [1, 1]} : vector<38x64xbf16> to vector<24x64xbf16>
    %c2 = arith.constant 2 : index
    %c0_9 = arith.constant 0 : index
    %c0_10 = arith.constant 0 : index
    %14 = vector.load %arg2[%c2, %c0_9, %c0_10] : memref<9x64x128xbf16, #tpu.memory_space<vmem>>, vector<1x64x128xbf16>
    %15 = vector.shape_cast %14 : vector<1x64x128xbf16> to vector<64x128xbf16>
    %cst_11 = arith.constant dense<0.000000e+00> : vector<24x128xf32>
    %16 = tpu.matmul %13, %15, %cst_11 {dimension_numbers = #tpu.dot_dimension_numbers<[1], [0], [0], [1], [0, 0, 1, 1], [], []>} : vector<24x64xbf16>, vector<64x128xbf16>, vector<24x128xf32> -> vector<24x128xf32>
    %17 = arith.addf %12, %16 : vector<24x128xf32>
    %18 = vector.extract_strided_slice %1 {offsets = [6, 0], sizes = [24, 64], strides = [1, 1]} : vector<38x64xbf16> to vector<24x64xbf16>
    %c3 = arith.constant 3 : index
    %c0_12 = arith.constant 0 : index
    %c0_13 = arith.constant 0 : index
    %19 = vector.load %arg2[%c3, %c0_12, %c0_13] : memref<9x64x128xbf16, #tpu.memory_space<vmem>>, vector<1x64x128xbf16>
    %20 = vector.shape_cast %19 : vector<1x64x128xbf16> to vector<64x128xbf16>
    %cst_14 = arith.constant dense<0.000000e+00> : vector<24x128xf32>
    %21 = tpu.matmul %18, %20, %cst_14 {dimension_numbers = #tpu.dot_dimension_numbers<[1], [0], [0], [1], [0, 0, 1, 1], [], []>} : vector<24x64xbf16>, vector<64x128xbf16>, vector<24x128xf32> -> vector<24x128xf32>
    %22 = arith.addf %17, %21 : vector<24x128xf32>
    %23 = vector.extract_strided_slice %1 {offsets = [7, 0], sizes = [24, 64], strides = [1, 1]} : vector<38x64xbf16> to vector<24x64xbf16>
    %c4 = arith.constant 4 : index
    %c0_15 = arith.constant 0 : index
    %c0_16 = arith.constant 0 : index
    %24 = vector.load %arg2[%c4, %c0_15, %c0_16] : memref<9x64x128xbf16, #tpu.memory_space<vmem>>, vector<1x64x128xbf16>
    %25 = vector.shape_cast %24 : vector<1x64x128xbf16> to vector<64x128xbf16>
    %cst_17 = arith.constant dense<0.000000e+00> : vector<24x128xf32>
    %26 = tpu.matmul %23, %25, %cst_17 {dimension_numbers = #tpu.dot_dimension_numbers<[1], [0], [0], [1], [0, 0, 1, 1], [], []>} : vector<24x64xbf16>, vector<64x128xbf16>, vector<24x128xf32> -> vector<24x128xf32>
    %27 = arith.addf %22, %26 : vector<24x128xf32>
    %28 = vector.extract_strided_slice %1 {offsets = [8, 0], sizes = [24, 64], strides = [1, 1]} : vector<38x64xbf16> to vector<24x64xbf16>
    %c5 = arith.constant 5 : index
    %c0_18 = arith.constant 0 : index
    %c0_19 = arith.constant 0 : index
    %29 = vector.load %arg2[%c5, %c0_18, %c0_19] : memref<9x64x128xbf16, #tpu.memory_space<vmem>>, vector<1x64x128xbf16>
    %30 = vector.shape_cast %29 : vector<1x64x128xbf16> to vector<64x128xbf16>
    %cst_20 = arith.constant dense<0.000000e+00> : vector<24x128xf32>
    %31 = tpu.matmul %28, %30, %cst_20 {dimension_numbers = #tpu.dot_dimension_numbers<[1], [0], [0], [1], [0, 0, 1, 1], [], []>} : vector<24x64xbf16>, vector<64x128xbf16>, vector<24x128xf32> -> vector<24x128xf32>
    %32 = arith.addf %27, %31 : vector<24x128xf32>
    %33 = vector.extract_strided_slice %1 {offsets = [12, 0], sizes = [24, 64], strides = [1, 1]} : vector<38x64xbf16> to vector<24x64xbf16>
    %c6 = arith.constant 6 : index
    %c0_21 = arith.constant 0 : index
    %c0_22 = arith.constant 0 : index
    %34 = vector.load %arg2[%c6, %c0_21, %c0_22] : memref<9x64x128xbf16, #tpu.memory_space<vmem>>, vector<1x64x128xbf16>
    %35 = vector.shape_cast %34 : vector<1x64x128xbf16> to vector<64x128xbf16>
    %cst_23 = arith.constant dense<0.000000e+00> : vector<24x128xf32>
    %36 = tpu.matmul %33, %35, %cst_23 {dimension_numbers = #tpu.dot_dimension_numbers<[1], [0], [0], [1], [0, 0, 1, 1], [], []>} : vector<24x64xbf16>, vector<64x128xbf16>, vector<24x128xf32> -> vector<24x128xf32>
    %37 = arith.addf %32, %36 : vector<24x128xf32>
    %38 = vector.extract_strided_slice %1 {offsets = [13, 0], sizes = [24, 64], strides = [1, 1]} : vector<38x64xbf16> to vector<24x64xbf16>
    %c7 = arith.constant 7 : index
    %c0_24 = arith.constant 0 : index
    %c0_25 = arith.constant 0 : index
    %39 = vector.load %arg2[%c7, %c0_24, %c0_25] : memref<9x64x128xbf16, #tpu.memory_space<vmem>>, vector<1x64x128xbf16>
    %40 = vector.shape_cast %39 : vector<1x64x128xbf16> to vector<64x128xbf16>
    %cst_26 = arith.constant dense<0.000000e+00> : vector<24x128xf32>
    %41 = tpu.matmul %38, %40, %cst_26 {dimension_numbers = #tpu.dot_dimension_numbers<[1], [0], [0], [1], [0, 0, 1, 1], [], []>} : vector<24x64xbf16>, vector<64x128xbf16>, vector<24x128xf32> -> vector<24x128xf32>
    %42 = arith.addf %37, %41 : vector<24x128xf32>
    %43 = vector.extract_strided_slice %1 {offsets = [14, 0], sizes = [24, 64], strides = [1, 1]} : vector<38x64xbf16> to vector<24x64xbf16>
    %c8 = arith.constant 8 : index
    %c0_27 = arith.constant 0 : index
    %c0_28 = arith.constant 0 : index
    %44 = vector.load %arg2[%c8, %c0_27, %c0_28] : memref<9x64x128xbf16, #tpu.memory_space<vmem>>, vector<1x64x128xbf16>
    %45 = vector.shape_cast %44 : vector<1x64x128xbf16> to vector<64x128xbf16>
    %cst_29 = arith.constant dense<0.000000e+00> : vector<24x128xf32>
    %46 = tpu.matmul %43, %45, %cst_29 {dimension_numbers = #tpu.dot_dimension_numbers<[1], [0], [0], [1], [0, 0, 1, 1], [], []>} : vector<24x64xbf16>, vector<64x128xbf16>, vector<24x128xf32> -> vector<24x128xf32>
    %47 = arith.addf %42, %46 : vector<24x128xf32>
    %c0_30 = arith.constant 0 : index
    %c0_31 = arith.constant 0 : index
    %48 = vector.load %arg3[%c0_30, %c0_31] : memref<1x128xf32, #tpu.memory_space<vmem>>, vector<1x128xf32>
    %49 = vector.broadcast %48 : vector<1x128xf32> to vector<24x128xf32>
    %50 = arith.addf %47, %49 : vector<24x128xf32>
    %cst_32 = arith.constant 0.000000e+00 : f32
    %51 = vector.broadcast %cst_32 : f32 to vector<24x128xf32>
    %52 = arith.maximumf %50, %51 : vector<24x128xf32>
    %53 = vector.extract_strided_slice %52 {offsets = [0, 0], sizes = [4, 128], strides = [1, 1]} : vector<24x128xf32> to vector<4x128xf32>
    %c0_33 = arith.constant 0 : index
    %c0_34 = arith.constant 0 : index
    %c0_35 = arith.constant 0 : index
    %c0_36 = arith.constant 0 : index
    %54 = vector.load %arg4[%c0_33, %c0_34, %c0_35, %c0_36] : memref<1x4x4x128xf32, #tpu.memory_space<vmem>>, vector<1x1x4x128xf32>
    %55 = vector.shape_cast %54 : vector<1x1x4x128xf32> to vector<4x128xf32>
    %56 = vector.shape_cast %53 : vector<4x128xf32> to vector<1x1x4x128xf32>
    tpu.vector_store %arg4[%c0_33, %c0_34, %c0_35, %c0_36], %56 {strides = array<i32>} : memref<1x4x4x128xf32, #tpu.memory_space<vmem>>, vector<1x1x4x128xf32>,
    %57 = vector.extract_strided_slice %52 {offsets = [6, 0], sizes = [4, 128], strides = [1, 1]} : vector<24x128xf32> to vector<4x128xf32>
    %c0_37 = arith.constant 0 : index
    %c1_38 = arith.constant 1 : index
    %c0_39 = arith.constant 0 : index
    %c0_40 = arith.constant 0 : index
    %58 = vector.load %arg4[%c0_37, %c1_38, %c0_39, %c0_40] : memref<1x4x4x128xf32, #tpu.memory_space<vmem>>, vector<1x1x4x128xf32>
    %59 = vector.shape_cast %58 : vector<1x1x4x128xf32> to vector<4x128xf32>
    %60 = vector.shape_cast %57 : vector<4x128xf32> to vector<1x1x4x128xf32>
    tpu.vector_store %arg4[%c0_37, %c1_38, %c0_39, %c0_40], %60 {strides = array<i32>} : memref<1x4x4x128xf32, #tpu.memory_space<vmem>>, vector<1x1x4x128xf32>,
    %61 = vector.extract_strided_slice %52 {offsets = [12, 0], sizes = [4, 128], strides = [1, 1]} : vector<24x128xf32> to vector<4x128xf32>
    %c0_41 = arith.constant 0 : index
    %c2_42 = arith.constant 2 : index
    %c0_43 = arith.constant 0 : index
    %c0_44 = arith.constant 0 : index
    %62 = vector.load %arg4[%c0_41, %c2_42, %c0_43, %c0_44] : memref<1x4x4x128xf32, #tpu.memory_space<vmem>>, vector<1x1x4x128xf32>
    %63 = vector.shape_cast %62 : vector<1x1x4x128xf32> to vector<4x128xf32>
    %64 = vector.shape_cast %61 : vector<4x128xf32> to vector<1x1x4x128xf32>
    tpu.vector_store %arg4[%c0_41, %c2_42, %c0_43, %c0_44], %64 {strides = array<i32>} : memref<1x4x4x128xf32, #tpu.memory_space<vmem>>, vector<1x1x4x128xf32>,
    %65 = vector.extract_strided_slice %52 {offsets = [18, 0], sizes = [4, 128], strides = [1, 1]} : vector<24x128xf32> to vector<4x128xf32>
    %c0_45 = arith.constant 0 : index
    %c3_46 = arith.constant 3 : index
    %c0_47 = arith.constant 0 : index
    %c0_48 = arith.constant 0 : index
    %66 = vector.load %arg4[%c0_45, %c3_46, %c0_47, %c0_48] : memref<1x4x4x128xf32, #tpu.memory_space<vmem>>, vector<1x1x4x128xf32>
    %67 = vector.shape_cast %66 : vector<1x1x4x128xf32> to vector<4x128xf32>
    %68 = vector.shape_cast %65 : vector<4x128xf32> to vector<1x1x4x128xf32>
    tpu.vector_store %arg4[%c0_45, %c3_46, %c0_47, %c0_48], %68 {strides = array<i32>} : memref<1x4x4x128xf32, #tpu.memory_space<vmem>>, vector<1x1x4x128xf32>,
    return
  }
  func.func @transform_0(%arg0: i32) -> (i32, i32, i32) {
    %c0_i32 = arith.constant 0 : i32
    %c0_i32_0 = arith.constant 0 : i32
    %c0_i32_1 = arith.constant 0 : i32
    return %arg0, %c0_i32, %c0_i32_0 : i32, i32, i32
  }
  func.func @transform_1(%arg0: i32) -> (i32, i32, i32) {
    %c0_i32 = arith.constant 0 : i32
    %c0_i32_0 = arith.constant 0 : i32
    %c0_i32_1 = arith.constant 0 : i32
    %c0_i32_2 = arith.constant 0 : i32
    return %c0_i32, %c0_i32_0, %c0_i32_1 : i32, i32, i32
  }
  func.func @transform_2(%arg0: i32) -> (i32, i32) {
    %c0_i32 = arith.constant 0 : i32
    %c0_i32_0 = arith.constant 0 : i32
    %c0_i32_1 = arith.constant 0 : i32
    return %c0_i32, %c0_i32_0 : i32, i32
  }
  func.func @transform_3(%arg0: i32) -> (i32, i32, i32, i32) {
    %c0_i32 = arith.constant 0 : i32
    %c0_i32_0 = arith.constant 0 : i32
    %c0_i32_1 = arith.constant 0 : i32
    %c0_i32_2 = arith.constant 0 : i32
    return %arg0, %c0_i32, %c0_i32_0, %c0_i32_1 : i32, i32, i32, i32
  }
}

module attributes {stable_mosaic.version = 11 : i64} {
  func.func @_conv3x3_kernel(%arg0: i32, %arg1: memref<1x38x128xbf16, #tpu.memory_space<vmem>>, %arg2: memref<9x128x128xbf16, #tpu.memory_space<vmem>>, %arg3: memref<1x128xf32, #tpu.memory_space<vmem>>, %arg4: memref<1x4x4x128xf32, #tpu.memory_space<vmem>>) attributes {dimension_semantics = [#tpu.dimension_semantics<parallel>], iteration_bounds = array<i64: 2>, scalar_prefetch = 0 : i64, scratch_operands = 0 : i64, tpu.core_type = #tpu.core_type<tc>, window_params = [{transform_indices = @transform_0, window_bounds = array<i64: 1, 38, 128>}, {pipeline_mode = #tpu.pipeline_mode<synchronous>, transform_indices = @transform_1, window_bounds = array<i64: 9, 128, 128>}, {pipeline_mode = #tpu.pipeline_mode<synchronous>, transform_indices = @transform_2, window_bounds = array<i64: 1, 128>}, {transform_indices = @transform_3, window_bounds = array<i64: 1, 4, 4, 128>}]} {
    %c0 = arith.constant 0 : index
    %c0_0 = arith.constant 0 : index
    %c0_1 = arith.constant 0 : index
    %0 = vector.load %arg1[%c0, %c0_0, %c0_1] : memref<1x38x128xbf16, #tpu.memory_space<vmem>>, vector<1x38x128xbf16>
    %1 = vector.shape_cast %0 : vector<1x38x128xbf16> to vector<38x128xbf16>
    %cst = arith.constant 0.000000e+00 : f32
    %2 = vector.broadcast %cst : f32 to vector<24x128xf32>
    %3 = vector.extract_strided_slice %1 {offsets = [0, 0], sizes = [24, 128], strides = [1, 1]} : vector<38x128xbf16> to vector<24x128xbf16>
    %c0_2 = arith.constant 0 : index
    %c0_3 = arith.constant 0 : index
    %c0_4 = arith.constant 0 : index
    %4 = vector.load %arg2[%c0_2, %c0_3, %c0_4] : memref<9x128x128xbf16, #tpu.memory_space<vmem>>, vector<1x128x128xbf16>
    %5 = vector.shape_cast %4 : vector<1x128x128xbf16> to vector<128x128xbf16>
    %cst_5 = arith.constant dense<0.000000e+00> : vector<24x128xf32>
    %6 = tpu.matmul %3, %5, %cst_5 {dimension_numbers = #tpu.dot_dimension_numbers<[1], [0], [0], [1], [0, 0, 1, 1], [], []>} : vector<24x128xbf16>, vector<128x128xbf16>, vector<24x128xf32> -> vector<24x128xf32>
    %7 = arith.addf %2, %6 : vector<24x128xf32>
    %8 = vector.extract_strided_slice %1 {offsets = [1, 0], sizes = [24, 128], strides = [1, 1]} : vector<38x128xbf16> to vector<24x128xbf16>
    %c1 = arith.constant 1 : index
    %c0_6 = arith.constant 0 : index
    %c0_7 = arith.constant 0 : index
    %9 = vector.load %arg2[%c1, %c0_6, %c0_7] : memref<9x128x128xbf16, #tpu.memory_space<vmem>>, vector<1x128x128xbf16>
    %10 = vector.shape_cast %9 : vector<1x128x128xbf16> to vector<128x128xbf16>
    %cst_8 = arith.constant dense<0.000000e+00> : vector<24x128xf32>
    %11 = tpu.matmul %8, %10, %cst_8 {dimension_numbers = #tpu.dot_dimension_numbers<[1], [0], [0], [1], [0, 0, 1, 1], [], []>} : vector<24x128xbf16>, vector<128x128xbf16>, vector<24x128xf32> -> vector<24x128xf32>
    %12 = arith.addf %7, %11 : vector<24x128xf32>
    %13 = vector.extract_strided_slice %1 {offsets = [2, 0], sizes = [24, 128], strides = [1, 1]} : vector<38x128xbf16> to vector<24x128xbf16>
    %c2 = arith.constant 2 : index
    %c0_9 = arith.constant 0 : index
    %c0_10 = arith.constant 0 : index
    %14 = vector.load %arg2[%c2, %c0_9, %c0_10] : memref<9x128x128xbf16, #tpu.memory_space<vmem>>, vector<1x128x128xbf16>
    %15 = vector.shape_cast %14 : vector<1x128x128xbf16> to vector<128x128xbf16>
    %cst_11 = arith.constant dense<0.000000e+00> : vector<24x128xf32>
    %16 = tpu.matmul %13, %15, %cst_11 {dimension_numbers = #tpu.dot_dimension_numbers<[1], [0], [0], [1], [0, 0, 1, 1], [], []>} : vector<24x128xbf16>, vector<128x128xbf16>, vector<24x128xf32> -> vector<24x128xf32>
    %17 = arith.addf %12, %16 : vector<24x128xf32>
    %18 = vector.extract_strided_slice %1 {offsets = [6, 0], sizes = [24, 128], strides = [1, 1]} : vector<38x128xbf16> to vector<24x128xbf16>
    %c3 = arith.constant 3 : index
    %c0_12 = arith.constant 0 : index
    %c0_13 = arith.constant 0 : index
    %19 = vector.load %arg2[%c3, %c0_12, %c0_13] : memref<9x128x128xbf16, #tpu.memory_space<vmem>>, vector<1x128x128xbf16>
    %20 = vector.shape_cast %19 : vector<1x128x128xbf16> to vector<128x128xbf16>
    %cst_14 = arith.constant dense<0.000000e+00> : vector<24x128xf32>
    %21 = tpu.matmul %18, %20, %cst_14 {dimension_numbers = #tpu.dot_dimension_numbers<[1], [0], [0], [1], [0, 0, 1, 1], [], []>} : vector<24x128xbf16>, vector<128x128xbf16>, vector<24x128xf32> -> vector<24x128xf32>
    %22 = arith.addf %17, %21 : vector<24x128xf32>
    %23 = vector.extract_strided_slice %1 {offsets = [7, 0], sizes = [24, 128], strides = [1, 1]} : vector<38x128xbf16> to vector<24x128xbf16>
    %c4 = arith.constant 4 : index
    %c0_15 = arith.constant 0 : index
    %c0_16 = arith.constant 0 : index
    %24 = vector.load %arg2[%c4, %c0_15, %c0_16] : memref<9x128x128xbf16, #tpu.memory_space<vmem>>, vector<1x128x128xbf16>
    %25 = vector.shape_cast %24 : vector<1x128x128xbf16> to vector<128x128xbf16>
    %cst_17 = arith.constant dense<0.000000e+00> : vector<24x128xf32>
    %26 = tpu.matmul %23, %25, %cst_17 {dimension_numbers = #tpu.dot_dimension_numbers<[1], [0], [0], [1], [0, 0, 1, 1], [], []>} : vector<24x128xbf16>, vector<128x128xbf16>, vector<24x128xf32> -> vector<24x128xf32>
    %27 = arith.addf %22, %26 : vector<24x128xf32>
    %28 = vector.extract_strided_slice %1 {offsets = [8, 0], sizes = [24, 128], strides = [1, 1]} : vector<38x128xbf16> to vector<24x128xbf16>
    %c5 = arith.constant 5 : index
    %c0_18 = arith.constant 0 : index
    %c0_19 = arith.constant 0 : index
    %29 = vector.load %arg2[%c5, %c0_18, %c0_19] : memref<9x128x128xbf16, #tpu.memory_space<vmem>>, vector<1x128x128xbf16>
    %30 = vector.shape_cast %29 : vector<1x128x128xbf16> to vector<128x128xbf16>
    %cst_20 = arith.constant dense<0.000000e+00> : vector<24x128xf32>
    %31 = tpu.matmul %28, %30, %cst_20 {dimension_numbers = #tpu.dot_dimension_numbers<[1], [0], [0], [1], [0, 0, 1, 1], [], []>} : vector<24x128xbf16>, vector<128x128xbf16>, vector<24x128xf32> -> vector<24x128xf32>
    %32 = arith.addf %27, %31 : vector<24x128xf32>
    %33 = vector.extract_strided_slice %1 {offsets = [12, 0], sizes = [24, 128], strides = [1, 1]} : vector<38x128xbf16> to vector<24x128xbf16>
    %c6 = arith.constant 6 : index
    %c0_21 = arith.constant 0 : index
    %c0_22 = arith.constant 0 : index
    %34 = vector.load %arg2[%c6, %c0_21, %c0_22] : memref<9x128x128xbf16, #tpu.memory_space<vmem>>, vector<1x128x128xbf16>
    %35 = vector.shape_cast %34 : vector<1x128x128xbf16> to vector<128x128xbf16>
    %cst_23 = arith.constant dense<0.000000e+00> : vector<24x128xf32>
    %36 = tpu.matmul %33, %35, %cst_23 {dimension_numbers = #tpu.dot_dimension_numbers<[1], [0], [0], [1], [0, 0, 1, 1], [], []>} : vector<24x128xbf16>, vector<128x128xbf16>, vector<24x128xf32> -> vector<24x128xf32>
    %37 = arith.addf %32, %36 : vector<24x128xf32>
    %38 = vector.extract_strided_slice %1 {offsets = [13, 0], sizes = [24, 128], strides = [1, 1]} : vector<38x128xbf16> to vector<24x128xbf16>
    %c7 = arith.constant 7 : index
    %c0_24 = arith.constant 0 : index
    %c0_25 = arith.constant 0 : index
    %39 = vector.load %arg2[%c7, %c0_24, %c0_25] : memref<9x128x128xbf16, #tpu.memory_space<vmem>>, vector<1x128x128xbf16>
    %40 = vector.shape_cast %39 : vector<1x128x128xbf16> to vector<128x128xbf16>
    %cst_26 = arith.constant dense<0.000000e+00> : vector<24x128xf32>
    %41 = tpu.matmul %38, %40, %cst_26 {dimension_numbers = #tpu.dot_dimension_numbers<[1], [0], [0], [1], [0, 0, 1, 1], [], []>} : vector<24x128xbf16>, vector<128x128xbf16>, vector<24x128xf32> -> vector<24x128xf32>
    %42 = arith.addf %37, %41 : vector<24x128xf32>
    %43 = vector.extract_strided_slice %1 {offsets = [14, 0], sizes = [24, 128], strides = [1, 1]} : vector<38x128xbf16> to vector<24x128xbf16>
    %c8 = arith.constant 8 : index
    %c0_27 = arith.constant 0 : index
    %c0_28 = arith.constant 0 : index
    %44 = vector.load %arg2[%c8, %c0_27, %c0_28] : memref<9x128x128xbf16, #tpu.memory_space<vmem>>, vector<1x128x128xbf16>
    %45 = vector.shape_cast %44 : vector<1x128x128xbf16> to vector<128x128xbf16>
    %cst_29 = arith.constant dense<0.000000e+00> : vector<24x128xf32>
    %46 = tpu.matmul %43, %45, %cst_29 {dimension_numbers = #tpu.dot_dimension_numbers<[1], [0], [0], [1], [0, 0, 1, 1], [], []>} : vector<24x128xbf16>, vector<128x128xbf16>, vector<24x128xf32> -> vector<24x128xf32>
    %47 = arith.addf %42, %46 : vector<24x128xf32>
    %c0_30 = arith.constant 0 : index
    %c0_31 = arith.constant 0 : index
    %48 = vector.load %arg3[%c0_30, %c0_31] : memref<1x128xf32, #tpu.memory_space<vmem>>, vector<1x128xf32>
    %49 = vector.broadcast %48 : vector<1x128xf32> to vector<24x128xf32>
    %50 = arith.addf %47, %49 : vector<24x128xf32>
    %cst_32 = arith.constant 0.000000e+00 : f32
    %51 = vector.broadcast %cst_32 : f32 to vector<24x128xf32>
    %52 = arith.maximumf %50, %51 : vector<24x128xf32>
    %53 = vector.extract_strided_slice %52 {offsets = [0, 0], sizes = [4, 128], strides = [1, 1]} : vector<24x128xf32> to vector<4x128xf32>
    %c0_33 = arith.constant 0 : index
    %c0_34 = arith.constant 0 : index
    %c0_35 = arith.constant 0 : index
    %c0_36 = arith.constant 0 : index
    %54 = vector.load %arg4[%c0_33, %c0_34, %c0_35, %c0_36] : memref<1x4x4x128xf32, #tpu.memory_space<vmem>>, vector<1x1x4x128xf32>
    %55 = vector.shape_cast %54 : vector<1x1x4x128xf32> to vector<4x128xf32>
    %56 = vector.shape_cast %53 : vector<4x128xf32> to vector<1x1x4x128xf32>
    tpu.vector_store %arg4[%c0_33, %c0_34, %c0_35, %c0_36], %56 {strides = array<i32>} : memref<1x4x4x128xf32, #tpu.memory_space<vmem>>, vector<1x1x4x128xf32>,
    %57 = vector.extract_strided_slice %52 {offsets = [6, 0], sizes = [4, 128], strides = [1, 1]} : vector<24x128xf32> to vector<4x128xf32>
    %c0_37 = arith.constant 0 : index
    %c1_38 = arith.constant 1 : index
    %c0_39 = arith.constant 0 : index
    %c0_40 = arith.constant 0 : index
    %58 = vector.load %arg4[%c0_37, %c1_38, %c0_39, %c0_40] : memref<1x4x4x128xf32, #tpu.memory_space<vmem>>, vector<1x1x4x128xf32>
    %59 = vector.shape_cast %58 : vector<1x1x4x128xf32> to vector<4x128xf32>
    %60 = vector.shape_cast %57 : vector<4x128xf32> to vector<1x1x4x128xf32>
    tpu.vector_store %arg4[%c0_37, %c1_38, %c0_39, %c0_40], %60 {strides = array<i32>} : memref<1x4x4x128xf32, #tpu.memory_space<vmem>>, vector<1x1x4x128xf32>,
    %61 = vector.extract_strided_slice %52 {offsets = [12, 0], sizes = [4, 128], strides = [1, 1]} : vector<24x128xf32> to vector<4x128xf32>
    %c0_41 = arith.constant 0 : index
    %c2_42 = arith.constant 2 : index
    %c0_43 = arith.constant 0 : index
    %c0_44 = arith.constant 0 : index
    %62 = vector.load %arg4[%c0_41, %c2_42, %c0_43, %c0_44] : memref<1x4x4x128xf32, #tpu.memory_space<vmem>>, vector<1x1x4x128xf32>
    %63 = vector.shape_cast %62 : vector<1x1x4x128xf32> to vector<4x128xf32>
    %64 = vector.shape_cast %61 : vector<4x128xf32> to vector<1x1x4x128xf32>
    tpu.vector_store %arg4[%c0_41, %c2_42, %c0_43, %c0_44], %64 {strides = array<i32>} : memref<1x4x4x128xf32, #tpu.memory_space<vmem>>, vector<1x1x4x128xf32>,
    %65 = vector.extract_strided_slice %52 {offsets = [18, 0], sizes = [4, 128], strides = [1, 1]} : vector<24x128xf32> to vector<4x128xf32>
    %c0_45 = arith.constant 0 : index
    %c3_46 = arith.constant 3 : index
    %c0_47 = arith.constant 0 : index
    %c0_48 = arith.constant 0 : index
    %66 = vector.load %arg4[%c0_45, %c3_46, %c0_47, %c0_48] : memref<1x4x4x128xf32, #tpu.memory_space<vmem>>, vector<1x1x4x128xf32>
    %67 = vector.shape_cast %66 : vector<1x1x4x128xf32> to vector<4x128xf32>
    %68 = vector.shape_cast %65 : vector<4x128xf32> to vector<1x1x4x128xf32>
    tpu.vector_store %arg4[%c0_45, %c3_46, %c0_47, %c0_48], %68 {strides = array<i32>} : memref<1x4x4x128xf32, #tpu.memory_space<vmem>>, vector<1x1x4x128xf32>,
    return
  }
  func.func @transform_0(%arg0: i32) -> (i32, i32, i32) {
    %c0_i32 = arith.constant 0 : i32
    %c0_i32_0 = arith.constant 0 : i32
    %c0_i32_1 = arith.constant 0 : i32
    return %arg0, %c0_i32, %c0_i32_0 : i32, i32, i32
  }
  func.func @transform_1(%arg0: i32) -> (i32, i32, i32) {
    %c0_i32 = arith.constant 0 : i32
    %c0_i32_0 = arith.constant 0 : i32
    %c0_i32_1 = arith.constant 0 : i32
    %c0_i32_2 = arith.constant 0 : i32
    return %c0_i32, %c0_i32_0, %c0_i32_1 : i32, i32, i32
  }
  func.func @transform_2(%arg0: i32) -> (i32, i32) {
    %c0_i32 = arith.constant 0 : i32
    %c0_i32_0 = arith.constant 0 : i32
    %c0_i32_1 = arith.constant 0 : i32
    return %c0_i32, %c0_i32_0 : i32, i32
  }
  func.func @transform_3(%arg0: i32) -> (i32, i32, i32, i32) {
    %c0_i32 = arith.constant 0 : i32
    %c0_i32_0 = arith.constant 0 : i32
    %c0_i32_1 = arith.constant 0 : i32
    %c0_i32_2 = arith.constant 0 : i32
    return %arg0, %c0_i32, %c0_i32_0, %c0_i32_1 : i32, i32, i32, i32
  }
}

module attributes {stable_mosaic.version = 11 : i64} {
  func.func @_maxpool_kernel(%arg0: i32, %arg1: memref<1x2x1024xf32, #tpu.memory_space<vmem>>, %arg2: memref<1x2x256xf32, #tpu.memory_space<vmem>>) attributes {dimension_semantics = [#tpu.dimension_semantics<parallel>], iteration_bounds = array<i64: 2>, scalar_prefetch = 0 : i64, scratch_operands = 0 : i64, tpu.core_type = #tpu.core_type<tc>, window_params = [{transform_indices = @transform_0, window_bounds = array<i64: 1, 2, 1024>}, {transform_indices = @transform_1, window_bounds = array<i64: 1, 2, 256>}]} {
    %c0 = arith.constant 0 : index
    %c0_0 = arith.constant 0 : index
    %c0_1 = arith.constant 0 : index
    %0 = vector.load %arg1[%c0, %c0_0, %c0_1] : memref<1x2x1024xf32, #tpu.memory_space<vmem>>, vector<1x2x1024xf32>
    %1 = vector.shape_cast %0 : vector<1x2x1024xf32> to vector<2x1024xf32>
    %2 = vector.extract_strided_slice %1 {offsets = [0, 0], sizes = [2, 512], strides = [1, 1]} : vector<2x1024xf32> to vector<2x512xf32>
    %3 = vector.extract_strided_slice %1 {offsets = [0, 512], sizes = [2, 512], strides = [1, 1]} : vector<2x1024xf32> to vector<2x512xf32>
    %4 = arith.maximumf %2, %3 : vector<2x512xf32>
    %5 = vector.extract_strided_slice %4 {offsets = [0, 0], sizes = [2, 128], strides = [1, 1]} : vector<2x512xf32> to vector<2x128xf32>
    %6 = vector.extract_strided_slice %4 {offsets = [0, 128], sizes = [2, 128], strides = [1, 1]} : vector<2x512xf32> to vector<2x128xf32>
    %7 = arith.maximumf %5, %6 : vector<2x128xf32>
    %8 = vector.extract_strided_slice %4 {offsets = [0, 256], sizes = [2, 128], strides = [1, 1]} : vector<2x512xf32> to vector<2x128xf32>
    %9 = vector.extract_strided_slice %4 {offsets = [0, 384], sizes = [2, 128], strides = [1, 1]} : vector<2x512xf32> to vector<2x128xf32>
    %10 = arith.maximumf %8, %9 : vector<2x128xf32>
    %11 = tpu.concatenate %7, %10 in 1 : vector<2x128xf32>, vector<2x128xf32> -> vector<2x256xf32>
    %c0_2 = arith.constant 0 : index
    %c0_3 = arith.constant 0 : index
    %c0_4 = arith.constant 0 : index
    %12 = vector.load %arg2[%c0_2, %c0_3, %c0_4] : memref<1x2x256xf32, #tpu.memory_space<vmem>>, vector<1x2x256xf32>
    %13 = vector.shape_cast %12 : vector<1x2x256xf32> to vector<2x256xf32>
    %14 = vector.shape_cast %11 : vector<2x256xf32> to vector<1x2x256xf32>
    tpu.vector_store %arg2[%c0_2, %c0_3, %c0_4], %14 {strides = array<i32>} : memref<1x2x256xf32, #tpu.memory_space<vmem>>, vector<1x2x256xf32>,
    return
  }
  func.func @transform_0(%arg0: i32) -> (i32, i32, i32) {
    %c0_i32 = arith.constant 0 : i32
    %c0_i32_0 = arith.constant 0 : i32
    %c0_i32_1 = arith.constant 0 : i32
    return %arg0, %c0_i32, %c0_i32_0 : i32, i32, i32
  }
  func.func @transform_1(%arg0: i32) -> (i32, i32, i32) {
    %c0_i32 = arith.constant 0 : i32
    %c0_i32_0 = arith.constant 0 : i32
    %c0_i32_1 = arith.constant 0 : i32
    return %arg0, %c0_i32, %c0_i32_0 : i32, i32, i32
  }
}

module attributes {stable_mosaic.version = 11 : i64} {
  func.func @_conv3x3_kernel(%arg0: i32, %arg1: memref<1x18x128xbf16, #tpu.memory_space<vmem>>, %arg2: memref<9x128x256xbf16, #tpu.memory_space<vmem>>, %arg3: memref<1x256xf32, #tpu.memory_space<vmem>>, %arg4: memref<1x2x2x256xf32, #tpu.memory_space<vmem>>) attributes {dimension_semantics = [#tpu.dimension_semantics<parallel>], iteration_bounds = array<i64: 2>, scalar_prefetch = 0 : i64, scratch_operands = 0 : i64, tpu.core_type = #tpu.core_type<tc>, window_params = [{transform_indices = @transform_0, window_bounds = array<i64: 1, 18, 128>}, {pipeline_mode = #tpu.pipeline_mode<synchronous>, transform_indices = @transform_1, window_bounds = array<i64: 9, 128, 256>}, {pipeline_mode = #tpu.pipeline_mode<synchronous>, transform_indices = @transform_2, window_bounds = array<i64: 1, 256>}, {transform_indices = @transform_3, window_bounds = array<i64: 1, 2, 2, 256>}]} {
    %c0 = arith.constant 0 : index
    %c0_0 = arith.constant 0 : index
    %c0_1 = arith.constant 0 : index
    %0 = vector.load %arg1[%c0, %c0_0, %c0_1] : memref<1x18x128xbf16, #tpu.memory_space<vmem>>, vector<1x18x128xbf16>
    %1 = vector.shape_cast %0 : vector<1x18x128xbf16> to vector<18x128xbf16>
    %cst = arith.constant 0.000000e+00 : f32
    %2 = vector.broadcast %cst : f32 to vector<8x256xf32>
    %3 = vector.extract_strided_slice %1 {offsets = [0, 0], sizes = [8, 128], strides = [1, 1]} : vector<18x128xbf16> to vector<8x128xbf16>
    %c0_2 = arith.constant 0 : index
    %c0_3 = arith.constant 0 : index
    %c0_4 = arith.constant 0 : index
    %4 = vector.load %arg2[%c0_2, %c0_3, %c0_4] : memref<9x128x256xbf16, #tpu.memory_space<vmem>>, vector<1x128x256xbf16>
    %5 = vector.shape_cast %4 : vector<1x128x256xbf16> to vector<128x256xbf16>
    %cst_5 = arith.constant dense<0.000000e+00> : vector<8x256xf32>
    %6 = tpu.matmul %3, %5, %cst_5 {dimension_numbers = #tpu.dot_dimension_numbers<[1], [0], [0], [1], [0, 0, 1, 1], [], []>} : vector<8x128xbf16>, vector<128x256xbf16>, vector<8x256xf32> -> vector<8x256xf32>
    %7 = arith.addf %2, %6 : vector<8x256xf32>
    %8 = vector.extract_strided_slice %1 {offsets = [1, 0], sizes = [8, 128], strides = [1, 1]} : vector<18x128xbf16> to vector<8x128xbf16>
    %c1 = arith.constant 1 : index
    %c0_6 = arith.constant 0 : index
    %c0_7 = arith.constant 0 : index
    %9 = vector.load %arg2[%c1, %c0_6, %c0_7] : memref<9x128x256xbf16, #tpu.memory_space<vmem>>, vector<1x128x256xbf16>
    %10 = vector.shape_cast %9 : vector<1x128x256xbf16> to vector<128x256xbf16>
    %cst_8 = arith.constant dense<0.000000e+00> : vector<8x256xf32>
    %11 = tpu.matmul %8, %10, %cst_8 {dimension_numbers = #tpu.dot_dimension_numbers<[1], [0], [0], [1], [0, 0, 1, 1], [], []>} : vector<8x128xbf16>, vector<128x256xbf16>, vector<8x256xf32> -> vector<8x256xf32>
    %12 = arith.addf %7, %11 : vector<8x256xf32>
    %13 = vector.extract_strided_slice %1 {offsets = [2, 0], sizes = [8, 128], strides = [1, 1]} : vector<18x128xbf16> to vector<8x128xbf16>
    %c2 = arith.constant 2 : index
    %c0_9 = arith.constant 0 : index
    %c0_10 = arith.constant 0 : index
    %14 = vector.load %arg2[%c2, %c0_9, %c0_10] : memref<9x128x256xbf16, #tpu.memory_space<vmem>>, vector<1x128x256xbf16>
    %15 = vector.shape_cast %14 : vector<1x128x256xbf16> to vector<128x256xbf16>
    %cst_11 = arith.constant dense<0.000000e+00> : vector<8x256xf32>
    %16 = tpu.matmul %13, %15, %cst_11 {dimension_numbers = #tpu.dot_dimension_numbers<[1], [0], [0], [1], [0, 0, 1, 1], [], []>} : vector<8x128xbf16>, vector<128x256xbf16>, vector<8x256xf32> -> vector<8x256xf32>
    %17 = arith.addf %12, %16 : vector<8x256xf32>
    %18 = vector.extract_strided_slice %1 {offsets = [4, 0], sizes = [8, 128], strides = [1, 1]} : vector<18x128xbf16> to vector<8x128xbf16>
    %c3 = arith.constant 3 : index
    %c0_12 = arith.constant 0 : index
    %c0_13 = arith.constant 0 : index
    %19 = vector.load %arg2[%c3, %c0_12, %c0_13] : memref<9x128x256xbf16, #tpu.memory_space<vmem>>, vector<1x128x256xbf16>
    %20 = vector.shape_cast %19 : vector<1x128x256xbf16> to vector<128x256xbf16>
    %cst_14 = arith.constant dense<0.000000e+00> : vector<8x256xf32>
    %21 = tpu.matmul %18, %20, %cst_14 {dimension_numbers = #tpu.dot_dimension_numbers<[1], [0], [0], [1], [0, 0, 1, 1], [], []>} : vector<8x128xbf16>, vector<128x256xbf16>, vector<8x256xf32> -> vector<8x256xf32>
    %22 = arith.addf %17, %21 : vector<8x256xf32>
    %23 = vector.extract_strided_slice %1 {offsets = [5, 0], sizes = [8, 128], strides = [1, 1]} : vector<18x128xbf16> to vector<8x128xbf16>
    %c4 = arith.constant 4 : index
    %c0_15 = arith.constant 0 : index
    %c0_16 = arith.constant 0 : index
    %24 = vector.load %arg2[%c4, %c0_15, %c0_16] : memref<9x128x256xbf16, #tpu.memory_space<vmem>>, vector<1x128x256xbf16>
    %25 = vector.shape_cast %24 : vector<1x128x256xbf16> to vector<128x256xbf16>
    %cst_17 = arith.constant dense<0.000000e+00> : vector<8x256xf32>
    %26 = tpu.matmul %23, %25, %cst_17 {dimension_numbers = #tpu.dot_dimension_numbers<[1], [0], [0], [1], [0, 0, 1, 1], [], []>} : vector<8x128xbf16>, vector<128x256xbf16>, vector<8x256xf32> -> vector<8x256xf32>
    %27 = arith.addf %22, %26 : vector<8x256xf32>
    %28 = vector.extract_strided_slice %1 {offsets = [6, 0], sizes = [8, 128], strides = [1, 1]} : vector<18x128xbf16> to vector<8x128xbf16>
    %c5 = arith.constant 5 : index
    %c0_18 = arith.constant 0 : index
    %c0_19 = arith.constant 0 : index
    %29 = vector.load %arg2[%c5, %c0_18, %c0_19] : memref<9x128x256xbf16, #tpu.memory_space<vmem>>, vector<1x128x256xbf16>
    %30 = vector.shape_cast %29 : vector<1x128x256xbf16> to vector<128x256xbf16>
    %cst_20 = arith.constant dense<0.000000e+00> : vector<8x256xf32>
    %31 = tpu.matmul %28, %30, %cst_20 {dimension_numbers = #tpu.dot_dimension_numbers<[1], [0], [0], [1], [0, 0, 1, 1], [], []>} : vector<8x128xbf16>, vector<128x256xbf16>, vector<8x256xf32> -> vector<8x256xf32>
    %32 = arith.addf %27, %31 : vector<8x256xf32>
    %33 = vector.extract_strided_slice %1 {offsets = [8, 0], sizes = [8, 128], strides = [1, 1]} : vector<18x128xbf16> to vector<8x128xbf16>
    %c6 = arith.constant 6 : index
    %c0_21 = arith.constant 0 : index
    %c0_22 = arith.constant 0 : index
    %34 = vector.load %arg2[%c6, %c0_21, %c0_22] : memref<9x128x256xbf16, #tpu.memory_space<vmem>>, vector<1x128x256xbf16>
    %35 = vector.shape_cast %34 : vector<1x128x256xbf16> to vector<128x256xbf16>
    %cst_23 = arith.constant dense<0.000000e+00> : vector<8x256xf32>
    %36 = tpu.matmul %33, %35, %cst_23 {dimension_numbers = #tpu.dot_dimension_numbers<[1], [0], [0], [1], [0, 0, 1, 1], [], []>} : vector<8x128xbf16>, vector<128x256xbf16>, vector<8x256xf32> -> vector<8x256xf32>
    %37 = arith.addf %32, %36 : vector<8x256xf32>
    %38 = vector.extract_strided_slice %1 {offsets = [9, 0], sizes = [8, 128], strides = [1, 1]} : vector<18x128xbf16> to vector<8x128xbf16>
    %c7 = arith.constant 7 : index
    %c0_24 = arith.constant 0 : index
    %c0_25 = arith.constant 0 : index
    %39 = vector.load %arg2[%c7, %c0_24, %c0_25] : memref<9x128x256xbf16, #tpu.memory_space<vmem>>, vector<1x128x256xbf16>
    %40 = vector.shape_cast %39 : vector<1x128x256xbf16> to vector<128x256xbf16>
    %cst_26 = arith.constant dense<0.000000e+00> : vector<8x256xf32>
    %41 = tpu.matmul %38, %40, %cst_26 {dimension_numbers = #tpu.dot_dimension_numbers<[1], [0], [0], [1], [0, 0, 1, 1], [], []>} : vector<8x128xbf16>, vector<128x256xbf16>, vector<8x256xf32> -> vector<8x256xf32>
    %42 = arith.addf %37, %41 : vector<8x256xf32>
    %43 = vector.extract_strided_slice %1 {offsets = [10, 0], sizes = [8, 128], strides = [1, 1]} : vector<18x128xbf16> to vector<8x128xbf16>
    %c8 = arith.constant 8 : index
    %c0_27 = arith.constant 0 : index
    %c0_28 = arith.constant 0 : index
    %44 = vector.load %arg2[%c8, %c0_27, %c0_28] : memref<9x128x256xbf16, #tpu.memory_space<vmem>>, vector<1x128x256xbf16>
    %45 = vector.shape_cast %44 : vector<1x128x256xbf16> to vector<128x256xbf16>
    %cst_29 = arith.constant dense<0.000000e+00> : vector<8x256xf32>
    %46 = tpu.matmul %43, %45, %cst_29 {dimension_numbers = #tpu.dot_dimension_numbers<[1], [0], [0], [1], [0, 0, 1, 1], [], []>} : vector<8x128xbf16>, vector<128x256xbf16>, vector<8x256xf32> -> vector<8x256xf32>
    %47 = arith.addf %42, %46 : vector<8x256xf32>
    %c0_30 = arith.constant 0 : index
    %c0_31 = arith.constant 0 : index
    %48 = vector.load %arg3[%c0_30, %c0_31] : memref<1x256xf32, #tpu.memory_space<vmem>>, vector<1x256xf32>
    %49 = vector.broadcast %48 : vector<1x256xf32> to vector<8x256xf32>
    %50 = arith.addf %47, %49 : vector<8x256xf32>
    %cst_32 = arith.constant 0.000000e+00 : f32
    %51 = vector.broadcast %cst_32 : f32 to vector<8x256xf32>
    %52 = arith.maximumf %50, %51 : vector<8x256xf32>
    %53 = vector.extract_strided_slice %52 {offsets = [0, 0], sizes = [2, 256], strides = [1, 1]} : vector<8x256xf32> to vector<2x256xf32>
    %c0_33 = arith.constant 0 : index
    %c0_34 = arith.constant 0 : index
    %c0_35 = arith.constant 0 : index
    %c0_36 = arith.constant 0 : index
    %54 = vector.load %arg4[%c0_33, %c0_34, %c0_35, %c0_36] : memref<1x2x2x256xf32, #tpu.memory_space<vmem>>, vector<1x1x2x256xf32>
    %55 = vector.shape_cast %54 : vector<1x1x2x256xf32> to vector<2x256xf32>
    %56 = vector.shape_cast %53 : vector<2x256xf32> to vector<1x1x2x256xf32>
    tpu.vector_store %arg4[%c0_33, %c0_34, %c0_35, %c0_36], %56 {strides = array<i32>} : memref<1x2x2x256xf32, #tpu.memory_space<vmem>>, vector<1x1x2x256xf32>,
    %57 = vector.extract_strided_slice %52 {offsets = [4, 0], sizes = [2, 256], strides = [1, 1]} : vector<8x256xf32> to vector<2x256xf32>
    %c0_37 = arith.constant 0 : index
    %c1_38 = arith.constant 1 : index
    %c0_39 = arith.constant 0 : index
    %c0_40 = arith.constant 0 : index
    %58 = vector.load %arg4[%c0_37, %c1_38, %c0_39, %c0_40] : memref<1x2x2x256xf32, #tpu.memory_space<vmem>>, vector<1x1x2x256xf32>
    %59 = vector.shape_cast %58 : vector<1x1x2x256xf32> to vector<2x256xf32>
    %60 = vector.shape_cast %57 : vector<2x256xf32> to vector<1x1x2x256xf32>
    tpu.vector_store %arg4[%c0_37, %c1_38, %c0_39, %c0_40], %60 {strides = array<i32>} : memref<1x2x2x256xf32, #tpu.memory_space<vmem>>, vector<1x1x2x256xf32>,
    return
  }
  func.func @transform_0(%arg0: i32) -> (i32, i32, i32) {
    %c0_i32 = arith.constant 0 : i32
    %c0_i32_0 = arith.constant 0 : i32
    %c0_i32_1 = arith.constant 0 : i32
    return %arg0, %c0_i32, %c0_i32_0 : i32, i32, i32
  }
  func.func @transform_1(%arg0: i32) -> (i32, i32, i32) {
    %c0_i32 = arith.constant 0 : i32
    %c0_i32_0 = arith.constant 0 : i32
    %c0_i32_1 = arith.constant 0 : i32
    %c0_i32_2 = arith.constant 0 : i32
    return %c0_i32, %c0_i32_0, %c0_i32_1 : i32, i32, i32
  }
  func.func @transform_2(%arg0: i32) -> (i32, i32) {
    %c0_i32 = arith.constant 0 : i32
    %c0_i32_0 = arith.constant 0 : i32
    %c0_i32_1 = arith.constant 0 : i32
    return %c0_i32, %c0_i32_0 : i32, i32
  }
  func.func @transform_3(%arg0: i32) -> (i32, i32, i32, i32) {
    %c0_i32 = arith.constant 0 : i32
    %c0_i32_0 = arith.constant 0 : i32
    %c0_i32_1 = arith.constant 0 : i32
    %c0_i32_2 = arith.constant 0 : i32
    return %arg0, %c0_i32, %c0_i32_0, %c0_i32_1 : i32, i32, i32, i32
  }
}

module attributes {stable_mosaic.version = 11 : i64} {
  func.func @_matmul_bias_kernel(%arg0: i32, %arg1: memref<2x1024xbf16, #tpu.memory_space<vmem>>, %arg2: memref<1024x512xbf16, #tpu.memory_space<vmem>>, %arg3: memref<1x512xf32, #tpu.memory_space<vmem>>, %arg4: memref<2x512xf32, #tpu.memory_space<vmem>>) attributes {dimension_semantics = [#tpu.dimension_semantics<parallel>], iteration_bounds = array<i64: 1>, scalar_prefetch = 0 : i64, scratch_operands = 0 : i64, tpu.core_type = #tpu.core_type<tc>, window_params = [{transform_indices = @transform_0, window_bounds = array<i64: 2, 1024>}, {pipeline_mode = #tpu.pipeline_mode<synchronous>, transform_indices = @transform_1, window_bounds = array<i64: 1024, 512>}, {pipeline_mode = #tpu.pipeline_mode<synchronous>, transform_indices = @transform_2, window_bounds = array<i64: 1, 512>}, {transform_indices = @transform_3, window_bounds = array<i64: 2, 512>}]} {
    %c0 = arith.constant 0 : index
    %c0_0 = arith.constant 0 : index
    %0 = vector.load %arg1[%c0, %c0_0] : memref<2x1024xbf16, #tpu.memory_space<vmem>>, vector<2x1024xbf16>
    %c0_1 = arith.constant 0 : index
    %c0_2 = arith.constant 0 : index
    %1 = vector.load %arg2[%c0_1, %c0_2] : memref<1024x512xbf16, #tpu.memory_space<vmem>>, vector<1024x512xbf16>
    %cst = arith.constant dense<0.000000e+00> : vector<2x512xf32>
    %2 = tpu.matmul %0, %1, %cst {dimension_numbers = #tpu.dot_dimension_numbers<[1], [0], [0], [1], [0, 0, 1, 1], [], []>} : vector<2x1024xbf16>, vector<1024x512xbf16>, vector<2x512xf32> -> vector<2x512xf32>
    %c0_3 = arith.constant 0 : index
    %c0_4 = arith.constant 0 : index
    %3 = vector.load %arg3[%c0_3, %c0_4] : memref<1x512xf32, #tpu.memory_space<vmem>>, vector<1x512xf32>
    %4 = vector.broadcast %3 : vector<1x512xf32> to vector<2x512xf32>
    %5 = arith.addf %2, %4 : vector<2x512xf32>
    %c0_5 = arith.constant 0 : index
    %c0_6 = arith.constant 0 : index
    %6 = vector.load %arg4[%c0_5, %c0_6] : memref<2x512xf32, #tpu.memory_space<vmem>>, vector<2x512xf32>
    tpu.vector_store %arg4[%c0_5, %c0_6], %5 {strides = array<i32>} : memref<2x512xf32, #tpu.memory_space<vmem>>, vector<2x512xf32>,
    return
  }
  func.func @transform_0(%arg0: i32) -> (i32, i32) {
    %c0_i32 = arith.constant 0 : i32
    %c0_i32_0 = arith.constant 0 : i32
    return %arg0, %c0_i32 : i32, i32
  }
  func.func @transform_1(%arg0: i32) -> (i32, i32) {
    %c0_i32 = arith.constant 0 : i32
    %c0_i32_0 = arith.constant 0 : i32
    %c0_i32_1 = arith.constant 0 : i32
    return %c0_i32, %c0_i32_0 : i32, i32
  }
  func.func @transform_2(%arg0: i32) -> (i32, i32) {
    %c0_i32 = arith.constant 0 : i32
    %c0_i32_0 = arith.constant 0 : i32
    %c0_i32_1 = arith.constant 0 : i32
    return %c0_i32, %c0_i32_0 : i32, i32
  }
  func.func @transform_3(%arg0: i32) -> (i32, i32) {
    %c0_i32 = arith.constant 0 : i32
    %c0_i32_0 = arith.constant 0 : i32
    return %arg0, %c0_i32 : i32, i32
  }
}

module attributes {stable_mosaic.version = 11 : i64} {
  func.func @_matmul_bias_kernel(%arg0: i32, %arg1: memref<2x512xbf16, #tpu.memory_space<vmem>>, %arg2: memref<512x2xbf16, #tpu.memory_space<vmem>>, %arg3: memref<1x2xf32, #tpu.memory_space<vmem>>, %arg4: memref<2x2xf32, #tpu.memory_space<vmem>>) attributes {dimension_semantics = [#tpu.dimension_semantics<parallel>], iteration_bounds = array<i64: 1>, scalar_prefetch = 0 : i64, scratch_operands = 0 : i64, tpu.core_type = #tpu.core_type<tc>, window_params = [{transform_indices = @transform_0, window_bounds = array<i64: 2, 512>}, {pipeline_mode = #tpu.pipeline_mode<synchronous>, transform_indices = @transform_1, window_bounds = array<i64: 512, 2>}, {pipeline_mode = #tpu.pipeline_mode<synchronous>, transform_indices = @transform_2, window_bounds = array<i64: 1, 2>}, {transform_indices = @transform_3, window_bounds = array<i64: 2, 2>}]} {
    %c0 = arith.constant 0 : index
    %c0_0 = arith.constant 0 : index
    %0 = vector.load %arg1[%c0, %c0_0] : memref<2x512xbf16, #tpu.memory_space<vmem>>, vector<2x512xbf16>
    %c0_1 = arith.constant 0 : index
    %c0_2 = arith.constant 0 : index
    %1 = vector.load %arg2[%c0_1, %c0_2] : memref<512x2xbf16, #tpu.memory_space<vmem>>, vector<512x2xbf16>
    %cst = arith.constant dense<0.000000e+00> : vector<2x2xf32>
    %2 = tpu.matmul %0, %1, %cst {dimension_numbers = #tpu.dot_dimension_numbers<[1], [0], [0], [1], [0, 0, 1, 1], [], []>} : vector<2x512xbf16>, vector<512x2xbf16>, vector<2x2xf32> -> vector<2x2xf32>
    %c0_3 = arith.constant 0 : index
    %c0_4 = arith.constant 0 : index
    %3 = vector.load %arg3[%c0_3, %c0_4] : memref<1x2xf32, #tpu.memory_space<vmem>>, vector<1x2xf32>
    %4 = vector.broadcast %3 : vector<1x2xf32> to vector<2x2xf32>
    %5 = arith.addf %2, %4 : vector<2x2xf32>
    %c0_5 = arith.constant 0 : index
    %c0_6 = arith.constant 0 : index
    %6 = vector.load %arg4[%c0_5, %c0_6] : memref<2x2xf32, #tpu.memory_space<vmem>>, vector<2x2xf32>
    tpu.vector_store %arg4[%c0_5, %c0_6], %5 {strides = array<i32>} : memref<2x2xf32, #tpu.memory_space<vmem>>, vector<2x2xf32>,
    return
  }
  func.func @transform_0(%arg0: i32) -> (i32, i32) {
    %c0_i32 = arith.constant 0 : i32
    %c0_i32_0 = arith.constant 0 : i32
    return %arg0, %c0_i32 : i32, i32
  }
  func.func @transform_1(%arg0: i32) -> (i32, i32) {
    %c0_i32 = arith.constant 0 : i32
    %c0_i32_0 = arith.constant 0 : i32
    %c0_i32_1 = arith.constant 0 : i32
    return %c0_i32, %c0_i32_0 : i32, i32
  }
  func.func @transform_2(%arg0: i32) -> (i32, i32) {
    %c0_i32 = arith.constant 0 : i32
    %c0_i32_0 = arith.constant 0 : i32
    %c0_i32_1 = arith.constant 0 : i32
    return %c0_i32, %c0_i32_0 : i32, i32
  }
  func.func @transform_3(%arg0: i32) -> (i32, i32) {
    %c0_i32 = arith.constant 0 : i32
    %c0_i32_0 = arith.constant 0 : i32
    return %arg0, %c0_i32 : i32, i32
  }
}

</mosaic_0001>

<bundles_post_ra>
// kernel: vgg_forward.11
= control target key start
LH: loop header
LB: loop body
LE: loop exit
PB: predicated region body
PF: predicated region fallthrough
CT: control target
= control target key end

     0   :  { %s261_s6 = smov 0   ;;  %s282_s0 = inlined_call_operand.vmem [shape: f32[2,4,1024], index: 0, kind: input, shape index: {}]   ;;  %s283_s1 = inlined_call_operand.vmem [shape: f32[2,4,256], index: 1, kind: output, shape index: {}]  }
   0x1 LB: > { %s220_s7 = sadd.s32 4294967295, %s248_s6   ;;  %p224_p0 = scmp.ge.s32.totalorder %s248_s6, 1  ;;  %s248_s6 = sphi %s261_s6, %s11_s6  }
   0x2   : > { %p87_p1 = scmp.lt.s32.totalorder %s248_s6, 3 }
   0x4   : > { %p88_p2 = pnand %p224_p0, %p87_p1 }
   0x5   : > { %p107_p3 = scmp.lt.s32.totalorder (!%p88_p2), %s220_s7, 1  ;;  %s250_s12 = smov (!%p88_p2), 64  }
   0x6   : > { %91 = sbr.rel (%p88_p2) target bundleno = 278 (0x116), region = 24 }
   0xb   : > { %s285_s7 = smov (!%p107_p3, %s220_s7), 1  ;;  %vm155_vm0 = vcmask 523264   ;;  %vm161_vm1 = vcmask 1043456  }
   0xc   : > { %s231_s8 = sshll.u32 %s285_s7, 5  ;;  %s232_s13 = sshll.u32 %s285_s7, 3 }
   0xd   : > { %s111_s11 = scalar_lea.vmem %s282_s0, %s231_s8  ;;  %s116_s16 = scalar_lea.vmem %s283_s1, %s232_s13 }
   0xe   : > { %v117_v0 = vld [vmem:[%s111_s11] sm:$0xff]  ;;  %v119_v1 = vld [vmem:[%s111_s11 + $0x10] sm:$0xff]  ;;  %v118_v3 = vld [vmem:[%s111_s11 + $0x8] sm:$0xff] }
   0xf   : > { %v121_v2 = vmax.f32 %v117_v0, %v119_v1  ;;  %v120_v4 = vld [vmem:[%s111_s11 + $0x18] sm:$0xff] }
  0x10   : > { %v122_v5 = vmax.f32 %v118_v3, %v120_v4 }
  0x11   : > { %124 = vrot.lane.b32.xlu0 %v121_v2, %s250_s12  ;;  %v128_v6 = vrot.slane %v121_v2, 4 }
  0x12   : > { %v138_v10 = vrot.slane %v122_v5, 4 }
  0x19   : > { %134 = vrot.lane.b32.xlu0 %v122_v5, %s250_s12 }
  0x83   : > { %v125_v7 = vpop.permute.xlu0 %124 }
  0x84   : > { %v130_v8 = vrot.slane %v125_v7, 4  ;;  %v127_v19 = vmax.f32 %v121_v2, %v125_v7 }
  0x86   : > { %v132_v9 = vmax.f32 %v128_v6, %v130_v8 }
  0x88   : > { %144 = vst [vmem:[#allocation1] ss:$2 sm:$0xff] %v132_v9 }
  0x8b   : > { %v135_v11 = vpop.permute.xlu0 %134 }
  0x8c   : > { %v140_v12 = vrot.slane %v135_v11, 4  ;;  %v137_v17 = vmax.f32 %v122_v5, %v135_v11 }
  0x8e   : > { %v142_v13 = vmax.f32 %v138_v10, %v140_v12 }
  0x8f   : > { %v145_v14 = vld.sshfl [vmem:[#allocation1] sm:$0xff pattern:$0x75316420] }
  0x90   : > { %150 = vst [vmem:[#allocation1] ss:$2 sm:$0xff] %v142_v13 }
  0x97   : > { %v151_v15 = vld.sshfl [vmem:[#allocation1] sm:$0xff pattern:$0x75316420] }
  0x98   : > { %152 = vrot.lane.b32.xlu1 %v151_v15, %s250_s12 }
  0xa0   : > { %146 = vrot.lane.b32.xlu1 %v145_v14, %s250_s12 }
 0x10a   : > { %v153_v16 = vpop.permute.xlu1 %152 }
 0x10b   : > { %v157_v18 = vsel %vm155_vm0, %v137_v17, %v153_v16 }
 0x10c   : > { %v160_v20 = vrot.slane %v157_v18, 4 }
 0x112   : > { %v147_v21 = vpop.permute.xlu1 %146 }
 0x113   : > { %v156_v22 = vsel %vm155_vm0, %v127_v19, %v147_v21 }
 0x114   : > { %v162_v23 = vsel %vm161_vm1, %v156_v22, %v160_v20 }
 0x115   : > { %164 = vst [vmem:[%s116_s16] sm:$0xff] %v162_v23 }
 0x116 PF: > { %s11_s6 = sadd.s32 1, %s248_s6  }
 0x117   : > { %p8_p4 = scmp.ge.s32.totalorder %s11_s6, 4  }
 0x119   :  { %10 = sbr.rel (!%p8_p4) target bundleno = 1 (0x1), region = 54 }

// kernel: vgg_forward.9
= control target key start
LH: loop header
LB: loop body
LE: loop exit
PB: predicated region body
PF: predicated region fallthrough
CT: control target
= control target key end

     0   :  { %s1250_s12 = smov 0   ;;  %s1616_s0 = inlined_call_operand.vmem [shape: bf16[2,102,8], index: 0, kind: input, shape index: {}]   ;;  %s1617_s1 = inlined_call_operand.vmem [shape: bf16[9,8,64], index: 1, kind: input, shape index: {}]   ;;  %s1618_s2 = inlined_call_operand.vmem [shape: f32[1,64], index: 2, kind: input, shape index: {}]   ;;  %s1619_s3 = inlined_call_operand.vmem [shape: f32[2,8,8,64], index: 3, kind: output, shape index: {}]  }
   0x1 LB: > { %s1075_s13 = sadd.s32 4294967295, %s1228_s12   ;;  %p1079_p0 = scmp.ge.s32.totalorder %s1228_s12, 1  ;;  %s1228_s12 = sphi %s1250_s12, %s13_s12  }
   0x2   : > { %p137_p1 = scmp.lt.s32.totalorder %s1228_s12, 3 }
   0x4   : > { %p138_p2 = pnand %p1079_p0, %p137_p1 }
   0x5   : > { %p161_p3 = scmp.lt.s32.totalorder (!%p138_p2), %s1075_s13, 1 }
   0x6   : > { %141 = sbr.rel (%p138_p2) target bundleno = 351 (0x15f), region = 32 }
   0xb   : > { %v1083_v0 = vld [vmem:[%s1617_s1 + $0x4] sm:$0xf]  ;;  %vm277_vm0 = vcmask 1043456   ;;  %v1094_v2 = vld [vmem:[%s1617_s1 + $0x8] sm:$0xf]  ;;  %s1621_s13 = smov (!%p161_p3, %s1075_s13), 1 }
   0xc   : > { %v279_v1 = vsel %vm277_vm0, %v1083_v0, 0  ;;  %v185_v3 = vld [vmem:[%s1617_s1] sm:$0xf]  ;;  %v392_v4 = vsel %vm277_vm0, %v1094_v2, 0  ;;  %v1100_v6 = vld [vmem:[%s1617_s1 + $0xc] sm:$0xf] }
   0xd   : > { %1209 = vmatpush.bf16.msra.mxu1 %v279_v1  ;;  %1210 = vmatpush.bf16.msra.mxu2 %v279_v1  ;;  %v326_v5 = vsel %vm277_vm0, %v185_v3, 0  ;;  %v475_v7 = vsel %vm277_vm0, %v1100_v6, 0  ;;  %v1106_v8 = vld [vmem:[%s1617_s1 + $0x10] sm:$0xf]  ;;  %s1212_s24 = smul.u32 52, %s1621_s13  ;;  %vm261_vm2 = vcmask 64512  }
   0xe   : > { %1211 = vmatpush.bf16.msra.mxu3 %v279_v1  ;;  %288 = vmatpush.bf16.msra.mxu0 %v279_v1  ;;  %v593_v9 = vsel %vm277_vm0, %v1106_v8, 0  ;;  %vm216_vm1 = vsmask.f32 7424  ;;  %v1118_v39 = vld [vmem:[%s1617_s1 + $0x18] sm:$0xf]  ;;  %vm364_vm3 = vcmask 1046528  }
   0xf   : > { %s1284_s27 = scalar_lea.vmem %s1616_s0, %s1212_s24  ;;  %v748_v40 = vsel %vm277_vm0, %v1118_v39, 0  ;;  %v1124_v43 = vld [vmem:[%s1617_s1 + $0x1c] sm:$0xf]  ;;  %v1112_v44 = vld [vmem:[%s1617_s1 + $0x14] sm:$0xf]  ;;  %vm641_vm5 = vcmask 1045504  }
  0x10   : > { %v1287_v10 = vld [vmem:[%s1284_s27 + $0x8] sm:$0xff]   ;;  %v1290_v11 = vld [vmem:[%s1284_s27 + $0x10] sm:$0xff]   ;;  %v1293_v12 = vld [vmem:[%s1284_s27 + $0x18] sm:$0xff]   ;;  %v846_v49 = vsel %vm277_vm0, %v1124_v43, 0  ;;  %v669_v52 = vsel %vm277_vm0, %v1112_v44, 0  ;;  %vm894_vm7 = vcmask 1044480  }
  0x11   : > { %401 = vmatpush.bf16.msrb.mxu2 %v392_v4  ;;  %335 = vmatpush.bf16.msrb.mxu1 %v326_v5  ;;  %v225_v13 = vshll.u32 %v1287_v10, 16  ;;  %v229_v14 = vshrl.u32 %v1287_v10, 16  ;;  %v233_v15 = vshll.u32 %v1290_v11, 16  ;;  %v237_v16 = vshrl.u32 %v1290_v11, 16  ;;  %v1300_v17 = vld [vmem:[%s1284_s27 + $0x20] sm:$0xff]   ;;  %v1303_v18 = vld [vmem:[%s1284_s27 + $0x28] sm:$0xff]  }
  0x12   : > { %484 = vmatpush.bf16.msrb.mxu3 %v475_v7  ;;  %602 = vmatpush.bf16.msrb.mxu0 %v593_v9  ;;  %v241_v19 = vshll.u32 %v1293_v12, 16  ;;  %v1307_v20 = vunpack.c.l.b16 %v1303_v18  ;;  %v249_v21 = vshll.u32 %v1300_v17, 16  ;;  %v1315_v24 = vld [vmem:[%s1284_s27] sm:$0xff]   ;;  %v253_v30 = vshrl.u32 %v1300_v17, 16  ;;  %v1359_v48 = vld [vmem:[%s1284_s27 + $0xc] sm:$0xff]   ;;  %v1382_v5 = vld [vmem:[%s1284_s27 + $0x14] sm:$0xff]  }
  0x13   : > { %v227_v22 = vrot.slane %v225_v13, 1  ;;  %v235_v23 = vrot.slane %v233_v15, 1  ;;  %v218_v32 = vshrl.u32 %v1315_v24, 16  ;;  %v220_v33 = vshll.u32 %v1315_v24, 16  ;;  %v1352_v45 = vld [vmem:[%s1284_s27 + $0x4] sm:$0xff]   ;;  %s1151_s11 = sshll.u32 %s1621_s13, 6 }
  0x14   : > { %v243_v25 = vrot.slane %v241_v19, 1  ;;  %v1321_v26 = vpack.c.b16 %v1307_v20, %v1307_v20  ;;  %v251_v27 = vrot.slane %v249_v21, 1  ;;  %v1130_v46 = vld [vmem:[%s1617_s1 + $0x20] sm:$0xf]  ;;  %v245_v50 = vshrl.u32 %v1293_v12, 16  ;;  %s1566_s16 = scalar_lea.vmem %s1619_s3, %s1151_s11 }
  0x15   : > { %v231_v28 = vor.u32 %v229_v14, %v227_v22  ;;  %v239_v29 = vor.u32 %v237_v16, %v235_v23  ;;  %v222_v38 = vrot.slane %v220_v33, 1  ;;  %v525_v51 = vshrl.u32 %v1352_v45, 16 }
  0x16   : > { %v257_v31 = vshll.u32 %v1321_v26, 16  ;;  %v255_v36 = vor.u32 %v253_v30, %v251_v27  ;;  %v528_v53 = vshll.u32 %v1352_v45, 16  ;;  %v533_v54 = vshrl.u32 %v1359_v48, 16 }
  0x17   : > { %v236_v34 = vsel %vm216_vm1, %v231_v28, %v235_v23  ;;  %v244_v35 = vsel %vm216_vm1, %v239_v29, %v243_v25  ;;  %v223_v42 = vor.u32 %v222_v38, %v218_v32  ;;  %v536_v55 = vshll.u32 %v1359_v48, 16 }
  0x18   : > { %1085 = vmatmul.msk.bf16.vlgmr.msra.gmra.mxu1 %vm261_vm2, %v236_v34  ;;  %1086 = vmatmul.msk.bf16.vlgmr.msra.gmra.mxu2 %vm261_vm2, %v244_v35  ;;  %v259_v37 = vrot.slane %v257_v31, 1  ;;  %v922_v56 = vsel %vm277_vm0, %v1130_v46, 0  ;;  %v247_v57 = vor.u32 %v245_v50, %v243_v25  ;;  %v527_v58 = vrot.slane %v525_v51, 1 }
  0x19   : > { %757 = vmatpush.bf16.msra.mxu2 %v748_v40  ;;  %v228_v47 = vsel %vm216_vm1, %v223_v42, %v227_v22  ;;  %678 = vmatpush.bf16.msra.mxu1 %v669_v52  ;;  %v530_v59 = vrot.slane %v528_v53, 2  ;;  %v535_v60 = vrot.slane %v533_v54, 1  ;;  %v538_v61 = vrot.slane %v536_v55, 2 }
  0x1a   : > { %v260_v41 = vsel %vm216_vm1, %v255_v36, %v259_v37  ;;  %1084 = vmatmul.msk.bf16.vlgmr.msra.gmra.mxu0 %vm261_vm2, %v228_v47  ;;  %v448_v62 = vrot.slane %v1352_v45, 1  ;;  %v449_v63 = vrot.slane %v1359_v48, 1  ;;  %v252_v0 = vsel %vm216_vm1, %v247_v57, %v251_v27 }
  0x1b   : > { %1088 = vmatmul.msk.bf16.vlgmr.msra.gmra.mxu3 %vm261_vm2, %v260_v41  ;;  %931 = vmatpush.bf16.msra.mxu0 %v922_v56  ;;  %v531_v1 = vor.u32 %v530_v59, %v527_v58  ;;  %v539_v2 = vor.u32 %v538_v61, %v535_v60  ;;  %vm523_vm4 = vsmask.f32 6400  ;;  %v542_v6 = vshrl.u32 %v1382_v5, 16 }
  0x1c   : > { %855 = vmatpush.bf16.msra.mxu3 %v846_v49  ;;  %v450_v3 = vsel %vm364_vm3, %v448_v62, %v449_v63  ;;  %v545_v7 = vshll.u32 %v1382_v5, 16  ;;  %v365_v8 = vrot.slane %v1315_v24, 1  ;;  %v366_v9 = vrot.slane %v1287_v10, 1 }
  0x1d   : > { %v540_v4 = vsel %vm523_vm4, %v531_v1, %v539_v2  ;;  %v544_v22 = vrot.slane %v542_v6, 1  ;;  %v451_v25 = vrot.slane %v1382_v5, 1  ;;  %v368_v34 = vrot.slane %v1290_v11, 1 }
  0x1e   : > { %v547_v23 = vrot.slane %v545_v7, 2  ;;  %v367_v27 = vsel %vm364_vm3, %v365_v8, %v366_v9  ;;  %v1171_v40 = vunpack.c.h.b16 %v1300_v17  ;;  %v372_v43 = vrot.slane %v1300_v17, 1 }
  0x1f   : > { %v452_v29 = vsel %vm364_vm3, %v449_v63, %v451_v25  ;;  %v369_v38 = vsel %vm364_vm3, %v366_v9, %v368_v34  ;;  %v374_v44 = vrot.slane %v1321_v26, 1  ;;  %v370_v52 = vrot.slane %v1293_v12, 1 }
  0x20   : > { %v548_v28 = vor.u32 %v547_v23, %v544_v22  ;;  %v1416_v46 = vpack.c.b16 %v1307_v20, %v1171_v40  ;;  %v801_v55 = vrot.slane %v233_v15, 3  ;;  %v800_v26 = vrot.slane %v237_v16, 2 }
  0x21   : > { %v375_v47 = vsel %vm364_vm3, %v372_v43, %v374_v44  ;;  %v371_v56 = vsel %vm364_vm3, %v368_v34, %v370_v52  ;;  %v642_v57 = vrot.slane %v1352_v45, 2  ;;  %v643_v58 = vrot.slane %v1359_v48, 2 }
  0x22   : > { %v549_v31 = vsel %vm523_vm4, %v539_v2, %v548_v28  ;;  %v560_v49 = vshrl.u32 %v1416_v46, 16  ;;  %v563_v51 = vshll.u32 %v1416_v46, 16  ;;  %v455_v20 = vrot.slane %v1416_v46, 1 }
  0x23   : > { %v797_v59 = vrot.slane %v229_v14, 2  ;;  %v644_v61 = vsel %vm641_vm5, %v642_v57, %v643_v58  ;;  %v1175_v16 = vunpack.c.h.b16 %v1303_v18  ;;  %v798_v45 = vrot.slane %v225_v13, 3 }
  0x24   : > { %v562_v53 = vrot.slane %v560_v49, 1  ;;  %v565_v54 = vrot.slane %v563_v51, 2  ;;  %v802_v48 = vor.u32 %v801_v55, %v800_v26  ;;  %vm796_vm6 = vsmask.f32 5376  ;;  %v184_v55 = vld [vmem:[%s1284_s27 + $0x30] sm:$0x7] }
  0x25   : > { %v799_v62 = vor.u32 %v798_v45, %v797_v59  ;;  %v645_v63 = vrot.slane %v1382_v5, 2  ;;  %v373_v8 = vsel %vm364_vm3, %v370_v52, %v372_v43  ;;  %v895_v23 = vrot.slane %v1287_v10, 3 }
  0x26   : > { %v566_v60 = vor.u32 %v565_v54, %v562_v53  ;;  %v816_v44 = vshll.u32 %v1303_v18, 16  ;;  %v649_v53 = vrot.slane %v1416_v46, 2  ;;  %v726_v54 = vrot.slane %v1300_v17, 2 }
  0x27   : > { %v803_v1 = vsel %vm796_vm6, %v799_v62, %v802_v48  ;;  %v646_v2 = vsel %vm641_vm5, %v643_v58, %v645_v63  ;;  %v718_v57 = vunpack.c.l.b16 %v184_v55  ;;  %vm992_vm8 = vcmask 523264  }
  0x28   : > { %1087 = vmatmul.msk.bf16.gmra.mxu2 %vm261_vm2, %v252_v0  ;;  %1089 = vmatmul.msk.bf16.vlgmr.msrb.gmra.mxu1 %vm261_vm2, %v1315_v24  ;;  %v1398_v24 = vld [vmem:[%s1284_s27 + $0x1c] sm:$0xff]   ;;  %v1444_v0 = vpack.c.b16 %v1175_v16, %v1175_v16  ;;  %v818_v52 = vrot.slane %v816_v44, 3  ;;  %v902_v16 = vrot.slane %v1303_v18, 3  ;;  %vm995_vm9 = vcmask 523266  }
  0x29   : > { %v551_v32 = vshrl.u32 %v1398_v24, 16  ;;  %v554_v33 = vshll.u32 %v1398_v24, 16  ;;  %v453_v37 = vrot.slane %v1398_v24, 1  ;;  %v720_v46 = vpack.c.b16 %v718_v57, %v718_v57 }
  0x2a   : > { %1107 = vmatmul.msk.bf16.vlgmr.msrb.gmra.mxu0 %vm261_vm2, %v540_v4  ;;  %v572_v13 = vshll.u32 %v1444_v0, 16  ;;  %v457_v7 = vrot.slane %v1444_v0, 1  ;;  %vm997_vm10 = vcmask 517120   ;;  %vm1000_vm11 = vcmask 523268  }
  0x2b   : > { %1101 = vmatmul.msk.bf16.vlgmr.msrb.gmra.mxu3 %vm261_vm2, %v450_v3  ;;  %v553_v35 = vrot.slane %v551_v32, 1  ;;  %v556_v36 = vrot.slane %v554_v33, 2  ;;  %v454_v41 = vsel %vm364_vm3, %v451_v25, %v453_v37  ;;  %v456_v15 = vsel %vm364_vm3, %v453_v37, %v455_v20 }
  0x2c   : > { %v569_v3 = vshrl.u32 %v1444_v0, 16  ;;  %v574_v6 = vrot.slane %v572_v13, 2  ;;  %v458_v5 = vsel %vm364_vm3, %v455_v20, %v457_v7  ;;  %v896_v25 = vrot.slane %v1290_v11, 3 }
  0x2d   : > { %v557_v39 = vor.u32 %v556_v36, %v553_v35  ;;  %v722_v32 = vrot.slane %v1290_v11, 2  ;;  %v898_v35 = vrot.slane %v1293_v12, 3  ;;  %v724_v37 = vrot.slane %v1293_v12, 2 }
  0x2e   : > { %v571_v4 = vrot.slane %v569_v3, 1  ;;  %v822_v62 = vshrl.u32 %v720_v46, 16  ;;  %v728_v7 = vrot.slane %v1303_v18, 2  ;;  %vm1002_vm12 = vcmask 519168  }
  0x2f   : > { %v558_v42 = vsel %vm523_vm4, %v548_v28, %v557_v39  ;;  %v567_v14 = vsel %vm523_vm4, %v557_v39, %v566_v60  ;;  %v804_v28 = vrot.slane %v245_v50, 2  ;;  %v899_v50 = vsel %vm894_vm7, %v896_v25, %v898_v35 }
  0x30   : > { %v575_v9 = vor.u32 %v574_v6, %v571_v4  ;;  %v824_v13 = vrot.slane %v822_v62, 2  ;;  %v651_v6 = vrot.slane %v1444_v0, 2  ;;  %vm1005_vm13 = vcmask 523270  }
  0x31   : > { %vm1007_vm14 = vcmask 521216  }
  0x32   : > { %v576_v22 = vsel %vm523_vm4, %v566_v60, %v575_v9  ;;  %v727_v60 = vsel %vm641_vm5, %v724_v37, %v726_v54 }
  0x38   : > { %1090 = vmatmul.msk.bf16.gmra.mxu1 %vm261_vm2, %v1287_v10  ;;  %1095 = vmatmul.msk.bf16.vlgmr.msrb.gmra.mxu2 %vm261_vm2, %v367_v27  ;;  %v897_v27 = vsel %vm894_vm7, %v895_v23, %v896_v25  ;;  %v652_v23 = vsel %vm641_vm5, %v649_v53, %v651_v6  ;;  %v729_v25 = vsel %vm641_vm5, %v726_v54, %v728_v7 }
  0x3a   : > { %1108 = vmatmul.msk.bf16.gmra.mxu0 %vm261_vm2, %v549_v31  ;;  %v721_v31 = vrot.slane %v1287_v10, 2  ;;  %v808_v10 = vrot.slane %v253_v30, 2 }
  0x3b   : > { %1102 = vmatmul.msk.bf16.gmra.mxu3 %vm261_vm2, %v452_v29  ;;  %v805_v29 = vrot.slane %v241_v19, 3  ;;  %v647_v19 = vrot.slane %v1398_v24, 2 }
  0x3c   : > { %v723_v34 = vsel %vm641_vm5, %v721_v31, %v722_v32 }
  0x3d   : > { %v806_v33 = vor.u32 %v805_v29, %v804_v28  ;;  %v648_v40 = vsel %vm641_vm5, %v645_v63, %v647_v19  ;;  %v650_v59 = vsel %vm641_vm5, %v647_v19, %v649_v53  ;;  %v825_v63 = vshll.u32 %v720_v46, 16 }
  0x3e   : > { %v904_v29 = vrot.slane %v720_v46, 3 }
  0x3f   : > { %v807_v36 = vsel %vm796_vm6, %v802_v48, %v806_v33  ;;  %v827_v4 = vrot.slane %v825_v63, 3 }
  0x48   : > { %1091 = vmatmul.msk.bf16.gmra.mxu1 %vm261_vm2, %v1290_v11  ;;  %1096 = vmatmul.msk.bf16.gmra.mxu2 %vm261_vm2, %v369_v38  ;;  %v809_v11 = vrot.slane %v249_v21, 3 }
  0x4a   : > { %1109 = vmatmul.msk.bf16.gmra.mxu0 %vm261_vm2, %v558_v42  ;;  %v810_v38 = vor.u32 %v809_v11, %v808_v10  ;;  %v900_v42 = vrot.slane %v1300_v17, 3  ;;  %v730_v11 = vrot.slane %v720_v46, 2 }
  0x4b   : > { %1103 = vmatmul.msk.bf16.gmra.mxu3 %vm261_vm2, %v454_v41  ;;  %v725_v41 = vsel %vm641_vm5, %v722_v32, %v724_v37 }
  0x4c   : > { %v811_v30 = vsel %vm796_vm6, %v806_v33, %v810_v38  ;;  %v901_v24 = vsel %vm894_vm7, %v898_v35, %v900_v42  ;;  %v903_v48 = vsel %vm894_vm7, %v900_v42, %v902_v16 }
  0x58   : > { %1092 = vmatmul.msk.bf16.gmra.mxu1 %vm261_vm2, %v1293_v12  ;;  %1097 = vmatmul.msk.bf16.gmra.mxu2 %vm261_vm2, %v371_v56  ;;  %v813_v12 = vshrl.u32 %v1303_v18, 16  ;;  %v905_v18 = vsel %vm894_vm7, %v902_v16, %v904_v29 }
  0x5a   : > { %1110 = vmatmul.msk.bf16.gmra.mxu0 %vm261_vm2, %v567_v14  ;;  %v815_v51 = vrot.slane %v813_v12, 2 }
  0x5b   : > { %1104 = vmatmul.msk.bf16.gmra.mxu3 %vm261_vm2, %v456_v15 }
  0x5c   : > { %v819_v56 = vor.u32 %v818_v52, %v815_v51 }
  0x68   : > { %1093 = vmatmul.msk.bf16.gmra.mxu1 %vm261_vm2, %v1300_v17  ;;  %1098 = vmatmul.msk.bf16.gmra.mxu2 %vm261_vm2, %v373_v8  ;;  %v820_v17 = vsel %vm796_vm6, %v810_v38, %v819_v56 }
  0x6a   : > { %1111 = vmatmul.msk.bf16.gmra.mxu0 %vm261_vm2, %v576_v22 }
  0x6b   : > { %1105 = vmatmul.msk.bf16.gmra.mxu3 %vm261_vm2, %v458_v5  ;;  %v828_v5 = vor.u32 %v827_v4, %v824_v13 }
  0x6d   : > { %v829_v31 = vsel %vm796_vm6, %v819_v56, %v828_v5 }
  0x78   : > { %1099 = vmatmul.msk.bf16.gmra.mxu2 %vm261_vm2, %v375_v47  ;;  %1113 = vmatmul.msk.bf16.vlgmr.msra.gmra.mxu1 %vm261_vm2, %v644_v61 }
  0x7a   : > { %1131 = vmatmul.msk.bf16.vlgmr.msra.gmra.mxu0 %vm261_vm2, %v897_v27 }
  0x7b   : > { %1125 = vmatmul.msk.bf16.vlgmr.msra.gmra.mxu3 %vm261_vm2, %v803_v1 }
  0x88   : > { %1114 = vmatmul.msk.bf16.gmra.mxu1 %vm261_vm2, %v646_v2  ;;  %1119 = vmatmul.msk.bf16.vlgmr.msra.gmra.mxu2 %vm261_vm2, %v723_v34 }
  0x8a   : > { %1132 = vmatmul.msk.bf16.gmra.mxu0 %vm261_vm2, %v899_v50 }
  0x8b   : > { %1126 = vmatmul.msk.bf16.gmra.mxu3 %vm261_vm2, %v807_v36 }
  0x95   : > { %v295_v39 = vpop.f32.mrf.mxu1 }
  0x97   : > { %v290_v21 = vpop.f32.mrf.mxu0 }
  0x98   : > { %1115 = vmatmul.msk.bf16.gmra.mxu1 %vm261_vm2, %v648_v40  ;;  %1120 = vmatmul.msk.bf16.gmra.mxu2 %vm261_vm2, %v725_v41  ;;  %v731_v40 = vsel %vm641_vm5, %v728_v7, %v730_v11 }
  0x9a   : > { %1133 = vmatmul.msk.bf16.gmra.mxu0 %vm261_vm2, %v901_v24 }
  0x9b   : > { %v1494_v43 = vpop.f32.mrf.mxu2  ;;  %1127 = vmatmul.msk.bf16.gmra.mxu3 %vm261_vm2, %v811_v30 }
  0x9d   : > { %v297_v47 = vpop.f32.mrf.mxu1 }
  0x9e   : > { %v1500_v49 = vpop.f32.mrf.mxu3 }
  0x9f   : > { %v292_v26 = vpop.f32.mrf.mxu0 }
  0xa3   : > { %v1505_v20 = vpop.f32.mrf.mxu2 }
  0xa5   : > { %v337_v58 = vpop.f32.mrf.mxu1 }
  0xa6   : > { %v338_v61 = vadd.f32 %v337_v58, %v290_v21  ;;  %v1509_v15 = vpop.f32.mrf.mxu3 }
  0xa7   : > { %v604_v45 = vpop.f32.mrf.mxu0 }
  0xa8   : > { %1116 = vmatmul.msk.bf16.gmra.mxu1 %vm261_vm2, %v650_v59  ;;  %1121 = vmatmul.msk.bf16.gmra.mxu2 %vm261_vm2, %v727_v60 }
  0xaa   : > { %1134 = vmatmul.msk.bf16.gmra.mxu0 %vm261_vm2, %v903_v48 }
  0xab   : > { %v305_v14 = vpop.f32.mrf.mxu2  ;;  %1128 = vmatmul.msk.bf16.gmra.mxu3 %vm261_vm2, %v820_v17 }
  0xad   : > { %v339_v1 = vpop.f32.mrf.mxu1 }
  0xae   : > { %v340_v2 = vadd.f32 %v339_v1, %v292_v26  ;;  %v486_v3 = vpop.f32.mrf.mxu3 }
  0xaf   : > { %v606_v8 = vpop.f32.mrf.mxu0 }
  0xb3   : > { %v307_v9 = vpop.f32.mrf.mxu2 }
  0xb5   : > { %v342_v22 = vpop.f32.mrf.mxu1 }
  0xb6   : > { %v343_v27 = vadd.f32 %v342_v22, %v295_v39  ;;  %v488_v28 = vpop.f32.mrf.mxu3 }
  0xb7   : > { %v609_v0 = vpop.f32.mrf.mxu0 }
  0xb8   : > { %1117 = vmatmul.msk.bf16.gmra.mxu1 %vm261_vm2, %v652_v23  ;;  %1122 = vmatmul.msk.bf16.gmra.mxu2 %vm261_vm2, %v729_v25 }
  0xba   : > { %1135 = vmatmul.msk.bf16.gmra.mxu0 %vm261_vm2, %v905_v18 }
  0xbb   : > { %v403_v32 = vpop.f32.mrf.mxu2  ;;  %1129 = vmatmul.msk.bf16.gmra.mxu3 %vm261_vm2, %v829_v31 }
  0xbc   : > { %v428_v33 = vadd.f32 %v403_v32, %v338_v61 }
  0xbd   : > { %v344_v34 = vpop.f32.mrf.mxu1 }
  0xbe   : > { %v511_v35 = vadd.f32 %v486_v3, %v428_v33  ;;  %v345_v36 = vadd.f32 %v344_v34, %v297_v47  ;;  %v491_v50 = vpop.f32.mrf.mxu3 }
  0xbf   : > { %v611_v19 = vpop.f32.mrf.mxu0 }
  0xc0   : > { %v1528_v10 = vadd.f32 %v604_v45, %v511_v35 }
  0xc3   : > { %v405_v37 = vpop.f32.mrf.mxu2 }
  0xc4   : > { %v429_v38 = vadd.f32 %v405_v37, %v340_v2 }
  0xc5   : > { %v347_v39 = vpop.f32.mrf.mxu1 }
  0xc6   : > { %v512_v41 = vadd.f32 %v488_v28, %v429_v38  ;;  %v348_v42 = vadd.f32 %v347_v39, %v1494_v43  ;;  %v493_v30 = vpop.f32.mrf.mxu3 }
  0xc7   : > { %v614_v24 = vpop.f32.mrf.mxu0 }
  0xc8   : > { %1123 = vmatmul.msk.bf16.gmra.mxu2 %vm261_vm2, %v731_v40  ;;  %v1533_v21 = vadd.f32 %v606_v8, %v512_v41 }
  0xcb   : > { %v408_v12 = vpop.f32.mrf.mxu2 }
  0xcc   : > { %v430_v44 = vadd.f32 %v408_v12, %v343_v27 }
  0xcd   : > { %v349_v47 = vpop.f32.mrf.mxu1 }
  0xce   : > { %v513_v51 = vadd.f32 %v491_v50, %v430_v44  ;;  %v350_v52 = vadd.f32 %v349_v47, %v1505_v20  ;;  %v496_v53 = vpop.f32.mrf.mxu3  ;;  %v1558_v47 = vld [vmem:[%s1618_s2] ss:$0 sm:$0xff] }
  0xcf   : > { %v616_v55 = vpop.f32.mrf.mxu0 }
  0xd0   : > { %v1536_v54 = vadd.f32 %v609_v0, %v513_v51 }
  0xd3   : > { %v410_v26 = vpop.f32.mrf.mxu2 }
  0xd4   : > { %v431_v56 = vadd.f32 %v410_v26, %v345_v36 }
  0xd5   : > { %v352_v57 = vpop.f32.mrf.mxu1 }
  0xd6   : > { %v514_v43 = vadd.f32 %v493_v30, %v431_v56  ;;  %v353_v58 = vadd.f32 %v352_v57, %v305_v14  ;;  %v498_v59 = vpop.f32.mrf.mxu3 }
  0xd7   : > { %v619_v61 = vpop.f32.mrf.mxu0 }
  0xd8   : > { %v1538_v60 = vadd.f32 %v611_v19, %v514_v43 }
  0xdb   : > { %v413_v16 = vpop.f32.mrf.mxu2 }
  0xdc   : > { %v432_v17 = vadd.f32 %v413_v16, %v348_v42 }
  0xdd   : > { %v354_v46 = vpop.f32.mrf.mxu1 }
  0xde   : > { %v515_v45 = vadd.f32 %v496_v53, %v432_v17  ;;  %v355_v48 = vadd.f32 %v354_v46, %v307_v9  ;;  %v501_v62 = vpop.f32.mrf.mxu3 }
  0xdf   : > { %v621_v63 = vpop.f32.mrf.mxu0 }
  0xe0   : > { %v1540_v20 = vadd.f32 %v614_v24, %v515_v45 }
  0xe3   : > { %v415_v1 = vpop.f32.mrf.mxu2 }
  0xe4   : > { %v433_v2 = vadd.f32 %v415_v1, %v350_v52 }
  0xe5   : > { %v357_v3 = vpop.f32.mrf.mxu1 }
  0xe6   : > { %v516_v13 = vadd.f32 %v498_v59, %v433_v2  ;;  %v358_v4 = vadd.f32 %v357_v3, %v1500_v49  ;;  %v503_v14 = vpop.f32.mrf.mxu3 }
  0xe7   : > { %v624_v7 = vpop.f32.mrf.mxu0 }
  0xe8   : > { %v1543_v6 = vadd.f32 %v616_v55, %v516_v13 }
  0xeb   : > { %v418_v8 = vpop.f32.mrf.mxu2 }
  0xec   : > { %v434_v5 = vadd.f32 %v418_v8, %v353_v58 }
  0xed   : > { %v359_v22 = vpop.f32.mrf.mxu1 }
  0xee   : > { %v517_v23 = vadd.f32 %v501_v62, %v434_v5  ;;  %v360_v9 = vadd.f32 %v359_v22, %v1509_v15  ;;  %v506_v25 = vpop.f32.mrf.mxu3 }
  0xef   : > { %v626_v29 = vpop.f32.mrf.mxu0 }
  0xf0   : > { %v1546_v27 = vadd.f32 %v619_v61, %v517_v23 }
  0xf3   : > { %v420_v28 = vpop.f32.mrf.mxu2 }
  0xf4   : > { %v435_v31 = vadd.f32 %v420_v28, %v355_v48 }
  0xf5   : > { %v680_v0 = vpop.f32.mrf.mxu1 }
  0xf6   : > { %v518_v18 = vadd.f32 %v503_v14, %v435_v31  ;;  %v508_v32 = vpop.f32.mrf.mxu3  ;;  %v705_v30 = vadd.f32 %v680_v0, %v1528_v10 }
  0xf7   : > { %v933_v35 = vpop.f32.mrf.mxu0 }
  0xf8   : > { %v1548_v49 = vadd.f32 %v621_v63, %v518_v18 }
  0xfb   : > { %v423_v33 = vpop.f32.mrf.mxu2 }
  0xfc   : > { %v436_v34 = vadd.f32 %v423_v33, %v358_v4 }
  0xfd   : > { %v682_v11 = vpop.f32.mrf.mxu1 }
  0xfe   : > { %v519_v36 = vadd.f32 %v506_v25, %v436_v34  ;;  %v857_v50 = vpop.f32.mrf.mxu3  ;;  %v706_v55 = vadd.f32 %v682_v11, %v1533_v21 }
  0xff   : > { %v935_v40 = vpop.f32.mrf.mxu0 }
 0x100   : > { %v1550_v19 = vadd.f32 %v624_v7, %v519_v36 }
 0x103   : > { %v425_v15 = vpop.f32.mrf.mxu2 }
 0x104   : > { %v437_v37 = vadd.f32 %v425_v15, %v360_v9 }
 0x105   : > { %v685_v42 = vpop.f32.mrf.mxu1 }
 0x106   : > { %v520_v38 = vadd.f32 %v508_v32, %v437_v37  ;;  %v859_v39 = vpop.f32.mrf.mxu3  ;;  %v707_v21 = vadd.f32 %v685_v42, %v1536_v54 }
 0x107   : > { %v938_v53 = vpop.f32.mrf.mxu0 }
 0x108   : > { %v1552_v41 = vadd.f32 %v626_v29, %v520_v38 }
 0x10b   : > { %v759_v24 = vpop.f32.mrf.mxu2 }
 0x10c   : > { %v784_v12 = vadd.f32 %v759_v24, %v705_v30 }
 0x10d   : > { %v687_v10 = vpop.f32.mrf.mxu1 }
 0x10e   : > { %v882_v44 = vadd.f32 %v857_v50, %v784_v12  ;;  %v862_v51 = vpop.f32.mrf.mxu3  ;;  %v708_v2 = vadd.f32 %v687_v10, %v1538_v60 }
 0x10f   : > { %v940_v46 = vpop.f32.mrf.mxu0 }
 0x110   : > { %v958_v52 = vadd.f32 %v933_v35, %v882_v44 }
 0x112   : > { %v972_v26 = vadd.f32 %v1558_v47, %v958_v52 }
 0x113   : > { %v761_v56 = vpop.f32.mrf.mxu2 }
 0x114   : > { %v982_v57 = vmax.f32 %v972_v26, 0.0  ;;  %v785_v43 = vadd.f32 %v761_v56, %v706_v55 }
 0x115   : > { %v690_v62 = vpop.f32.mrf.mxu1 }
 0x116   : > { %993 = vst.msk [vmem:[%s1566_s16] sm:$0xff] %vm992_vm8, %v982_v57  ;;  %v883_v58 = vadd.f32 %v859_v39, %v785_v43  ;;  %v864_v61 = vpop.f32.mrf.mxu3  ;;  %v709_v60 = vadd.f32 %v690_v62, %v1540_v20 }
 0x117   : > { %v943_v7 = vpop.f32.mrf.mxu0 }
 0x118   : > { %v959_v59 = vadd.f32 %v935_v40, %v883_v58 }
 0x11a   : > { %v973_v16 = vadd.f32 %v1558_v47, %v959_v59 }
 0x11b   : > { %v764_v17 = vpop.f32.mrf.mxu2 }
 0x11c   : > { %v983_v45 = vmax.f32 %v973_v16, 0.0  ;;  %v786_v48 = vadd.f32 %v764_v17, %v707_v21 }
 0x11d   : > { %v692_v5 = vpop.f32.mrf.mxu1 }
 0x11e   : > { %1136 = vst.msk [vmem:[%s1566_s16 + $0x6] sm:$0xfc] %vm995_vm9, %v983_v45  ;;  %v884_v63 = vadd.f32 %v862_v51, %v786_v48  ;;  %v867_v13 = vpop.f32.mrf.mxu3  ;;  %v710_v33 = vadd.f32 %v692_v5, %v1543_v6 }
 0x11f   : > { %v945_v0 = vpop.f32.mrf.mxu0 }
 0x120   : > { %v960_v1 = vadd.f32 %v938_v53, %v884_v63 }
 0x122   : > { %v974_v3 = vadd.f32 %v1558_v47, %v960_v1 }
 0x123   : > { %v766_v54 = vpop.f32.mrf.mxu2 }
 0x124   : > { %v984_v4 = vmax.f32 %v974_v3, 0.0  ;;  %v787_v14 = vadd.f32 %v766_v54, %v708_v2 }
 0x125   : > { %v695_v32 = vpop.f32.mrf.mxu1 }
 0x126   : > { %1137 = vst.msk [vmem:[%s1566_s16 + $0xe] sm:$0x3] %vm997_vm10, %v984_v4  ;;  %v885_v8 = vadd.f32 %v864_v61, %v787_v14  ;;  %v869_v29 = vpop.f32.mrf.mxu3  ;;  %v711_v38 = vadd.f32 %v695_v32, %v1546_v27 }
 0x127   : > { %1138 = vst.msk [vmem:[%s1566_s16 + $0xc] sm:$0xf0] %vm1000_vm11, %v984_v4  ;;  %v948_v37 = vpop.f32.mrf.mxu0 }
 0x128   : > { %v961_v22 = vadd.f32 %v940_v46, %v885_v8 }
 0x12a   : > { %v975_v23 = vadd.f32 %v1558_v47, %v961_v22 }
 0x12b   : > { %v769_v9 = vpop.f32.mrf.mxu2 }
 0x12c   : > { %v985_v25 = vmax.f32 %v975_v23, 0.0  ;;  %v788_v28 = vadd.f32 %v769_v9, %v709_v60 }
 0x12d   : > { %v697_v40 = vpop.f32.mrf.mxu1 }
 0x12e   : > { %1139 = vst.msk [vmem:[%s1566_s16 + $0x14] sm:$0xf] %vm1002_vm12, %v985_v25  ;;  %v886_v31 = vadd.f32 %v867_v13, %v788_v28  ;;  %v872_v11 = vpop.f32.mrf.mxu3  ;;  %v712_v51 = vadd.f32 %v697_v40, %v1548_v49 }
 0x12f   : > { %1140 = vst.msk [vmem:[%s1566_s16 + $0x12] sm:$0xc0] %vm1005_vm13, %v985_v25  ;;  %v950_v53 = vpop.f32.mrf.mxu0 }
 0x130   : > { %v962_v18 = vadd.f32 %v943_v7, %v886_v31 }
 0x132   : > { %v976_v20 = vadd.f32 %v1558_v47, %v962_v18 }
 0x133   : > { %v771_v34 = vpop.f32.mrf.mxu2 }
 0x134   : > { %v986_v35 = vmax.f32 %v976_v20, 0.0  ;;  %v789_v36 = vadd.f32 %v771_v34, %v710_v33 }
 0x135   : > { %v700_v10 = vpop.f32.mrf.mxu1 }
 0x136   : > { %1141 = vst.msk [vmem:[%s1566_s16 + $0x1a] sm:$0x3f] %vm1007_vm14, %v986_v35  ;;  %v887_v50 = vadd.f32 %v869_v29, %v789_v36  ;;  %v874_v44 = vpop.f32.mrf.mxu3  ;;  %v713_v43 = vadd.f32 %v700_v10, %v1550_v19 }
 0x137   : > { %v953_v16 = vpop.f32.mrf.mxu0 }
 0x138   : > { %v963_v15 = vadd.f32 %v945_v0, %v887_v50 }
 0x13a   : > { %v977_v39 = vadd.f32 %v1558_v47, %v963_v15 }
 0x13b   : > { %v774_v6 = vpop.f32.mrf.mxu2 }
 0x13c   : > { %v987_v42 = vmax.f32 %v977_v39, 0.0  ;;  %v790_v30 = vadd.f32 %v774_v6, %v711_v38 }
 0x13d   : > { %v702_v46 = vpop.f32.mrf.mxu1 }
 0x13e   : > { %1142 = vst.msk [vmem:[%s1566_s16 + $0x20] sm:$0xff] %vm992_vm8, %v987_v42  ;;  %v888_v24 = vadd.f32 %v872_v11, %v790_v30  ;;  %v877_v59 = vpop.f32.mrf.mxu3  ;;  %v714_v48 = vadd.f32 %v702_v46, %v1552_v41 }
 0x13f   : > { %v955_v54 = vpop.f32.mrf.mxu0 }
 0x140   : > { %v964_v12 = vadd.f32 %v948_v37, %v888_v24 }
 0x142   : > { %v978_v52 = vadd.f32 %v1558_v47, %v964_v12 }
 0x143   : > { %v776_v55 = vpop.f32.mrf.mxu2 }
 0x144   : > { %v988_v27 = vmax.f32 %v978_v52, 0.0  ;;  %v791_v26 = vadd.f32 %v776_v55, %v712_v51 }
 0x146   : > { %1143 = vst.msk [vmem:[%s1566_s16 + $0x26] sm:$0xfc] %vm995_vm9, %v988_v27  ;;  %v889_v56 = vadd.f32 %v874_v44, %v791_v26  ;;  %v879_v2 = vpop.f32.mrf.mxu3 }
 0x148   : > { %v965_v57 = vadd.f32 %v950_v53, %v889_v56 }
 0x14a   : > { %v979_v58 = vadd.f32 %v1558_v47, %v965_v57 }
 0x14b   : > { %v779_v49 = vpop.f32.mrf.mxu2 }
 0x14c   : > { %v989_v61 = vmax.f32 %v979_v58, 0.0  ;;  %v792_v21 = vadd.f32 %v779_v49, %v713_v43 }
 0x14e   : > { %1144 = vst.msk [vmem:[%s1566_s16 + $0x2e] sm:$0x3] %vm997_vm10, %v989_v61  ;;  %v890_v17 = vadd.f32 %v877_v59, %v792_v21 }
 0x14f   : > { %1145 = vst.msk [vmem:[%s1566_s16 + $0x2c] sm:$0xf0] %vm1000_vm11, %v989_v61 }
 0x150   : > { %v966_v45 = vadd.f32 %v953_v16, %v890_v17 }
 0x152   : > { %v980_v19 = vadd.f32 %v1558_v47, %v966_v45 }
 0x153   : > { %v781_v62 = vpop.f32.mrf.mxu2 }
 0x154   : > { %v990_v63 = vmax.f32 %v980_v19, 0.0  ;;  %v793_v1 = vadd.f32 %v781_v62, %v714_v48 }
 0x156   : > { %1146 = vst.msk [vmem:[%s1566_s16 + $0x34] sm:$0xf] %vm1002_vm12, %v990_v63  ;;  %v891_v3 = vadd.f32 %v879_v2, %v793_v1 }
 0x157   : > { %1147 = vst.msk [vmem:[%s1566_s16 + $0x32] sm:$0xc0] %vm1005_vm13, %v990_v63 }
 0x158   : > { %v967_v13 = vadd.f32 %v955_v54, %v891_v3 }
 0x15a   : > { %v981_v4 = vadd.f32 %v1558_v47, %v967_v13 }
 0x15c   : > { %v991_v14 = vmax.f32 %v981_v4, 0.0 }
 0x15e   : > { %1148 = vst.msk [vmem:[%s1566_s16 + $0x3a] sm:$0x3f] %vm1007_vm14, %v991_v14 }
 0x15f PF: > { %s13_s12 = sadd.s32 1, %s1228_s12  }
 0x160   : > { %p10_p4 = scmp.ge.s32.totalorder %s13_s12, 4  }
 0x162   :  { %12 = sbr.rel (!%p10_p4) target bundleno = 1 (0x1), region = 77 }

// kernel: vgg_forward.10
= control target key start
LH: loop header
LB: loop body
LE: loop exit
PB: predicated region body
PF: predicated region fallthrough
CT: control target
= control target key end

     0   :  { %s1745_s12 = smov 0   ;;  %s2191_s0 = inlined_call_operand.vmem [shape: bf16[2,102,64], index: 0, kind: input, shape index: {}]   ;;  %s2192_s1 = inlined_call_operand.vmem [shape: bf16[9,64,64], index: 1, kind: input, shape index: {}]   ;;  %s2193_s2 = inlined_call_operand.vmem [shape: f32[1,64], index: 2, kind: input, shape index: {}]   ;;  %s2194_s3 = inlined_call_operand.vmem [shape: f32[2,8,8,64], index: 3, kind: output, shape index: {}]  }
   0x1 LB: > { %s1325_s13 = sadd.s32 4294967295, %s1723_s12   ;;  %p1329_p0 = scmp.ge.s32.totalorder %s1723_s12, 1  ;;  %s1723_s12 = sphi %s1745_s12, %s13_s12  }
   0x2   : > { %p137_p1 = scmp.lt.s32.totalorder %s1723_s12, 3 }
   0x4   : > { %p138_p2 = pnand %p1329_p0, %p137_p1 }
   0x5   : > { %p161_p3 = scmp.lt.s32.totalorder (!%p138_p2), %s1325_s13, 1 }
   0x6   : > { %141 = sbr.rel (%p138_p2) target bundleno = 354 (0x162), region = 32 }
   0xb   : > { %v1609_v0 = vld [vmem:[%s2192_s1 + $0x38] sm:$0xff]  ;;  %v1608_v1 = vld [vmem:[%s2192_s1 + $0x30] sm:$0xff]  ;;  %s2196_s13 = smov (!%p161_p3, %s1325_s13), 1  ;;  %v1607_v2 = vld [vmem:[%s2192_s1 + $0x28] sm:$0xff]  ;;  %vm230_vm0 = vsmask.f32 7424 }
   0xc   : > { %1695 = vmatpush.bf16.msra.mxu1 %v1609_v0  ;;  %1696 = vmatpush.bf16.msra.mxu2 %v1609_v0  ;;  %s1707_s18 = smul.u32 52, %s2196_s13  ;;  %v1606_v15 = vld [vmem:[%s2192_s1 + $0x20] sm:$0xff]  ;;  %v1613_v20 = vld [vmem:[%s2192_s1 + $0x58] sm:$0xff]  ;;  %vm299_vm1 = vcmask 523264   ;;  %v1604_v35 = vld [vmem:[%s2192_s1 + $0x10] sm:$0xff]  ;;  %vm426_vm2 = vcmask 1046528  }
   0xd   : > { %1697 = vmatpush.bf16.msra.mxu3 %v1609_v0  ;;  %319 = vmatpush.bf16.msra.mxu0 %v1609_v0  ;;  %v1605_v21 = vld [vmem:[%s2192_s1 + $0x18] sm:$0xff]  ;;  %v1612_v36 = vld [vmem:[%s2192_s1 + $0x50] sm:$0xff]  ;;  %v1603_v41 = vld [vmem:[%s2192_s1 + $0x8] sm:$0xff]  ;;  %vm641_vm3 = vsmask.f32 6400  ;;  %vm787_vm4 = vcmask 1045504  }
   0xe   : > { %s1768_s23 = scalar_lea.vmem %s2191_s0, %s1707_s18  ;;  %v1617_v33 = vld [vmem:[%s2192_s1 + $0x78] sm:$0xff]  ;;  %v1616_v42 = vld [vmem:[%s2192_s1 + $0x70] sm:$0xff]  ;;  %v1611_v44 = vld [vmem:[%s2192_s1 + $0x48] sm:$0xff]  ;;  %vm998_vm5 = vsmask.f32 5376  ;;  %vm1124_vm6 = vcmask 1044480  }
   0xf   : > { %v1771_v3 = vld [vmem:[%s1768_s23 + $0x8] sm:$0xff]   ;;  %v1774_v4 = vld [vmem:[%s1768_s23 + $0x10] sm:$0xff]   ;;  %v1777_v5 = vld [vmem:[%s1768_s23 + $0x18] sm:$0xff]   ;;  %s1601_s18 = sshll.u32 %s2196_s13, 6  ;;  %vm1245_vm7 = vcmask 523266   ;;  %vm1247_vm8 = vcmask 517120  }
  0x10   : > { %1698 = vmatpush.bf16.msra.mxu1 %v1608_v1  ;;  %1699 = vmatpush.bf16.msra.mxu2 %v1608_v1  ;;  %v239_v6 = vshll.u32 %v1771_v3, 16  ;;  %v243_v7 = vshrl.u32 %v1771_v3, 16  ;;  %v247_v8 = vshll.u32 %v1774_v4, 16  ;;  %v251_v9 = vshrl.u32 %v1774_v4, 16  ;;  %v1784_v10 = vld [vmem:[%s1768_s23 + $0x20] sm:$0xff]   ;;  %v1787_v11 = vld [vmem:[%s1768_s23 + $0x28] sm:$0xff]   ;;  %s2141_s21 = scalar_lea.vmem %s2194_s3, %s1601_s18 }
  0x11   : > { %1700 = vmatpush.bf16.msra.mxu3 %v1608_v1  ;;  %320 = vmatpush.bf16.msra.mxu0 %v1608_v1  ;;  %v255_v12 = vshll.u32 %v1777_v5, 16  ;;  %v1791_v13 = vunpack.c.l.b16 %v1787_v11  ;;  %v263_v14 = vshll.u32 %v1784_v10, 16  ;;  %v1802_v18 = vld [vmem:[%s1768_s23] sm:$0xff]   ;;  %v267_v26 = vshrl.u32 %v1784_v10, 16  ;;  %v1621_v34 = vld [vmem:[%s2192_s1 + $0x98] sm:$0xff]  ;;  %v1620_v43 = vld [vmem:[%s2192_s1 + $0x90] sm:$0xff] }
  0x12   : > { %v241_v16 = vrot.slane %v239_v6, 1  ;;  %v249_v17 = vrot.slane %v247_v8, 1  ;;  %v232_v28 = vshrl.u32 %v1802_v18, 16  ;;  %v234_v29 = vshll.u32 %v1802_v18, 16  ;;  %v1865_v46 = vld [vmem:[%s1768_s23 + $0x4] sm:$0xff]   ;;  %v1868_v47 = vld [vmem:[%s1768_s23 + $0xc] sm:$0xff]  }
  0x13   : > { %v1806_v19 = vrot.slane %v255_v12, 1  ;;  %v1816_v22 = vpack.c.b16 %v1791_v13, %v1791_v13  ;;  %v1820_v23 = vrot.slane %v263_v14, 1  ;;  %v643_v48 = vshrl.u32 %v1865_v46, 16  ;;  %v1615_v53 = vld [vmem:[%s2192_s1 + $0x68] sm:$0xff]  ;;  %v1602_v55 = vld [vmem:[%s2192_s1] sm:$0xff]  ;;  %v1629_v57 = vld [vmem:[%s2192_s1 + $0xd8] sm:$0xff] }
  0x14   : > { %1701 = vmatpush.bf16.msra.mxu1 %v1607_v2  ;;  %1702 = vmatpush.bf16.msra.mxu2 %v1607_v2  ;;  %v245_v24 = vor.u32 %v243_v7, %v241_v16  ;;  %v253_v25 = vor.u32 %v251_v9, %v249_v17  ;;  %v236_v38 = vrot.slane %v234_v29, 1  ;;  %v646_v49 = vshll.u32 %v1865_v46, 16  ;;  %v1619_v54 = vld [vmem:[%s2192_s1 + $0x88] sm:$0xff]  ;;  %v1610_v56 = vld [vmem:[%s2192_s1 + $0x40] sm:$0xff]  ;;  %v1625_v58 = vld [vmem:[%s2192_s1 + $0xb8] sm:$0xff] }
  0x15   : > { %1703 = vmatpush.bf16.msra.mxu3 %v1607_v2  ;;  %321 = vmatpush.bf16.msra.mxu0 %v1607_v2  ;;  %v271_v27 = vshll.u32 %v1816_v22, 16  ;;  %v269_v32 = vor.u32 %v267_v26, %v1820_v23  ;;  %v651_v50 = vshrl.u32 %v1868_v47, 16  ;;  %v654_v51 = vshll.u32 %v1868_v47, 16  ;;  %v1614_v0 = vld [vmem:[%s2192_s1 + $0x60] sm:$0xff]  ;;  %v1633_v2 = vld [vmem:[%s2192_s1 + $0xf8] sm:$0xff] }
  0x16   : > { %v250_v30 = vsel %vm230_vm0, %v245_v24, %v249_v17  ;;  %v258_v31 = vsel %vm230_vm0, %v253_v25, %v1806_v19  ;;  %v237_v40 = vor.u32 %v236_v38, %v232_v28  ;;  %v259_v52 = vshrl.u32 %v1777_v5, 16  ;;  %v1618_v1 = vld [vmem:[%s2192_s1 + $0x80] sm:$0xff]  ;;  %v1624_v28 = vld [vmem:[%s2192_s1 + $0xb0] sm:$0xff] }
  0x17   : > { %v273_v37 = vrot.slane %v271_v27, 1  ;;  %v645_v59 = vrot.slane %v643_v48, 1  ;;  %v648_v60 = vrot.slane %v646_v49, 2  ;;  %v653_v61 = vrot.slane %v651_v50, 1  ;;  %v1628_v27 = vld [vmem:[%s2192_s1 + $0xd0] sm:$0xff] }
  0x18   : > { %1704 = vmatpush.bf16.msra.mxu1 %v1606_v15  ;;  %1705 = vmatpush.bf16.msra.mxu2 %v1606_v15  ;;  %v242_v45 = vsel %vm230_vm0, %v237_v40, %v241_v16  ;;  %v656_v62 = vrot.slane %v654_v51, 2  ;;  %v261_v63 = vor.u32 %v259_v52, %v1806_v19  ;;  %v538_v16 = vrot.slane %v1865_v46, 1  ;;  %v1929_v29 = vld [vmem:[%s1768_s23 + $0x14] sm:$0xff]  }
  0x19   : > { %1706 = vmatpush.bf16.msra.mxu3 %v1606_v15  ;;  %322 = vmatpush.bf16.msra.mxu0 %v1606_v15  ;;  %v274_v39 = vsel %vm230_vm0, %v269_v32, %v273_v37  ;;  %v1637_v15 = vld [vmem:[%s2192_s1 + $0x118] sm:$0xff]  ;;  %v539_v17 = vrot.slane %v1868_v47, 1  ;;  %v649_v19 = vor.u32 %v648_v60, %v645_v59  ;;  %v663_v32 = vshll.u32 %v1929_v29, 16  ;;  %v1635_v59 = vld [vmem:[%s2192_s1 + $0x108] sm:$0xff] }
  0x1a   : > { %v541_v37 = vrot.slane %v1929_v29, 1  ;;  %v430_v51 = vrot.slane %v1774_v4, 1  ;;  %vm1250_vm9 = vcmask 523268   ;;  %vm1252_vm10 = vcmask 519168  }
  0x1b   : > { %1358 = vmatmul.msk.bf16.vlgmr.msra.gmra.mxu1 %vm299_vm1, %v250_v30  ;;  %1359 = vmatmul.msk.bf16.vlgmr.msra.gmra.mxu2 %vm299_vm1, %v258_v31  ;;  %v540_v24 = vsel %vm426_vm2, %v538_v16, %v539_v17  ;;  %v1636_v30 = vld [vmem:[%s2192_s1 + $0x110] sm:$0xff]  ;;  %v660_v31 = vshrl.u32 %v1929_v29, 16  ;;  %vm1255_vm11 = vcmask 523270   ;;  %vm1257_vm12 = vcmask 521216  }
  0x1c   : > { %481 = vmatpush.bf16.msrb.mxu2 %v1613_v20  ;;  %387 = vmatpush.bf16.msrb.mxu1 %v1605_v21  ;;  %v657_v20 = vor.u32 %v656_v62, %v653_v61  ;;  %v266_v21 = vsel %vm230_vm0, %v261_v63, %v1820_v23  ;;  %v1632_v23 = vld [vmem:[%s2192_s1 + $0xf0] sm:$0xff]  ;;  %v542_v40 = vsel %vm426_vm2, %v539_v17, %v541_v37  ;;  %v434_v61 = vrot.slane %v1784_v10, 1  ;;  %v1626_v62 = vld [vmem:[%s2192_s1 + $0xc0] sm:$0xff] }
  0x1d   : > { %592 = vmatpush.bf16.msrb.mxu3 %v1617_v33  ;;  %738 = vmatpush.bf16.msrb.mxu0 %v1621_v34  ;;  %v662_v33 = vrot.slane %v660_v31, 1  ;;  %v665_v34 = vrot.slane %v663_v32, 2  ;;  %v1622_v63 = vld [vmem:[%s2192_s1 + $0xa0] sm:$0xff] }
  0x1e   : > { %1361 = vmatmul.msk.bf16.vlgmr.msra.gmra.mxu3 %vm299_vm1, %v274_v39  ;;  %1357 = vmatmul.msk.bf16.vlgmr.msra.gmra.mxu0 %vm299_vm1, %v242_v45  ;;  %v658_v25 = vsel %vm641_vm3, %v649_v19, %v657_v20  ;;  %v432_v19 = vrot.slane %v1777_v5, 1 }
  0x1f   : > { %v666_v38 = vor.u32 %v665_v34, %v662_v33  ;;  %v791_v34 = vrot.slane %v1929_v29, 2 }
  0x20   : > { %388 = vmatpush.bf16.msrb.mxu1 %v1604_v35  ;;  %482 = vmatpush.bf16.msrb.mxu2 %v1612_v36  ;;  %v427_v35 = vrot.slane %v1802_v18, 1  ;;  %v428_v36 = vrot.slane %v1771_v3, 1 }
  0x21   : > { %593 = vmatpush.bf16.msrb.mxu3 %v1616_v42  ;;  %739 = vmatpush.bf16.msrb.mxu0 %v1620_v43  ;;  %v1951_v42 = vld [vmem:[%s1768_s23 + $0x1c] sm:$0xff]   ;;  %v1631_v43 = vld [vmem:[%s2192_s1 + $0xe8] sm:$0xff] }
  0x22   : > { %v429_v39 = vsel %vm426_vm2, %v427_v35, %v428_v36  ;;  %v669_v45 = vshrl.u32 %v1951_v42, 16  ;;  %v672_v48 = vshll.u32 %v1951_v42, 16 }
  0x24   : > { %389 = vmatpush.bf16.msrb.mxu1 %v1603_v41  ;;  %483 = vmatpush.bf16.msrb.mxu2 %v1611_v44  ;;  %v667_v41 = vsel %vm641_vm3, %v657_v20, %v666_v38  ;;  %v1623_v44 = vld [vmem:[%s2192_s1 + $0xa8] sm:$0xff]  ;;  %v671_v49 = vrot.slane %v669_v45, 1  ;;  %v674_v50 = vrot.slane %v672_v48, 2  ;;  %v1003_v20 = vrot.slane %v247_v8, 3 }
  0x25   : > { %594 = vmatpush.bf16.msrb.mxu3 %v1615_v53  ;;  %740 = vmatpush.bf16.msrb.mxu0 %v1619_v54  ;;  %v543_v53 = vrot.slane %v1951_v42, 1  ;;  %v1126_v45 = vrot.slane %v1774_v4, 3 }
  0x26   : > { %v675_v54 = vor.u32 %v674_v50, %v671_v49  ;;  %v1006_v49 = vrot.slane %v259_v52, 2  ;;  %v1007_v50 = vrot.slane %v255_v12, 3  ;;  %v793_v12 = vrot.slane %v1951_v42, 2 }
  0x28   : > { %390 = vmatpush.bf16.msrb.mxu1 %v1602_v55  ;;  %484 = vmatpush.bf16.msrb.mxu2 %v1610_v56  ;;  %v431_v55 = vsel %vm426_vm2, %v428_v36, %v430_v51  ;;  %v1657_v56 = vunpack.c.h.b16 %v1784_v10 }
  0x29   : > { %595 = vmatpush.bf16.msrb.mxu3 %v1614_v0  ;;  %741 = vmatpush.bf16.msrb.mxu0 %v1618_v1  ;;  %v436_v0 = vrot.slane %v1816_v22, 1 }
  0x2a   : > { %v1976_v60 = vpack.c.b16 %v1791_v13, %v1657_v56  ;;  %v1630_v13 = vld [vmem:[%s2192_s1 + $0xe0] sm:$0xff] }
  0x2b   : > { %1360 = vmatmul.msk.bf16.gmra.mxu2 %vm299_vm1, %v266_v21  ;;  %1378 = vmatmul.msk.bf16.vlgmr.msrb.gmra.mxu1 %vm299_vm1, %v1802_v18  ;;  %v1627_v18 = vld [vmem:[%s2192_s1 + $0xc8] sm:$0xff]  ;;  %v1002_v21 = vrot.slane %v251_v9, 2 }
  0x2c   : > { %949 = vmatpush.bf16.msra.mxu2 %v1629_v57  ;;  %842 = vmatpush.bf16.msra.mxu1 %v1625_v58  ;;  %v544_v57 = vsel %vm426_vm2, %v541_v37, %v543_v53  ;;  %v676_v58 = vsel %vm641_vm3, %v666_v38, %v675_v54  ;;  %v678_v1 = vshrl.u32 %v1976_v60, 16  ;;  %v545_v22 = vrot.slane %v1976_v60, 1 }
  0x2d   : > { %1075 = vmatpush.bf16.msra.mxu3 %v1633_v2  ;;  %1179 = vmatpush.bf16.msra.mxu0 %v1637_v15  ;;  %v681_v2 = vshll.u32 %v1976_v60, 16  ;;  %v437_v15 = vsel %vm426_vm2, %v434_v61, %v436_v0 }
  0x2e   : > { %1436 = vmatmul.msk.bf16.vlgmr.msrb.gmra.mxu3 %vm299_vm1, %v540_v24  ;;  %1465 = vmatmul.msk.bf16.vlgmr.msrb.gmra.mxu0 %vm299_vm1, %v658_v25  ;;  %v680_v16 = vrot.slane %v678_v1, 1  ;;  %v433_v25 = vsel %vm426_vm2, %v430_v51, %v432_v19  ;;  %v546_v9 = vsel %vm426_vm2, %v543_v53, %v545_v22  ;;  %v895_v51 = vrot.slane %v1771_v3, 2 }
  0x2f   : > { %v683_v17 = vrot.slane %v681_v2, 2  ;;  %v896_v53 = vrot.slane %v1774_v4, 2  ;;  %v1018_v1 = vshll.u32 %v1787_v11, 16 }
  0x30   : > { %950 = vmatpush.bf16.msra.mxu2 %v1628_v27  ;;  %843 = vmatpush.bf16.msra.mxu1 %v1624_v28  ;;  %v788_v27 = vrot.slane %v1865_v46, 2  ;;  %v999_v28 = vrot.slane %v243_v7, 2  ;;  %v1634_v46 = vld [vmem:[%s2192_s1 + $0x100] sm:$0xff]  ;;  %v1000_v7 = vrot.slane %v239_v6, 3 }
  0x31   : > { %1076 = vmatpush.bf16.msra.mxu3 %v1632_v23  ;;  %1180 = vmatpush.bf16.msra.mxu0 %v1636_v30  ;;  %v684_v24 = vor.u32 %v683_v17, %v680_v16  ;;  %v789_v23 = vrot.slane %v1868_v47, 2  ;;  %v1661_v30 = vunpack.c.h.b16 %v1787_v11  ;;  %v1004_v47 = vor.u32 %v1003_v20, %v1002_v21 }
  0x32   : > { %v1001_v33 = vor.u32 %v1000_v7, %v999_v28  ;;  %v897_v56 = vsel %vm787_vm4, %v895_v51, %v896_v53  ;;  %v795_v20 = vrot.slane %v1976_v60, 2  ;;  %v900_v21 = vrot.slane %v1784_v10, 2 }
  0x33   : > { %v790_v8 = vsel %vm787_vm4, %v788_v27, %v789_v23  ;;  %v685_v31 = vsel %vm641_vm3, %v675_v54, %v684_v24  ;;  %v2017_v32 = vpack.c.b16 %v1661_v30, %v1661_v30  ;;  %v792_v6 = vsel %vm787_vm4, %v789_v23, %v791_v34 }
  0x34   : > { %951 = vmatpush.bf16.msra.mxu2 %v1627_v18  ;;  %844 = vmatpush.bf16.msra.mxu1 %v1623_v44  ;;  %v1005_v37 = vsel %vm998_vm5, %v1001_v33, %v1004_v47  ;;  %v435_v18 = vsel %vm426_vm2, %v432_v19, %v434_v61  ;;  %v1125_v44 = vrot.slane %v1771_v3, 3  ;;  %v1008_v54 = vor.u32 %v1007_v50, %v1006_v49 }
  0x35   : > { %1077 = vmatpush.bf16.msra.mxu3 %v1631_v43  ;;  %1181 = vmatpush.bf16.msra.mxu0 %v1635_v59  ;;  %v687_v35 = vshrl.u32 %v2017_v32, 16  ;;  %v690_v36 = vshll.u32 %v2017_v32, 16  ;;  %v1130_v61 = vrot.slane %v1784_v10, 3  ;;  %v1020_v19 = vrot.slane %v1018_v1, 3 }
  0x36   : > { %v1127_v48 = vsel %vm1124_vm6, %v1125_v44, %v1126_v45  ;;  %v1132_v27 = vrot.slane %v1787_v11, 3  ;;  %v796_v30 = vsel %vm787_vm4, %v793_v12, %v795_v20 }
  0x37   : > { %v689_v38 = vrot.slane %v687_v35, 1 }
  0x38   : > { %952 = vmatpush.bf16.msra.mxu2 %v1626_v62  ;;  %845 = vmatpush.bf16.msra.mxu1 %v1622_v63  ;;  %v794_v63 = vsel %vm787_vm4, %v791_v34, %v793_v12 }
  0x39   : > { %1078 = vmatpush.bf16.msra.mxu3 %v1630_v13  ;;  %1182 = vmatpush.bf16.msra.mxu0 %v1634_v46  ;;  %v1133_v46 = vsel %vm1124_vm6, %v1130_v61, %v1132_v27 }
  0x3b   : > { %1379 = vmatmul.msk.bf16.gmra.mxu1 %vm299_vm1, %v1771_v3  ;;  %1407 = vmatmul.msk.bf16.vlgmr.msrb.gmra.mxu2 %vm299_vm1, %v429_v39  ;;  %v692_v39 = vrot.slane %v690_v36, 2  ;;  %v1010_v3 = vrot.slane %v267_v26, 2 }
  0x3e   : > { %1437 = vmatmul.msk.bf16.gmra.mxu3 %vm299_vm1, %v542_v40  ;;  %1466 = vmatmul.msk.bf16.gmra.mxu0 %vm299_vm1, %v667_v41  ;;  %v547_v40 = vrot.slane %v2017_v32, 1  ;;  %v693_v41 = vor.u32 %v692_v39, %v689_v38 }
  0x40   : > { %v548_v29 = vsel %vm426_vm2, %v545_v22, %v547_v40  ;;  %v694_v43 = vsel %vm641_vm3, %v684_v24, %v693_v41  ;;  %v184_v22 = vld [vmem:[%s1768_s23 + $0x30] sm:$0x7]  ;;  %v797_v40 = vrot.slane %v2017_v32, 2  ;;  %v902_v41 = vrot.slane %v1787_v11, 2 }
  0x41   : > { %v892_v23 = vunpack.c.l.b16 %v184_v22 }
  0x43   : > { %v894_v7 = vpack.c.b16 %v892_v23, %v892_v23 }
  0x45   : > { %v1024_v33 = vshrl.u32 %v894_v7, 16  ;;  %v1027_v34 = vshll.u32 %v894_v7, 16  ;;  %v904_v12 = vrot.slane %v894_v7, 2 }
  0x47   : > { %v1026_v38 = vrot.slane %v1024_v33, 2  ;;  %v1029_v39 = vrot.slane %v1027_v34, 3 }
  0x4b   : > { %1380 = vmatmul.msk.bf16.gmra.mxu1 %vm299_vm1, %v1774_v4  ;;  %1408 = vmatmul.msk.bf16.gmra.mxu2 %vm299_vm1, %v431_v55  ;;  %v1128_v55 = vrot.slane %v1777_v5, 3  ;;  %v1011_v4 = vrot.slane %v263_v14, 3 }
  0x4d   : > { %v1129_v52 = vsel %vm1124_vm6, %v1126_v45, %v1128_v55  ;;  %v1012_v59 = vor.u32 %v1011_v4, %v1010_v3  ;;  %v1131_v42 = vsel %vm1124_vm6, %v1128_v55, %v1130_v61  ;;  %v798_v45 = vsel %vm787_vm4, %v795_v20, %v797_v40 }
  0x4e   : > { %1438 = vmatmul.msk.bf16.gmra.mxu3 %vm299_vm1, %v544_v57  ;;  %1467 = vmatmul.msk.bf16.gmra.mxu0 %vm299_vm1, %v676_v58  ;;  %v1009_v57 = vsel %vm998_vm5, %v1004_v47, %v1008_v54  ;;  %v898_v58 = vrot.slane %v1777_v5, 2 }
  0x4f   : > { %v1013_v26 = vsel %vm998_vm5, %v1008_v54, %v1012_v59 }
  0x50   : > { %v899_v13 = vsel %vm787_vm4, %v896_v53, %v898_v58 }
  0x5b   : > { %1381 = vmatmul.msk.bf16.gmra.mxu1 %vm299_vm1, %v1777_v5  ;;  %1409 = vmatmul.msk.bf16.gmra.mxu2 %vm299_vm1, %v433_v25  ;;  %v1015_v5 = vshrl.u32 %v1787_v11, 16 }
  0x5d   : > { %v1017_v17 = vrot.slane %v1015_v5, 2 }
  0x5e   : > { %1439 = vmatmul.msk.bf16.gmra.mxu3 %vm299_vm1, %v546_v9  ;;  %1468 = vmatmul.msk.bf16.gmra.mxu0 %vm299_vm1, %v685_v31 }
  0x5f   : > { %v1021_v25 = vor.u32 %v1020_v19, %v1017_v17 }
  0x6b   : > { %1382 = vmatmul.msk.bf16.gmra.mxu1 %vm299_vm1, %v1784_v10  ;;  %1410 = vmatmul.msk.bf16.gmra.mxu2 %vm299_vm1, %v435_v18  ;;  %v1022_v10 = vsel %vm998_vm5, %v1012_v59, %v1021_v25 }
  0x6e   : > { %1440 = vmatmul.msk.bf16.gmra.mxu3 %vm299_vm1, %v548_v29  ;;  %1469 = vmatmul.msk.bf16.gmra.mxu0 %vm299_vm1, %v694_v43  ;;  %v1030_v29 = vor.u32 %v1029_v39, %v1026_v38  ;;  %v1134_v43 = vrot.slane %v894_v7, 3 }
  0x70   : > { %v1031_v51 = vsel %vm998_vm5, %v1021_v25, %v1030_v29  ;;  %v1135_v32 = vsel %vm1124_vm6, %v1132_v27, %v1134_v43 }
  0x7b   : > { %1411 = vmatmul.msk.bf16.gmra.mxu2 %vm299_vm1, %v437_v15  ;;  %1494 = vmatmul.msk.bf16.vlgmr.msra.gmra.mxu1 %vm299_vm1, %v790_v8  ;;  %v901_v8 = vsel %vm787_vm4, %v898_v58, %v900_v21 }
  0x7e   : > { %1552 = vmatmul.msk.bf16.vlgmr.msra.gmra.mxu3 %vm299_vm1, %v1005_v37  ;;  %1581 = vmatmul.msk.bf16.vlgmr.msra.gmra.mxu0 %vm299_vm1, %v1127_v48  ;;  %v903_v48 = vsel %vm787_vm4, %v900_v21, %v902_v41 }
  0x8b   : > { %1495 = vmatmul.msk.bf16.gmra.mxu1 %vm299_vm1, %v792_v6  ;;  %1523 = vmatmul.msk.bf16.vlgmr.msra.gmra.mxu2 %vm299_vm1, %v897_v56 }
  0x8e   : > { %1553 = vmatmul.msk.bf16.gmra.mxu3 %vm299_vm1, %v1009_v57  ;;  %1582 = vmatmul.msk.bf16.gmra.mxu0 %vm299_vm1, %v1129_v52 }
  0x98   : > { %v329_v62 = vpop.f32.mrf.mxu1 }
  0x9b   : > { %1496 = vmatmul.msk.bf16.gmra.mxu1 %vm299_vm1, %v794_v63  ;;  %1524 = vmatmul.msk.bf16.gmra.mxu2 %vm299_vm1, %v899_v13  ;;  %v324_v14 = vpop.f32.mrf.mxu0 }
  0x9e   : > { %v2069_v0 = vpop.f32.mrf.mxu2  ;;  %1554 = vmatmul.msk.bf16.gmra.mxu3 %vm299_vm1, %v1013_v26  ;;  %1583 = vmatmul.msk.bf16.gmra.mxu0 %vm299_vm1, %v1131_v42 }
  0xa0   : > { %v331_v2 = vpop.f32.mrf.mxu1 }
  0xa1   : > { %v2075_v15 = vpop.f32.mrf.mxu3 }
  0xa3   : > { %v326_v16 = vpop.f32.mrf.mxu0 }
  0xa6   : > { %v2080_v24 = vpop.f32.mrf.mxu2 }
  0xa8   : > { %v392_v28 = vpop.f32.mrf.mxu1 }
  0xa9   : > { %v393_v9 = vadd.f32 %v392_v28, %v324_v14  ;;  %v2085_v31 = vpop.f32.mrf.mxu3 }
  0xab   : > { %1497 = vmatmul.msk.bf16.gmra.mxu1 %vm299_vm1, %v796_v30  ;;  %1525 = vmatmul.msk.bf16.gmra.mxu2 %vm299_vm1, %v901_v8  ;;  %v743_v60 = vpop.f32.mrf.mxu0 }
  0xae   : > { %v339_v47 = vpop.f32.mrf.mxu2  ;;  %1555 = vmatmul.msk.bf16.gmra.mxu3 %vm299_vm1, %v1022_v10  ;;  %1584 = vmatmul.msk.bf16.gmra.mxu0 %vm299_vm1, %v1133_v46 }
  0xb0   : > { %v394_v35 = vpop.f32.mrf.mxu1 }
  0xb1   : > { %v395_v36 = vadd.f32 %v394_v35, %v326_v16  ;;  %v597_v37 = vpop.f32.mrf.mxu3 }
  0xb3   : > { %v745_v6 = vpop.f32.mrf.mxu0 }
  0xb6   : > { %v341_v18 = vpop.f32.mrf.mxu2 }
  0xb8   : > { %v397_v44 = vpop.f32.mrf.mxu1 }
  0xb9   : > { %v398_v49 = vadd.f32 %v397_v44, %v329_v62  ;;  %v599_v50 = vpop.f32.mrf.mxu3  ;;  %v905_v62 = vsel %vm787_vm4, %v902_v41, %v904_v12 }
  0xbb   : > { %1498 = vmatmul.msk.bf16.gmra.mxu1 %vm299_vm1, %v798_v45  ;;  %1526 = vmatmul.msk.bf16.gmra.mxu2 %vm299_vm1, %v903_v48  ;;  %v748_v53 = vpop.f32.mrf.mxu0 }
  0xbe   : > { %v486_v11 = vpop.f32.mrf.mxu2  ;;  %1556 = vmatmul.msk.bf16.gmra.mxu3 %vm299_vm1, %v1031_v51  ;;  %1585 = vmatmul.msk.bf16.gmra.mxu0 %vm299_vm1, %v1135_v32 }
  0xbf   : > { %v511_v54 = vadd.f32 %v486_v11, %v393_v9 }
  0xc0   : > { %v399_v55 = vpop.f32.mrf.mxu1 }
  0xc1   : > { %v622_v56 = vadd.f32 %v597_v37, %v511_v54  ;;  %v400_v57 = vadd.f32 %v399_v55, %v331_v2  ;;  %v602_v52 = vpop.f32.mrf.mxu3 }
  0xc3   : > { %v750_v3 = vpop.f32.mrf.mxu0  ;;  %v2103_v4 = vadd.f32 %v743_v60, %v622_v56 }
  0xc6   : > { %v488_v58 = vpop.f32.mrf.mxu2 }
  0xc7   : > { %v512_v59 = vadd.f32 %v488_v58, %v395_v36 }
  0xc8   : > { %v402_v61 = vpop.f32.mrf.mxu1 }
  0xc9   : > { %v623_v63 = vadd.f32 %v599_v50, %v512_v59  ;;  %v403_v13 = vadd.f32 %v402_v61, %v2069_v0  ;;  %v604_v26 = vpop.f32.mrf.mxu3 }
  0xcb   : > { %1527 = vmatmul.msk.bf16.gmra.mxu2 %vm299_vm1, %v905_v62  ;;  %v753_v14 = vpop.f32.mrf.mxu0  ;;  %v2108_v42 = vadd.f32 %v745_v6, %v623_v63 }
  0xce   : > { %v491_v5 = vpop.f32.mrf.mxu2 }
  0xcf   : > { %v513_v1 = vadd.f32 %v491_v5, %v398_v49 }
  0xd0   : > { %v404_v2 = vpop.f32.mrf.mxu1 }
  0xd1   : > { %v624_v16 = vadd.f32 %v602_v52, %v513_v1  ;;  %v405_v17 = vadd.f32 %v404_v2, %v2080_v24  ;;  %v607_v19 = vpop.f32.mrf.mxu3  ;;  %v2133_v2 = vld [vmem:[%s2193_s2] ss:$0 sm:$0xff] }
  0xd3   : > { %v755_v20 = vpop.f32.mrf.mxu0  ;;  %v2111_v21 = vadd.f32 %v748_v53, %v624_v16 }
  0xd6   : > { %v493_v22 = vpop.f32.mrf.mxu2 }
  0xd7   : > { %v514_v25 = vadd.f32 %v493_v22, %v400_v57 }
  0xd8   : > { %v407_v27 = vpop.f32.mrf.mxu1 }
  0xd9   : > { %v625_v0 = vadd.f32 %v604_v26, %v514_v25  ;;  %v408_v23 = vadd.f32 %v407_v27, %v339_v47  ;;  %v609_v28 = vpop.f32.mrf.mxu3 }
  0xdb   : > { %v758_v30 = vpop.f32.mrf.mxu0  ;;  %v2113_v8 = vadd.f32 %v750_v3, %v625_v0 }
  0xde   : > { %v496_v9 = vpop.f32.mrf.mxu2 }
  0xdf   : > { %v515_v10 = vadd.f32 %v496_v9, %v403_v13 }
  0xe0   : > { %v409_v60 = vpop.f32.mrf.mxu1 }
  0xe1   : > { %v626_v46 = vadd.f32 %v607_v19, %v515_v10  ;;  %v410_v7 = vadd.f32 %v409_v60, %v341_v18  ;;  %v612_v33 = vpop.f32.mrf.mxu3 }
  0xe3   : > { %v760_v24 = vpop.f32.mrf.mxu0  ;;  %v2115_v34 = vadd.f32 %v753_v14, %v626_v46 }
  0xe6   : > { %v498_v35 = vpop.f32.mrf.mxu2 }
  0xe7   : > { %v516_v36 = vadd.f32 %v498_v35, %v405_v17 }
  0xe8   : > { %v412_v37 = vpop.f32.mrf.mxu1 }
  0xe9   : > { %v627_v6 = vadd.f32 %v609_v28, %v516_v36  ;;  %v413_v38 = vadd.f32 %v412_v37, %v2075_v15  ;;  %v614_v47 = vpop.f32.mrf.mxu3 }
  0xeb   : > { %v2118_v39 = vadd.f32 %v755_v20, %v627_v6  ;;  %v763_v40 = vpop.f32.mrf.mxu0 }
  0xee   : > { %v501_v41 = vpop.f32.mrf.mxu2 }
  0xef   : > { %v517_v29 = vadd.f32 %v501_v41, %v408_v23 }
  0xf0   : > { %v414_v43 = vpop.f32.mrf.mxu1 }
  0xf1   : > { %v628_v44 = vadd.f32 %v612_v33, %v517_v29  ;;  %v415_v18 = vadd.f32 %v414_v43, %v2085_v31  ;;  %v617_v45 = vpop.f32.mrf.mxu3 }
  0xf3   : > { %v2121_v48 = vadd.f32 %v758_v30, %v628_v44  ;;  %v765_v50 = vpop.f32.mrf.mxu0 }
  0xf6   : > { %v503_v49 = vpop.f32.mrf.mxu2 }
  0xf7   : > { %v518_v51 = vadd.f32 %v503_v49, %v410_v7 }
  0xf8   : > { %v847_v53 = vpop.f32.mrf.mxu1 }
  0xf9   : > { %v629_v32 = vadd.f32 %v614_v47, %v518_v51  ;;  %v619_v11 = vpop.f32.mrf.mxu3  ;;  %v872_v26 = vadd.f32 %v847_v53, %v2103_v4 }
  0xfb   : > { %v2123_v15 = vadd.f32 %v760_v24, %v629_v32  ;;  %v1184_v56 = vpop.f32.mrf.mxu0 }
  0xfe   : > { %v506_v54 = vpop.f32.mrf.mxu2 }
  0xff   : > { %v519_v55 = vadd.f32 %v506_v54, %v413_v38 }
 0x100   : > { %v849_v3 = vpop.f32.mrf.mxu1 }
 0x101   : > { %v630_v57 = vadd.f32 %v617_v45, %v519_v55  ;;  %v1080_v52 = vpop.f32.mrf.mxu3  ;;  %v873_v20 = vadd.f32 %v849_v3, %v2108_v42 }
 0x103   : > { %v2125_v12 = vadd.f32 %v763_v40, %v630_v57  ;;  %v1186_v62 = vpop.f32.mrf.mxu0 }
 0x106   : > { %v508_v31 = vpop.f32.mrf.mxu2 }
 0x107   : > { %v520_v58 = vadd.f32 %v508_v31, %v415_v18 }
 0x108   : > { %v852_v13 = vpop.f32.mrf.mxu1 }
 0x109   : > { %v631_v59 = vadd.f32 %v619_v11, %v520_v58  ;;  %v1082_v61 = vpop.f32.mrf.mxu3  ;;  %v874_v42 = vadd.f32 %v852_v13, %v2111_v21 }
 0x10b   : > { %v2127_v63 = vadd.f32 %v765_v50, %v631_v59  ;;  %v1189_v19 = vpop.f32.mrf.mxu0 }
 0x10e   : > { %v954_v14 = vpop.f32.mrf.mxu2 }
 0x10f   : > { %v979_v5 = vadd.f32 %v954_v14, %v872_v26 }
 0x110   : > { %v854_v4 = vpop.f32.mrf.mxu1 }
 0x111   : > { %v1105_v1 = vadd.f32 %v1080_v52, %v979_v5  ;;  %v1085_v16 = vpop.f32.mrf.mxu3  ;;  %v875_v36 = vadd.f32 %v854_v4, %v2113_v8 }
 0x113   : > { %v1209_v17 = vadd.f32 %v1184_v56, %v1105_v1  ;;  %v1191_v60 = vpop.f32.mrf.mxu0 }
 0x115   : > { %v1223_v22 = vadd.f32 %v2133_v2, %v1209_v17 }
 0x116   : > { %v956_v25 = vpop.f32.mrf.mxu2 }
 0x117   : > { %v1233_v27 = vmax.f32 %v1223_v22, 0.0  ;;  %v980_v0 = vadd.f32 %v956_v25, %v873_v20 }
 0x118   : > { %v857_v33 = vpop.f32.mrf.mxu1 }
 0x119   : > { %1243 = vst.msk [vmem:[%s2141_s21] sm:$0xff] %vm299_vm1, %v1233_v27  ;;  %v1106_v23 = vadd.f32 %v1082_v61, %v980_v0  ;;  %v1087_v30 = vpop.f32.mrf.mxu3  ;;  %v876_v8 = vadd.f32 %v857_v33, %v2115_v34 }
 0x11b   : > { %v1210_v28 = vadd.f32 %v1186_v62, %v1106_v23  ;;  %v1194_v40 = vpop.f32.mrf.mxu0 }
 0x11d   : > { %v1224_v9 = vadd.f32 %v2133_v2, %v1210_v28 }
 0x11e   : > { %v959_v10 = vpop.f32.mrf.mxu2 }
 0x11f   : > { %v1234_v46 = vmax.f32 %v1224_v9, 0.0  ;;  %v981_v7 = vadd.f32 %v959_v10, %v874_v42 }
 0x120   : > { %v859_v29 = vpop.f32.mrf.mxu1 }
 0x121   : > { %1586 = vst.msk [vmem:[%s2141_s21 + $0x6] sm:$0xfc] %vm1245_vm7, %v1234_v46  ;;  %v1107_v24 = vadd.f32 %v1085_v16, %v981_v7  ;;  %v1090_v6 = vpop.f32.mrf.mxu3  ;;  %v877_v54 = vadd.f32 %v859_v29, %v2118_v39 }
 0x123   : > { %v1211_v35 = vadd.f32 %v1189_v19, %v1107_v24  ;;  %v1196_v53 = vpop.f32.mrf.mxu0 }
 0x125   : > { %v1225_v37 = vadd.f32 %v2133_v2, %v1211_v35 }
 0x126   : > { %v961_v21 = vpop.f32.mrf.mxu2 }
 0x127   : > { %v1235_v38 = vmax.f32 %v1225_v37, 0.0  ;;  %v982_v47 = vadd.f32 %v961_v21, %v875_v36 }
 0x128   : > { %v862_v11 = vpop.f32.mrf.mxu1 }
 0x129   : > { %1587 = vst.msk [vmem:[%s2141_s21 + $0xe] sm:$0x3] %vm1247_vm8, %v1235_v38  ;;  %v1108_v41 = vadd.f32 %v1087_v30, %v982_v47  ;;  %v1092_v50 = vpop.f32.mrf.mxu3  ;;  %v878_v59 = vadd.f32 %v862_v11, %v2121_v48 }
 0x12a   : > { %1588 = vst.msk [vmem:[%s2141_s21 + $0xc] sm:$0xf0] %vm1250_vm9, %v1235_v38 }
 0x12b   : > { %v1212_v43 = vadd.f32 %v1191_v60, %v1108_v41  ;;  %v1199_v58 = vpop.f32.mrf.mxu0 }
 0x12d   : > { %v1226_v44 = vadd.f32 %v2133_v2, %v1212_v43 }
 0x12e   : > { %v964_v18 = vpop.f32.mrf.mxu2 }
 0x12f   : > { %v1236_v45 = vmax.f32 %v1226_v44, 0.0  ;;  %v983_v49 = vadd.f32 %v964_v18, %v876_v8 }
 0x130   : > { %v864_v62 = vpop.f32.mrf.mxu1 }
 0x131   : > { %1589 = vst.msk [vmem:[%s2141_s21 + $0x14] sm:$0xf] %vm1252_vm10, %v1236_v45  ;;  %v1109_v51 = vadd.f32 %v1090_v6, %v983_v49  ;;  %v1095_v3 = vpop.f32.mrf.mxu3  ;;  %v879_v16 = vadd.f32 %v864_v62, %v2123_v15 }
 0x132   : > { %1590 = vst.msk [vmem:[%s2141_s21 + $0x12] sm:$0xc0] %vm1255_vm11, %v1236_v45 }
 0x133   : > { %v1213_v32 = vadd.f32 %v1194_v40, %v1109_v51  ;;  %v1201_v19 = vpop.f32.mrf.mxu0 }
 0x135   : > { %v1227_v34 = vadd.f32 %v2133_v2, %v1213_v32 }
 0x136   : > { %v966_v55 = vpop.f32.mrf.mxu2 }
 0x137   : > { %v1237_v56 = vmax.f32 %v1227_v34, 0.0  ;;  %v984_v57 = vadd.f32 %v966_v55, %v877_v54 }
 0x138   : > { %v867_v4 = vpop.f32.mrf.mxu1 }
 0x139   : > { %1591 = vst.msk [vmem:[%s2141_s21 + $0x1a] sm:$0x3f] %vm1257_vm12, %v1237_v56  ;;  %v1110_v52 = vadd.f32 %v1092_v50, %v984_v57  ;;  %v1097_v1 = vpop.f32.mrf.mxu3  ;;  %v880_v0 = vadd.f32 %v867_v4, %v2125_v12 }
 0x13b   : > { %v1214_v31 = vadd.f32 %v1196_v53, %v1110_v52  ;;  %v1204_v9 = vpop.f32.mrf.mxu0 }
 0x13d   : > { %v1228_v61 = vadd.f32 %v2133_v2, %v1214_v31 }
 0x13e   : > { %v969_v39 = vpop.f32.mrf.mxu2 }
 0x13f   : > { %v1238_v13 = vmax.f32 %v1228_v61, 0.0  ;;  %v985_v26 = vadd.f32 %v969_v39, %v878_v59 }
 0x140   : > { %v869_v60 = vpop.f32.mrf.mxu1 }
 0x141   : > { %1592 = vst.msk [vmem:[%s2141_s21 + $0x20] sm:$0xff] %vm299_vm1, %v1238_v13  ;;  %v1111_v14 = vadd.f32 %v1095_v3, %v985_v26  ;;  %v1100_v28 = vpop.f32.mrf.mxu3  ;;  %v881_v7 = vadd.f32 %v869_v60, %v2127_v63 }
 0x143   : > { %v1215_v5 = vadd.f32 %v1199_v58, %v1111_v14  ;;  %v1206_v21 = vpop.f32.mrf.mxu0 }
 0x145   : > { %v1229_v17 = vadd.f32 %v2133_v2, %v1215_v5 }
 0x146   : > { %v971_v20 = vpop.f32.mrf.mxu2 }
 0x147   : > { %v1239_v48 = vmax.f32 %v1229_v17, 0.0  ;;  %v986_v22 = vadd.f32 %v971_v20, %v879_v16 }
 0x149   : > { %1593 = vst.msk [vmem:[%s2141_s21 + $0x26] sm:$0xfc] %vm1245_vm7, %v1239_v48  ;;  %v1112_v25 = vadd.f32 %v1097_v1, %v986_v22  ;;  %v1102_v36 = vpop.f32.mrf.mxu3 }
 0x14b   : > { %v1216_v27 = vadd.f32 %v1201_v19, %v1112_v25 }
 0x14d   : > { %v1230_v23 = vadd.f32 %v2133_v2, %v1216_v27 }
 0x14e   : > { %v974_v15 = vpop.f32.mrf.mxu2 }
 0x14f   : > { %v1240_v30 = vmax.f32 %v1230_v23, 0.0  ;;  %v987_v42 = vadd.f32 %v974_v15, %v880_v0 }
 0x151   : > { %1594 = vst.msk [vmem:[%s2141_s21 + $0x2e] sm:$0x3] %vm1247_vm8, %v1240_v30  ;;  %v1113_v10 = vadd.f32 %v1100_v28, %v987_v42 }
 0x152   : > { %1595 = vst.msk [vmem:[%s2141_s21 + $0x2c] sm:$0xf0] %vm1250_vm9, %v1240_v30 }
 0x153   : > { %v1217_v46 = vadd.f32 %v1204_v9, %v1113_v10 }
 0x155   : > { %v1231_v12 = vadd.f32 %v2133_v2, %v1217_v46 }
 0x156   : > { %v976_v33 = vpop.f32.mrf.mxu2 }
 0x157   : > { %v1241_v24 = vmax.f32 %v1231_v12, 0.0  ;;  %v988_v35 = vadd.f32 %v976_v33, %v881_v7 }
 0x159   : > { %1596 = vst.msk [vmem:[%s2141_s21 + $0x34] sm:$0xf] %vm1252_vm10, %v1241_v24  ;;  %v1114_v37 = vadd.f32 %v1102_v36, %v988_v35 }
 0x15a   : > { %1597 = vst.msk [vmem:[%s2141_s21 + $0x32] sm:$0xc0] %vm1255_vm11, %v1241_v24 }
 0x15b   : > { %v1218_v6 = vadd.f32 %v1206_v21, %v1114_v37 }
 0x15d   : > { %v1232_v38 = vadd.f32 %v2133_v2, %v1218_v6 }
 0x15f   : > { %v1242_v47 = vmax.f32 %v1232_v38, 0.0 }
 0x161   : > { %1598 = vst.msk [vmem:[%s2141_s21 + $0x3a] sm:$0x3f] %vm1257_vm12, %v1242_v47 }
 0x162 PF: > { %s13_s12 = sadd.s32 1, %s1723_s12  }
 0x163   : > { %p10_p4 = scmp.ge.s32.totalorder %s13_s12, 4  }
 0x165   :  { %12 = sbr.rel (!%p10_p4) target bundleno = 1 (0x1), region = 77 }

// kernel: vgg_forward.12
= control target key start
LH: loop header
LB: loop body
LE: loop exit
PB: predicated region body
PF: predicated region fallthrough
CT: control target
= control target key end

     0   :  { %s1183_s12 = smov 0   ;;  %s1366_s0 = inlined_call_operand.vmem [shape: bf16[2,38,64], index: 0, kind: input, shape index: {}]   ;;  %s1367_s1 = inlined_call_operand.vmem [shape: bf16[9,64,128], index: 1, kind: input, shape index: {}]   ;;  %s1368_s2 = inlined_call_operand.vmem [shape: f32[1,128], index: 2, kind: input, shape index: {}]   ;;  %s1369_s3 = inlined_call_operand.vmem [shape: f32[2,4,4,128], index: 3, kind: output, shape index: {}]  }
   0x1 LB: > { %s855_s13 = sadd.s32 4294967295, %s1161_s12   ;;  %p859_p0 = scmp.ge.s32.totalorder %s1161_s12, 1  ;;  %s1161_s12 = sphi %s1183_s12, %s13_s12  }
   0x2   : > { %p137_p1 = scmp.lt.s32.totalorder %s1161_s12, 3 }
   0x4   : > { %p138_p2 = pnand %p859_p0, %p137_p1 }
   0x5   : > { %p161_p3 = scmp.lt.s32.totalorder (!%p138_p2), %s855_s13, 1 }
   0x6   : > { %141 = sbr.rel (%p138_p2) target bundleno = 231 (0xe7), region = 32 }
   0xb   : > { %v1103_v0 = vld [vmem:[%s1367_s1 + $0x38] sm:$0xff]  ;;  %v1102_v3 = vld [vmem:[%s1367_s1 + $0x30] sm:$0xff]  ;;  %s1371_s13 = smov (!%p161_p3, %s855_s13), 1  ;;  %v1101_v6 = vld [vmem:[%s1367_s1 + $0x28] sm:$0xff]  ;;  %vm204_vm0 = vsmask.f32 7424 }
   0xc   : > { %v1107_v1 = vld [vmem:[%s1367_s1 + $0x58] sm:$0xff]  ;;  %255 = vmatpush.bf16.msra.mxu0 %v1103_v0  ;;  %1141 = vmatpush.bf16.msra.mxu1 %v1103_v0  ;;  %v1106_v4 = vld [vmem:[%s1367_s1 + $0x50] sm:$0xff]  ;;  %s1145_s26 = smul.u32 20, %s1371_s13  ;;  %v1105_v7 = vld [vmem:[%s1367_s1 + $0x48] sm:$0xff]  ;;  %vm326_vm1 = vcmask 1046528   ;;  %vm390_vm2 = vcmask 1044480  }
   0xd   : > { %v1111_v2 = vld [vmem:[%s1367_s1 + $0x78] sm:$0xff]  ;;  %364 = vmatpush.bf16.msra.mxu2 %v1107_v1  ;;  %v1110_v5 = vld [vmem:[%s1367_s1 + $0x70] sm:$0xff]  ;;  %v1109_v8 = vld [vmem:[%s1367_s1 + $0x68] sm:$0xff]  ;;  %vm244_vm3 = vcmask 523264   ;;  %vm454_vm4 = vsmask.f32 4352 }
   0xe   : > { %428 = vmatpush.bf16.msra.mxu3 %v1111_v2  ;;  %s1221_s6 = scalar_lea.vmem %s1366_s0, %s1145_s26  ;;  %v1100_v15 = vld [vmem:[%s1367_s1 + $0x20] sm:$0xff]  ;;  %v1099_v18 = vld [vmem:[%s1367_s1 + $0x18] sm:$0xff]  ;;  %v1098_v30 = vld [vmem:[%s1367_s1 + $0x10] sm:$0xff]  ;;  %vm587_vm5 = vcmask 1045504   ;;  %vm651_vm6 = vsmask.f32 5376 }
   0xf   : > { %v1227_v9 = vld [vmem:[%s1221_s6] sm:$0xff]   ;;  %v1230_v10 = vld [vmem:[%s1221_s6 + $0x8] sm:$0xff]   ;;  %v1115_v23 = vld [vmem:[%s1367_s1 + $0x98] sm:$0xff]  ;;  %s1095_s18 = sshll.u32 %s1371_s13, 4 }
  0x10   : > { %256 = vmatpush.bf16.msra.mxu0 %v1102_v3  ;;  %1142 = vmatpush.bf16.msra.mxu1 %v1102_v3  ;;  %v206_v11 = vshrl.u32 %v1227_v9, 16  ;;  %v208_v12 = vshll.u32 %v1227_v9, 16  ;;  %v213_v13 = vshll.u32 %v1230_v10, 16  ;;  %v217_v14 = vshrl.u32 %v1230_v10, 16  ;;  %v1104_v19 = vld [vmem:[%s1367_s1 + $0x40] sm:$0xff]  ;;  %v1127_v29 = vld [vmem:[%s1367_s1 + $0xf8] sm:$0xff]  ;;  %s170_s21 = scalar_lea.vmem %s1369_s3, %s1095_s18 }
  0x11   : > { %365 = vmatpush.bf16.msra.mxu2 %v1106_v4  ;;  %v327_v20 = vrot.slane %v1227_v9, 1  ;;  %v328_v21 = vrot.slane %v1230_v10, 1  ;;  %v1108_v24 = vld [vmem:[%s1367_s1 + $0x60] sm:$0xff]  ;;  %v391_v25 = vrot.slane %v1227_v9, 3  ;;  %v392_v26 = vrot.slane %v1230_v10, 3  ;;  %v1114_v32 = vld [vmem:[%s1367_s1 + $0x90] sm:$0xff] }
  0x12   : > { %429 = vmatpush.bf16.msra.mxu3 %v1110_v5  ;;  %v210_v16 = vrot.slane %v208_v12, 1  ;;  %v215_v17 = vrot.slane %v213_v13, 1  ;;  %v1123_v34 = vld [vmem:[%s1367_s1 + $0xd8] sm:$0xff]  ;;  %v1126_v35 = vld [vmem:[%s1367_s1 + $0xf0] sm:$0xff]  ;;  %v1097_v36 = vld [vmem:[%s1367_s1 + $0x8] sm:$0xff]  ;;  %v458_v39 = vrot.slane %v217_v14, 3  ;;  %v1135_v54 = vunpack.c.h.b16 %v1227_v9 }
  0x13   : > { %v329_v31 = vsel %vm326_vm1, %v327_v20, %v328_v21  ;;  %v393_v33 = vsel %vm390_vm2, %v391_v25, %v392_v26  ;;  %v1113_v37 = vld [vmem:[%s1367_s1 + $0x88] sm:$0xff]  ;;  %v1122_v38 = vld [vmem:[%s1367_s1 + $0xd0] sm:$0xff]  ;;  %v455_v40 = vrot.slane %v206_v11, 3  ;;  %v456_v41 = vrot.slane %v208_v12, 4  ;;  %v1096_v44 = vld [vmem:[%s1367_s1] sm:$0xff] }
  0x14   : > { %257 = vmatpush.bf16.msra.mxu0 %v1101_v6  ;;  %1143 = vmatpush.bf16.msra.mxu1 %v1101_v6  ;;  %v211_v22 = vor.u32 %v210_v16, %v206_v11  ;;  %v219_v27 = vor.u32 %v217_v14, %v215_v17  ;;  %v459_v42 = vrot.slane %v213_v13, 4  ;;  %v1125_v43 = vld [vmem:[%s1367_s1 + $0xe8] sm:$0xff]  ;;  %v1112_v45 = vld [vmem:[%s1367_s1 + $0x80] sm:$0xff]  ;;  %v1119_v46 = vld [vmem:[%s1367_s1 + $0xb8] sm:$0xff]  ;;  %v1138_v55 = vunpack.c.l.b16 %v1230_v10 }
  0x15   : > { %366 = vmatpush.bf16.msra.mxu2 %v1105_v7  ;;  %v1131_v47 = vld [vmem:[%s1367_s1 + $0x118] sm:$0xff]  ;;  %v1121_v48 = vld [vmem:[%s1367_s1 + $0xc8] sm:$0xff]  ;;  %v176_v49 = vld [vmem:[%s1221_s6 + $0x10] sm:$0x7]  ;;  %v457_v50 = vor.u32 %v456_v41, %v455_v40  ;;  %v1139_v56 = vunpack.c.h.b16 %v1230_v10 }
  0x16   : > { %430 = vmatpush.bf16.msra.mxu3 %v1109_v8  ;;  %v216_v28 = vsel %vm204_vm0, %v211_v22, %v215_v17  ;;  %v460_v51 = vor.u32 %v459_v42, %v458_v39  ;;  %v1124_v52 = vld [vmem:[%s1367_s1 + $0xe0] sm:$0xff]  ;;  %v1118_v53 = vld [vmem:[%s1367_s1 + $0xb0] sm:$0xff]  ;;  %v585_v57 = vunpack.c.l.b16 %v176_v49  ;;  %v522_v61 = vpack.c.b16 %v1138_v55, %v1135_v54  ;;  %v1117_v62 = vld [vmem:[%s1367_s1 + $0xa8] sm:$0xff] }
  0x17   : > { %v1130_v59 = vld [vmem:[%s1367_s1 + $0x110] sm:$0xff]  ;;  %v1120_v60 = vld [vmem:[%s1367_s1 + $0xc0] sm:$0xff]  ;;  %v1129_v0 = vld [vmem:[%s1367_s1 + $0x108] sm:$0xff] }
  0x18   : > { %258 = vmatpush.bf16.msra.mxu0 %v1100_v15  ;;  %1144 = vmatpush.bf16.msra.mxu1 %v1100_v15  ;;  %v461_v58 = vsel %vm454_vm4, %v457_v50, %v460_v51  ;;  %v586_v63 = vpack.c.b16 %v585_v57, %v1139_v56  ;;  %v652_v1 = vshrl.u32 %v522_v61, 16  ;;  %v655_v2 = vshll.u32 %v522_v61, 16  ;;  %v1116_v5 = vld [vmem:[%s1367_s1 + $0xa0] sm:$0xff] }
  0x19   : > { %367 = vmatpush.bf16.msra.mxu2 %v1104_v19  ;;  %v1128_v6 = vld [vmem:[%s1367_s1 + $0x100] sm:$0xff]  ;;  %v588_v11 = vrot.slane %v522_v61, 2  ;;  %v269_v15 = vpack.c.b16 %v1138_v55, %v1138_v55 }
  0x1a   : > { %431 = vmatpush.bf16.msra.mxu3 %v1108_v24  ;;  %v660_v3 = vshrl.u32 %v586_v63, 16  ;;  %v663_v4 = vshll.u32 %v586_v63, 16  ;;  %v654_v7 = vrot.slane %v652_v1, 2  ;;  %v657_v8 = vrot.slane %v655_v2, 3 }
  0x1b   : > { %887 = vmatmul.msk.bf16.vlgmr.msra.gmra.mxu0 %vm244_vm3, %v216_v28  ;;  %888 = vmatmul.msk.bf16.vlgmr.msra.gmra.mxu1 %vm244_vm3, %v219_v27  ;;  %v589_v12 = vrot.slane %v586_v63, 2  ;;  %v729_v19 = vrot.slane %v586_v63, 3 }
  0x1c   : > { %303 = vmatpush.bf16.msrb.mxu1 %v1099_v18  ;;  %496 = vmatpush.bf16.msrb.mxu0 %v1115_v23  ;;  %v665_v10 = vrot.slane %v663_v4, 3  ;;  %v658_v13 = vor.u32 %v657_v8, %v654_v7  ;;  %v728_v18 = vrot.slane %v522_v61, 3 }
  0x1d   : > { %931 = vmatmul.msk.bf16.vlgmr.msra.gmra.mxu2 %vm244_vm3, %v329_v31  ;;  %957 = vmatmul.msk.bf16.vlgmr.msra.gmra.mxu3 %vm244_vm3, %v393_v33  ;;  %v590_v16 = vsel %vm587_vm5, %v588_v11, %v589_v12 }
  0x1e   : > { %702 = vmatpush.bf16.msrb.mxu3 %v1127_v29  ;;  %625 = vmatpush.bf16.msrb.mxu2 %v1123_v34  ;;  %v730_v20 = vsel %vm390_vm2, %v728_v18, %v729_v19 }
  0x20   : > { %304 = vmatpush.bf16.msrb.mxu1 %v1098_v30  ;;  %497 = vmatpush.bf16.msrb.mxu0 %v1114_v32 }
  0x22   : > { %703 = vmatpush.bf16.msrb.mxu3 %v1126_v35  ;;  %626 = vmatpush.bf16.msrb.mxu2 %v1122_v38 }
  0x24   : > { %305 = vmatpush.bf16.msrb.mxu1 %v1097_v36  ;;  %498 = vmatpush.bf16.msrb.mxu0 %v1113_v37 }
  0x26   : > { %704 = vmatpush.bf16.msrb.mxu3 %v1125_v43  ;;  %627 = vmatpush.bf16.msrb.mxu2 %v1121_v48 }
  0x28   : > { %306 = vmatpush.bf16.msrb.mxu1 %v1096_v44  ;;  %499 = vmatpush.bf16.msrb.mxu0 %v1112_v45 }
  0x2a   : > { %705 = vmatpush.bf16.msrb.mxu3 %v1124_v52  ;;  %628 = vmatpush.bf16.msrb.mxu2 %v1120_v60 }
  0x2b   : > { %905 = vmatmul.msk.bf16.vlgmr.msrb.gmra.mxu1 %vm244_vm3, %v1227_v9  ;;  %983 = vmatmul.msk.bf16.vlgmr.msrb.gmra.mxu0 %vm244_vm3, %v461_v58  ;;  %v662_v9 = vrot.slane %v660_v3, 2 }
  0x2c   : > { %558 = vmatpush.bf16.msra.mxu1 %v1119_v46  ;;  %765 = vmatpush.bf16.msra.mxu0 %v1131_v47 }
  0x2d   : > { %932 = vmatmul.msk.bf16.gmra.mxu2 %vm244_vm3, %v328_v21  ;;  %958 = vmatmul.msk.bf16.gmra.mxu3 %vm244_vm3, %v392_v26  ;;  %v666_v14 = vor.u32 %v665_v10, %v662_v9  ;;  %v523_v21 = vpack.c.b16 %v1139_v56, %v1139_v56 }
  0x2f   : > { %v667_v17 = vsel %vm651_vm6, %v658_v13, %v666_v14 }
  0x30   : > { %559 = vmatpush.bf16.msra.mxu1 %v1118_v53  ;;  %766 = vmatpush.bf16.msra.mxu0 %v1130_v59  ;;  %v1154_v59 = vld [vmem:[%s1368_s2] ss:$0 sm:$0xff] }
  0x34   : > { %560 = vmatpush.bf16.msra.mxu1 %v1117_v62  ;;  %767 = vmatpush.bf16.msra.mxu0 %v1129_v0 }
  0x38   : > { %561 = vmatpush.bf16.msra.mxu1 %v1116_v5  ;;  %768 = vmatpush.bf16.msra.mxu0 %v1128_v6 }
  0x3b   : > { %906 = vmatmul.msk.bf16.gmra.mxu1 %vm244_vm3, %v269_v15  ;;  %984 = vmatmul.msk.bf16.gmra.mxu0 %vm244_vm3, %v460_v51 }
  0x3d   : > { %1035 = vmatmul.msk.bf16.vlgmr.msrb.gmra.mxu2 %vm244_vm3, %v590_v16  ;;  %1061 = vmatmul.msk.bf16.vlgmr.msrb.gmra.mxu3 %vm244_vm3, %v667_v17 }
  0x4b   : > { %1009 = vmatmul.msk.bf16.vlgmr.msra.gmra.mxu1 %vm244_vm3, %v522_v61  ;;  %1087 = vmatmul.msk.bf16.vlgmr.msra.gmra.mxu0 %vm244_vm3, %v730_v20 }
  0x4d   : > { %1036 = vmatmul.msk.bf16.gmra.mxu2 %vm244_vm3, %v589_v12  ;;  %1062 = vmatmul.msk.bf16.gmra.mxu3 %vm244_vm3, %v666_v14 }
  0x5b   : > { %1010 = vmatmul.msk.bf16.gmra.mxu1 %vm244_vm3, %v523_v21  ;;  %1088 = vmatmul.msk.bf16.gmra.mxu0 %vm244_vm3, %v729_v19 }
  0x98   : > { %v260_v22 = vpop.f32.mrf.mxu0  ;;  %v265_v23 = vpop.f32.mrf.mxu1 }
  0xa0   : > { %v369_v24 = vpop.f32.mrf.mxu2  ;;  %v262_v25 = vpop.f32.mrf.mxu0 }
  0xa1   : > { %v267_v26 = vpop.f32.mrf.mxu1  ;;  %v433_v27 = vpop.f32.mrf.mxu3 }
  0xa8   : > { %v371_v28 = vpop.f32.mrf.mxu2  ;;  %v501_v30 = vpop.f32.mrf.mxu0 }
  0xa9   : > { %v308_v29 = vpop.f32.mrf.mxu1  ;;  %v435_v31 = vpop.f32.mrf.mxu3 }
  0xaa   : > { %v309_v40 = vadd.f32 %v308_v29, %v260_v22 }
  0xac   : > { %v378_v41 = vadd.f32 %v369_v24, %v309_v40 }
  0xae   : > { %v442_v46 = vadd.f32 %v433_v27, %v378_v41 }
  0xb0   : > { %v374_v32 = vpop.f32.mrf.mxu2  ;;  %v503_v34 = vpop.f32.mrf.mxu0  ;;  %v510_v48 = vadd.f32 %v501_v30, %v442_v46 }
  0xb1   : > { %v310_v33 = vpop.f32.mrf.mxu1  ;;  %v438_v35 = vpop.f32.mrf.mxu3 }
  0xb2   : > { %v311_v47 = vadd.f32 %v310_v33, %v262_v25 }
  0xb4   : > { %v379_v49 = vadd.f32 %v371_v28, %v311_v47 }
  0xb6   : > { %v443_v55 = vadd.f32 %v435_v31, %v379_v49 }
  0xb8   : > { %v376_v36 = vpop.f32.mrf.mxu2  ;;  %v506_v38 = vpop.f32.mrf.mxu0  ;;  %v511_v60 = vadd.f32 %v503_v34, %v443_v55 }
  0xb9   : > { %v313_v37 = vpop.f32.mrf.mxu1  ;;  %v440_v39 = vpop.f32.mrf.mxu3 }
  0xba   : > { %v314_v56 = vadd.f32 %v313_v37, %v265_v23 }
  0xbc   : > { %v380_v61 = vadd.f32 %v374_v32, %v314_v56 }
  0xbe   : > { %v444_v5 = vadd.f32 %v438_v35, %v380_v61 }
  0xc0   : > { %v630_v42 = vpop.f32.mrf.mxu2  ;;  %v508_v44 = vpop.f32.mrf.mxu0  ;;  %v512_v9 = vadd.f32 %v506_v38, %v444_v5 }
  0xc1   : > { %v315_v43 = vpop.f32.mrf.mxu1  ;;  %v707_v45 = vpop.f32.mrf.mxu3 }
  0xc8   : > { %v632_v50 = vpop.f32.mrf.mxu2  ;;  %v770_v52 = vpop.f32.mrf.mxu0 }
  0xc9   : > { %v563_v51 = vpop.f32.mrf.mxu1  ;;  %v709_v54 = vpop.f32.mrf.mxu3 }
  0xca   : > { %v572_v53 = vadd.f32 %v563_v51, %v510_v48 }
  0xcc   : > { %v639_v57 = vadd.f32 %v630_v42, %v572_v53 }
  0xce   : > { %v716_v58 = vadd.f32 %v707_v45, %v639_v57 }
  0xd0   : > { %v779_v62 = vadd.f32 %v770_v52, %v716_v58  ;;  %v635_v63 = vpop.f32.mrf.mxu2  ;;  %v772_v1 = vpop.f32.mrf.mxu0 }
  0xd1   : > { %v565_v0 = vpop.f32.mrf.mxu1  ;;  %v712_v4 = vpop.f32.mrf.mxu3 }
  0xd2   : > { %v786_v2 = vadd.f32 %v1154_v59, %v779_v62  ;;  %v573_v3 = vadd.f32 %v565_v0, %v511_v60 }
  0xd4   : > { %v789_v6 = vmax.f32 %v786_v2, 0.0  ;;  %v640_v7 = vadd.f32 %v632_v50, %v573_v3 }
  0xd6   : > { %792 = vst [vmem:[%s170_s21] sm:$0xf] %v789_v6  ;;  %v717_v8 = vadd.f32 %v709_v54, %v640_v7 }
  0xd7   : > { %1089 = vst [vmem:[%s170_s21 - $0x2] sm:$0xc0] %v789_v6 }
  0xd8   : > { %v780_v10 = vadd.f32 %v772_v1, %v717_v8  ;;  %v637_v11 = vpop.f32.mrf.mxu2  ;;  %v775_v13 = vpop.f32.mrf.mxu0 }
  0xd9   : > { %v568_v12 = vpop.f32.mrf.mxu1  ;;  %v714_v16 = vpop.f32.mrf.mxu3 }
  0xda   : > { %v787_v14 = vadd.f32 %v1154_v59, %v780_v10  ;;  %v574_v15 = vadd.f32 %v568_v12, %v512_v9 }
  0xdc   : > { %v790_v17 = vmax.f32 %v787_v14, 0.0  ;;  %v641_v18 = vadd.f32 %v635_v63, %v574_v15 }
  0xde   : > { %1090 = vst [vmem:[%s170_s21 + $0x6] sm:$0x3] %v790_v17  ;;  %v718_v19 = vadd.f32 %v712_v4, %v641_v18 }
  0xdf   : > { %1091 = vst [vmem:[%s170_s21 + $0x4] sm:$0xf0] %v790_v17 }
  0xe0   : > { %v781_v20 = vadd.f32 %v775_v13, %v718_v19  ;;  %v777_v22 = vpop.f32.mrf.mxu0 }
  0xe1   : > { %v570_v21 = vpop.f32.mrf.mxu1 }
  0xe2   : > { %v788_v23 = vadd.f32 %v1154_v59, %v781_v20 }
  0xe4   : > { %v791_v24 = vmax.f32 %v788_v23, 0.0 }
  0xe6   : > { %1092 = vst [vmem:[%s170_s21 + $0xa] sm:$0x3c] %v791_v24 }
  0xe7 PF: > { %s13_s12 = sadd.s32 1, %s1161_s12  }
  0xe8   : > { %p10_p4 = scmp.ge.s32.totalorder %s13_s12, 4  }
  0xea   :  { %12 = sbr.rel (!%p10_p4) target bundleno = 1 (0x1), region = 73 }

// kernel: vgg_forward.14
= control target key start
LH: loop header
LB: loop body
LE: loop exit
PB: predicated region body
PF: predicated region fallthrough
CT: control target
= control target key end

     0   :  { %s230_s6 = smov 0   ;;  %s241_s0 = inlined_call_operand.vmem [shape: f32[2,2,1024], index: 0, kind: input, shape index: {}]   ;;  %s242_s1 = inlined_call_operand.vmem [shape: f32[2,2,256], index: 1, kind: output, shape index: {}]  }
   0x1 LB: > { %s191_s7 = sadd.s32 4294967295, %s218_s6   ;;  %p195_p0 = scmp.ge.s32.totalorder %s218_s6, 1  ;;  %s218_s6 = sphi %s230_s6, %s11_s6  }
   0x2   : > { %p87_p1 = scmp.lt.s32.totalorder %s218_s6, 3 }
   0x4   : > { %p88_p2 = pnand %p195_p0, %p87_p1 }
   0x5   : > { %p107_p3 = scmp.lt.s32.totalorder (!%p88_p2), %s191_s7, 1 }
   0x6   : > { %91 = sbr.rel (%p88_p2) target bundleno = 25 (0x19), region = 24 }
   0xb   : > { %s244_s7 = smov (!%p107_p3, %s191_s7), 1  ;;  %vm132_vm0 = vcmask 1041408  }
   0xc   : > { %s202_s8 = sshll.u32 %s244_s7, 4  ;;  %s203_s12 = sshll.u32 %s244_s7, 2 }
   0xd   : > { %s111_s11 = scalar_lea.vmem %s241_s0, %s202_s8  ;;  %s116_s15 = scalar_lea.vmem %s242_s1, %s203_s12 }
   0xe   : > { %v117_v0 = vld [vmem:[%s111_s11] sm:$0xff]  ;;  %v118_v1 = vld [vmem:[%s111_s11 + $0x8] sm:$0xff] }
   0xf   : > { %v119_v2 = vmax.f32 %v117_v0, %v118_v1 }
  0x11   : > { %v121_v3 = vrot.slane %v119_v2, 2  ;;  %v124_v4 = vrot.slane %v119_v2, 4  ;;  %v126_v5 = vrot.slane %v119_v2, 6 }
  0x13   : > { %v123_v6 = vmax.f32 %v119_v2, %v121_v3  ;;  %v128_v7 = vmax.f32 %v124_v4, %v126_v5 }
  0x15   : > { %v131_v8 = vrot.slane %v128_v7, 6 }
  0x17   : > { %v133_v9 = vsel %vm132_vm0, %v123_v6, %v131_v8 }
  0x18   : > { %135 = vst [vmem:[%s116_s15] sm:$0xf] %v133_v9 }
  0x19 PF: > { %s11_s6 = sadd.s32 1, %s218_s6  }
  0x1a   : > { %p8_p4 = scmp.ge.s32.totalorder %s11_s6, 4  }
  0x1c   :  { %10 = sbr.rel (!%p8_p4) target bundleno = 1 (0x1), region = 54 }

// kernel: vgg_forward.13
= control target key start
LH: loop header
LB: loop body
LE: loop exit
PB: predicated region body
PF: predicated region fallthrough
CT: control target
= control target key end

     0   :  { %s1665_s12 = smov 0   ;;  %s1968_s0 = inlined_call_operand.vmem [shape: bf16[2,38,128], index: 0, kind: input, shape index: {}]   ;;  %s1969_s1 = inlined_call_operand.vmem [shape: bf16[9,128,128], index: 1, kind: input, shape index: {}]   ;;  %s1970_s2 = inlined_call_operand.vmem [shape: f32[1,128], index: 2, kind: input, shape index: {}]   ;;  %s1971_s3 = inlined_call_operand.vmem [shape: f32[2,4,4,128], index: 3, kind: output, shape index: {}]  }
   0x1 LB: > { %s1107_s13 = sadd.s32 4294967295, %s1643_s12   ;;  %p1111_p0 = scmp.ge.s32.totalorder %s1643_s12, 1  ;;  %s1643_s12 = sphi %s1665_s12, %s13_s12  }
   0x2   : > { %p137_p1 = scmp.lt.s32.totalorder %s1643_s12, 3 }
   0x4   : > { %p138_p2 = pnand %p1111_p0, %p137_p1 }
   0x5   : > { %p161_p3 = scmp.lt.s32.totalorder (!%p138_p2), %s1107_s13, 1 }
   0x6   : > { %141 = sbr.rel (%p138_p2) target bundleno = 249 (0xf9), region = 32 }
   0xb   : > { %v1553_v0 = vld [vmem:[%s1969_s1 + $0x78] sm:$0xff]  ;;  %v1552_v4 = vld [vmem:[%s1969_s1 + $0x70] sm:$0xff]  ;;  %s1973_s13 = smov (!%p161_p3, %s1107_s13), 1  ;;  %v1551_v8 = vld [vmem:[%s1969_s1 + $0x68] sm:$0xff]  ;;  %vm219_vm0 = vsmask.f32 7424 }
   0xc   : > { %v1545_v1 = vld [vmem:[%s1969_s1 + $0x38] sm:$0xff]  ;;  %285 = vmatpush.bf16.msra.mxu0 %v1553_v0  ;;  %v1544_v5 = vld [vmem:[%s1969_s1 + $0x30] sm:$0xff]  ;;  %v1543_v9 = vld [vmem:[%s1969_s1 + $0x28] sm:$0xff]  ;;  %s1627_s11 = smul.u32 20, %s1973_s13  ;;  %vm389_vm1 = vcmask 1046528   ;;  %vm481_vm2 = vcmask 1044480  }
   0xd   : > { %v1561_v2 = vld [vmem:[%s1969_s1 + $0xb8] sm:$0xff]  ;;  %354 = vmatpush.bf16.msra.mxu1 %v1545_v1  ;;  %v1560_v6 = vld [vmem:[%s1969_s1 + $0xb0] sm:$0xff]  ;;  %v1559_v10 = vld [vmem:[%s1969_s1 + $0xa8] sm:$0xff]  ;;  %vm573_vm3 = vsmask.f32 4352  ;;  %vm762_vm4 = vcmask 1045504  }
   0xe   : > { %v1569_v3 = vld [vmem:[%s1969_s1 + $0xf8] sm:$0xff]  ;;  %443 = vmatpush.bf16.msra.mxu2 %v1561_v2  ;;  %v1568_v7 = vld [vmem:[%s1969_s1 + $0xf0] sm:$0xff]  ;;  %v1567_v11 = vld [vmem:[%s1969_s1 + $0xe8] sm:$0xff]  ;;  %s1727_s24 = scalar_lea.vmem %s1968_s0, %s1627_s11  ;;  %vm854_vm5 = vsmask.f32 5376 }
   0xf   : > { %535 = vmatpush.bf16.msra.mxu3 %v1569_v3  ;;  %v1550_v12 = vld [vmem:[%s1969_s1 + $0x60] sm:$0xff]  ;;  %v1549_v16 = vld [vmem:[%s1969_s1 + $0x58] sm:$0xff]  ;;  %v1548_v21 = vld [vmem:[%s1969_s1 + $0x50] sm:$0xff] }
  0x10   : > { %286 = vmatpush.bf16.msra.mxu0 %v1552_v4  ;;  %v1542_v13 = vld [vmem:[%s1969_s1 + $0x20] sm:$0xff]  ;;  %v1541_v17 = vld [vmem:[%s1969_s1 + $0x18] sm:$0xff]  ;;  %v1540_v22 = vld [vmem:[%s1969_s1 + $0x10] sm:$0xff] }
  0x11   : > { %355 = vmatpush.bf16.msra.mxu1 %v1544_v5  ;;  %v1558_v14 = vld [vmem:[%s1969_s1 + $0xa0] sm:$0xff]  ;;  %v1557_v18 = vld [vmem:[%s1969_s1 + $0x98] sm:$0xff]  ;;  %v1556_v24 = vld [vmem:[%s1969_s1 + $0x90] sm:$0xff] }
  0x12   : > { %444 = vmatpush.bf16.msra.mxu2 %v1560_v6  ;;  %v1566_v15 = vld [vmem:[%s1969_s1 + $0xe0] sm:$0xff]  ;;  %v1565_v19 = vld [vmem:[%s1969_s1 + $0xd8] sm:$0xff]  ;;  %v1564_v25 = vld [vmem:[%s1969_s1 + $0xd0] sm:$0xff] }
  0x13   : > { %536 = vmatpush.bf16.msra.mxu3 %v1568_v7  ;;  %v1742_v20 = vld [vmem:[%s1727_s24] sm:$0xff]   ;;  %v1758_v26 = vld [vmem:[%s1727_s24 + $0x8] sm:$0xff]   ;;  %v1577_v44 = vld [vmem:[%s1969_s1 + $0x138] sm:$0xff] }
  0x14   : > { %287 = vmatpush.bf16.msra.mxu0 %v1551_v8  ;;  %v223_v23 = vshll.u32 %v1742_v20, 16  ;;  %v1547_v27 = vld [vmem:[%s1969_s1 + $0x48] sm:$0xff]  ;;  %v221_v29 = vshrl.u32 %v1742_v20, 16  ;;  %v228_v31 = vshll.u32 %v1758_v26, 16  ;;  %v1546_v34 = vld [vmem:[%s1969_s1 + $0x40] sm:$0xff]  ;;  %v390_v40 = vrot.slane %v1742_v20, 1 }
  0x15   : > { %356 = vmatpush.bf16.msra.mxu1 %v1543_v9  ;;  %v1539_v28 = vld [vmem:[%s1969_s1 + $0x8] sm:$0xff]  ;;  %v1538_v35 = vld [vmem:[%s1969_s1] sm:$0xff]  ;;  %v391_v41 = vrot.slane %v1758_v26, 1  ;;  %v482_v42 = vrot.slane %v1742_v20, 3  ;;  %v483_v43 = vrot.slane %v1758_v26, 3  ;;  %v1585_v45 = vld [vmem:[%s1969_s1 + $0x178] sm:$0xff]  ;;  %v1616_v63 = vunpack.c.l.b16 %v1758_v26 }
  0x16   : > { %445 = vmatpush.bf16.msra.mxu2 %v1559_v10  ;;  %v225_v30 = vrot.slane %v223_v23, 1  ;;  %v1555_v32 = vld [vmem:[%s1969_s1 + $0x88] sm:$0xff]  ;;  %v230_v37 = vrot.slane %v228_v31, 1  ;;  %v1554_v38 = vld [vmem:[%s1969_s1 + $0x80] sm:$0xff]  ;;  %v1593_v48 = vld [vmem:[%s1969_s1 + $0x1b8] sm:$0xff]  ;;  %v232_v62 = vshrl.u32 %v1758_v26, 16  ;;  %v1613_v2 = vunpack.c.h.b16 %v1742_v20 }
  0x17   : > { %537 = vmatpush.bf16.msra.mxu3 %v1567_v11  ;;  %v1563_v33 = vld [vmem:[%s1969_s1 + $0xc8] sm:$0xff]  ;;  %v1562_v39 = vld [vmem:[%s1969_s1 + $0xc0] sm:$0xff]  ;;  %v392_v47 = vsel %vm389_vm1, %v390_v40, %v391_v41  ;;  %v484_v49 = vsel %vm481_vm2, %v482_v42, %v483_v43  ;;  %v1601_v50 = vld [vmem:[%s1969_s1 + $0x1f8] sm:$0xff]  ;;  %v1856_v3 = vunpack.c.h.b16 %v1758_v26  ;;  %v303_v8 = vpack.c.b16 %v1616_v63, %v1616_v63 }
  0x18   : > { %288 = vmatpush.bf16.msra.mxu0 %v1550_v12  ;;  %v226_v36 = vor.u32 %v225_v30, %v221_v29  ;;  %v1576_v51 = vld [vmem:[%s1969_s1 + $0x130] sm:$0xff]  ;;  %v1575_v55 = vld [vmem:[%s1969_s1 + $0x128] sm:$0xff]  ;;  %v1574_v59 = vld [vmem:[%s1969_s1 + $0x120] sm:$0xff]  ;;  %v234_v7 = vor.u32 %v232_v62, %v230_v37  ;;  %v1864_v9 = vpack.c.b16 %v1616_v63, %v1613_v2  ;;  %v578_v30 = vrot.slane %v228_v31, 4 }
  0x19   : > { %357 = vmatpush.bf16.msra.mxu1 %v1542_v13  ;;  %v1584_v52 = vld [vmem:[%s1969_s1 + $0x170] sm:$0xff]  ;;  %v1583_v56 = vld [vmem:[%s1969_s1 + $0x168] sm:$0xff]  ;;  %v1582_v60 = vld [vmem:[%s1969_s1 + $0x160] sm:$0xff] }
  0x1a   : > { %446 = vmatpush.bf16.msra.mxu2 %v1558_v14  ;;  %v231_v46 = vsel %vm219_vm0, %v226_v36, %v230_v37  ;;  %v1592_v53 = vld [vmem:[%s1969_s1 + $0x1b0] sm:$0xff]  ;;  %v1591_v57 = vld [vmem:[%s1969_s1 + $0x1a8] sm:$0xff]  ;;  %v1590_v0 = vld [vmem:[%s1969_s1 + $0x1a0] sm:$0xff]  ;;  %v763_v40 = vrot.slane %v1864_v9, 2 }
  0x1b   : > { %538 = vmatpush.bf16.msra.mxu3 %v1566_v15  ;;  %v1600_v54 = vld [vmem:[%s1969_s1 + $0x1f0] sm:$0xff]  ;;  %v1599_v58 = vld [vmem:[%s1969_s1 + $0x1e8] sm:$0xff]  ;;  %v1598_v1 = vld [vmem:[%s1969_s1 + $0x1e0] sm:$0xff] }
  0x1c   : > { %289 = vmatpush.bf16.msra.mxu0 %v1549_v16  ;;  %v175_v61 = vld [vmem:[%s1727_s24 + $0x10] sm:$0x7]  ;;  %v1573_v5 = vld [vmem:[%s1969_s1 + $0x118] sm:$0xff]  ;;  %s1537_s24 = sshll.u32 %s1973_s13, 4 }
  0x1d   : > { %358 = vmatpush.bf16.msra.mxu1 %v1541_v17  ;;  %v760_v4 = vunpack.c.l.b16 %v175_v61  ;;  %v1581_v6 = vld [vmem:[%s1969_s1 + $0x158] sm:$0xff]  ;;  %v1572_v13 = vld [vmem:[%s1969_s1 + $0x110] sm:$0xff]  ;;  %v856_v17 = vshrl.u32 %v1864_v9, 16  ;;  %s170_s18 = scalar_lea.vmem %s1971_s3, %s1537_s24 }
  0x1e   : > { %447 = vmatpush.bf16.msra.mxu2 %v1557_v18  ;;  %v1589_v10 = vld [vmem:[%s1969_s1 + $0x198] sm:$0xff]  ;;  %v1580_v14 = vld [vmem:[%s1969_s1 + $0x150] sm:$0xff]  ;;  %v859_v18 = vshll.u32 %v1864_v9, 16 }
  0x1f   : > { %539 = vmatpush.bf16.msra.mxu3 %v1565_v19  ;;  %v1597_v11 = vld [vmem:[%s1969_s1 + $0x1d8] sm:$0xff]  ;;  %v1873_v12 = vpack.c.b16 %v760_v4, %v1856_v3  ;;  %v1588_v15 = vld [vmem:[%s1969_s1 + $0x190] sm:$0xff] }
  0x20   : > { %290 = vmatpush.bf16.msra.mxu0 %v1548_v21  ;;  %v1596_v16 = vld [vmem:[%s1969_s1 + $0x1d0] sm:$0xff]  ;;  %v1609_v26 = vld [vmem:[%s1969_s1 + $0x238] sm:$0xff] }
  0x21   : > { %359 = vmatpush.bf16.msra.mxu1 %v1540_v22  ;;  %v864_v19 = vshrl.u32 %v1873_v12, 16  ;;  %v867_v21 = vshll.u32 %v1873_v12, 16  ;;  %v1571_v22 = vld [vmem:[%s1969_s1 + $0x108] sm:$0xff] }
  0x22   : > { %448 = vmatpush.bf16.msra.mxu2 %v1556_v24  ;;  %v1579_v24 = vld [vmem:[%s1969_s1 + $0x148] sm:$0xff] }
  0x23   : > { %540 = vmatpush.bf16.msra.mxu3 %v1564_v25  ;;  %v577_v25 = vrot.slane %v232_v62, 3  ;;  %v866_v36 = vrot.slane %v864_v19, 2 }
  0x24   : > { %291 = vmatpush.bf16.msra.mxu0 %v1547_v27  ;;  %v574_v27 = vrot.slane %v221_v29, 3  ;;  %v869_v29 = vrot.slane %v867_v21, 3 }
  0x25   : > { %360 = vmatpush.bf16.msra.mxu1 %v1539_v28  ;;  %v575_v28 = vrot.slane %v223_v23, 4  ;;  %v1578_v23 = vld [vmem:[%s1969_s1 + $0x140] sm:$0xff]  ;;  %v579_v37 = vor.u32 %v578_v30, %v577_v25 }
  0x26   : > { %449 = vmatpush.bf16.msra.mxu2 %v1555_v32  ;;  %v1587_v32 = vld [vmem:[%s1969_s1 + $0x188] sm:$0xff] }
  0x27   : > { %541 = vmatpush.bf16.msra.mxu3 %v1563_v33  ;;  %v1595_v33 = vld [vmem:[%s1969_s1 + $0x1c8] sm:$0xff]  ;;  %v576_v31 = vor.u32 %v575_v28, %v574_v27 }
  0x28   : > { %292 = vmatpush.bf16.msra.mxu0 %v1546_v34  ;;  %v858_v34 = vrot.slane %v856_v17, 2 }
  0x29   : > { %361 = vmatpush.bf16.msra.mxu1 %v1538_v35  ;;  %v861_v35 = vrot.slane %v859_v18, 3 }
  0x2a   : > { %450 = vmatpush.bf16.msra.mxu2 %v1554_v38  ;;  %v1586_v38 = vld [vmem:[%s1969_s1 + $0x180] sm:$0xff] }
  0x2b   : > { %542 = vmatpush.bf16.msra.mxu3 %v1562_v39  ;;  %293 = vmatmul.bf16.vlgmr.msra.gmra.mxu0 %v231_v46  ;;  %v1594_v39 = vld [vmem:[%s1969_s1 + $0x1c0] sm:$0xff]  ;;  %v862_v42 = vor.u32 %v861_v35, %v858_v34 }
  0x2c   : > { %631 = vmatpush.bf16.msrb.mxu0 %v1577_v44  ;;  %362 = vmatmul.bf16.vlgmr.msra.gmra.mxu1 %v1742_v20  ;;  %v1570_v20 = vld [vmem:[%s1969_s1 + $0x100] sm:$0xff]  ;;  %v580_v44 = vsel %vm573_vm3, %v576_v31, %v579_v37 }
  0x2d   : > { %721 = vmatpush.bf16.msrb.mxu1 %v1585_v45  ;;  %451 = vmatmul.bf16.vlgmr.msra.gmra.mxu2 %v392_v47  ;;  %v1608_v47 = vld [vmem:[%s1969_s1 + $0x230] sm:$0xff] }
  0x2e   : > { %543 = vmatmul.bf16.vlgmr.msra.gmra.mxu3 %v484_v49  ;;  %816 = vmatpush.bf16.msrb.mxu2 %v1593_v48  ;;  %v1607_v48 = vld [vmem:[%s1969_s1 + $0x228] sm:$0xff]  ;;  %v1606_v49 = vld [vmem:[%s1969_s1 + $0x220] sm:$0xff] }
  0x2f   : > { %922 = vmatpush.bf16.msrb.mxu3 %v1601_v50  ;;  %v1605_v50 = vld [vmem:[%s1969_s1 + $0x218] sm:$0xff] }
  0x30   : > { %632 = vmatpush.bf16.msrb.mxu0 %v1576_v51  ;;  %v670_v51 = vpack.c.b16 %v1856_v3, %v1856_v3 }
  0x31   : > { %722 = vmatpush.bf16.msrb.mxu1 %v1584_v52  ;;  %v1604_v52 = vld [vmem:[%s1969_s1 + $0x210] sm:$0xff] }
  0x32   : > { %817 = vmatpush.bf16.msrb.mxu2 %v1592_v53  ;;  %v1603_v53 = vld [vmem:[%s1969_s1 + $0x208] sm:$0xff] }
  0x33   : > { %923 = vmatpush.bf16.msrb.mxu3 %v1600_v54  ;;  %v1602_v54 = vld [vmem:[%s1969_s1 + $0x200] sm:$0xff] }
  0x34   : > { %633 = vmatpush.bf16.msrb.mxu0 %v1575_v55  ;;  %v960_v55 = vrot.slane %v1864_v9, 3 }
  0x35   : > { %723 = vmatpush.bf16.msrb.mxu1 %v1583_v56  ;;  %v961_v56 = vrot.slane %v1873_v12, 3 }
  0x36   : > { %818 = vmatpush.bf16.msrb.mxu2 %v1591_v57 }
  0x37   : > { %924 = vmatpush.bf16.msrb.mxu3 %v1599_v58  ;;  %v962_v57 = vsel %vm481_vm2, %v960_v55, %v961_v56 }
  0x38   : > { %634 = vmatpush.bf16.msrb.mxu0 %v1574_v59 }
  0x39   : > { %724 = vmatpush.bf16.msrb.mxu1 %v1582_v60 }
  0x3a   : > { %819 = vmatpush.bf16.msrb.mxu2 %v1590_v0 }
  0x3b   : > { %925 = vmatpush.bf16.msrb.mxu3 %v1598_v1  ;;  %298 = vmatmul.bf16.gmra.mxu0 %v234_v7 }
  0x3c   : > { %635 = vmatpush.bf16.msrb.mxu0 %v1573_v5  ;;  %367 = vmatmul.bf16.gmra.mxu1 %v303_v8 }
  0x3d   : > { %725 = vmatpush.bf16.msrb.mxu1 %v1581_v6  ;;  %456 = vmatmul.bf16.gmra.mxu2 %v391_v41  ;;  %v764_v41 = vrot.slane %v1873_v12, 2 }
  0x3e   : > { %548 = vmatmul.bf16.gmra.mxu3 %v483_v43  ;;  %820 = vmatpush.bf16.msrb.mxu2 %v1589_v10  ;;  %v870_v43 = vor.u32 %v869_v29, %v866_v36 }
  0x3f   : > { %926 = vmatpush.bf16.msrb.mxu3 %v1597_v11  ;;  %v765_v45 = vsel %vm762_vm4, %v763_v40, %v764_v41 }
  0x40   : > { %636 = vmatpush.bf16.msrb.mxu0 %v1572_v13  ;;  %v871_v46 = vsel %vm854_vm5, %v862_v42, %v870_v43  ;;  %v1636_v42 = vld [vmem:[%s1970_s2] ss:$0 sm:$0xff] }
  0x41   : > { %726 = vmatpush.bf16.msrb.mxu1 %v1580_v14 }
  0x42   : > { %821 = vmatpush.bf16.msrb.mxu2 %v1588_v15 }
  0x43   : > { %927 = vmatpush.bf16.msrb.mxu3 %v1596_v16 }
  0x44   : > { %637 = vmatpush.bf16.msrb.mxu0 %v1571_v22 }
  0x45   : > { %727 = vmatpush.bf16.msrb.mxu1 %v1579_v24 }
  0x46   : > { %822 = vmatpush.bf16.msrb.mxu2 %v1587_v32 }
  0x47   : > { %928 = vmatpush.bf16.msrb.mxu3 %v1595_v33 }
  0x48   : > { %638 = vmatpush.bf16.msrb.mxu0 %v1570_v20 }
  0x49   : > { %728 = vmatpush.bf16.msrb.mxu1 %v1578_v23 }
  0x4a   : > { %823 = vmatpush.bf16.msrb.mxu2 %v1586_v38 }
  0x4b   : > { %929 = vmatpush.bf16.msrb.mxu3 %v1594_v39  ;;  %639 = vmatmul.bf16.vlgmr.msrb.gmra.mxu0 %v580_v44 }
  0x4c   : > { %1013 = vmatpush.bf16.msra.mxu0 %v1609_v26  ;;  %729 = vmatmul.bf16.vlgmr.msrb.gmra.mxu1 %v1864_v9 }
  0x4d   : > { %1619 = vmatpush.bf16.msra.mxu1 %v1609_v26  ;;  %824 = vmatmul.bf16.vlgmr.msrb.gmra.mxu2 %v765_v45 }
  0x4e   : > { %930 = vmatmul.bf16.vlgmr.msrb.gmra.mxu3 %v871_v46 }
  0x50   : > { %1014 = vmatpush.bf16.msra.mxu0 %v1608_v47 }
  0x51   : > { %1620 = vmatpush.bf16.msra.mxu1 %v1608_v47 }
  0x54   : > { %1015 = vmatpush.bf16.msra.mxu0 %v1607_v48 }
  0x55   : > { %1621 = vmatpush.bf16.msra.mxu1 %v1607_v48 }
  0x58   : > { %1016 = vmatpush.bf16.msra.mxu0 %v1606_v49 }
  0x59   : > { %1622 = vmatpush.bf16.msra.mxu1 %v1606_v49 }
  0x5b   : > { %644 = vmatmul.bf16.gmra.mxu0 %v579_v37 }
  0x5c   : > { %1017 = vmatpush.bf16.msra.mxu0 %v1605_v50  ;;  %734 = vmatmul.bf16.gmra.mxu1 %v670_v51 }
  0x5d   : > { %1623 = vmatpush.bf16.msra.mxu1 %v1605_v50  ;;  %829 = vmatmul.bf16.gmra.mxu2 %v764_v41 }
  0x5e   : > { %935 = vmatmul.bf16.gmra.mxu3 %v870_v43 }
  0x60   : > { %1018 = vmatpush.bf16.msra.mxu0 %v1604_v52 }
  0x61   : > { %1624 = vmatpush.bf16.msra.mxu1 %v1604_v52 }
  0x64   : > { %1019 = vmatpush.bf16.msra.mxu0 %v1603_v53 }
  0x65   : > { %1625 = vmatpush.bf16.msra.mxu1 %v1603_v53 }
  0x68   : > { %1020 = vmatpush.bf16.msra.mxu0 %v1602_v54 }
  0x69   : > { %1626 = vmatpush.bf16.msra.mxu1 %v1602_v54 }
  0x6b   : > { %1021 = vmatmul.bf16.vlgmr.msra.gmra.mxu0 %v962_v57 }
  0x6c   : > { %1026 = vmatmul.bf16.vlgmr.msra.gmra.mxu1 %v961_v56 }
  0xa8   : > { %v294_v58 = vpop.f32.mrf.mxu0 }
  0xa9   : > { %v363_v59 = vpop.f32.mrf.mxu1 }
  0xaa   : > { %v364_v16 = vadd.f32 %v363_v59, %v294_v58 }
  0xb0   : > { %v452_v60 = vpop.f32.mrf.mxu2  ;;  %v296_v62 = vpop.f32.mrf.mxu0 }
  0xb1   : > { %v544_v61 = vpop.f32.mrf.mxu3  ;;  %v365_v63 = vpop.f32.mrf.mxu1  ;;  %v461_v18 = vadd.f32 %v452_v60, %v364_v16 }
  0xb2   : > { %v366_v30 = vadd.f32 %v365_v63, %v296_v62 }
  0xb3   : > { %v553_v27 = vadd.f32 %v544_v61, %v461_v18 }
  0xb8   : > { %v454_v0 = vpop.f32.mrf.mxu2  ;;  %v299_v2 = vpop.f32.mrf.mxu0 }
  0xb9   : > { %v546_v1 = vpop.f32.mrf.mxu3  ;;  %v368_v3 = vpop.f32.mrf.mxu1  ;;  %v462_v34 = vadd.f32 %v454_v0, %v366_v30 }
  0xba   : > { %v369_v17 = vadd.f32 %v368_v3, %v299_v2 }
  0xbb   : > { %v554_v31 = vadd.f32 %v546_v1, %v462_v34 }
  0xc0   : > { %v457_v4 = vpop.f32.mrf.mxu2  ;;  %v301_v6 = vpop.f32.mrf.mxu0 }
  0xc1   : > { %v549_v5 = vpop.f32.mrf.mxu3  ;;  %v370_v7 = vpop.f32.mrf.mxu1  ;;  %v463_v19 = vadd.f32 %v457_v4, %v369_v17 }
  0xc3   : > { %v555_v28 = vadd.f32 %v549_v5, %v463_v19 }
  0xc8   : > { %v459_v8 = vpop.f32.mrf.mxu2  ;;  %v640_v10 = vpop.f32.mrf.mxu0 }
  0xc9   : > { %v551_v9 = vpop.f32.mrf.mxu3  ;;  %v730_v11 = vpop.f32.mrf.mxu1  ;;  %v649_v32 = vadd.f32 %v640_v10, %v553_v27 }
  0xcb   : > { %v739_v23 = vadd.f32 %v730_v11, %v649_v32 }
  0xd0   : > { %v825_v12 = vpop.f32.mrf.mxu2  ;;  %v642_v14 = vpop.f32.mrf.mxu0 }
  0xd1   : > { %v931_v13 = vpop.f32.mrf.mxu3  ;;  %v732_v15 = vpop.f32.mrf.mxu1  ;;  %v834_v37 = vadd.f32 %v825_v12, %v739_v23  ;;  %v650_v39 = vadd.f32 %v642_v14, %v554_v31 }
  0xd3   : > { %v940_v40 = vadd.f32 %v931_v13, %v834_v37  ;;  %v740_v47 = vadd.f32 %v732_v15, %v650_v39 }
  0xd8   : > { %v827_v21 = vpop.f32.mrf.mxu2  ;;  %v645_v24 = vpop.f32.mrf.mxu0 }
  0xd9   : > { %v933_v22 = vpop.f32.mrf.mxu3  ;;  %v735_v25 = vpop.f32.mrf.mxu1  ;;  %v651_v33 = vadd.f32 %v645_v24, %v555_v28  ;;  %v835_v50 = vadd.f32 %v827_v21, %v740_v47 }
  0xdb   : > { %v741_v26 = vadd.f32 %v735_v25, %v651_v33  ;;  %v941_v55 = vadd.f32 %v933_v22, %v835_v50 }
  0xe0   : > { %v830_v35 = vpop.f32.mrf.mxu2  ;;  %v647_v29 = vpop.f32.mrf.mxu0 }
  0xe1   : > { %v936_v36 = vpop.f32.mrf.mxu3  ;;  %v737_v20 = vpop.f32.mrf.mxu1  ;;  %v836_v38 = vadd.f32 %v830_v35, %v741_v26 }
  0xe3   : > { %v942_v41 = vadd.f32 %v936_v36, %v836_v38 }
  0xe8   : > { %v832_v43 = vpop.f32.mrf.mxu2  ;;  %v1022_v45 = vpop.f32.mrf.mxu0 }
  0xe9   : > { %v938_v44 = vpop.f32.mrf.mxu3  ;;  %v1027_v46 = vpop.f32.mrf.mxu1  ;;  %v1031_v48 = vadd.f32 %v1022_v45, %v940_v40 }
  0xea   : > { %v1033_v49 = vadd.f32 %v1027_v46, %v942_v41 }
  0xeb   : > { %v1038_v51 = vadd.f32 %v1636_v42, %v1031_v48 }
  0xec   : > { %v1040_v52 = vadd.f32 %v1636_v42, %v1033_v49 }
  0xed   : > { %v1041_v53 = vmax.f32 %v1038_v51, 0.0 }
  0xee   : > { %v1043_v54 = vmax.f32 %v1040_v52, 0.0 }
  0xef   : > { %1044 = vst [vmem:[%s170_s18] sm:$0xf] %v1041_v53 }
  0xf0   : > { %1531 = vst [vmem:[%s170_s18 - $0x2] sm:$0xc0] %v1041_v53  ;;  %v1024_v56 = vpop.f32.mrf.mxu0 }
  0xf1   : > { %v1029_v57 = vpop.f32.mrf.mxu1  ;;  %1534 = vst [vmem:[%s170_s18 + $0xa] sm:$0x3c] %v1043_v54  ;;  %v1032_v58 = vadd.f32 %v1024_v56, %v941_v55 }
  0xf3   : > { %v1039_v59 = vadd.f32 %v1636_v42, %v1032_v58 }
  0xf5   : > { %v1042_v60 = vmax.f32 %v1039_v59, 0.0 }
  0xf7   : > { %1532 = vst [vmem:[%s170_s18 + $0x6] sm:$0x3] %v1042_v60 }
  0xf8   : > { %1533 = vst [vmem:[%s170_s18 + $0x4] sm:$0xf0] %v1042_v60 }
  0xf9 PF: > { %s13_s12 = sadd.s32 1, %s1643_s12  }
  0xfa   : > { %p10_p4 = scmp.ge.s32.totalorder %s13_s12, 4  }
  0xfc   :  { %12 = sbr.rel (!%p10_p4) target bundleno = 1 (0x1), region = 73 }

// kernel: vgg_forward.15
= control target key start
LH: loop header
LB: loop body
LE: loop exit
PB: predicated region body
PF: predicated region fallthrough
CT: control target
= control target key end

     0   :  { %s2306_s12 = smov 0   ;;  %s3232_s0 = inlined_call_operand.vmem [shape: bf16[2,18,128], index: 0, kind: input, shape index: {}]   ;;  %s3233_s1 = inlined_call_operand.vmem [shape: bf16[9,128,256], index: 1, kind: input, shape index: {}]   ;;  %s3234_s2 = inlined_call_operand.vmem [shape: f32[1,256], index: 2, kind: input, shape index: {}]   ;;  %s3235_s3 = inlined_call_operand.vmem [shape: f32[2,2,2,256], index: 3, kind: output, shape index: {}]  }
   0x1 LB: > { %s1409_s13 = sadd.s32 4294967295, %s2284_s12   ;;  %p1413_p0 = scmp.ge.s32.totalorder %s2284_s12, 1  ;;  %s2284_s12 = sphi %s2306_s12, %s13_s12  }
   0x2   : > { %p137_p1 = scmp.lt.s32.totalorder %s2284_s12, 3 }
   0x4   : > { %p138_p2 = pnand %p1413_p0, %p137_p1 }
   0x5   : > { %p161_p3 = scmp.lt.s32.totalorder (!%p138_p2), %s1409_s13, 1 }
   0x6   : > { %141 = sbr.rel (%p138_p2) target bundleno = 315 (0x13b), region = 32 }
   0xb   : > { %v1491_v0 = vld [vmem:[%s3233_s1 + $0xf0] sm:$0xf]  ;;  %v2156_v1 = vld [vmem:[%s3233_s1 + $0xf4] sm:$0xf0]  ;;  %v2155_v2 = vld [vmem:[%s3233_s1 + $0xf4] sm:$0xf] }
   0xc   : > { %v1492_v3 = vor.u32 %v2156_v1, %v1491_v0  ;;  %v1493_v4 = vld [vmem:[%s3233_s1 + $0xf8] sm:$0xf0]  ;;  %v1555_v5 = vld [vmem:[%s3233_s1 + $0x70] sm:$0xf]  ;;  %v2140_v6 = vld [vmem:[%s3233_s1 + $0x74] sm:$0xf0] }
   0xd   : > { %v1496_v7 = vor.u32 %v2155_v2, %v1493_v4  ;;  %v1556_v8 = vor.u32 %v2140_v6, %v1555_v5  ;;  %v2139_v9 = vld [vmem:[%s3233_s1 + $0x74] sm:$0xf]  ;;  %v1557_v10 = vld [vmem:[%s3233_s1 + $0x78] sm:$0xf0]  ;;  %v1483_v11 = vld [vmem:[%s3233_s1 + $0xe0] sm:$0xf] }
   0xe   : > { %300 = vmatpush.bf16.msra.mxu0 %v1492_v3  ;;  %v1560_v12 = vor.u32 %v2139_v9, %v1557_v10  ;;  %v2154_v13 = vld [vmem:[%s3233_s1 + $0xe4] sm:$0xf0]  ;;  %v2153_v14 = vld [vmem:[%s3233_s1 + $0xe4] sm:$0xf]  ;;  %v1485_v15 = vld [vmem:[%s3233_s1 + $0xe8] sm:$0xf0] }
   0xf   : > { %313 = vmatpush.bf16.msra.mxu1 %v1496_v7  ;;  %406 = vmatpush.bf16.msra.mxu2 %v1556_v8  ;;  %v1484_v16 = vor.u32 %v2154_v13, %v1483_v11  ;;  %v1488_v17 = vor.u32 %v2153_v14, %v1485_v15  ;;  %v1547_v18 = vld [vmem:[%s3233_s1 + $0x60] sm:$0xf]  ;;  %v2138_v19 = vld [vmem:[%s3233_s1 + $0x64] sm:$0xf0]  ;;  %v2137_v20 = vld [vmem:[%s3233_s1 + $0x64] sm:$0xf] }
  0x10   : > { %419 = vmatpush.bf16.msra.mxu3 %v1560_v12  ;;  %v1548_v21 = vor.u32 %v2138_v19, %v1547_v18  ;;  %v1549_v22 = vld [vmem:[%s3233_s1 + $0x68] sm:$0xf0]  ;;  %v1475_v23 = vld [vmem:[%s3233_s1 + $0xd0] sm:$0xf]  ;;  %v2152_v24 = vld [vmem:[%s3233_s1 + $0xd4] sm:$0xf0] }
  0x11   : > { %v1552_v25 = vor.u32 %v2137_v20, %v1549_v22  ;;  %v2151_v26 = vld [vmem:[%s3233_s1 + $0xd4] sm:$0xf]  ;;  %v1477_v27 = vld [vmem:[%s3233_s1 + $0xd8] sm:$0xf0]  ;;  %v1539_v28 = vld [vmem:[%s3233_s1 + $0x50] sm:$0xf]  ;;  %v1476_v29 = vor.u32 %v2152_v24, %v1475_v23 }
  0x12   : > { %301 = vmatpush.bf16.msra.mxu0 %v1484_v16  ;;  %v2136_v30 = vld [vmem:[%s3233_s1 + $0x54] sm:$0xf0]  ;;  %v2135_v31 = vld [vmem:[%s3233_s1 + $0x54] sm:$0xf]  ;;  %v1541_v32 = vld [vmem:[%s3233_s1 + $0x58] sm:$0xf0]  ;;  %v1480_v33 = vor.u32 %v2151_v26, %v1477_v27 }
  0x13   : > { %314 = vmatpush.bf16.msra.mxu1 %v1488_v17  ;;  %407 = vmatpush.bf16.msra.mxu2 %v1548_v21  ;;  %v1540_v34 = vor.u32 %v2136_v30, %v1539_v28  ;;  %v1467_v35 = vld [vmem:[%s3233_s1 + $0xc0] sm:$0xf]  ;;  %v2150_v36 = vld [vmem:[%s3233_s1 + $0xc4] sm:$0xf0]  ;;  %v2149_v37 = vld [vmem:[%s3233_s1 + $0xc4] sm:$0xf]  ;;  %v1544_v38 = vor.u32 %v2135_v31, %v1541_v32 }
  0x14   : > { %420 = vmatpush.bf16.msra.mxu3 %v1552_v25  ;;  %v1469_v39 = vld [vmem:[%s3233_s1 + $0xc8] sm:$0xf0]  ;;  %v1531_v40 = vld [vmem:[%s3233_s1 + $0x40] sm:$0xf]  ;;  %v2134_v41 = vld [vmem:[%s3233_s1 + $0x44] sm:$0xf0]  ;;  %v1468_v44 = vor.u32 %v2150_v36, %v1467_v35 }
  0x15   : > { %v2133_v42 = vld [vmem:[%s3233_s1 + $0x44] sm:$0xf]  ;;  %v1533_v43 = vld [vmem:[%s3233_s1 + $0x48] sm:$0xf0]  ;;  %v1472_v45 = vor.u32 %v2149_v37, %v1469_v39  ;;  %v1532_v46 = vor.u32 %v2134_v41, %v1531_v40  ;;  %v1459_v47 = vld [vmem:[%s3233_s1 + $0xb0] sm:$0xf] }
  0x16   : > { %302 = vmatpush.bf16.msra.mxu0 %v1476_v29  ;;  %v2148_v48 = vld [vmem:[%s3233_s1 + $0xb4] sm:$0xf0]  ;;  %v2147_v49 = vld [vmem:[%s3233_s1 + $0xb4] sm:$0xf]  ;;  %v1536_v50 = vor.u32 %v2133_v42, %v1533_v43  ;;  %v1461_v51 = vld [vmem:[%s3233_s1 + $0xb8] sm:$0xf0] }
  0x17   : > { %315 = vmatpush.bf16.msra.mxu1 %v1480_v33  ;;  %408 = vmatpush.bf16.msra.mxu2 %v1540_v34  ;;  %v1523_v52 = vld [vmem:[%s3233_s1 + $0x30] sm:$0xf]  ;;  %v2132_v53 = vld [vmem:[%s3233_s1 + $0x34] sm:$0xf0]  ;;  %v2131_v54 = vld [vmem:[%s3233_s1 + $0x34] sm:$0xf]  ;;  %v1460_v56 = vor.u32 %v2148_v48, %v1459_v47  ;;  %v1464_v57 = vor.u32 %v2147_v49, %v1461_v51 }
  0x18   : > { %421 = vmatpush.bf16.msra.mxu3 %v1544_v38  ;;  %v1525_v55 = vld [vmem:[%s3233_s1 + $0x38] sm:$0xf0]  ;;  %v1524_v58 = vor.u32 %v2132_v53, %v1523_v52  ;;  %v1451_v59 = vld [vmem:[%s3233_s1 + $0xa0] sm:$0xf]  ;;  %v2146_v60 = vld [vmem:[%s3233_s1 + $0xa4] sm:$0xf0] }
  0x19   : > { %v2145_v61 = vld [vmem:[%s3233_s1 + $0xa4] sm:$0xf]  ;;  %v1528_v62 = vor.u32 %v2131_v54, %v1525_v55  ;;  %v1453_v63 = vld [vmem:[%s3233_s1 + $0xa8] sm:$0xf0]  ;;  %v1515_v0 = vld [vmem:[%s3233_s1 + $0x20] sm:$0xf]  ;;  %v1452_v4 = vor.u32 %v2146_v60, %v1451_v59 }
  0x1a   : > { %303 = vmatpush.bf16.msra.mxu0 %v1468_v44  ;;  %v2130_v1 = vld [vmem:[%s3233_s1 + $0x24] sm:$0xf0]  ;;  %v2129_v2 = vld [vmem:[%s3233_s1 + $0x24] sm:$0xf]  ;;  %v1517_v3 = vld [vmem:[%s3233_s1 + $0x28] sm:$0xf0]  ;;  %v1456_v5 = vor.u32 %v2145_v61, %v1453_v63 }
  0x1b   : > { %316 = vmatpush.bf16.msra.mxu1 %v1472_v45  ;;  %409 = vmatpush.bf16.msra.mxu2 %v1532_v46  ;;  %v1516_v6 = vor.u32 %v2130_v1, %v1515_v0  ;;  %v1443_v7 = vld [vmem:[%s3233_s1 + $0x90] sm:$0xf]  ;;  %v2144_v8 = vld [vmem:[%s3233_s1 + $0x94] sm:$0xf0]  ;;  %v2143_v9 = vld [vmem:[%s3233_s1 + $0x94] sm:$0xf]  ;;  %v1520_v10 = vor.u32 %v2129_v2, %v1517_v3 }
  0x1c   : > { %422 = vmatpush.bf16.msra.mxu3 %v1536_v50  ;;  %v1445_v11 = vld [vmem:[%s3233_s1 + $0x98] sm:$0xf0]  ;;  %v1507_v12 = vld [vmem:[%s3233_s1 + $0x10] sm:$0xf]  ;;  %v2128_v13 = vld [vmem:[%s3233_s1 + $0x14] sm:$0xf0]  ;;  %v1444_v16 = vor.u32 %v2144_v8, %v1443_v7 }
  0x1d   : > { %v2127_v14 = vld [vmem:[%s3233_s1 + $0x14] sm:$0xf]  ;;  %v1509_v15 = vld [vmem:[%s3233_s1 + $0x18] sm:$0xf0]  ;;  %v1435_v17 = vld [vmem:[%s3233_s1 + $0x80] sm:$0xf]  ;;  %v1448_v19 = vor.u32 %v2143_v9, %v1445_v11  ;;  %v1508_v20 = vor.u32 %v2128_v13, %v1507_v12 }
  0x1e   : > { %304 = vmatpush.bf16.msra.mxu0 %v1460_v56  ;;  %v2142_v18 = vld [vmem:[%s3233_s1 + $0x84] sm:$0xf0]  ;;  %v2141_v21 = vld [vmem:[%s3233_s1 + $0x84] sm:$0xf]  ;;  %v1437_v22 = vld [vmem:[%s3233_s1 + $0x88] sm:$0xf0]  ;;  %v1512_v24 = vor.u32 %v2127_v14, %v1509_v15 }
  0x1f   : > { %317 = vmatpush.bf16.msra.mxu1 %v1464_v57  ;;  %410 = vmatpush.bf16.msra.mxu2 %v1524_v58  ;;  %v1499_v23 = vld [vmem:[%s3233_s1] sm:$0xf]  ;;  %v2126_v25 = vld [vmem:[%s3233_s1 + $0x4] sm:$0xf0]  ;;  %v2125_v26 = vld [vmem:[%s3233_s1 + $0x4] sm:$0xf]  ;;  %v1436_v31 = vor.u32 %v2142_v18, %v1435_v17  ;;  %v1440_v35 = vor.u32 %v2141_v21, %v1437_v22 }
  0x20   : > { %423 = vmatpush.bf16.msra.mxu3 %v1528_v62  ;;  %v1501_v27 = vld [vmem:[%s3233_s1 + $0x8] sm:$0xf0]  ;;  %v1635_v28 = vld [vmem:[%s3233_s1 + $0x170] sm:$0xf]  ;;  %v2172_v29 = vld [vmem:[%s3233_s1 + $0x174] sm:$0xf0]  ;;  %v1500_v36 = vor.u32 %v2126_v25, %v1499_v23 }
  0x21   : > { %v2171_v30 = vld [vmem:[%s3233_s1 + $0x174] sm:$0xf]  ;;  %v1637_v32 = vld [vmem:[%s3233_s1 + $0x178] sm:$0xf0]  ;;  %v1715_v33 = vld [vmem:[%s3233_s1 + $0x1f0] sm:$0xf]  ;;  %v1504_v39 = vor.u32 %v2125_v26, %v1501_v27  ;;  %v1636_v40 = vor.u32 %v2172_v29, %v1635_v28 }
  0x22   : > { %305 = vmatpush.bf16.msra.mxu0 %v1452_v4  ;;  %v2188_v34 = vld [vmem:[%s3233_s1 + $0x1f4] sm:$0xf0]  ;;  %v2187_v37 = vld [vmem:[%s3233_s1 + $0x1f4] sm:$0xf]  ;;  %v1717_v38 = vld [vmem:[%s3233_s1 + $0x1f8] sm:$0xf0]  ;;  %v1640_v41 = vor.u32 %v2171_v30, %v1637_v32 }
  0x23   : > { %318 = vmatpush.bf16.msra.mxu1 %v1456_v5  ;;  %411 = vmatpush.bf16.msra.mxu2 %v1516_v6  ;;  %v1716_v42 = vor.u32 %v2188_v34, %v1715_v33  ;;  %v1627_v43 = vld [vmem:[%s3233_s1 + $0x160] sm:$0xf]  ;;  %v2170_v44 = vld [vmem:[%s3233_s1 + $0x164] sm:$0xf0]  ;;  %v2169_v45 = vld [vmem:[%s3233_s1 + $0x164] sm:$0xf]  ;;  %v1720_v46 = vor.u32 %v2187_v37, %v1717_v38 }
  0x24   : > { %424 = vmatpush.bf16.msra.mxu3 %v1520_v10  ;;  %v1629_v47 = vld [vmem:[%s3233_s1 + $0x168] sm:$0xf0]  ;;  %v1707_v48 = vld [vmem:[%s3233_s1 + $0x1e0] sm:$0xf]  ;;  %v2186_v49 = vld [vmem:[%s3233_s1 + $0x1e4] sm:$0xf0]  ;;  %v1628_v52 = vor.u32 %v2170_v44, %v1627_v43 }
  0x25   : > { %v2185_v50 = vld [vmem:[%s3233_s1 + $0x1e4] sm:$0xf]  ;;  %v1709_v51 = vld [vmem:[%s3233_s1 + $0x1e8] sm:$0xf0]  ;;  %v1619_v53 = vld [vmem:[%s3233_s1 + $0x150] sm:$0xf]  ;;  %v1632_v54 = vor.u32 %v2169_v45, %v1629_v47  ;;  %v1708_v55 = vor.u32 %v2186_v49, %v1707_v48 }
  0x26   : > { %306 = vmatpush.bf16.msra.mxu0 %v1444_v16  ;;  %v2168_v56 = vld [vmem:[%s3233_s1 + $0x154] sm:$0xf0]  ;;  %v2167_v57 = vld [vmem:[%s3233_s1 + $0x154] sm:$0xf]  ;;  %s3237_s13 = smov (!%p161_p3, %s1409_s13), 1  ;;  %v1712_v58 = vor.u32 %v2185_v50, %v1709_v51  ;;  %vm1343_vm0 = vcmask 1041408  }
  0x27   : > { %319 = vmatpush.bf16.msra.mxu1 %v1448_v19  ;;  %412 = vmatpush.bf16.msra.mxu2 %v1508_v20  ;;  %v1621_v59 = vld [vmem:[%s3233_s1 + $0x158] sm:$0xf0]  ;;  %v1699_v60 = vld [vmem:[%s3233_s1 + $0x1d0] sm:$0xf]  ;;  %v2184_v61 = vld [vmem:[%s3233_s1 + $0x1d4] sm:$0xf0]  ;;  %v1620_v0 = vor.u32 %v2168_v56, %v1619_v53 }
  0x28   : > { %425 = vmatpush.bf16.msra.mxu3 %v1512_v24  ;;  %v2183_v62 = vld [vmem:[%s3233_s1 + $0x1d4] sm:$0xf]  ;;  %v1701_v63 = vld [vmem:[%s3233_s1 + $0x1d8] sm:$0xf0]  ;;  %s2269_s15 = smul.u32 12, %s3237_s13  ;;  %v1624_v3 = vor.u32 %v2167_v57, %v1621_v59  ;;  %v1700_v4 = vor.u32 %v2184_v61, %v1699_v60  ;;  %s2124_s29 = sshll.u32 %s3237_s13, 3 }
  0x29   : > { %v1611_v1 = vld [vmem:[%s3233_s1 + $0x140] sm:$0xf]  ;;  %v2166_v2 = vld [vmem:[%s3233_s1 + $0x144] sm:$0xf0]  ;;  %v2165_v5 = vld [vmem:[%s3233_s1 + $0x144] sm:$0xf]  ;;  %v1704_v8 = vor.u32 %v2183_v62, %v1701_v63  ;;  %s170_s5 = scalar_lea.vmem %s3235_s3, %s2124_s29 }
  0x2a   : > { %307 = vmatpush.bf16.msra.mxu0 %v1436_v31  ;;  %v1613_v6 = vld [vmem:[%s3233_s1 + $0x148] sm:$0xf0]  ;;  %v1691_v7 = vld [vmem:[%s3233_s1 + $0x1c0] sm:$0xf]  ;;  %s2603_s28 = scalar_lea.vmem %s3232_s0, %s2269_s15  ;;  %v2182_v9 = vld [vmem:[%s3233_s1 + $0x1c4] sm:$0xf0]  ;;  %v1612_v16 = vor.u32 %v2166_v2, %v1611_v1 }
  0x2b   : > { %320 = vmatpush.bf16.msra.mxu1 %v1440_v35  ;;  %413 = vmatpush.bf16.msra.mxu2 %v1500_v36  ;;  %v171_v10 = vld [vmem:[%s2603_s28] sm:$0xf]  ;;  %v2610_v11 = vld [vmem:[%s2603_s28 + $0x4] sm:$0xf]  ;;  %v1693_v13 = vld [vmem:[%s3233_s1 + $0x1c8] sm:$0xf0]  ;;  %v1616_v17 = vor.u32 %v2165_v5, %v1613_v6  ;;  %v1692_v18 = vor.u32 %v2182_v9, %v1691_v7 }
  0x2c   : > { %426 = vmatpush.bf16.msra.mxu3 %v1504_v39  ;;  %v2181_v12 = vld [vmem:[%s3233_s1 + $0x1c4] sm:$0xf]  ;;  %v209_v14 = vunpack.c.l.b16 %v171_v10  ;;  %v210_v15 = vunpack.c.l.b16 %v2610_v11  ;;  %v1603_v20 = vld [vmem:[%s3233_s1 + $0x130] sm:$0xf]  ;;  %v2164_v21 = vld [vmem:[%s3233_s1 + $0x134] sm:$0xf0] }
  0x2d   : > { %v1696_v22 = vor.u32 %v2181_v12, %v1693_v13  ;;  %v2163_v23 = vld [vmem:[%s3233_s1 + $0x134] sm:$0xf]  ;;  %v1605_v24 = vld [vmem:[%s3233_s1 + $0x138] sm:$0xf0]  ;;  %v1683_v27 = vld [vmem:[%s3233_s1 + $0x1b0] sm:$0xf]  ;;  %v1604_v29 = vor.u32 %v2164_v21, %v1603_v20 }
  0x2e   : > { %531 = vmatpush.bf16.msrb.mxu0 %v1636_v40  ;;  %414 = vmatmul.bf16.vlgmr.msra.gmra.mxu2 %v171_v10  ;;  %v2621_v19 = vpack.c.b16 %v210_v15, %v209_v14  ;;  %v2180_v28 = vld [vmem:[%s3233_s1 + $0x1b4] sm:$0xf0]  ;;  %v2179_v30 = vld [vmem:[%s3233_s1 + $0x1b4] sm:$0xf]  ;;  %v1685_v31 = vld [vmem:[%s3233_s1 + $0x1b8] sm:$0xf0]  ;;  %v1608_v35 = vor.u32 %v2163_v23, %v1605_v24 }
  0x2f   : > { %544 = vmatpush.bf16.msrb.mxu1 %v1640_v41  ;;  %658 = vmatpush.bf16.msrb.mxu2 %v1716_v42  ;;  %v1595_v33 = vld [vmem:[%s3233_s1 + $0x120] sm:$0xf]  ;;  %v2162_v34 = vld [vmem:[%s3233_s1 + $0x124] sm:$0xf0]  ;;  %v1684_v36 = vor.u32 %v2180_v28, %v1683_v27  ;;  %v2161_v37 = vld [vmem:[%s3233_s1 + $0x124] sm:$0xf]  ;;  %v1688_v39 = vor.u32 %v2179_v30, %v1685_v31 }
  0x30   : > { %671 = vmatpush.bf16.msrb.mxu3 %v1720_v46  ;;  %v213_v25 = vshrl.u32 %v2621_v19, 16  ;;  %v215_v26 = vshll.u32 %v2621_v19, 16  ;;  %v1597_v40 = vld [vmem:[%s3233_s1 + $0x128] sm:$0xf0]  ;;  %v1675_v41 = vld [vmem:[%s3233_s1 + $0x1a0] sm:$0xf]  ;;  %v1596_v43 = vor.u32 %v2162_v34, %v1595_v33 }
  0x31   : > { %427 = vmatmul.bf16.vlgmr.msra.gmra.mxu3 %v171_v10  ;;  %v2178_v42 = vld [vmem:[%s3233_s1 + $0x1a4] sm:$0xf0]  ;;  %v2177_v44 = vld [vmem:[%s3233_s1 + $0x1a4] sm:$0xf]  ;;  %v1677_v45 = vld [vmem:[%s3233_s1 + $0x1a8] sm:$0xf0]  ;;  %v1600_v48 = vor.u32 %v2161_v37, %v1597_v40 }
  0x32   : > { %532 = vmatpush.bf16.msrb.mxu0 %v1628_v52  ;;  %v217_v32 = vrot.slane %v215_v26, 1  ;;  %v1587_v46 = vld [vmem:[%s3233_s1 + $0x110] sm:$0xf]  ;;  %v2160_v47 = vld [vmem:[%s3233_s1 + $0x114] sm:$0xf0]  ;;  %v1676_v49 = vor.u32 %v2178_v42, %v1675_v41  ;;  %v1680_v51 = vor.u32 %v2177_v44, %v1677_v45 }
  0x33   : > { %545 = vmatpush.bf16.msrb.mxu1 %v1632_v54  ;;  %659 = vmatpush.bf16.msrb.mxu2 %v1708_v55  ;;  %v2159_v50 = vld [vmem:[%s3233_s1 + $0x114] sm:$0xf]  ;;  %v1589_v52 = vld [vmem:[%s3233_s1 + $0x118] sm:$0xf0]  ;;  %v1667_v53 = vld [vmem:[%s3233_s1 + $0x190] sm:$0xf]  ;;  %v1588_v55 = vor.u32 %v2160_v47, %v1587_v46 }
  0x34   : > { %672 = vmatpush.bf16.msrb.mxu3 %v1712_v58  ;;  %v218_v38 = vor.u32 %v217_v32, %v213_v25  ;;  %v2176_v54 = vld [vmem:[%s3233_s1 + $0x194] sm:$0xf0]  ;;  %v2175_v56 = vld [vmem:[%s3233_s1 + $0x194] sm:$0xf]  ;;  %v1669_v57 = vld [vmem:[%s3233_s1 + $0x198] sm:$0xf0]  ;;  %v1592_v62 = vor.u32 %v2159_v50, %v1589_v52 }
  0x35   : > { %v1579_v58 = vld [vmem:[%s3233_s1 + $0x100] sm:$0xf]  ;;  %v2158_v59 = vld [vmem:[%s3233_s1 + $0x104] sm:$0xf0]  ;;  %v2157_v60 = vld [vmem:[%s3233_s1 + $0x104] sm:$0xf]  ;;  %v1668_v63 = vor.u32 %v2176_v54, %v1667_v53 }
  0x36   : > { %533 = vmatpush.bf16.msrb.mxu0 %v1620_v0  ;;  %321 = vmatmul.bf16.vlgmr.msra.gmra.mxu1 %v218_v38  ;;  %v1581_v61 = vld [vmem:[%s3233_s1 + $0x108] sm:$0xf0]  ;;  %v1659_v0 = vld [vmem:[%s3233_s1 + $0x180] sm:$0xf]  ;;  %v1795_v1 = vld [vmem:[%s3233_s1 + $0x270] sm:$0xf]  ;;  %v1580_v7 = vor.u32 %v2158_v59, %v1579_v58 }
  0x37   : > { %546 = vmatpush.bf16.msrb.mxu1 %v1624_v3  ;;  %660 = vmatpush.bf16.msrb.mxu2 %v1700_v4  ;;  %v2204_v2 = vld [vmem:[%s3233_s1 + $0x274] sm:$0xf0]  ;;  %v1672_v3 = vor.u32 %v2175_v56, %v1669_v57  ;;  %v2174_v4 = vld [vmem:[%s3233_s1 + $0x184] sm:$0xf0]  ;;  %v2173_v5 = vld [vmem:[%s3233_s1 + $0x184] sm:$0xf] }
  0x38   : > { %673 = vmatpush.bf16.msrb.mxu3 %v1704_v8  ;;  %308 = vmatmul.bf16.vlgmr.msra.gmra.mxu0 %v218_v38  ;;  %v1661_v6 = vld [vmem:[%s3233_s1 + $0x188] sm:$0xf0]  ;;  %v2203_v8 = vld [vmem:[%s3233_s1 + $0x274] sm:$0xf]  ;;  %v1797_v9 = vld [vmem:[%s3233_s1 + $0x278] sm:$0xf0]  ;;  %v1796_v12 = vor.u32 %v2204_v2, %v1795_v1 }
  0x39   : > { %v1875_v10 = vld [vmem:[%s3233_s1 + $0x2f0] sm:$0xf]  ;;  %v2220_v13 = vld [vmem:[%s3233_s1 + $0x2f4] sm:$0xf0]  ;;  %v2219_v14 = vld [vmem:[%s3233_s1 + $0x2f4] sm:$0xf]  ;;  %v1664_v20 = vor.u32 %v2173_v5, %v1661_v6  ;;  %v1800_v21 = vor.u32 %v2203_v8, %v1797_v9 }
  0x3a   : > { %534 = vmatpush.bf16.msrb.mxu0 %v1612_v16  ;;  %v1877_v16 = vld [vmem:[%s3233_s1 + $0x2f8] sm:$0xf0]  ;;  %v1787_v23 = vld [vmem:[%s3233_s1 + $0x260] sm:$0xf]  ;;  %v2202_v24 = vld [vmem:[%s3233_s1 + $0x264] sm:$0xf0]  ;;  %v1876_v27 = vor.u32 %v2220_v13, %v1875_v10 }
  0x3b   : > { %547 = vmatpush.bf16.msrb.mxu1 %v1616_v17  ;;  %661 = vmatpush.bf16.msrb.mxu2 %v1692_v18  ;;  %v1584_v17 = vor.u32 %v2157_v60, %v1581_v61  ;;  %v1660_v18 = vor.u32 %v2174_v4, %v1659_v0  ;;  %v1880_v28 = vor.u32 %v2219_v14, %v1877_v16  ;;  %v1789_v30 = vld [vmem:[%s3233_s1 + $0x268] sm:$0xf0]  ;;  %v1867_v31 = vld [vmem:[%s3233_s1 + $0x2e0] sm:$0xf]  ;;  %v2218_v32 = vld [vmem:[%s3233_s1 + $0x2e4] sm:$0xf0] }
  0x3c   : > { %674 = vmatpush.bf16.msrb.mxu3 %v1696_v22  ;;  %v449_v22 = vrot.slane %v2621_v19, 1  ;;  %v2217_v33 = vld [vmem:[%s3233_s1 + $0x2e4] sm:$0xf]  ;;  %v1869_v34 = vld [vmem:[%s3233_s1 + $0x2e8] sm:$0xf0]  ;;  %v1868_v40 = vor.u32 %v2218_v32, %v1867_v31 }
  0x3d   : > { %v1779_v38 = vld [vmem:[%s3233_s1 + $0x250] sm:$0xf]  ;;  %v1872_v41 = vor.u32 %v2217_v33, %v1869_v34  ;;  %v2199_v42 = vld [vmem:[%s3233_s1 + $0x254] sm:$0xf]  ;;  %v2216_v45 = vld [vmem:[%s3233_s1 + $0x2d4] sm:$0xf0] }
  0x3e   : > { %535 = vmatpush.bf16.msrb.mxu0 %v1604_v29  ;;  %v2201_v29 = vld [vmem:[%s3233_s1 + $0x264] sm:$0xf]  ;;  %v1859_v44 = vld [vmem:[%s3233_s1 + $0x2d0] sm:$0xf]  ;;  %v2215_v46 = vld [vmem:[%s3233_s1 + $0x2d4] sm:$0xf] }
  0x3f   : > { %548 = vmatpush.bf16.msrb.mxu1 %v1608_v35  ;;  %662 = vmatpush.bf16.msrb.mxu2 %v1684_v36  ;;  %v576_v35 = vrot.slane %v2621_v19, 2  ;;  %v1788_v36 = vor.u32 %v2202_v24, %v1787_v23  ;;  %v1792_v37 = vor.u32 %v2201_v29, %v1789_v30  ;;  %v1861_v47 = vld [vmem:[%s3233_s1 + $0x2d8] sm:$0xf0]  ;;  %v1771_v50 = vld [vmem:[%s3233_s1 + $0x240] sm:$0xf]  ;;  %v1860_v52 = vor.u32 %v2216_v45, %v1859_v44 }
  0x40   : > { %675 = vmatpush.bf16.msrb.mxu3 %v1688_v39  ;;  %v2200_v39 = vld [vmem:[%s3233_s1 + $0x254] sm:$0xf0]  ;;  %v1864_v53 = vor.u32 %v2215_v46, %v1861_v47  ;;  %v2197_v54 = vld [vmem:[%s3233_s1 + $0x244] sm:$0xf]  ;;  %v1851_v56 = vld [vmem:[%s3233_s1 + $0x2c0] sm:$0xf] }
  0x41   : > { %v2214_v57 = vld [vmem:[%s3233_s1 + $0x2c4] sm:$0xf0]  ;;  %v2213_v58 = vld [vmem:[%s3233_s1 + $0x2c4] sm:$0xf]  ;;  %v1853_v59 = vld [vmem:[%s3233_s1 + $0x2c8] sm:$0xf0] }
  0x42   : > { %536 = vmatpush.bf16.msrb.mxu0 %v1596_v43  ;;  %v1781_v43 = vld [vmem:[%s3233_s1 + $0x258] sm:$0xf0]  ;;  %v1852_v0 = vor.u32 %v2214_v57, %v1851_v56  ;;  %v1856_v1 = vor.u32 %v2213_v58, %v1853_v59  ;;  %v2195_v2 = vld [vmem:[%s3233_s1 + $0x234] sm:$0xf]  ;;  %v1843_v4 = vld [vmem:[%s3233_s1 + $0x2b0] sm:$0xf] }
  0x43   : > { %549 = vmatpush.bf16.msrb.mxu1 %v1600_v48  ;;  %663 = vmatpush.bf16.msrb.mxu2 %v1676_v49  ;;  %v1780_v48 = vor.u32 %v2200_v39, %v1779_v38  ;;  %v1784_v49 = vor.u32 %v2199_v42, %v1781_v43  ;;  %v2212_v5 = vld [vmem:[%s3233_s1 + $0x2b4] sm:$0xf0]  ;;  %v2211_v6 = vld [vmem:[%s3233_s1 + $0x2b4] sm:$0xf]  ;;  %v1755_v10 = vld [vmem:[%s3233_s1 + $0x220] sm:$0xf] }
  0x44   : > { %676 = vmatpush.bf16.msrb.mxu3 %v1680_v51  ;;  %v2198_v51 = vld [vmem:[%s3233_s1 + $0x244] sm:$0xf0]  ;;  %v1844_v13 = vor.u32 %v2212_v5, %v1843_v4  ;;  %v2193_v16 = vld [vmem:[%s3233_s1 + $0x224] sm:$0xf]  ;;  %v2191_v31 = vld [vmem:[%s3233_s1 + $0x214] sm:$0xf] }
  0x45   : > { %v1772_v60 = vor.u32 %v2198_v51, %v1771_v50  ;;  %v1749_v32 = vld [vmem:[%s3233_s1 + $0x218] sm:$0xf0]  ;;  %v1827_v33 = vld [vmem:[%s3233_s1 + $0x290] sm:$0xf]  ;;  %v2208_v34 = vld [vmem:[%s3233_s1 + $0x294] sm:$0xf0] }
  0x46   : > { %537 = vmatpush.bf16.msrb.mxu0 %v1588_v55  ;;  %v1773_v55 = vld [vmem:[%s3233_s1 + $0x248] sm:$0xf0]  ;;  %v704_v38 = vrot.slane %v215_v26, 3  ;;  %v1739_v39 = vld [vmem:[%s3233_s1 + $0x200] sm:$0xf]  ;;  %v1752_v42 = vor.u32 %v2191_v31, %v1749_v32  ;;  %v1828_v44 = vor.u32 %v2208_v34, %v1827_v33 }
  0x47   : > { %550 = vmatpush.bf16.msrb.mxu1 %v1592_v62  ;;  %664 = vmatpush.bf16.msrb.mxu2 %v1668_v63  ;;  %v1776_v61 = vor.u32 %v2197_v54, %v1773_v55  ;;  %v1763_v62 = vld [vmem:[%s3233_s1 + $0x230] sm:$0xf]  ;;  %v2196_v63 = vld [vmem:[%s3233_s1 + $0x234] sm:$0xf0]  ;;  %v1741_v26 = vld [vmem:[%s3233_s1 + $0x208] sm:$0xf0] }
  0x48   : > { %677 = vmatpush.bf16.msrb.mxu3 %v1672_v3  ;;  %v1765_v3 = vld [vmem:[%s3233_s1 + $0x238] sm:$0xf0]  ;;  %v1764_v8 = vor.u32 %v2196_v63, %v1763_v62  ;;  %v1819_v43 = vld [vmem:[%s3233_s1 + $0x280] sm:$0xf]  ;;  %v2206_v46 = vld [vmem:[%s3233_s1 + $0x284] sm:$0xf0] }
  0x49   : > { %v1768_v9 = vor.u32 %v2195_v2, %v1765_v3  ;;  %v2205_v47 = vld [vmem:[%s3233_s1 + $0x284] sm:$0xf]  ;;  %v2236_v50 = vld [vmem:[%s3233_s1 + $0x374] sm:$0xf0]  ;;  %v173_v51 = vld [vmem:[%s2603_s28 + $0x8] sm:$0x1] }
  0x4a   : > { %538 = vmatpush.bf16.msrb.mxu0 %v1580_v7  ;;  %v1845_v7 = vld [vmem:[%s3233_s1 + $0x2b8] sm:$0xf0]  ;;  %v2035_v54 = vld [vmem:[%s3233_s1 + $0x3f0] sm:$0xf]  ;;  %v1085_v55 = vunpack.c.l.b16 %v173_v51  ;;  %v2252_v58 = vld [vmem:[%s3233_s1 + $0x3f4] sm:$0xf0] }
  0x4b   : > { %551 = vmatpush.bf16.msrb.mxu1 %v1584_v17  ;;  %665 = vmatpush.bf16.msrb.mxu2 %v1660_v18  ;;  %v1848_v14 = vor.u32 %v2211_v6, %v1845_v7  ;;  %v1757_v17 = vld [vmem:[%s3233_s1 + $0x228] sm:$0xf0]  ;;  %v1835_v18 = vld [vmem:[%s3233_s1 + $0x2a0] sm:$0xf]  ;;  %v2251_v59 = vld [vmem:[%s3233_s1 + $0x3f4] sm:$0xf]  ;;  %v2036_v4 = vor.u32 %v2252_v58, %v2035_v54 }
  0x4c   : > { %678 = vmatpush.bf16.msrb.mxu3 %v1664_v20  ;;  %v2210_v20 = vld [vmem:[%s3233_s1 + $0x2a4] sm:$0xf0]  ;;  %v1760_v24 = vor.u32 %v2193_v16, %v1757_v17  ;;  %v2950_v63 = vpack.c.b16 %v1085_v55, %v210_v15  ;;  %v1947_v2 = vld [vmem:[%s3233_s1 + $0x360] sm:$0xf]  ;;  %v2233_v6 = vld [vmem:[%s3233_s1 + $0x364] sm:$0xf] }
  0x4d   : > { %539 = vmatmul.bf16.vlgmr.msrb.gmra.mxu0 %v449_v22  ;;  %v1836_v29 = vor.u32 %v2210_v20, %v1835_v18  ;;  %v2234_v3 = vld [vmem:[%s3233_s1 + $0x364] sm:$0xf0]  ;;  %v1949_v15 = vld [vmem:[%s3233_s1 + $0x368] sm:$0xf0]  ;;  %v2027_v7 = vld [vmem:[%s3233_s1 + $0x3e0] sm:$0xf] }
  0x4e   : > { %787 = vmatpush.bf16.msra.mxu0 %v1796_v12  ;;  %552 = vmatmul.bf16.vlgmr.msrb.gmra.mxu1 %v449_v22  ;;  %v2194_v12 = vld [vmem:[%s3233_s1 + $0x224] sm:$0xf0]  ;;  %v1837_v22 = vld [vmem:[%s3233_s1 + $0x2a8] sm:$0xf0]  ;;  %v1952_v16 = vor.u32 %v2233_v6, %v1949_v15  ;;  %v1939_v17 = vld [vmem:[%s3233_s1 + $0x350] sm:$0xf] }
  0x4f   : > { %800 = vmatpush.bf16.msra.mxu1 %v1800_v21  ;;  %914 = vmatpush.bf16.msra.mxu2 %v1876_v27  ;;  %v2209_v21 = vld [vmem:[%s3233_s1 + $0x2a4] sm:$0xf]  ;;  %v1756_v23 = vor.u32 %v2194_v12, %v1755_v10  ;;  %v1747_v27 = vld [vmem:[%s3233_s1 + $0x210] sm:$0xf]  ;;  %v2029_v12 = vld [vmem:[%s3233_s1 + $0x3e8] sm:$0xf0] }
  0x50   : > { %927 = vmatpush.bf16.msra.mxu3 %v1880_v28  ;;  %666 = vmatmul.bf16.vlgmr.msrb.gmra.mxu2 %v576_v35  ;;  %v2192_v28 = vld [vmem:[%s3233_s1 + $0x214] sm:$0xf0]  ;;  %v1840_v30 = vor.u32 %v2209_v21, %v1837_v22  ;;  %v2249_v10 = vld [vmem:[%s3233_s1 + $0x3e4] sm:$0xf]  ;;  %v1941_v22 = vld [vmem:[%s3233_s1 + $0x358] sm:$0xf0] }
  0x51   : > { %679 = vmatmul.bf16.vlgmr.msrb.gmra.mxu3 %v576_v35  ;;  %v2207_v35 = vld [vmem:[%s3233_s1 + $0x294] sm:$0xf]  ;;  %v2232_v18 = vld [vmem:[%s3233_s1 + $0x354] sm:$0xf0]  ;;  %v2032_v21 = vor.u32 %v2249_v10, %v2029_v12  ;;  %v1931_v31 = vld [vmem:[%s3233_s1 + $0x340] sm:$0xf] }
  0x52   : > { %788 = vmatpush.bf16.msra.mxu0 %v1788_v36  ;;  %v1829_v36 = vld [vmem:[%s3233_s1 + $0x298] sm:$0xf0]  ;;  %v2230_v32 = vld [vmem:[%s3233_s1 + $0x344] sm:$0xf0]  ;;  %v1917_v58 = vld [vmem:[%s3233_s1 + $0x328] sm:$0xf0] }
  0x53   : > { %801 = vmatpush.bf16.msra.mxu1 %v1792_v37  ;;  %915 = vmatpush.bf16.msra.mxu2 %v1868_v40  ;;  %v703_v37 = vrot.slane %v213_v25, 2  ;;  %v2190_v40 = vld [vmem:[%s3233_s1 + $0x204] sm:$0xf0]  ;;  %v2189_v25 = vld [vmem:[%s3233_s1 + $0x204] sm:$0xf]  ;;  %v1832_v45 = vor.u32 %v2207_v35, %v1829_v36 }
  0x54   : > { %928 = vmatpush.bf16.msra.mxu3 %v1872_v41  ;;  %v1748_v41 = vor.u32 %v2192_v28, %v1747_v27  ;;  %v1740_v56 = vor.u32 %v2190_v40, %v1739_v39  ;;  %v1744_v57 = vor.u32 %v2189_v25, %v1741_v26  ;;  %v2247_v27 = vld [vmem:[%s3233_s1 + $0x3d4] sm:$0xf]  ;;  %v2021_v28 = vld [vmem:[%s3233_s1 + $0x3d8] sm:$0xf0]  ;;  %v2229_v35 = vld [vmem:[%s3233_s1 + $0x344] sm:$0xf] }
  0x55   : > { %v2024_v34 = vor.u32 %v2247_v27, %v2021_v28  ;;  %v1933_v36 = vld [vmem:[%s3233_s1 + $0x348] sm:$0xf0]  ;;  %v2245_v39 = vld [vmem:[%s3233_s1 + $0x3c4] sm:$0xf]  ;;  %v1923_v25 = vld [vmem:[%s3233_s1 + $0x330] sm:$0xf] }
  0x56   : > { %789 = vmatpush.bf16.msra.mxu0 %v1780_v48  ;;  %v1821_v48 = vld [vmem:[%s3233_s1 + $0x288] sm:$0xf0]  ;;  %v2228_v26 = vld [vmem:[%s3233_s1 + $0x334] sm:$0xf0]  ;;  %v2226_v54 = vld [vmem:[%s3233_s1 + $0x324] sm:$0xf0] }
  0x57   : > { %802 = vmatpush.bf16.msra.mxu1 %v1784_v49  ;;  %916 = vmatpush.bf16.msra.mxu2 %v1860_v52  ;;  %v1955_v49 = vld [vmem:[%s3233_s1 + $0x370] sm:$0xf]  ;;  %v2235_v52 = vld [vmem:[%s3233_s1 + $0x374] sm:$0xf]  ;;  %v1824_v62 = vor.u32 %v2205_v47, %v1821_v48  ;;  %v2013_v40 = vld [vmem:[%s3233_s1 + $0x3c8] sm:$0xf0]  ;;  %v1924_v51 = vor.u32 %v2228_v26, %v1923_v25 }
  0x58   : > { %929 = vmatpush.bf16.msra.mxu3 %v1864_v53  ;;  %v1957_v53 = vld [vmem:[%s3233_s1 + $0x378] sm:$0xf0]  ;;  %v2003_v47 = vld [vmem:[%s3233_s1 + $0x3b0] sm:$0xf]  ;;  %v2244_v48 = vld [vmem:[%s3233_s1 + $0x3b4] sm:$0xf0] }
  0x59   : > { %v2004_v55 = vor.u32 %v2244_v48, %v2003_v47  ;;  %v2223_v6 = vld [vmem:[%s3233_s1 + $0x314] sm:$0xf]  ;;  %v1909_v15 = vld [vmem:[%s3233_s1 + $0x318] sm:$0xf0]  ;;  %v1899_v12 = vld [vmem:[%s3233_s1 + $0x300] sm:$0xf] }
  0x5a   : > { %790 = vmatpush.bf16.msra.mxu0 %v1772_v60  ;;  %v2037_v60 = vld [vmem:[%s3233_s1 + $0x3f8] sm:$0xf0]  ;;  %v1981_v27 = vld [vmem:[%s3233_s1 + $0x388] sm:$0xf0]  ;;  %v2115_v28 = vld [vmem:[%s3233_s1 + $0x470] sm:$0xf] }
  0x5b   : > { %803 = vmatpush.bf16.msra.mxu1 %v1776_v61  ;;  %917 = vmatpush.bf16.msra.mxu2 %v1852_v0  ;;  %v1820_v61 = vor.u32 %v2206_v46, %v1819_v43  ;;  %v1956_v0 = vor.u32 %v2236_v50, %v1955_v49  ;;  %v2040_v5 = vor.u32 %v2251_v59, %v2037_v60  ;;  %v1925_v46 = vld [vmem:[%s3233_s1 + $0x338] sm:$0xf0]  ;;  %v2243_v49 = vld [vmem:[%s3233_s1 + $0x3b4] sm:$0xf]  ;;  %v1995_v59 = vld [vmem:[%s3233_s1 + $0x3a0] sm:$0xf] }
  0x5c   : > { %930 = vmatpush.bf16.msra.mxu3 %v1856_v1  ;;  %v1960_v1 = vor.u32 %v2235_v52, %v1957_v53  ;;  %v2005_v50 = vld [vmem:[%s3233_s1 + $0x3b8] sm:$0xf0]  ;;  %v1915_v53 = vld [vmem:[%s3233_s1 + $0x320] sm:$0xf]  ;;  %v2242_v60 = vld [vmem:[%s3233_s1 + $0x3a4] sm:$0xf0] }
  0x5d   : > { %v1989_v10 = vld [vmem:[%s3233_s1 + $0x398] sm:$0xf0]  ;;  %v2109_v25 = vld [vmem:[%s3233_s1 + $0x468] sm:$0xf0]  ;;  %v2263_v47 = vld [vmem:[%s3233_s1 + $0x454] sm:$0xf] }
  0x5e   : > { %791 = vmatpush.bf16.msra.mxu0 %v1764_v8  ;;  %v705_v8 = vor.u32 %v704_v38, %v703_v37  ;;  %v2011_v37 = vld [vmem:[%s3233_s1 + $0x3c0] sm:$0xf]  ;;  %v2246_v38 = vld [vmem:[%s3233_s1 + $0x3c4] sm:$0xf0]  ;;  %v2101_v48 = vld [vmem:[%s3233_s1 + $0x458] sm:$0xf0] }
  0x5f   : > { %804 = vmatpush.bf16.msra.mxu1 %v1768_v9  ;;  %918 = vmatpush.bf16.msra.mxu2 %v1844_v13  ;;  %v2250_v9 = vld [vmem:[%s3233_s1 + $0x3e4] sm:$0xf0]  ;;  %v832_v13 = vrot.slane %v2621_v19, 3  ;;  %v2231_v19 = vld [vmem:[%s3233_s1 + $0x354] sm:$0xf]  ;;  %v2012_v43 = vor.u32 %v2246_v38, %v2011_v37 }
  0x60   : > { %931 = vmatpush.bf16.msra.mxu3 %v1848_v14  ;;  %v1948_v14 = vor.u32 %v2234_v3, %v1947_v2  ;;  %v2028_v20 = vor.u32 %v2250_v9, %v2027_v7  ;;  %v1907_v2 = vld [vmem:[%s3233_s1 + $0x310] sm:$0xf]  ;;  %v2224_v3 = vld [vmem:[%s3233_s1 + $0x314] sm:$0xf0]  ;;  %v2239_v9 = vld [vmem:[%s3233_s1 + $0x394] sm:$0xf] }
  0x61   : > { %v1987_v7 = vld [vmem:[%s3233_s1 + $0x390] sm:$0xf] }
  0x62   : > { %792 = vmatpush.bf16.msra.mxu0 %v1756_v23  ;;  %v2019_v23 = vld [vmem:[%s3233_s1 + $0x3d0] sm:$0xf] }
  0x63   : > { %805 = vmatpush.bf16.msra.mxu1 %v1760_v24  ;;  %919 = vmatpush.bf16.msra.mxu2 %v1836_v29  ;;  %v2248_v24 = vld [vmem:[%s3233_s1 + $0x3d4] sm:$0xf0]  ;;  %v1940_v29 = vor.u32 %v2232_v18, %v1939_v17  ;;  %v2221_v17 = vld [vmem:[%s3233_s1 + $0x304] sm:$0xf]  ;;  %v1090_v18 = vshll.u32 %v2950_v63, 16 }
  0x64   : > { %932 = vmatpush.bf16.msra.mxu3 %v1840_v30  ;;  %v1944_v30 = vor.u32 %v2231_v19, %v1941_v22  ;;  %v2020_v33 = vor.u32 %v2248_v24, %v2019_v23  ;;  %v1901_v19 = vld [vmem:[%s3233_s1 + $0x308] sm:$0xf0]  ;;  %v1979_v22 = vld [vmem:[%s3233_s1 + $0x380] sm:$0xf]  ;;  %v2238_v23 = vld [vmem:[%s3233_s1 + $0x384] sm:$0xf0] }
  0x65   : > { %v2237_v24 = vld [vmem:[%s3233_s1 + $0x384] sm:$0xf] }
  0x66   : > { %793 = vmatpush.bf16.msra.mxu0 %v1748_v41  ;;  %v1932_v41 = vor.u32 %v2230_v32, %v1931_v31  ;;  %v2117_v31 = vld [vmem:[%s3233_s1 + $0x478] sm:$0xf0]  ;;  %v1984_v37 = vor.u32 %v2237_v24, %v1981_v27 }
  0x67   : > { %806 = vmatpush.bf16.msra.mxu1 %v1752_v42  ;;  %920 = vmatpush.bf16.msra.mxu2 %v1828_v44  ;;  %v1936_v42 = vor.u32 %v2229_v35, %v1933_v36  ;;  %v2016_v44 = vor.u32 %v2245_v39, %v2013_v40  ;;  %v1092_v35 = vrot.slane %v1090_v18, 1  ;;  %v1980_v36 = vor.u32 %v2238_v23, %v1979_v22  ;;  %v2107_v40 = vld [vmem:[%s3233_s1 + $0x460] sm:$0xf] }
  0x68   : > { %933 = vmatpush.bf16.msra.mxu3 %v1832_v45  ;;  %v2227_v45 = vld [vmem:[%s3233_s1 + $0x334] sm:$0xf]  ;;  %v1220_v18 = vrot.slane %v2950_v63, 1 }
  0x69   : > { %v1928_v52 = vor.u32 %v2227_v45, %v1925_v46  ;;  %v2099_v45 = vld [vmem:[%s3233_s1 + $0x450] sm:$0xf]  ;;  %v2264_v46 = vld [vmem:[%s3233_s1 + $0x454] sm:$0xf0] }
  0x6a   : > { %794 = vmatpush.bf16.msra.mxu0 %v1740_v56  ;;  %v2008_v56 = vor.u32 %v2243_v49, %v2005_v50  ;;  %v2100_v49 = vor.u32 %v2264_v46, %v2099_v45  ;;  %v2104_v50 = vor.u32 %v2263_v47, %v2101_v48 }
  0x6b   : > { %807 = vmatpush.bf16.msra.mxu1 %v1744_v57  ;;  %921 = vmatpush.bf16.msra.mxu2 %v1820_v61  ;;  %v2225_v57 = vld [vmem:[%s3233_s1 + $0x324] sm:$0xf] }
  0x6c   : > { %934 = vmatpush.bf16.msra.mxu3 %v1824_v62  ;;  %v2241_v61 = vld [vmem:[%s3233_s1 + $0x3a4] sm:$0xf]  ;;  %v1997_v62 = vld [vmem:[%s3233_s1 + $0x3a8] sm:$0xf0] }
  0x6d   : > { %795 = vmatmul.bf16.vlgmr.msra.gmra.mxu0 %v705_v8 }
  0x6e   : > { %1039 = vmatpush.bf16.msrb.mxu0 %v1956_v0  ;;  %808 = vmatmul.bf16.vlgmr.msra.gmra.mxu1 %v705_v8  ;;  %v1916_v0 = vor.u32 %v2226_v54, %v1915_v53  ;;  %v2240_v8 = vld [vmem:[%s3233_s1 + $0x394] sm:$0xf0]  ;;  %v2093_v53 = vld [vmem:[%s3233_s1 + $0x448] sm:$0xf0] }
  0x6f   : > { %1052 = vmatpush.bf16.msrb.mxu1 %v1960_v1  ;;  %1175 = vmatpush.bf16.msrb.mxu2 %v2036_v4  ;;  %v1920_v1 = vor.u32 %v2225_v57, %v1917_v58  ;;  %v1996_v4 = vor.u32 %v2242_v60, %v1995_v59  ;;  %v2260_v57 = vld [vmem:[%s3233_s1 + $0x434] sm:$0xf0]  ;;  %v2259_v58 = vld [vmem:[%s3233_s1 + $0x434] sm:$0xf]  ;;  %v2085_v59 = vld [vmem:[%s3233_s1 + $0x438] sm:$0xf0] }
  0x70   : > { %1188 = vmatpush.bf16.msrb.mxu3 %v2040_v5  ;;  %922 = vmatmul.bf16.vlgmr.msra.gmra.mxu2 %v832_v13  ;;  %v2000_v5 = vor.u32 %v2241_v61, %v1997_v62  ;;  %v2088_v61 = vor.u32 %v2259_v58, %v2085_v59  ;;  %v2075_v62 = vld [vmem:[%s3233_s1 + $0x420] sm:$0xf] }
  0x71   : > { %935 = vmatmul.bf16.vlgmr.msra.gmra.mxu3 %v832_v13  ;;  %v1908_v13 = vor.u32 %v2224_v3, %v1907_v2  ;;  %v2077_v2 = vld [vmem:[%s3233_s1 + $0x428] sm:$0xf0]  ;;  %v1330_v59 = vld [vmem:[%s3234_s2] sm:$0x3] }
  0x72   : > { %1040 = vmatpush.bf16.msrb.mxu0 %v1948_v14  ;;  %v1912_v14 = vor.u32 %v2223_v6, %v1909_v15  ;;  %v2256_v6 = vld [vmem:[%s3233_s1 + $0x414] sm:$0xf0]  ;;  %v2255_v15 = vld [vmem:[%s3233_s1 + $0x414] sm:$0xf] }
  0x73   : > { %1053 = vmatpush.bf16.msrb.mxu1 %v1952_v16  ;;  %1176 = vmatpush.bf16.msrb.mxu2 %v2028_v20  ;;  %v2222_v16 = vld [vmem:[%s3233_s1 + $0x304] sm:$0xf0]  ;;  %v1988_v20 = vor.u32 %v2240_v8, %v1987_v7  ;;  %v2069_v7 = vld [vmem:[%s3233_s1 + $0x418] sm:$0xf0] }
  0x74   : > { %1189 = vmatpush.bf16.msrb.mxu3 %v2032_v21  ;;  %v1992_v21 = vor.u32 %v2239_v9, %v1989_v10  ;;  %v1900_v32 = vor.u32 %v2222_v16, %v1899_v12  ;;  %v2072_v9 = vor.u32 %v2255_v15, %v2069_v7  ;;  %v2059_v10 = vld [vmem:[%s3233_s1 + $0x400] sm:$0xf]  ;;  %v2254_v12 = vld [vmem:[%s3233_s1 + $0x404] sm:$0xf0] }
  0x75   : > { %v2060_v16 = vor.u32 %v2254_v12, %v2059_v10 }
  0x76   : > { %1041 = vmatpush.bf16.msrb.mxu0 %v1940_v29  ;;  %v2268_v29 = vld [vmem:[%s3233_s1 + $0x474] sm:$0xf0] }
  0x77   : > { %1054 = vmatpush.bf16.msrb.mxu1 %v1944_v30  ;;  %1177 = vmatpush.bf16.msrb.mxu2 %v2020_v33  ;;  %v2267_v30 = vld [vmem:[%s3233_s1 + $0x474] sm:$0xf]  ;;  %v1904_v33 = vor.u32 %v2221_v17, %v1901_v19  ;;  %v2116_v38 = vor.u32 %v2268_v29, %v2115_v28 }
  0x78   : > { %1190 = vmatpush.bf16.msrb.mxu3 %v2024_v34  ;;  %v1088_v34 = vshrl.u32 %v2950_v63, 16  ;;  %v2120_v39 = vor.u32 %v2267_v30, %v2117_v31 }
  0x7a   : > { %1042 = vmatpush.bf16.msrb.mxu0 %v1932_v41  ;;  %v2266_v41 = vld [vmem:[%s3233_s1 + $0x464] sm:$0xf0]  ;;  %v1093_v26 = vor.u32 %v1092_v35, %v1088_v34 }
  0x7b   : > { %1055 = vmatpush.bf16.msrb.mxu1 %v1936_v42  ;;  %1178 = vmatpush.bf16.msrb.mxu2 %v2012_v43  ;;  %v2265_v42 = vld [vmem:[%s3233_s1 + $0x464] sm:$0xf]  ;;  %v2108_v43 = vor.u32 %v2266_v41, %v2107_v40 }
  0x7c   : > { %1191 = vmatpush.bf16.msrb.mxu3 %v2016_v44  ;;  %v2112_v44 = vor.u32 %v2265_v42, %v2109_v25 }
  0x7e   : > { %1043 = vmatpush.bf16.msrb.mxu0 %v1924_v51  ;;  %v2262_v51 = vld [vmem:[%s3233_s1 + $0x444] sm:$0xf0] }
  0x7f   : > { %1056 = vmatpush.bf16.msrb.mxu1 %v1928_v52  ;;  %1179 = vmatpush.bf16.msrb.mxu2 %v2004_v55  ;;  %v2261_v52 = vld [vmem:[%s3233_s1 + $0x444] sm:$0xf] }
  0x80   : > { %1192 = vmatpush.bf16.msrb.mxu3 %v2008_v56  ;;  %v2096_v55 = vor.u32 %v2261_v52, %v2093_v53  ;;  %v2083_v56 = vld [vmem:[%s3233_s1 + $0x430] sm:$0xf] }
  0x81   : > { %v2084_v60 = vor.u32 %v2260_v57, %v2083_v56 }
  0x82   : > { %1044 = vmatpush.bf16.msrb.mxu0 %v1916_v0  ;;  %v2258_v0 = vld [vmem:[%s3233_s1 + $0x424] sm:$0xf0] }
  0x83   : > { %1057 = vmatpush.bf16.msrb.mxu1 %v1920_v1  ;;  %1180 = vmatpush.bf16.msrb.mxu2 %v1996_v4  ;;  %v2257_v1 = vld [vmem:[%s3233_s1 + $0x424] sm:$0xf]  ;;  %v2076_v3 = vor.u32 %v2258_v0, %v2075_v62 }
  0x84   : > { %1193 = vmatpush.bf16.msrb.mxu3 %v2000_v5  ;;  %v2080_v4 = vor.u32 %v2257_v1, %v2077_v2  ;;  %v2067_v5 = vld [vmem:[%s3233_s1 + $0x410] sm:$0xf]  ;;  %v1332_v1 = vperm.slane %v1330_v59, 0  ;;  %v1333_v2 = vperm.slane %v1330_v59, 1 }
  0x85   : > { %v2068_v8 = vor.u32 %v2256_v6, %v2067_v5 }
  0x86   : > { %1045 = vmatpush.bf16.msrb.mxu0 %v1908_v13  ;;  %v2253_v13 = vld [vmem:[%s3233_s1 + $0x404] sm:$0xf] }
  0x87   : > { %1058 = vmatpush.bf16.msrb.mxu1 %v1912_v14  ;;  %1181 = vmatpush.bf16.msrb.mxu2 %v1988_v20  ;;  %v2061_v14 = vld [vmem:[%s3233_s1 + $0x408] sm:$0xf0] }
  0x88   : > { %1194 = vmatpush.bf16.msrb.mxu3 %v1992_v21  ;;  %v2064_v17 = vor.u32 %v2253_v13, %v2061_v14 }
  0x8a   : > { %1046 = vmatpush.bf16.msrb.mxu0 %v1900_v32 }
  0x8b   : > { %1059 = vmatpush.bf16.msrb.mxu1 %v1904_v33  ;;  %1182 = vmatpush.bf16.msrb.mxu2 %v1980_v36 }
  0x8c   : > { %1195 = vmatpush.bf16.msrb.mxu3 %v1984_v37 }
  0x8d   : > { %1047 = vmatmul.bf16.vlgmr.msrb.gmra.mxu0 %v2610_v11 }
  0x8e   : > { %1302 = vmatpush.bf16.msra.mxu0 %v2116_v38  ;;  %1060 = vmatmul.bf16.vlgmr.msrb.gmra.mxu1 %v2610_v11  ;;  %v2091_v11 = vld [vmem:[%s3233_s1 + $0x440] sm:$0xf] }
  0x8f   : > { %1315 = vmatpush.bf16.msra.mxu1 %v2120_v39  ;;  %1183 = vmatmul.bf16.vlgmr.msrb.gmra.mxu2 %v1093_v26  ;;  %v2092_v54 = vor.u32 %v2262_v51, %v2091_v11 }
  0x90   : > { %1196 = vmatmul.bf16.vlgmr.msrb.gmra.mxu3 %v1093_v26 }
  0x92   : > { %1303 = vmatpush.bf16.msra.mxu0 %v2108_v43 }
  0x93   : > { %1316 = vmatpush.bf16.msra.mxu1 %v2112_v44 }
  0x96   : > { %1304 = vmatpush.bf16.msra.mxu0 %v2100_v49 }
  0x97   : > { %1317 = vmatpush.bf16.msra.mxu1 %v2104_v50 }
  0x9a   : > { %1305 = vmatpush.bf16.msra.mxu0 %v2092_v54 }
  0x9b   : > { %1318 = vmatpush.bf16.msra.mxu1 %v2096_v55 }
  0x9e   : > { %1306 = vmatpush.bf16.msra.mxu0 %v2084_v60 }
  0x9f   : > { %1319 = vmatpush.bf16.msra.mxu1 %v2088_v61 }
  0xa2   : > { %1307 = vmatpush.bf16.msra.mxu0 %v2076_v3 }
  0xa3   : > { %1320 = vmatpush.bf16.msra.mxu1 %v2080_v4 }
  0xa6   : > { %1308 = vmatpush.bf16.msra.mxu0 %v2068_v8 }
  0xa7   : > { %1321 = vmatpush.bf16.msra.mxu1 %v2072_v9 }
  0xaa   : > { %1309 = vmatpush.bf16.msra.mxu0 %v2060_v16 }
  0xab   : > { %1322 = vmatpush.bf16.msra.mxu1 %v2064_v17 }
  0xad   : > { %1310 = vmatmul.bf16.vlgmr.msra.gmra.mxu0 %v1220_v18 }
  0xae   : > { %1323 = vmatmul.bf16.vlgmr.msra.gmra.mxu1 %v1220_v18 }
  0xb1   : > { %v415_v20 = vpop.f32.mrf.mxu2 }
  0xb3   : > { %v322_v22 = vpop.f32.mrf.mxu1 }
  0xb4   : > { %v428_v21 = vpop.f32.mrf.mxu3 }
  0xb5   : > { %v309_v19 = vpop.f32.mrf.mxu0  ;;  %v429_v24 = vadd.f32 %v428_v21, %v322_v22 }
  0xb6   : > { %v416_v23 = vadd.f32 %v415_v20, %v309_v19 }
  0xb9   : > { %v417_v27 = vpop.f32.mrf.mxu2 }
  0xbb   : > { %v324_v30 = vpop.f32.mrf.mxu1 }
  0xbc   : > { %v430_v28 = vpop.f32.mrf.mxu3 }
  0xbd   : > { %v311_v29 = vpop.f32.mrf.mxu0 }
  0xca   : > { %v540_v31 = vpop.f32.mrf.mxu0 }
  0xcb   : > { %v553_v32 = vpop.f32.mrf.mxu1  ;;  %v557_v33 = vadd.f32 %v540_v31, %v416_v23 }
  0xcc   : > { %v558_v34 = vadd.f32 %v553_v32, %v429_v24 }
  0xd2   : > { %v542_v38 = vpop.f32.mrf.mxu0 }
  0xd3   : > { %v667_v35 = vpop.f32.mrf.mxu2  ;;  %v555_v39 = vpop.f32.mrf.mxu1 }
  0xd4   : > { %v680_v63 = vpop.f32.mrf.mxu3  ;;  %v684_v36 = vadd.f32 %v667_v35, %v557_v33 }
  0xd5   : > { %v685_v37 = vadd.f32 %v680_v63, %v558_v34 }
  0xdb   : > { %v669_v40 = vpop.f32.mrf.mxu2 }
  0xdc   : > { %v682_v41 = vpop.f32.mrf.mxu3 }
  0xea   : > { %v796_v42 = vpop.f32.mrf.mxu0 }
  0xeb   : > { %v809_v25 = vpop.f32.mrf.mxu1  ;;  %v813_v55 = vadd.f32 %v796_v42, %v684_v36 }
  0xec   : > { %v814_v56 = vadd.f32 %v809_v25, %v685_v37 }
  0xf2   : > { %v798_v44 = vpop.f32.mrf.mxu0 }
  0xf3   : > { %v923_v26 = vpop.f32.mrf.mxu2  ;;  %v811_v45 = vpop.f32.mrf.mxu1 }
  0xf4   : > { %v936_v43 = vpop.f32.mrf.mxu3  ;;  %v940_v57 = vadd.f32 %v923_v26, %v813_v55 }
  0xf5   : > { %v941_v58 = vadd.f32 %v936_v43, %v814_v56 }
  0xfb   : > { %v925_v46 = vpop.f32.mrf.mxu2 }
  0xfc   : > { %v938_v47 = vpop.f32.mrf.mxu3 }
 0x10a   : > { %v1048_v48 = vpop.f32.mrf.mxu0 }
 0x10b   : > { %v1061_v49 = vpop.f32.mrf.mxu1  ;;  %v1065_v60 = vadd.f32 %v1048_v48, %v940_v57 }
 0x10c   : > { %v1066_v61 = vadd.f32 %v1061_v49, %v941_v58 }
 0x112   : > { %v1184_v50 = vpop.f32.mrf.mxu2  ;;  %v1050_v51 = vpop.f32.mrf.mxu0 }
 0x113   : > { %v1197_v11 = vpop.f32.mrf.mxu3  ;;  %v1063_v52 = vpop.f32.mrf.mxu1  ;;  %v1201_v62 = vadd.f32 %v1184_v50, %v1065_v60 }
 0x114   : > { %v1202_v0 = vadd.f32 %v1197_v11, %v1066_v61 }
 0x11a   : > { %v1186_v53 = vpop.f32.mrf.mxu2 }
 0x11b   : > { %v1199_v54 = vpop.f32.mrf.mxu3 }
 0x12a   : > { %v1311_v3 = vpop.f32.mrf.mxu0 }
 0x12b   : > { %v1324_v4 = vpop.f32.mrf.mxu1  ;;  %v1328_v5 = vadd.f32 %v1311_v3, %v1201_v62 }
 0x12c   : > { %v1329_v6 = vadd.f32 %v1324_v4, %v1202_v0 }
 0x12d   : > { %v1336_v15 = vadd.f32 %v1332_v1, %v1328_v5 }
 0x12e   : > { %v1337_v7 = vadd.f32 %v1333_v2, %v1329_v6 }
 0x12f   : > { %v1338_v8 = vmax.f32 %v1336_v15, 0.0 }
 0x130   : > { %v1339_v9 = vmax.f32 %v1337_v7, 0.0 }
 0x131   : > { %1347 = vst.sshfl [vmem:[#allocation1] sm:$0xff pattern:$0x73625140] %v1338_v8 }
 0x132   : > { %v1342_v10 = vrot.slane %v1339_v9, 6  ;;  %1348 = vst.sshfl [vmem:[#allocation1 + $0x8] sm:$0xff pattern:$0x73625140] %v1339_v9  ;;  %v1313_v12 = vpop.f32.mrf.mxu0 }
 0x133   : > { %v1326_v13 = vpop.f32.mrf.mxu1 }
 0x134   : > { %v1344_v14 = vsel %vm1343_vm0, %v1338_v8, %v1342_v10 }
 0x135   : > { %1346 = vst [vmem:[%s170_s5] sm:$0xf] %v1344_v14 }
 0x139   : > { %v1350_v16 = vld [vmem:[#allocation1 + $0x2] ss:$4 sm:$0xff] }
 0x13a   : > { %2121 = vst [vmem:[%s170_s5 + $0x4] sm:$0xf] %v1350_v16 }
 0x13b PF: > { %s13_s12 = sadd.s32 1, %s2284_s12  }
 0x13c   : > { %p10_p4 = scmp.ge.s32.totalorder %s13_s12, 4  }
 0x13e   :  { %12 = sbr.rel (!%p10_p4) target bundleno = 1 (0x1), region = 72 }

// kernel: vgg_forward.17
= control target key start
LH: loop header
LB: loop body
LE: loop exit
PB: predicated region body
PF: predicated region fallthrough
CT: control target
= control target key end

     0   :  { %s670_s0 = inlined_call_operand.vmem [shape: bf16[2,512], index: 0, kind: input, shape index: {}]   ;;  %s671_s1 = inlined_call_operand.vmem [shape: bf16[512,2], index: 1, kind: input, shape index: {}]   ;;  %s672_s2 = inlined_call_operand.vmem [shape: f32[1,2], index: 2, kind: input, shape index: {}]   ;;  %s673_s3 = inlined_call_operand.hbm [shape: f32[2,2], index: 3, kind: output, shape index: {}]  }
   0x1   :  { %v491_v0 = vld [vmem:[%s671_s1 + $0x38] sm:$0xff]  ;;  %v490_v4 = vld [vmem:[%s671_s1 + $0x30] sm:$0xff]  ;;  %v489_v8 = vld [vmem:[%s671_s1 + $0x28] sm:$0xff] }
   0x2   :  { %v499_v1 = vld [vmem:[%s671_s1 + $0x78] sm:$0xff]  ;;  %286 = vmatpush.bf16.msra.mxu0 %v491_v0  ;;  %v498_v5 = vld [vmem:[%s671_s1 + $0x70] sm:$0xff]  ;;  %v497_v9 = vld [vmem:[%s671_s1 + $0x68] sm:$0xff] }
   0x3   :  { %v507_v2 = vld [vmem:[%s671_s1 + $0xb8] sm:$0xff]  ;;  %299 = vmatpush.bf16.msra.mxu1 %v499_v1  ;;  %v506_v6 = vld [vmem:[%s671_s1 + $0xb0] sm:$0xff]  ;;  %v505_v10 = vld [vmem:[%s671_s1 + $0xa8] sm:$0xff] }
   0x4   :  { %v515_v3 = vld [vmem:[%s671_s1 + $0xf8] sm:$0xff]  ;;  %312 = vmatpush.bf16.msra.mxu2 %v507_v2  ;;  %v514_v7 = vld [vmem:[%s671_s1 + $0xf0] sm:$0xff]  ;;  %v513_v11 = vld [vmem:[%s671_s1 + $0xe8] sm:$0xff] }
   0x5   :  { %325 = vmatpush.bf16.msra.mxu3 %v515_v3  ;;  %v488_v12 = vld [vmem:[%s671_s1 + $0x20] sm:$0xff] }
   0x6   :  { %287 = vmatpush.bf16.msra.mxu0 %v490_v4  ;;  %v496_v13 = vld [vmem:[%s671_s1 + $0x60] sm:$0xff] }
   0x7   :  { %300 = vmatpush.bf16.msra.mxu1 %v498_v5  ;;  %v15_v14 = vld [vmem:[%s670_s0] sm:$0xf] }
   0x8   :  { %313 = vmatpush.bf16.msra.mxu2 %v506_v6  ;;  %v504_v15 = vld [vmem:[%s671_s1 + $0xa0] sm:$0xff]  ;;  %85 = vst [vmem:[#allocation1] ss:$9 sm:$0xff] %v15_v14 }
   0x9   :  { %326 = vmatpush.bf16.msra.mxu3 %v514_v7  ;;  %v512_v16 = vld [vmem:[%s671_s1 + $0xe0] sm:$0xff] }
   0xa   :  { %288 = vmatpush.bf16.msra.mxu0 %v489_v8 }
   0xb   :  { %301 = vmatpush.bf16.msra.mxu1 %v497_v9 }
   0xc   :  { %314 = vmatpush.bf16.msra.mxu2 %v505_v10 }
   0xd   :  { %327 = vmatpush.bf16.msra.mxu3 %v513_v11 }
   0xe   :  { %8 = vsyncpa [#allocation3], 0  ;;  %289 = vmatpush.bf16.msra.mxu0 %v488_v12  ;;  %v487_v17 = vld [vmem:[%s671_s1 + $0x18] sm:$0xff]  ;;  %v486_v21 = vld [vmem:[%s671_s1 + $0x10] sm:$0xff]  ;;  %s347_s27 = sshll.u32 %s673_s3, 4  ;;  %vm338_vm0 = vcmask 9216   ;;  %s348_s27 = int_to_ptr.hbm [resolvable:$true] %s347_s27 }
   0xf   :  { %302 = vmatpush.bf16.msra.mxu1 %v496_v13  ;;  %v495_v18 = vld [vmem:[%s671_s1 + $0x58] sm:$0xff]  ;;  %v494_v22 = vld [vmem:[%s671_s1 + $0x50] sm:$0xff]  ;;  %v485_v25 = vld [vmem:[%s671_s1 + $0x8] sm:$0xff] }
  0x10   :  { %315 = vmatpush.bf16.msra.mxu2 %v504_v15  ;;  %v503_v19 = vld [vmem:[%s671_s1 + $0x98] sm:$0xff]  ;;  %v502_v23 = vld [vmem:[%s671_s1 + $0x90] sm:$0xff]  ;;  %v493_v26 = vld [vmem:[%s671_s1 + $0x48] sm:$0xff] }
  0x11   :  { %328 = vmatpush.bf16.msra.mxu3 %v512_v16  ;;  %v511_v20 = vld [vmem:[%s671_s1 + $0xd8] sm:$0xff]  ;;  %v510_v24 = vld [vmem:[%s671_s1 + $0xd0] sm:$0xff]  ;;  %v501_v27 = vld [vmem:[%s671_s1 + $0x88] sm:$0xff] }
  0x12   :  { %290 = vmatpush.bf16.msra.mxu0 %v487_v17  ;;  %v509_v28 = vld [vmem:[%s671_s1 + $0xc8] sm:$0xff]  ;;  %v484_v29 = vld [vmem:[%s671_s1] sm:$0xff]  ;;  %v88_v35 = vld [vmem:[#allocation1 + $0x12] sm:$0xff] }
  0x13   :  { %303 = vmatpush.bf16.msra.mxu1 %v495_v18  ;;  %v492_v30 = vld [vmem:[%s671_s1 + $0x40] sm:$0xff]  ;;  %v87_v34 = vld [vmem:[#allocation1 + $0x9] sm:$0xff] }
  0x14   :  { %316 = vmatpush.bf16.msra.mxu2 %v503_v19  ;;  %v500_v31 = vld [vmem:[%s671_s1 + $0x80] sm:$0xff] }
  0x15   :  { %329 = vmatpush.bf16.msra.mxu3 %v511_v20  ;;  %v508_v32 = vld [vmem:[%s671_s1 + $0xc0] sm:$0xff]  ;;  %s544_s1 = smov [#allocation2]  }
  0x16   :  { %291 = vmatpush.bf16.msra.mxu0 %v486_v21  ;;  %v86_v33 = vld [vmem:[#allocation1] sm:$0xff]  ;;  %s345_s24 = sshll.u32 %s544_s1, 4  ;;  %s346_s24 = int_to_ptr.vmem [resolvable:$true] %s345_s24 }
  0x17   :  { %304 = vmatpush.bf16.msra.mxu1 %v494_v22  ;;  %v89_v36 = vld [vmem:[#allocation1 + $0x1b] sm:$0xff] }
  0x18   :  { %317 = vmatpush.bf16.msra.mxu2 %v502_v23  ;;  %v517_v37 = vld [vmem:[%s672_s2] ss:$0 sm:$0xff] }
  0x19   :  { %330 = vmatpush.bf16.msra.mxu3 %v510_v24 }
  0x1a   :  { %292 = vmatpush.bf16.msra.mxu0 %v485_v25 }
  0x1b   :  { %305 = vmatpush.bf16.msra.mxu1 %v493_v26 }
  0x1c   :  { %318 = vmatpush.bf16.msra.mxu2 %v501_v27 }
  0x1d   :  { %331 = vmatpush.bf16.msra.mxu3 %v509_v28 }
  0x1e   :  { %293 = vmatpush.bf16.msra.mxu0 %v484_v29 }
  0x1f   :  { %306 = vmatpush.bf16.msra.mxu1 %v492_v30 }
  0x20   :  { %319 = vmatpush.bf16.msra.mxu2 %v500_v31 }
  0x21   :  { %332 = vmatpush.bf16.msra.mxu3 %v508_v32  ;;  %294 = vmatmul.bf16.vlgmr.msra.gmra.mxu0 %v86_v33 }
  0x22   :  { %307 = vmatmul.bf16.vlgmr.msra.gmra.mxu1 %v87_v34 }
  0x23   :  { %320 = vmatmul.bf16.vlgmr.msra.gmra.mxu2 %v88_v35 }
  0x24   :  { %333 = vmatmul.bf16.vlgmr.msra.gmra.mxu3 %v89_v36 }
  0x9e   :  { %v295_v38 = vpop.f32.mrf.mxu0 }
  0x9f   :  { %v308_v39 = vpop.f32.mrf.mxu1  ;;  %v296_v40 = vadd.f32 %v517_v37, %v295_v38 }
  0xa1   :  { %v309_v41 = vadd.f32 %v308_v39, %v296_v40 }
  0xa6   :  { %v321_v42 = vpop.f32.mrf.mxu2  ;;  %v297_v45 = vpop.f32.mrf.mxu0 }
  0xa7   :  { %v334_v43 = vpop.f32.mrf.mxu3  ;;  %v322_v44 = vadd.f32 %v321_v42, %v309_v41  ;;  %v310_v46 = vpop.f32.mrf.mxu1 }
  0xa9   :  { %v335_v47 = vadd.f32 %v334_v43, %v322_v44 }
  0xab   :  { %339 = vst.msk [vmem:[#allocation2] sm:$0x3] %vm338_vm0, %v335_v47 }
  0xac   :  { %350 = dma.vmem_to_hbm [thread:$0]  %s346_s24, 32, %s348_s27, [#allocation3]  }
  0xae   :  { %v323_v48 = vpop.f32.mrf.mxu2 }
  0xaf   :  { %v336_v49 = vpop.f32.mrf.mxu3 }
  0xb0   :  { %542 = dma.done.wait [#allocation3], 32  }
  0xb1   :  { %543 = vsyncadd [#allocation3], 4294967264 }
  0xb2   :  { %355 = vsyncpa [#allocation3], 1 }

// kernel: vgg_forward.16
= control target key start
LH: loop header
LB: loop body
LE: loop exit
PB: predicated region body
PF: predicated region fallthrough
CT: control target
= control target key end

     0   :  { %vm2002_vm0 = vcmask 1041408   ;;  %vm2004_vm1 = vcmask 1045508   ;;  %vm2006_vm2 = vcmask 1043456   ;;  %s4931_s1 = inlined_call_operand.vmem [shape: bf16[1024,512], index: 1, kind: input, shape index: {}]   ;;  %s4932_s0 = inlined_call_operand.vmem [shape: bf16[2,1024], index: 0, kind: input, shape index: {}]   ;;  %s4933_s2 = inlined_call_operand.vmem [shape: f32[1,512], index: 2, kind: input, shape index: {}]   ;;  %s4934_s3 = inlined_call_operand.vmem [shape: f32[2,512], index: 3, kind: output, shape index: {}]  }
   0x1   :  { %v2128_v0 = vld [vmem:[%s4931_s1 + $0xe0] sm:$0xf]  ;;  %v3068_v1 = vld [vmem:[%s4931_s1 + $0xec] sm:$0xf0] }
   0x2   :  { %v2256_v2 = vld [vmem:[%s4931_s1 + $0x1e0] sm:$0xf]  ;;  %v2129_v3 = vor.u32 %v3068_v1, %v2128_v0  ;;  %v3100_v4 = vld [vmem:[%s4931_s1 + $0x1ec] sm:$0xf0] }
   0x3   :  { %v2384_v5 = vld [vmem:[%s4931_s1 + $0x2e0] sm:$0xf]  ;;  %v3132_v6 = vld [vmem:[%s4931_s1 + $0x2ec] sm:$0xf0]  ;;  %v2257_v7 = vor.u32 %v3100_v4, %v2256_v2 }
   0x4   :  { %v2385_v8 = vor.u32 %v3132_v6, %v2384_v5  ;;  %v2512_v9 = vld [vmem:[%s4931_s1 + $0x3e0] sm:$0xf]  ;;  %v3164_v10 = vld [vmem:[%s4931_s1 + $0x3ec] sm:$0xf0]  ;;  %1579 = vmatpush.bf16.msra.mxu0 %v2129_v3 }
   0x5   :  { %v2112_v11 = vld [vmem:[%s4931_s1 + $0xc0] sm:$0xf]  ;;  %v2513_v12 = vor.u32 %v3164_v10, %v2512_v9  ;;  %v3064_v13 = vld [vmem:[%s4931_s1 + $0xcc] sm:$0xf0]  ;;  %1592 = vmatpush.bf16.msra.mxu1 %v2257_v7 }
   0x6   :  { %v2240_v14 = vld [vmem:[%s4931_s1 + $0x1c0] sm:$0xf]  ;;  %v3096_v15 = vld [vmem:[%s4931_s1 + $0x1cc] sm:$0xf0]  ;;  %1605 = vmatpush.bf16.msra.mxu2 %v2385_v8  ;;  %v2113_v16 = vor.u32 %v3064_v13, %v2112_v11 }
   0x7   :  { %v2241_v17 = vor.u32 %v3096_v15, %v2240_v14  ;;  %v2368_v18 = vld [vmem:[%s4931_s1 + $0x2c0] sm:$0xf]  ;;  %v3128_v19 = vld [vmem:[%s4931_s1 + $0x2cc] sm:$0xf0]  ;;  %1618 = vmatpush.bf16.msra.mxu3 %v2513_v12 }
   0x8   :  { %v2496_v20 = vld [vmem:[%s4931_s1 + $0x3c0] sm:$0xf]  ;;  %v2369_v21 = vor.u32 %v3128_v19, %v2368_v18  ;;  %v3160_v22 = vld [vmem:[%s4931_s1 + $0x3cc] sm:$0xf0]  ;;  %1580 = vmatpush.bf16.msra.mxu0 %v2113_v16 }
   0x9   :  { %v2096_v23 = vld [vmem:[%s4931_s1 + $0xa0] sm:$0xf]  ;;  %v3060_v24 = vld [vmem:[%s4931_s1 + $0xac] sm:$0xf0]  ;;  %v2497_v25 = vor.u32 %v3160_v22, %v2496_v20  ;;  %1593 = vmatpush.bf16.msra.mxu1 %v2241_v17 }
   0xa   :  { %v2224_v26 = vld [vmem:[%s4931_s1 + $0x1a0] sm:$0xf]  ;;  %v3092_v27 = vld [vmem:[%s4931_s1 + $0x1ac] sm:$0xf0]  ;;  %v2097_v29 = vor.u32 %v3060_v24, %v2096_v23  ;;  %1606 = vmatpush.bf16.msra.mxu2 %v2369_v21 }
   0xb   :  { %v2352_v28 = vld [vmem:[%s4931_s1 + $0x2a0] sm:$0xf]  ;;  %v3124_v30 = vld [vmem:[%s4931_s1 + $0x2ac] sm:$0xf0]  ;;  %v2225_v33 = vor.u32 %v3092_v27, %v2224_v26  ;;  %1619 = vmatpush.bf16.msra.mxu3 %v2497_v25 }
   0xc   :  { %v2480_v31 = vld [vmem:[%s4931_s1 + $0x3a0] sm:$0xf]  ;;  %v3156_v32 = vld [vmem:[%s4931_s1 + $0x3ac] sm:$0xf0]  ;;  %v2353_v34 = vor.u32 %v3124_v30, %v2352_v28  ;;  %1581 = vmatpush.bf16.msra.mxu0 %v2097_v29 }
   0xd   :  { %v2080_v35 = vld [vmem:[%s4931_s1 + $0x80] sm:$0xf]  ;;  %v3056_v36 = vld [vmem:[%s4931_s1 + $0x8c] sm:$0xf0]  ;;  %v2481_v38 = vor.u32 %v3156_v32, %v2480_v31  ;;  %1594 = vmatpush.bf16.msra.mxu1 %v2225_v33 }
   0xe   :  { %v2208_v37 = vld [vmem:[%s4931_s1 + $0x180] sm:$0xf]  ;;  %v3088_v39 = vld [vmem:[%s4931_s1 + $0x18c] sm:$0xf0]  ;;  %v2081_v44 = vor.u32 %v3056_v36, %v2080_v35  ;;  %1607 = vmatpush.bf16.msra.mxu2 %v2353_v34 }
   0xf   :  { %v2336_v40 = vld [vmem:[%s4931_s1 + $0x280] sm:$0xf]  ;;  %v3120_v41 = vld [vmem:[%s4931_s1 + $0x28c] sm:$0xf0]  ;;  %v2209_v45 = vor.u32 %v3088_v39, %v2208_v37  ;;  %1620 = vmatpush.bf16.msra.mxu3 %v2481_v38 }
  0x10   :  { %v2464_v42 = vld [vmem:[%s4931_s1 + $0x380] sm:$0xf]  ;;  %v3152_v43 = vld [vmem:[%s4931_s1 + $0x38c] sm:$0xf0]  ;;  %v2337_v46 = vor.u32 %v3120_v41, %v2336_v40  ;;  %1582 = vmatpush.bf16.msra.mxu0 %v2081_v44 }
  0x11   :  { %v2064_v47 = vld [vmem:[%s4931_s1 + $0x60] sm:$0xf]  ;;  %v3052_v48 = vld [vmem:[%s4931_s1 + $0x6c] sm:$0xf0]  ;;  %v2465_v50 = vor.u32 %v3152_v43, %v2464_v42  ;;  %1595 = vmatpush.bf16.msra.mxu1 %v2209_v45 }
  0x12   :  { %v2192_v49 = vld [vmem:[%s4931_s1 + $0x160] sm:$0xf]  ;;  %v3084_v51 = vld [vmem:[%s4931_s1 + $0x16c] sm:$0xf0]  ;;  %v2065_v56 = vor.u32 %v3052_v48, %v2064_v47  ;;  %1608 = vmatpush.bf16.msra.mxu2 %v2337_v46 }
  0x13   :  { %v2320_v52 = vld [vmem:[%s4931_s1 + $0x260] sm:$0xf]  ;;  %v3116_v53 = vld [vmem:[%s4931_s1 + $0x26c] sm:$0xf0]  ;;  %v2193_v57 = vor.u32 %v3084_v51, %v2192_v49  ;;  %1621 = vmatpush.bf16.msra.mxu3 %v2465_v50 }
  0x14   :  { %v2448_v54 = vld [vmem:[%s4931_s1 + $0x360] sm:$0xf]  ;;  %v3148_v55 = vld [vmem:[%s4931_s1 + $0x36c] sm:$0xf0]  ;;  %v2321_v58 = vor.u32 %v3116_v53, %v2320_v52  ;;  %1583 = vmatpush.bf16.msra.mxu0 %v2065_v56 }
  0x15   :  { %v2048_v59 = vld [vmem:[%s4931_s1 + $0x40] sm:$0xf]  ;;  %v3048_v60 = vld [vmem:[%s4931_s1 + $0x4c] sm:$0xf0]  ;;  %v2449_v62 = vor.u32 %v3148_v55, %v2448_v54  ;;  %1596 = vmatpush.bf16.msra.mxu1 %v2193_v57 }
  0x16   :  { %v2176_v61 = vld [vmem:[%s4931_s1 + $0x140] sm:$0xf]  ;;  %v3080_v63 = vld [vmem:[%s4931_s1 + $0x14c] sm:$0xf0]  ;;  %v2049_v4 = vor.u32 %v3048_v60, %v2048_v59  ;;  %1609 = vmatpush.bf16.msra.mxu2 %v2321_v58 }
  0x17   :  { %v2304_v0 = vld [vmem:[%s4931_s1 + $0x240] sm:$0xf]  ;;  %v3112_v1 = vld [vmem:[%s4931_s1 + $0x24c] sm:$0xf0]  ;;  %v2177_v5 = vor.u32 %v3080_v63, %v2176_v61  ;;  %1622 = vmatpush.bf16.msra.mxu3 %v2449_v62 }
  0x18   :  { %v2432_v2 = vld [vmem:[%s4931_s1 + $0x340] sm:$0xf]  ;;  %v3144_v3 = vld [vmem:[%s4931_s1 + $0x34c] sm:$0xf0]  ;;  %v2305_v6 = vor.u32 %v3112_v1, %v2304_v0  ;;  %1584 = vmatpush.bf16.msra.mxu0 %v2049_v4 }
  0x19   :  { %v2032_v7 = vld [vmem:[%s4931_s1 + $0x20] sm:$0xf]  ;;  %v3044_v8 = vld [vmem:[%s4931_s1 + $0x2c] sm:$0xf0]  ;;  %v2433_v10 = vor.u32 %v3144_v3, %v2432_v2  ;;  %1597 = vmatpush.bf16.msra.mxu1 %v2177_v5 }
  0x1a   :  { %v2160_v9 = vld [vmem:[%s4931_s1 + $0x120] sm:$0xf]  ;;  %v3076_v11 = vld [vmem:[%s4931_s1 + $0x12c] sm:$0xf0]  ;;  %v2033_v16 = vor.u32 %v3044_v8, %v2032_v7  ;;  %1610 = vmatpush.bf16.msra.mxu2 %v2305_v6 }
  0x1b   :  { %v2288_v12 = vld [vmem:[%s4931_s1 + $0x220] sm:$0xf]  ;;  %v3108_v13 = vld [vmem:[%s4931_s1 + $0x22c] sm:$0xf0]  ;;  %v2161_v19 = vor.u32 %v3076_v11, %v2160_v9  ;;  %1623 = vmatpush.bf16.msra.mxu3 %v2433_v10 }
  0x1c   :  { %v2416_v14 = vld [vmem:[%s4931_s1 + $0x320] sm:$0xf]  ;;  %v3140_v15 = vld [vmem:[%s4931_s1 + $0x32c] sm:$0xf0]  ;;  %v2289_v20 = vor.u32 %v3108_v13, %v2288_v12  ;;  %1585 = vmatpush.bf16.msra.mxu0 %v2033_v16 }
  0x1d   :  { %v2016_v17 = vld [vmem:[%s4931_s1] sm:$0xf]  ;;  %v3040_v18 = vld [vmem:[%s4931_s1 + $0xc] sm:$0xf0]  ;;  %v2417_v24 = vor.u32 %v3140_v15, %v2416_v14  ;;  %1598 = vmatpush.bf16.msra.mxu1 %v2161_v19 }
  0x1e   :  { %v2144_v21 = vld [vmem:[%s4931_s1 + $0x100] sm:$0xf]  ;;  %v3072_v22 = vld [vmem:[%s4931_s1 + $0x10c] sm:$0xf0]  ;;  %v2017_v31 = vor.u32 %v3040_v18, %v2016_v17  ;;  %1611 = vmatpush.bf16.msra.mxu2 %v2289_v20 }
  0x1f   :  { %v2272_v23 = vld [vmem:[%s4931_s1 + $0x200] sm:$0xf]  ;;  %v3104_v25 = vld [vmem:[%s4931_s1 + $0x20c] sm:$0xf0]  ;;  %v2145_v35 = vor.u32 %v3072_v22, %v2144_v21  ;;  %1624 = vmatpush.bf16.msra.mxu3 %v2417_v24 }
  0x20   :  { %v2400_v26 = vld [vmem:[%s4931_s1 + $0x300] sm:$0xf]  ;;  %v3136_v27 = vld [vmem:[%s4931_s1 + $0x30c] sm:$0xf0]  ;;  %v2273_v36 = vor.u32 %v3104_v25, %v2272_v23  ;;  %1586 = vmatpush.bf16.msra.mxu0 %v2017_v31 }
  0x21   :  { %v2640_v28 = vld [vmem:[%s4931_s1 + $0x4e0] sm:$0xf]  ;;  %v3196_v29 = vld [vmem:[%s4931_s1 + $0x4ec] sm:$0xf0]  ;;  %v2401_v39 = vor.u32 %v3136_v27, %v2400_v26  ;;  %1599 = vmatpush.bf16.msra.mxu1 %v2145_v35 }
  0x22   :  { %v2768_v30 = vld [vmem:[%s4931_s1 + $0x5e0] sm:$0xf]  ;;  %v3228_v32 = vld [vmem:[%s4931_s1 + $0x5ec] sm:$0xf0]  ;;  %v2641_v40 = vor.u32 %v3196_v29, %v2640_v28  ;;  %1612 = vmatpush.bf16.msra.mxu2 %v2273_v36 }
  0x23   :  { %v2896_v33 = vld [vmem:[%s4931_s1 + $0x6e0] sm:$0xf]  ;;  %v3260_v34 = vld [vmem:[%s4931_s1 + $0x6ec] sm:$0xf0]  ;;  %v2769_v41 = vor.u32 %v3228_v32, %v2768_v30  ;;  %1625 = vmatpush.bf16.msra.mxu3 %v2401_v39 }
  0x24   :  { %v3024_v37 = vld [vmem:[%s4931_s1 + $0x7e0] sm:$0xf]  ;;  %v3292_v38 = vld [vmem:[%s4931_s1 + $0x7ec] sm:$0xf0]  ;;  %v2897_v42 = vor.u32 %v3260_v34, %v2896_v33  ;;  %1631 = vmatpush.bf16.msrb.mxu0 %v2641_v40 }
  0x25   :  { %v2624_v43 = vld [vmem:[%s4931_s1 + $0x4c0] sm:$0xf]  ;;  %v3192_v44 = vld [vmem:[%s4931_s1 + $0x4cc] sm:$0xf0]  ;;  %v3025_v46 = vor.u32 %v3292_v38, %v3024_v37  ;;  %1644 = vmatpush.bf16.msrb.mxu1 %v2769_v41 }
  0x26   :  { %v2752_v45 = vld [vmem:[%s4931_s1 + $0x5c0] sm:$0xf]  ;;  %v3224_v47 = vld [vmem:[%s4931_s1 + $0x5cc] sm:$0xf0]  ;;  %v2625_v52 = vor.u32 %v3192_v44, %v2624_v43  ;;  %1657 = vmatpush.bf16.msrb.mxu2 %v2897_v42 }
  0x27   :  { %v2880_v48 = vld [vmem:[%s4931_s1 + $0x6c0] sm:$0xf]  ;;  %v3256_v49 = vld [vmem:[%s4931_s1 + $0x6cc] sm:$0xf0]  ;;  %v2753_v55 = vor.u32 %v3224_v47, %v2752_v45  ;;  %1670 = vmatpush.bf16.msrb.mxu3 %v3025_v46 }
  0x28   :  { %v3008_v50 = vld [vmem:[%s4931_s1 + $0x7c0] sm:$0xf]  ;;  %v3288_v51 = vld [vmem:[%s4931_s1 + $0x7cc] sm:$0xf0]  ;;  %v2881_v56 = vor.u32 %v3256_v49, %v2880_v48  ;;  %1632 = vmatpush.bf16.msrb.mxu0 %v2625_v52 }
  0x29   :  { %v2608_v53 = vld [vmem:[%s4931_s1 + $0x4a0] sm:$0xf]  ;;  %v3188_v54 = vld [vmem:[%s4931_s1 + $0x4ac] sm:$0xf0]  ;;  %v3009_v60 = vor.u32 %v3288_v51, %v3008_v50  ;;  %1645 = vmatpush.bf16.msrb.mxu1 %v2753_v55 }
  0x2a   :  { %v2736_v57 = vld [vmem:[%s4931_s1 + $0x5a0] sm:$0xf]  ;;  %v3220_v58 = vld [vmem:[%s4931_s1 + $0x5ac] sm:$0xf0]  ;;  %v2609_v1 = vor.u32 %v3188_v54, %v2608_v53  ;;  %1658 = vmatpush.bf16.msrb.mxu2 %v2881_v56 }
  0x2b   :  { %v14_v59 = vld [vmem:[%s4932_s0] sm:$0xff]  ;;  %v3252_v62 = vld [vmem:[%s4931_s1 + $0x6ac] sm:$0xf0]  ;;  %v2737_v2 = vor.u32 %v3220_v58, %v2736_v57  ;;  %1671 = vmatpush.bf16.msrb.mxu3 %v3009_v60 }
  0x2c   :  { %v2864_v61 = vld [vmem:[%s4931_s1 + $0x6a0] sm:$0xf]  ;;  %282 = vst [vmem:[#allocation1] ss:$9 sm:$0xff] %v14_v59  ;;  %v3284_v0 = vld [vmem:[%s4931_s1 + $0x7ac] sm:$0xf0]  ;;  %1633 = vmatpush.bf16.msrb.mxu0 %v2609_v1 }
  0x2d   :  { %v2992_v63 = vld [vmem:[%s4931_s1 + $0x7a0] sm:$0xf]  ;;  %v2865_v3 = vor.u32 %v3252_v62, %v2864_v61  ;;  %v3184_v5 = vld [vmem:[%s4931_s1 + $0x48c] sm:$0xf0]  ;;  %1646 = vmatpush.bf16.msrb.mxu1 %v2737_v2  ;;  %v3066_v1 = vld [vmem:[%s4931_s1 + $0xe4] sm:$0xf] }
  0x2e   :  { %v2592_v4 = vld [vmem:[%s4931_s1 + $0x480] sm:$0xf]  ;;  %v2993_v7 = vor.u32 %v3284_v0, %v2992_v63  ;;  %v3216_v8 = vld [vmem:[%s4931_s1 + $0x58c] sm:$0xf0]  ;;  %v2130_v2 = vld [vmem:[%s4931_s1 + $0xf0] sm:$0xf0] }
  0x2f   :  { %v2720_v6 = vld [vmem:[%s4931_s1 + $0x580] sm:$0xf]  ;;  %v3248_v10 = vld [vmem:[%s4931_s1 + $0x68c] sm:$0xf0]  ;;  %v2593_v14 = vor.u32 %v3184_v5, %v2592_v4  ;;  %1659 = vmatpush.bf16.msrb.mxu2 %v2865_v3  ;;  %v3098_v3 = vld [vmem:[%s4931_s1 + $0x1e4] sm:$0xf] }
  0x30   :  { %v2848_v9 = vld [vmem:[%s4931_s1 + $0x680] sm:$0xf]  ;;  %v3280_v12 = vld [vmem:[%s4931_s1 + $0x78c] sm:$0xf0]  ;;  %v2721_v18 = vor.u32 %v3216_v8, %v2720_v6  ;;  %1672 = vmatpush.bf16.msrb.mxu3 %v2993_v7  ;;  %v2258_v5 = vld [vmem:[%s4931_s1 + $0x1f0] sm:$0xf0] }
  0x31   :  { %v2976_v11 = vld [vmem:[%s4931_s1 + $0x780] sm:$0xf]  ;;  %v3180_v15 = vld [vmem:[%s4931_s1 + $0x46c] sm:$0xf0]  ;;  %v2849_v19 = vor.u32 %v3248_v10, %v2848_v9  ;;  %1634 = vmatpush.bf16.msrb.mxu0 %v2593_v14  ;;  %v3130_v6 = vld [vmem:[%s4931_s1 + $0x2e4] sm:$0xf]  ;;  %v2261_v14 = vor.u32 %v3098_v3, %v2258_v5 }
  0x32   :  { %v2576_v13 = vld [vmem:[%s4931_s1 + $0x460] sm:$0xf]  ;;  %v3212_v17 = vld [vmem:[%s4931_s1 + $0x56c] sm:$0xf0]  ;;  %v2977_v23 = vor.u32 %v3280_v12, %v2976_v11  ;;  %1647 = vmatpush.bf16.msrb.mxu1 %v2721_v18  ;;  %v2386_v7 = vld [vmem:[%s4931_s1 + $0x2f0] sm:$0xf0] }
  0x33   :  { %v2704_v16 = vld [vmem:[%s4931_s1 + $0x560] sm:$0xf]  ;;  %v3625_v20 = vld [vmem:[#allocation1 + $0x12] sm:$0xff]  ;;  %v3638_v26 = vld [vmem:[#allocation1 + $0x9] sm:$0xff]  ;;  %v2577_v29 = vor.u32 %v3180_v15, %v2576_v13  ;;  %1660 = vmatpush.bf16.msrb.mxu2 %v2849_v19  ;;  %v2133_v13 = vor.u32 %v3066_v1, %v2130_v2  ;;  %v2389_v15 = vor.u32 %v3130_v6, %v2386_v7 }
  0x34   :  { %v3627_v21 = vld [vmem:[#allocation1] sm:$0xff]  ;;  %v3244_v25 = vld [vmem:[%s4931_s1 + $0x66c] sm:$0xf0]  ;;  %1613 = vmatmul.bf16.vlgmr.msra.gmra.mxu2 %v3625_v20  ;;  %1600 = vmatmul.bf16.vlgmr.msra.gmra.mxu1 %v3638_v26  ;;  %v2705_v30 = vor.u32 %v3212_v17, %v2704_v16  ;;  %v2514_v11 = vld [vmem:[%s4931_s1 + $0x3f0] sm:$0xf0] }
  0x35   :  { %v3629_v22 = vld [vmem:[#allocation1 + $0x1b] sm:$0xff]  ;;  %v3276_v28 = vld [vmem:[%s4931_s1 + $0x76c] sm:$0xf0]  ;;  %1587 = vmatmul.bf16.vlgmr.msra.gmra.mxu0 %v3627_v21  ;;  %1673 = vmatpush.bf16.msrb.mxu3 %v2977_v23  ;;  %v3162_v10 = vld [vmem:[%s4931_s1 + $0x3e4] sm:$0xf] }
  0x36   :  { %v2832_v24 = vld [vmem:[%s4931_s1 + $0x660] sm:$0xf]  ;;  %1626 = vmatmul.bf16.vlgmr.msra.gmra.mxu3 %v3629_v22  ;;  %v3176_v33 = vld [vmem:[%s4931_s1 + $0x44c] sm:$0xf0]  ;;  %1635 = vmatpush.bf16.msrb.mxu0 %v2577_v29  ;;  %v3062_v16 = vld [vmem:[%s4931_s1 + $0xc4] sm:$0xf]  ;;  %v2517_v19 = vor.u32 %v3162_v10, %v2514_v11 }
  0x37   :  { %v2960_v27 = vld [vmem:[%s4931_s1 + $0x760] sm:$0xf]  ;;  %v2833_v31 = vor.u32 %v3244_v25, %v2832_v24  ;;  %v3208_v36 = vld [vmem:[%s4931_s1 + $0x54c] sm:$0xf0]  ;;  %1648 = vmatpush.bf16.msrb.mxu1 %v2705_v30  ;;  %v2114_v17 = vld [vmem:[%s4931_s1 + $0xd0] sm:$0xf0] }
  0x38   :  { %v2560_v32 = vld [vmem:[%s4931_s1 + $0x440] sm:$0xf]  ;;  %v2961_v35 = vor.u32 %v3276_v28, %v2960_v27  ;;  %v3240_v38 = vld [vmem:[%s4931_s1 + $0x64c] sm:$0xf0]  ;;  %v3094_v18 = vld [vmem:[%s4931_s1 + $0x1c4] sm:$0xf]  ;;  %v2117_v30 = vor.u32 %v3062_v16, %v2114_v17 }
  0x39   :  { %v2688_v34 = vld [vmem:[%s4931_s1 + $0x540] sm:$0xf]  ;;  %v3272_v40 = vld [vmem:[%s4931_s1 + $0x74c] sm:$0xf0]  ;;  %v2561_v41 = vor.u32 %v3176_v33, %v2560_v32  ;;  %1661 = vmatpush.bf16.msrb.mxu2 %v2833_v31  ;;  %v2242_v23 = vld [vmem:[%s4931_s1 + $0x1d0] sm:$0xf0] }
  0x3a   :  { %v2816_v37 = vld [vmem:[%s4931_s1 + $0x640] sm:$0xf]  ;;  %v2689_v42 = vor.u32 %v3208_v36, %v2688_v34  ;;  %v3172_v45 = vld [vmem:[%s4931_s1 + $0x42c] sm:$0xf0]  ;;  %1674 = vmatpush.bf16.msrb.mxu3 %v2961_v35  ;;  %v3126_v24 = vld [vmem:[%s4931_s1 + $0x2c4] sm:$0xf]  ;;  %v2245_v34 = vor.u32 %v3094_v18, %v2242_v23 }
  0x3b   :  { %v2944_v39 = vld [vmem:[%s4931_s1 + $0x740] sm:$0xf]  ;;  %v2817_v43 = vor.u32 %v3240_v38, %v2816_v37  ;;  %v3204_v48 = vld [vmem:[%s4931_s1 + $0x52c] sm:$0xf0]  ;;  %1636 = vmatpush.bf16.msrb.mxu0 %v2561_v41  ;;  %v2370_v25 = vld [vmem:[%s4931_s1 + $0x2d0] sm:$0xf0] }
  0x3c   :  { %v2544_v44 = vld [vmem:[%s4931_s1 + $0x420] sm:$0xf]  ;;  %v2945_v47 = vor.u32 %v3272_v40, %v2944_v39  ;;  %v3236_v50 = vld [vmem:[%s4931_s1 + $0x62c] sm:$0xf0]  ;;  %1649 = vmatpush.bf16.msrb.mxu1 %v2689_v42  ;;  %v3158_v27 = vld [vmem:[%s4931_s1 + $0x3c4] sm:$0xf]  ;;  %v2373_v35 = vor.u32 %v3126_v24, %v2370_v25 }
  0x3d   :  { %v2672_v46 = vld [vmem:[%s4931_s1 + $0x520] sm:$0xf]  ;;  %v3268_v52 = vld [vmem:[%s4931_s1 + $0x72c] sm:$0xf0]  ;;  %v2545_v53 = vor.u32 %v3172_v45, %v2544_v44  ;;  %1662 = vmatpush.bf16.msrb.mxu2 %v2817_v43  ;;  %v2498_v28 = vld [vmem:[%s4931_s1 + $0x3d0] sm:$0xf0] }
  0x3e   :  { %v2800_v49 = vld [vmem:[%s4931_s1 + $0x620] sm:$0xf]  ;;  %v3168_v55 = vld [vmem:[%s4931_s1 + $0x40c] sm:$0xf0]  ;;  %v2673_v56 = vor.u32 %v3204_v48, %v2672_v46  ;;  %1675 = vmatpush.bf16.msrb.mxu3 %v2945_v47  ;;  %v3769_v29 = vld [vmem:[#allocation1 + $0x36] sm:$0xff]  ;;  %v2501_v39 = vor.u32 %v3158_v27, %v2498_v28 }
  0x3f   :  { %v2928_v51 = vld [vmem:[%s4931_s1 + $0x720] sm:$0xf]  ;;  %v2801_v57 = vor.u32 %v3236_v50, %v2800_v49  ;;  %v3200_v59 = vld [vmem:[%s4931_s1 + $0x50c] sm:$0xf0]  ;;  %1637 = vmatpush.bf16.msrb.mxu0 %v2545_v53  ;;  %v3058_v31 = vld [vmem:[%s4931_s1 + $0xa4] sm:$0xf] }
  0x40   :  { %v2528_v54 = vld [vmem:[%s4931_s1 + $0x400] sm:$0xf]  ;;  %v2929_v61 = vor.u32 %v3268_v52, %v2928_v51  ;;  %v3232_v62 = vld [vmem:[%s4931_s1 + $0x60c] sm:$0xf0]  ;;  %1650 = vmatpush.bf16.msrb.mxu1 %v2673_v56  ;;  %v3774_v32 = vld [vmem:[#allocation1 + $0x24] sm:$0xff] }
  0x41   :  { %v2656_v58 = vld [vmem:[%s4931_s1 + $0x500] sm:$0xf]  ;;  %v3264_v0 = vld [vmem:[%s4931_s1 + $0x70c] sm:$0xf0]  ;;  %v2529_v4 = vor.u32 %v3168_v55, %v2528_v54  ;;  %1663 = vmatpush.bf16.msrb.mxu2 %v2801_v57  ;;  %v2098_v36 = vld [vmem:[%s4931_s1 + $0xb0] sm:$0xf0] }
  0x42   :  { %v2784_v60 = vld [vmem:[%s4931_s1 + $0x600] sm:$0xf]  ;;  %v2657_v8 = vor.u32 %v3200_v59, %v2656_v58  ;;  %1676 = vmatpush.bf16.msrb.mxu3 %v2929_v61  ;;  %v3090_v37 = vld [vmem:[%s4931_s1 + $0x1a4] sm:$0xf]  ;;  %v3784_v38 = vld [vmem:[#allocation1 + $0x2d] sm:$0xff]  ;;  %v2101_v45 = vor.u32 %v3058_v31, %v2098_v36 }
  0x43   :  { %v2912_v63 = vld [vmem:[%s4931_s1 + $0x700] sm:$0xf]  ;;  %v2785_v9 = vor.u32 %v3232_v62, %v2784_v60  ;;  %1638 = vmatpush.bf16.msrb.mxu0 %v2529_v4  ;;  %v2226_v40 = vld [vmem:[%s4931_s1 + $0x1b0] sm:$0xf0]  ;;  %v3122_v41 = vld [vmem:[%s4931_s1 + $0x2a4] sm:$0xf] }
  0x44   :  { %v2913_v12 = vor.u32 %v3264_v0, %v2912_v63  ;;  %1651 = vmatpush.bf16.msrb.mxu1 %v2657_v8  ;;  %v3776_v33 = vld [vmem:[#allocation1 + $0x3f] sm:$0xff]  ;;  %v2354_v42 = vld [vmem:[%s4931_s1 + $0x2b0] sm:$0xf0]  ;;  %v2229_v46 = vor.u32 %v3090_v37, %v2226_v40 }
  0x45   :  { %1664 = vmatpush.bf16.msrb.mxu2 %v2785_v9  ;;  %v3154_v43 = vld [vmem:[%s4931_s1 + $0x3a4] sm:$0xf]  ;;  %v2482_v44 = vld [vmem:[%s4931_s1 + $0x3b0] sm:$0xf0]  ;;  %v2357_v47 = vor.u32 %v3122_v41, %v2354_v42 }
  0x46   :  { %1677 = vmatpush.bf16.msrb.mxu3 %v2913_v12  ;;  %1639 = vmatmul.bf16.vlgmr.msrb.gmra.mxu0 %v3774_v32  ;;  %v3054_v48 = vld [vmem:[%s4931_s1 + $0x84] sm:$0xf]  ;;  %v2082_v49 = vld [vmem:[%s4931_s1 + $0x90] sm:$0xf0]  ;;  %v2485_v51 = vor.u32 %v3154_v43, %v2482_v44 }
  0x47   :  { %1683 = vmatpush.bf16.msra.mxu0 %v2133_v13  ;;  %1652 = vmatmul.bf16.vlgmr.msrb.gmra.mxu1 %v3784_v38  ;;  %v3086_v50 = vld [vmem:[%s4931_s1 + $0x184] sm:$0xf]  ;;  %v2210_v52 = vld [vmem:[%s4931_s1 + $0x190] sm:$0xf0]  ;;  %v2085_v57 = vor.u32 %v3054_v48, %v2082_v49 }
  0x48   :  { %1696 = vmatpush.bf16.msra.mxu1 %v2261_v14  ;;  %1665 = vmatmul.bf16.vlgmr.msrb.gmra.mxu2 %v3769_v29  ;;  %v3118_v53 = vld [vmem:[%s4931_s1 + $0x284] sm:$0xf]  ;;  %v2338_v54 = vld [vmem:[%s4931_s1 + $0x290] sm:$0xf0]  ;;  %v2213_v58 = vor.u32 %v3086_v50, %v2210_v52 }
  0x49   :  { %1709 = vmatpush.bf16.msra.mxu2 %v2389_v15  ;;  %1678 = vmatmul.bf16.vlgmr.msrb.gmra.mxu3 %v3776_v33  ;;  %v3150_v55 = vld [vmem:[%s4931_s1 + $0x384] sm:$0xf]  ;;  %v2466_v56 = vld [vmem:[%s4931_s1 + $0x390] sm:$0xf0]  ;;  %v2341_v59 = vor.u32 %v3118_v53, %v2338_v54 }
  0x4a   :  { %1722 = vmatpush.bf16.msra.mxu3 %v2517_v19  ;;  %v3050_v60 = vld [vmem:[%s4931_s1 + $0x64] sm:$0xf]  ;;  %v2066_v61 = vld [vmem:[%s4931_s1 + $0x70] sm:$0xf0]  ;;  %v2469_v63 = vor.u32 %v3150_v55, %v2466_v56 }
  0x4b   :  { %1684 = vmatpush.bf16.msra.mxu0 %v2117_v30  ;;  %v3082_v62 = vld [vmem:[%s4931_s1 + $0x164] sm:$0xf]  ;;  %v2194_v0 = vld [vmem:[%s4931_s1 + $0x170] sm:$0xf0]  ;;  %v2069_v5 = vor.u32 %v3050_v60, %v2066_v61 }
  0x4c   :  { %1697 = vmatpush.bf16.msra.mxu1 %v2245_v34  ;;  %v3114_v1 = vld [vmem:[%s4931_s1 + $0x264] sm:$0xf]  ;;  %v2322_v2 = vld [vmem:[%s4931_s1 + $0x270] sm:$0xf0]  ;;  %v2197_v6 = vor.u32 %v3082_v62, %v2194_v0 }
  0x4d   :  { %1710 = vmatpush.bf16.msra.mxu2 %v2373_v35  ;;  %v3146_v3 = vld [vmem:[%s4931_s1 + $0x364] sm:$0xf]  ;;  %v2450_v4 = vld [vmem:[%s4931_s1 + $0x370] sm:$0xf0]  ;;  %v2325_v7 = vor.u32 %v3114_v1, %v2322_v2 }
  0x4e   :  { %1723 = vmatpush.bf16.msra.mxu3 %v2501_v39  ;;  %v3046_v8 = vld [vmem:[%s4931_s1 + $0x44] sm:$0xf]  ;;  %v2050_v9 = vld [vmem:[%s4931_s1 + $0x50] sm:$0xf0]  ;;  %v2453_v11 = vor.u32 %v3146_v3, %v2450_v4 }
  0x4f   :  { %1685 = vmatpush.bf16.msra.mxu0 %v2101_v45  ;;  %v3078_v10 = vld [vmem:[%s4931_s1 + $0x144] sm:$0xf]  ;;  %v2178_v12 = vld [vmem:[%s4931_s1 + $0x150] sm:$0xf0]  ;;  %v2053_v17 = vor.u32 %v3046_v8, %v2050_v9 }
  0x50   :  { %1698 = vmatpush.bf16.msra.mxu1 %v2229_v46  ;;  %v3110_v13 = vld [vmem:[%s4931_s1 + $0x244] sm:$0xf]  ;;  %v2306_v14 = vld [vmem:[%s4931_s1 + $0x250] sm:$0xf0]  ;;  %v2181_v18 = vor.u32 %v3078_v10, %v2178_v12 }
  0x51   :  { %1711 = vmatpush.bf16.msra.mxu2 %v2357_v47  ;;  %v3142_v15 = vld [vmem:[%s4931_s1 + $0x344] sm:$0xf]  ;;  %v2434_v16 = vld [vmem:[%s4931_s1 + $0x350] sm:$0xf0]  ;;  %v2309_v19 = vor.u32 %v3110_v13, %v2306_v14 }
  0x52   :  { %1724 = vmatpush.bf16.msra.mxu3 %v2485_v51  ;;  %v3042_v23 = vld [vmem:[%s4931_s1 + $0x24] sm:$0xf]  ;;  %v2034_v24 = vld [vmem:[%s4931_s1 + $0x30] sm:$0xf0]  ;;  %v2437_v27 = vor.u32 %v3142_v15, %v2434_v16 }
  0x53   :  { %1686 = vmatpush.bf16.msra.mxu0 %v2085_v57  ;;  %v3074_v25 = vld [vmem:[%s4931_s1 + $0x124] sm:$0xf]  ;;  %v2162_v28 = vld [vmem:[%s4931_s1 + $0x130] sm:$0xf0]  ;;  %v2037_v36 = vor.u32 %v3042_v23, %v2034_v24 }
  0x54   :  { %1699 = vmatpush.bf16.msra.mxu1 %v2213_v58  ;;  %v3106_v30 = vld [vmem:[%s4931_s1 + $0x224] sm:$0xf]  ;;  %v2290_v31 = vld [vmem:[%s4931_s1 + $0x230] sm:$0xf0]  ;;  %v2165_v40 = vor.u32 %v3074_v25, %v2162_v28 }
  0x55   :  { %1712 = vmatpush.bf16.msra.mxu2 %v2341_v59  ;;  %v3138_v34 = vld [vmem:[%s4931_s1 + $0x324] sm:$0xf]  ;;  %v2418_v35 = vld [vmem:[%s4931_s1 + $0x330] sm:$0xf0]  ;;  %v2293_v41 = vor.u32 %v3106_v30, %v2290_v31 }
  0x56   :  { %1725 = vmatpush.bf16.msra.mxu3 %v2469_v63  ;;  %v3038_v37 = vld [vmem:[%s4931_s1 + $0x4] sm:$0xf]  ;;  %v2018_v39 = vld [vmem:[%s4931_s1 + $0x10] sm:$0xf0]  ;;  %v2421_v45 = vor.u32 %v3138_v34, %v2418_v35 }
  0x57   :  { %1687 = vmatpush.bf16.msra.mxu0 %v2069_v5  ;;  %v3070_v42 = vld [vmem:[%s4931_s1 + $0x104] sm:$0xf]  ;;  %v2146_v43 = vld [vmem:[%s4931_s1 + $0x110] sm:$0xf0]  ;;  %v2021_v52 = vor.u32 %v3038_v37, %v2018_v39 }
  0x58   :  { %1700 = vmatpush.bf16.msra.mxu1 %v2197_v6  ;;  %v3102_v44 = vld [vmem:[%s4931_s1 + $0x204] sm:$0xf]  ;;  %v2274_v46 = vld [vmem:[%s4931_s1 + $0x210] sm:$0xf0]  ;;  %v2149_v56 = vor.u32 %v3070_v42, %v2146_v43 }
  0x59   :  { %1713 = vmatpush.bf16.msra.mxu2 %v2325_v7  ;;  %v3134_v47 = vld [vmem:[%s4931_s1 + $0x304] sm:$0xf]  ;;  %v2402_v48 = vld [vmem:[%s4931_s1 + $0x310] sm:$0xf0]  ;;  %v2277_v57 = vor.u32 %v3102_v44, %v2274_v46 }
  0x5a   :  { %1726 = vmatpush.bf16.msra.mxu3 %v2453_v11  ;;  %v3194_v49 = vld [vmem:[%s4931_s1 + $0x4e4] sm:$0xf]  ;;  %v2642_v50 = vld [vmem:[%s4931_s1 + $0x4f0] sm:$0xf0]  ;;  %v2405_v60 = vor.u32 %v3134_v47, %v2402_v48 }
  0x5b   :  { %1688 = vmatpush.bf16.msra.mxu0 %v2053_v17  ;;  %v3226_v51 = vld [vmem:[%s4931_s1 + $0x5e4] sm:$0xf]  ;;  %v2770_v53 = vld [vmem:[%s4931_s1 + $0x5f0] sm:$0xf0]  ;;  %v2645_v61 = vor.u32 %v3194_v49, %v2642_v50 }
  0x5c   :  { %1701 = vmatpush.bf16.msra.mxu1 %v2181_v18  ;;  %v3258_v54 = vld [vmem:[%s4931_s1 + $0x6e4] sm:$0xf]  ;;  %v2898_v55 = vld [vmem:[%s4931_s1 + $0x6f0] sm:$0xf0]  ;;  %v2773_v62 = vor.u32 %v3226_v51, %v2770_v53 }
  0x5d   :  { %1714 = vmatpush.bf16.msra.mxu2 %v2309_v19  ;;  %v3290_v58 = vld [vmem:[%s4931_s1 + $0x7e4] sm:$0xf]  ;;  %v3026_v59 = vld [vmem:[%s4931_s1 + $0x7f0] sm:$0xf0]  ;;  %v2901_v63 = vor.u32 %v3258_v54, %v2898_v55 }
  0x5e   :  { %1727 = vmatpush.bf16.msra.mxu3 %v2437_v27  ;;  %v3190_v0 = vld [vmem:[%s4931_s1 + $0x4c4] sm:$0xf]  ;;  %v2626_v1 = vld [vmem:[%s4931_s1 + $0x4d0] sm:$0xf0]  ;;  %v3029_v3 = vor.u32 %v3290_v58, %v3026_v59 }
  0x5f   :  { %1689 = vmatpush.bf16.msra.mxu0 %v2037_v36  ;;  %v3222_v2 = vld [vmem:[%s4931_s1 + $0x5c4] sm:$0xf]  ;;  %v2754_v4 = vld [vmem:[%s4931_s1 + $0x5d0] sm:$0xf0]  ;;  %v2629_v9 = vor.u32 %v3190_v0, %v2626_v1 }
  0x60   :  { %1702 = vmatpush.bf16.msra.mxu1 %v2165_v40  ;;  %v3254_v5 = vld [vmem:[%s4931_s1 + $0x6c4] sm:$0xf]  ;;  %v2882_v6 = vld [vmem:[%s4931_s1 + $0x6d0] sm:$0xf0]  ;;  %v2757_v10 = vor.u32 %v3222_v2, %v2754_v4 }
  0x61   :  { %1715 = vmatpush.bf16.msra.mxu2 %v2293_v41  ;;  %v3286_v7 = vld [vmem:[%s4931_s1 + $0x7c4] sm:$0xf]  ;;  %v3010_v8 = vld [vmem:[%s4931_s1 + $0x7d0] sm:$0xf0]  ;;  %v2885_v11 = vor.u32 %v3254_v5, %v2882_v6 }
  0x62   :  { %1728 = vmatpush.bf16.msra.mxu3 %v2421_v45  ;;  %v3186_v12 = vld [vmem:[%s4931_s1 + $0x4a4] sm:$0xf]  ;;  %v2610_v13 = vld [vmem:[%s4931_s1 + $0x4b0] sm:$0xf0]  ;;  %v3013_v15 = vor.u32 %v3286_v7, %v3010_v8 }
  0x63   :  { %1690 = vmatpush.bf16.msra.mxu0 %v2021_v52  ;;  %v3218_v14 = vld [vmem:[%s4931_s1 + $0x5a4] sm:$0xf]  ;;  %v2738_v16 = vld [vmem:[%s4931_s1 + $0x5b0] sm:$0xf0]  ;;  %v2613_v24 = vor.u32 %v3186_v12, %v2610_v13 }
  0x64   :  { %1703 = vmatpush.bf16.msra.mxu1 %v2149_v56  ;;  %v3250_v17 = vld [vmem:[%s4931_s1 + $0x6a4] sm:$0xf]  ;;  %v2866_v18 = vld [vmem:[%s4931_s1 + $0x6b0] sm:$0xf0]  ;;  %v2741_v25 = vor.u32 %v3218_v14, %v2738_v16 }
  0x65   :  { %1716 = vmatpush.bf16.msra.mxu2 %v2277_v57  ;;  %v3282_v19 = vld [vmem:[%s4931_s1 + $0x7a4] sm:$0xf]  ;;  %v2994_v23 = vld [vmem:[%s4931_s1 + $0x7b0] sm:$0xf0]  ;;  %v2869_v27 = vor.u32 %v3250_v17, %v2866_v18 }
  0x66   :  { %1729 = vmatpush.bf16.msra.mxu3 %v2405_v60  ;;  %1691 = vmatmul.bf16.vlgmr.msra.gmra.mxu0 %v3627_v21  ;;  %v3182_v28 = vld [vmem:[%s4931_s1 + $0x484] sm:$0xf]  ;;  %v2594_v30 = vld [vmem:[%s4931_s1 + $0x490] sm:$0xf0]  ;;  %v2997_v34 = vor.u32 %v3282_v19, %v2994_v23 }
  0x67   :  { %1735 = vmatpush.bf16.msrb.mxu0 %v2645_v61  ;;  %1704 = vmatmul.bf16.vlgmr.msra.gmra.mxu1 %v3638_v26  ;;  %v3214_v31 = vld [vmem:[%s4931_s1 + $0x584] sm:$0xf]  ;;  %v2722_v35 = vld [vmem:[%s4931_s1 + $0x590] sm:$0xf0]  ;;  %v2597_v41 = vor.u32 %v3182_v28, %v2594_v30  ;;  %v2136_v30 = vld [vmem:[%s4931_s1 + $0xe8] sm:$0xf] }
  0x68   :  { %1748 = vmatpush.bf16.msrb.mxu1 %v2773_v62  ;;  %1717 = vmatmul.bf16.vlgmr.msra.gmra.mxu2 %v3625_v20  ;;  %v3246_v36 = vld [vmem:[%s4931_s1 + $0x684] sm:$0xf]  ;;  %v2850_v37 = vld [vmem:[%s4931_s1 + $0x690] sm:$0xf0]  ;;  %v2725_v42 = vor.u32 %v3214_v31, %v2722_v35  ;;  %v3069_v31 = vld [vmem:[%s4931_s1 + $0xf4] sm:$0xf0] }
  0x69   :  { %1761 = vmatpush.bf16.msrb.mxu2 %v2901_v63  ;;  %1730 = vmatmul.bf16.vlgmr.msra.gmra.mxu3 %v3629_v22  ;;  %v3278_v39 = vld [vmem:[%s4931_s1 + $0x784] sm:$0xf]  ;;  %v2978_v40 = vld [vmem:[%s4931_s1 + $0x790] sm:$0xf0]  ;;  %v2853_v43 = vor.u32 %v3246_v36, %v2850_v37  ;;  %v3101_v36 = vld [vmem:[%s4931_s1 + $0x1f4] sm:$0xf0] }
  0x6a   :  { %1774 = vmatpush.bf16.msrb.mxu3 %v3029_v3  ;;  %v3178_v44 = vld [vmem:[%s4931_s1 + $0x464] sm:$0xf]  ;;  %v2578_v45 = vld [vmem:[%s4931_s1 + $0x470] sm:$0xf0]  ;;  %v2981_v47 = vor.u32 %v3278_v39, %v2978_v40  ;;  %v2392_v37 = vld [vmem:[%s4931_s1 + $0x2e8] sm:$0xf] }
  0x6b   :  { %1736 = vmatpush.bf16.msrb.mxu0 %v2629_v9  ;;  %v3210_v46 = vld [vmem:[%s4931_s1 + $0x564] sm:$0xf]  ;;  %v2706_v48 = vld [vmem:[%s4931_s1 + $0x570] sm:$0xf0]  ;;  %v2581_v53 = vor.u32 %v3178_v44, %v2578_v45  ;;  %v3133_v39 = vld [vmem:[%s4931_s1 + $0x2f4] sm:$0xf0]  ;;  %v2137_v45 = vor.u32 %v3069_v31, %v2136_v30 }
  0x6c   :  { %1749 = vmatpush.bf16.msrb.mxu1 %v2757_v10  ;;  %v3242_v49 = vld [vmem:[%s4931_s1 + $0x664] sm:$0xf]  ;;  %v2834_v50 = vld [vmem:[%s4931_s1 + $0x670] sm:$0xf0]  ;;  %v2709_v54 = vor.u32 %v3210_v46, %v2706_v48  ;;  %v2120_v48 = vld [vmem:[%s4931_s1 + $0xc8] sm:$0xf] }
  0x6d   :  { %1762 = vmatpush.bf16.msrb.mxu2 %v2885_v11  ;;  %v3274_v51 = vld [vmem:[%s4931_s1 + $0x764] sm:$0xf]  ;;  %v2962_v52 = vld [vmem:[%s4931_s1 + $0x770] sm:$0xf0]  ;;  %v2837_v55 = vor.u32 %v3242_v49, %v2834_v50  ;;  %v3065_v49 = vld [vmem:[%s4931_s1 + $0xd4] sm:$0xf0] }
  0x6e   :  { %1775 = vmatpush.bf16.msrb.mxu3 %v3013_v15  ;;  %v3174_v56 = vld [vmem:[%s4931_s1 + $0x444] sm:$0xf]  ;;  %v2562_v57 = vld [vmem:[%s4931_s1 + $0x450] sm:$0xf0]  ;;  %v2965_v59 = vor.u32 %v3274_v51, %v2962_v52  ;;  %v2248_v50 = vld [vmem:[%s4931_s1 + $0x1c8] sm:$0xf] }
  0x6f   :  { %1737 = vmatpush.bf16.msrb.mxu0 %v2613_v24  ;;  %v3206_v58 = vld [vmem:[%s4931_s1 + $0x544] sm:$0xf]  ;;  %v2690_v60 = vld [vmem:[%s4931_s1 + $0x550] sm:$0xf0]  ;;  %v2565_v1 = vor.u32 %v3174_v56, %v2562_v57  ;;  %v3097_v52 = vld [vmem:[%s4931_s1 + $0x1d4] sm:$0xf0]  ;;  %v2121_v57 = vor.u32 %v3065_v49, %v2120_v48 }
  0x70   :  { %1750 = vmatpush.bf16.msrb.mxu1 %v2741_v25  ;;  %v3238_v61 = vld [vmem:[%s4931_s1 + $0x644] sm:$0xf]  ;;  %v2818_v62 = vld [vmem:[%s4931_s1 + $0x650] sm:$0xf0]  ;;  %v2693_v2 = vor.u32 %v3206_v58, %v2690_v60  ;;  %v3161_v56 = vld [vmem:[%s4931_s1 + $0x3d4] sm:$0xf0]  ;;  %v2249_v58 = vor.u32 %v3097_v52, %v2248_v50 }
  0x71   :  { %1763 = vmatpush.bf16.msrb.mxu2 %v2869_v27  ;;  %v3270_v63 = vld [vmem:[%s4931_s1 + $0x744] sm:$0xf]  ;;  %v2946_v0 = vld [vmem:[%s4931_s1 + $0x750] sm:$0xf0]  ;;  %v2821_v3 = vor.u32 %v3238_v61, %v2818_v62  ;;  %v2104_v60 = vld [vmem:[%s4931_s1 + $0xa8] sm:$0xf] }
  0x72   :  { %1776 = vmatpush.bf16.msrb.mxu3 %v2997_v34  ;;  %v3170_v4 = vld [vmem:[%s4931_s1 + $0x424] sm:$0xf]  ;;  %v2546_v5 = vld [vmem:[%s4931_s1 + $0x430] sm:$0xf0]  ;;  %v2949_v7 = vor.u32 %v3270_v63, %v2946_v0  ;;  %v2264_v34 = vld [vmem:[%s4931_s1 + $0x1e8] sm:$0xf] }
  0x73   :  { %1738 = vmatpush.bf16.msrb.mxu0 %v2597_v41  ;;  %v3202_v6 = vld [vmem:[%s4931_s1 + $0x524] sm:$0xf]  ;;  %v2674_v8 = vld [vmem:[%s4931_s1 + $0x530] sm:$0xf0]  ;;  %v2549_v13 = vor.u32 %v3170_v4, %v2546_v5  ;;  %v2265_v46 = vor.u32 %v3101_v36, %v2264_v34  ;;  %v3061_v61 = vld [vmem:[%s4931_s1 + $0xb4] sm:$0xf0] }
  0x74   :  { %1751 = vmatpush.bf16.msrb.mxu1 %v2725_v42  ;;  %v3234_v9 = vld [vmem:[%s4931_s1 + $0x624] sm:$0xf]  ;;  %v2802_v10 = vld [vmem:[%s4931_s1 + $0x630] sm:$0xf0]  ;;  %v2677_v16 = vor.u32 %v3202_v6, %v2674_v8  ;;  %v2520_v42 = vld [vmem:[%s4931_s1 + $0x3e8] sm:$0xf]  ;;  %v2105_v4 = vor.u32 %v3061_v61, %v2104_v60 }
  0x75   :  { %1764 = vmatpush.bf16.msrb.mxu2 %v2853_v43  ;;  %v3266_v11 = vld [vmem:[%s4931_s1 + $0x724] sm:$0xf]  ;;  %v2930_v12 = vld [vmem:[%s4931_s1 + $0x730] sm:$0xf0]  ;;  %v2805_v17 = vor.u32 %v3234_v9, %v2802_v10  ;;  %v3165_v43 = vld [vmem:[%s4931_s1 + $0x3f4] sm:$0xf0] }
  0x76   :  { %1777 = vmatpush.bf16.msrb.mxu3 %v2981_v47  ;;  %v3166_v14 = vld [vmem:[%s4931_s1 + $0x404] sm:$0xf]  ;;  %v2530_v15 = vld [vmem:[%s4931_s1 + $0x410] sm:$0xf0]  ;;  %v2933_v24 = vor.u32 %v3266_v11, %v2930_v12  ;;  %v2393_v47 = vor.u32 %v3133_v39, %v2392_v37  ;;  %v2521_v51 = vor.u32 %v3165_v43, %v2520_v42  ;;  %v2232_v62 = vld [vmem:[%s4931_s1 + $0x1a8] sm:$0xf] }
  0x77   :  { %1739 = vmatpush.bf16.msrb.mxu0 %v2581_v53  ;;  %v3198_v18 = vld [vmem:[%s4931_s1 + $0x504] sm:$0xf]  ;;  %v2658_v19 = vld [vmem:[%s4931_s1 + $0x510] sm:$0xf0]  ;;  %v2533_v35 = vor.u32 %v3166_v14, %v2530_v15  ;;  %v2376_v53 = vld [vmem:[%s4931_s1 + $0x2c8] sm:$0xf] }
  0x78   :  { %1752 = vmatpush.bf16.msrb.mxu1 %v2709_v54  ;;  %v3230_v23 = vld [vmem:[%s4931_s1 + $0x604] sm:$0xf]  ;;  %v2786_v25 = vld [vmem:[%s4931_s1 + $0x610] sm:$0xf0]  ;;  %v2661_v40 = vor.u32 %v3198_v18, %v2658_v19  ;;  %v3129_v54 = vld [vmem:[%s4931_s1 + $0x2d4] sm:$0xf0] }
  0x79   :  { %1765 = vmatpush.bf16.msrb.mxu2 %v2837_v55  ;;  %v3262_v27 = vld [vmem:[%s4931_s1 + $0x704] sm:$0xf]  ;;  %v2914_v28 = vld [vmem:[%s4931_s1 + $0x710] sm:$0xf0]  ;;  %v2789_v41 = vor.u32 %v3230_v23, %v2786_v25  ;;  %v2504_v55 = vld [vmem:[%s4931_s1 + $0x3c8] sm:$0xf] }
  0x7a   :  { %1778 = vmatpush.bf16.msrb.mxu3 %v2965_v59  ;;  %v2917_v44 = vor.u32 %v3262_v27, %v2914_v28  ;;  %v2377_v59 = vor.u32 %v3129_v54, %v2376_v53  ;;  %v2505_v63 = vor.u32 %v3161_v56, %v2504_v55  ;;  %v3093_v0 = vld [vmem:[%s4931_s1 + $0x1b4] sm:$0xf0]  ;;  %v2344_v9 = vld [vmem:[%s4931_s1 + $0x288] sm:$0xf] }
  0x7b   :  { %1740 = vmatpush.bf16.msrb.mxu0 %v2565_v1  ;;  %v2360_v1 = vld [vmem:[%s4931_s1 + $0x2a8] sm:$0xf]  ;;  %v2233_v5 = vor.u32 %v3093_v0, %v2232_v62  ;;  %v3121_v10 = vld [vmem:[%s4931_s1 + $0x294] sm:$0xf0] }
  0x7c   :  { %1753 = vmatpush.bf16.msrb.mxu1 %v2693_v2  ;;  %v3125_v2 = vld [vmem:[%s4931_s1 + $0x2b4] sm:$0xf0]  ;;  %v2472_v11 = vld [vmem:[%s4931_s1 + $0x388] sm:$0xf]  ;;  %v2345_v15 = vor.u32 %v3121_v10, %v2344_v9 }
  0x7d   :  { %1766 = vmatpush.bf16.msrb.mxu2 %v2821_v3  ;;  %v3157_v3 = vld [vmem:[%s4931_s1 + $0x3b4] sm:$0xf0]  ;;  %v2361_v6 = vor.u32 %v3125_v2, %v2360_v1  ;;  %v2200_v18 = vld [vmem:[%s4931_s1 + $0x168] sm:$0xf] }
  0x7e   :  { %1779 = vmatpush.bf16.msrb.mxu3 %v2949_v7  ;;  %v2216_v7 = vld [vmem:[%s4931_s1 + $0x188] sm:$0xf]  ;;  %v3153_v12 = vld [vmem:[%s4931_s1 + $0x394] sm:$0xf0] }
  0x7f   :  { %1741 = vmatpush.bf16.msrb.mxu0 %v2549_v13  ;;  %v2473_v19 = vor.u32 %v3153_v12, %v2472_v11  ;;  %v3085_v23 = vld [vmem:[%s4931_s1 + $0x174] sm:$0xf0]  ;;  %v2456_v27 = vld [vmem:[%s4931_s1 + $0x368] sm:$0xf] }
  0x80   :  { %1754 = vmatpush.bf16.msrb.mxu1 %v2677_v16  ;;  %v2072_v16 = vld [vmem:[%s4931_s1 + $0x68] sm:$0xf]  ;;  %v3117_v25 = vld [vmem:[%s4931_s1 + $0x274] sm:$0xf0]  ;;  %v2201_v31 = vor.u32 %v3085_v23, %v2200_v18 }
  0x81   :  { %1767 = vmatpush.bf16.msrb.mxu2 %v2805_v17  ;;  %v3053_v17 = vld [vmem:[%s4931_s1 + $0x74] sm:$0xf0]  ;;  %v2184_v37 = vld [vmem:[%s4931_s1 + $0x148] sm:$0xf] }
  0x82   :  { %1780 = vmatpush.bf16.msrb.mxu3 %v2933_v24  ;;  %v2328_v24 = vld [vmem:[%s4931_s1 + $0x268] sm:$0xf]  ;;  %v3149_v28 = vld [vmem:[%s4931_s1 + $0x374] sm:$0xf0]  ;;  %v2073_v30 = vor.u32 %v3053_v17, %v2072_v16 }
  0x83   :  { %1742 = vmatpush.bf16.msrb.mxu0 %v2533_v35  ;;  %v2329_v34 = vor.u32 %v3117_v25, %v2328_v24  ;;  %v2056_v35 = vld [vmem:[%s4931_s1 + $0x48] sm:$0xf]  ;;  %v3049_v36 = vld [vmem:[%s4931_s1 + $0x54] sm:$0xf0]  ;;  %v2457_v39 = vor.u32 %v3149_v28, %v2456_v27 }
  0x84   :  { %1755 = vmatpush.bf16.msrb.mxu1 %v2661_v40  ;;  %v3081_v40 = vld [vmem:[%s4931_s1 + $0x154] sm:$0xf0]  ;;  %v2440_v43 = vld [vmem:[%s4931_s1 + $0x348] sm:$0xf] }
  0x85   :  { %1768 = vmatpush.bf16.msrb.mxu2 %v2789_v41  ;;  %v2312_v41 = vld [vmem:[%s4931_s1 + $0x248] sm:$0xf]  ;;  %v3113_v42 = vld [vmem:[%s4931_s1 + $0x254] sm:$0xf0] }
  0x86   :  { %1781 = vmatpush.bf16.msrb.mxu3 %v2917_v44  ;;  %1743 = vmatmul.bf16.vlgmr.msrb.gmra.mxu0 %v3774_v32  ;;  %v2088_v32 = vld [vmem:[%s4931_s1 + $0x88] sm:$0xf]  ;;  %v3145_v44 = vld [vmem:[%s4931_s1 + $0x354] sm:$0xf0] }
  0x87   :  { %1787 = vmatpush.bf16.msra.mxu0 %v2137_v45  ;;  %1756 = vmatmul.bf16.vlgmr.msrb.gmra.mxu1 %v3784_v38  ;;  %v3089_v38 = vld [vmem:[%s4931_s1 + $0x194] sm:$0xf0]  ;;  %v2057_v45 = vor.u32 %v3049_v36, %v2056_v35  ;;  %v2040_v48 = vld [vmem:[%s4931_s1 + $0x28] sm:$0xf] }
  0x88   :  { %1800 = vmatpush.bf16.msra.mxu1 %v2265_v46  ;;  %1769 = vmatmul.bf16.vlgmr.msrb.gmra.mxu2 %v3769_v29  ;;  %v2488_v29 = vld [vmem:[%s4931_s1 + $0x3a8] sm:$0xf]  ;;  %v2217_v14 = vor.u32 %v3089_v38, %v2216_v7  ;;  %v2185_v46 = vor.u32 %v3081_v40, %v2184_v37  ;;  %v3045_v49 = vld [vmem:[%s4931_s1 + $0x34] sm:$0xf0] }
  0x89   :  { %1813 = vmatpush.bf16.msra.mxu2 %v2393_v47  ;;  %1782 = vmatmul.bf16.vlgmr.msrb.gmra.mxu3 %v3776_v33  ;;  %v3057_v33 = vld [vmem:[%s4931_s1 + $0x94] sm:$0xf0]  ;;  %v2489_v8 = vor.u32 %v3157_v3, %v2488_v29  ;;  %v2313_v47 = vor.u32 %v3113_v42, %v2312_v41  ;;  %v2168_v50 = vld [vmem:[%s4931_s1 + $0x128] sm:$0xf] }
  0x8a   :  { %1826 = vmatpush.bf16.msra.mxu3 %v2521_v51  ;;  %v2089_v13 = vor.u32 %v3057_v33, %v2088_v32  ;;  %v2441_v51 = vor.u32 %v3145_v44, %v2440_v43  ;;  %v3077_v52 = vld [vmem:[%s4931_s1 + $0x134] sm:$0xf0]  ;;  %v2296_v53 = vld [vmem:[%s4931_s1 + $0x228] sm:$0xf] }
  0x8b   :  { %1788 = vmatpush.bf16.msra.mxu0 %v2121_v57  ;;  %v3109_v54 = vld [vmem:[%s4931_s1 + $0x234] sm:$0xf0]  ;;  %v2424_v55 = vld [vmem:[%s4931_s1 + $0x328] sm:$0xf]  ;;  %v2041_v57 = vor.u32 %v3045_v49, %v2040_v48  ;;  %v2169_v60 = vor.u32 %v3077_v52, %v2168_v50 }
  0x8c   :  { %1801 = vmatpush.bf16.msra.mxu1 %v2249_v58  ;;  %v3141_v56 = vld [vmem:[%s4931_s1 + $0x334] sm:$0xf0]  ;;  %v2024_v58 = vld [vmem:[%s4931_s1 + $0x8] sm:$0xf]  ;;  %v2297_v61 = vor.u32 %v3109_v54, %v2296_v53 }
  0x8d   :  { %1814 = vmatpush.bf16.msra.mxu2 %v2377_v59  ;;  %v3041_v59 = vld [vmem:[%s4931_s1 + $0x14] sm:$0xf0]  ;;  %v2152_v62 = vld [vmem:[%s4931_s1 + $0x108] sm:$0xf]  ;;  %v2425_v1 = vor.u32 %v3141_v56, %v2424_v55 }
  0x8e   :  { %1827 = vmatpush.bf16.msra.mxu3 %v2505_v63  ;;  %v3073_v63 = vld [vmem:[%s4931_s1 + $0x114] sm:$0xf0]  ;;  %v2280_v0 = vld [vmem:[%s4931_s1 + $0x208] sm:$0xf]  ;;  %v2025_v32 = vor.u32 %v3041_v59, %v2024_v58 }
  0x8f   :  { %1789 = vmatpush.bf16.msra.mxu0 %v2105_v4  ;;  %v3105_v2 = vld [vmem:[%s4931_s1 + $0x214] sm:$0xf0]  ;;  %v2408_v29 = vld [vmem:[%s4931_s1 + $0x308] sm:$0xf]  ;;  %v2153_v38 = vor.u32 %v3073_v63, %v2152_v62  ;;  %v4438_v63 = vld [vmem:[%s4933_s2] sm:$0xf] }
  0x90   :  { %1802 = vmatpush.bf16.msra.mxu1 %v2233_v5  ;;  %v3137_v3 = vld [vmem:[%s4931_s1 + $0x314] sm:$0xf0]  ;;  %v2648_v4 = vld [vmem:[%s4931_s1 + $0x4e8] sm:$0xf]  ;;  %v2281_v9 = vor.u32 %v3105_v2, %v2280_v0 }
  0x91   :  { %1815 = vmatpush.bf16.msra.mxu2 %v2361_v6  ;;  %v3197_v5 = vld [vmem:[%s4931_s1 + $0x4f4] sm:$0xf0]  ;;  %v2776_v6 = vld [vmem:[%s4931_s1 + $0x5e8] sm:$0xf]  ;;  %v2409_v12 = vor.u32 %v3137_v3, %v2408_v29 }
  0x92   :  { %1828 = vmatpush.bf16.msra.mxu3 %v2489_v8  ;;  %v3229_v33 = vld [vmem:[%s4931_s1 + $0x5f4] sm:$0xf0]  ;;  %v2904_v7 = vld [vmem:[%s4931_s1 + $0x6e8] sm:$0xf] }
  0x93   :  { %1790 = vmatpush.bf16.msra.mxu0 %v2089_v13  ;;  %v3261_v8 = vld [vmem:[%s4931_s1 + $0x6f4] sm:$0xf0]  ;;  %v3032_v10 = vld [vmem:[%s4931_s1 + $0x7e8] sm:$0xf]  ;;  %v2649_v13 = vor.u32 %v3197_v5, %v2648_v4 }
  0x94   :  { %1803 = vmatpush.bf16.msra.mxu1 %v2217_v14  ;;  %v3293_v11 = vld [vmem:[%s4931_s1 + $0x7f4] sm:$0xf0]  ;;  %v2777_v14 = vor.u32 %v3229_v33, %v2776_v6  ;;  %v2632_v16 = vld [vmem:[%s4931_s1 + $0x4c8] sm:$0xf] }
  0x95   :  { %1816 = vmatpush.bf16.msra.mxu2 %v2345_v15  ;;  %v2905_v15 = vor.u32 %v3261_v8, %v2904_v7  ;;  %v3193_v17 = vld [vmem:[%s4931_s1 + $0x4d4] sm:$0xf0]  ;;  %v2760_v18 = vld [vmem:[%s4931_s1 + $0x5c8] sm:$0xf] }
  0x96   :  { %1829 = vmatpush.bf16.msra.mxu3 %v2473_v19  ;;  %v3033_v19 = vor.u32 %v3293_v11, %v3032_v10  ;;  %v3225_v23 = vld [vmem:[%s4931_s1 + $0x5d4] sm:$0xf0]  ;;  %v2888_v24 = vld [vmem:[%s4931_s1 + $0x6c8] sm:$0xf] }
  0x97   :  { %1791 = vmatpush.bf16.msra.mxu0 %v2073_v30  ;;  %v3257_v25 = vld [vmem:[%s4931_s1 + $0x6d4] sm:$0xf0]  ;;  %v3016_v27 = vld [vmem:[%s4931_s1 + $0x7c8] sm:$0xf]  ;;  %v2633_v30 = vor.u32 %v3193_v17, %v2632_v16 }
  0x98   :  { %1804 = vmatpush.bf16.msra.mxu1 %v2201_v31  ;;  %v3289_v28 = vld [vmem:[%s4931_s1 + $0x7d4] sm:$0xf0]  ;;  %v2761_v31 = vor.u32 %v3225_v23, %v2760_v18  ;;  %v2616_v35 = vld [vmem:[%s4931_s1 + $0x4a8] sm:$0xf] }
  0x99   :  { %1817 = vmatpush.bf16.msra.mxu2 %v2329_v34  ;;  %v2889_v34 = vor.u32 %v3257_v25, %v2888_v24  ;;  %v3189_v36 = vld [vmem:[%s4931_s1 + $0x4b4] sm:$0xf0]  ;;  %v2744_v37 = vld [vmem:[%s4931_s1 + $0x5a8] sm:$0xf] }
  0x9a   :  { %1830 = vmatpush.bf16.msra.mxu3 %v2457_v39  ;;  %v3017_v39 = vor.u32 %v3289_v28, %v3016_v27  ;;  %v3221_v40 = vld [vmem:[%s4931_s1 + $0x5b4] sm:$0xf0]  ;;  %v2872_v41 = vld [vmem:[%s4931_s1 + $0x6a8] sm:$0xf] }
  0x9b   :  { %1792 = vmatpush.bf16.msra.mxu0 %v2057_v45  ;;  %v3253_v42 = vld [vmem:[%s4931_s1 + $0x6b4] sm:$0xf0]  ;;  %v3000_v43 = vld [vmem:[%s4931_s1 + $0x7a8] sm:$0xf]  ;;  %v2617_v45 = vor.u32 %v3189_v36, %v2616_v35 }
  0x9c   :  { %1805 = vmatpush.bf16.msra.mxu1 %v2185_v46  ;;  %v3285_v44 = vld [vmem:[%s4931_s1 + $0x7b4] sm:$0xf0]  ;;  %v2745_v46 = vor.u32 %v3221_v40, %v2744_v37  ;;  %v2856_v49 = vld [vmem:[%s4931_s1 + $0x688] sm:$0xf] }
  0x9d   :  { %1818 = vmatpush.bf16.msra.mxu2 %v2313_v47  ;;  %v2600_v47 = vld [vmem:[%s4931_s1 + $0x488] sm:$0xf]  ;;  %v3185_v48 = vld [vmem:[%s4931_s1 + $0x494] sm:$0xf0] }
  0x9e   :  { %1831 = vmatpush.bf16.msra.mxu3 %v2441_v51  ;;  %v3249_v50 = vld [vmem:[%s4931_s1 + $0x694] sm:$0xf0]  ;;  %v2984_v51 = vld [vmem:[%s4931_s1 + $0x788] sm:$0xf]  ;;  %v2601_v53 = vor.u32 %v3185_v48, %v2600_v47 }
  0x9f   :  { %1793 = vmatpush.bf16.msra.mxu0 %v2041_v57  ;;  %v3281_v52 = vld [vmem:[%s4931_s1 + $0x794] sm:$0xf0]  ;;  %v2584_v54 = vld [vmem:[%s4931_s1 + $0x468] sm:$0xf]  ;;  %v2857_v56 = vor.u32 %v3249_v50, %v2856_v49  ;;  %v2266_v50 = vld [vmem:[%s4931_s1 + $0x1f8] sm:$0xf0] }
  0xa0   :  { %1806 = vmatpush.bf16.msra.mxu1 %v2169_v60  ;;  %v3181_v57 = vld [vmem:[%s4931_s1 + $0x474] sm:$0xf0]  ;;  %v2712_v58 = vld [vmem:[%s4931_s1 + $0x568] sm:$0xf]  ;;  %v2985_v60 = vor.u32 %v3281_v52, %v2984_v51  ;;  %v3131_v51 = vld [vmem:[%s4931_s1 + $0x2ec] sm:$0xf] }
  0xa1   :  { %1819 = vmatpush.bf16.msra.mxu2 %v2297_v61  ;;  %v3213_v59 = vld [vmem:[%s4931_s1 + $0x574] sm:$0xf0]  ;;  %v2840_v61 = vld [vmem:[%s4931_s1 + $0x668] sm:$0xf]  ;;  %v2585_v2 = vor.u32 %v3181_v57, %v2584_v54  ;;  %v2394_v52 = vld [vmem:[%s4931_s1 + $0x2f8] sm:$0xf0] }
  0xa2   :  { %1832 = vmatpush.bf16.msra.mxu3 %v2425_v1  ;;  %v3245_v62 = vld [vmem:[%s4931_s1 + $0x674] sm:$0xf0]  ;;  %v2968_v0 = vld [vmem:[%s4931_s1 + $0x768] sm:$0xf]  ;;  %v2713_v3 = vor.u32 %v3213_v59, %v2712_v58  ;;  %v3163_v57 = vld [vmem:[%s4931_s1 + $0x3ec] sm:$0xf] }
  0xa3   :  { %1794 = vmatpush.bf16.msra.mxu0 %v2025_v32  ;;  %v3277_v1 = vld [vmem:[%s4931_s1 + $0x774] sm:$0xf0]  ;;  %v2568_v29 = vld [vmem:[%s4931_s1 + $0x448] sm:$0xf]  ;;  %v2841_v4 = vor.u32 %v3245_v62, %v2840_v61  ;;  %v273_v32 = vperm.slane %v4438_v63, 0 }
  0xa4   :  { %1807 = vmatpush.bf16.msra.mxu1 %v2153_v38  ;;  %v3177_v5 = vld [vmem:[%s4931_s1 + $0x454] sm:$0xf0]  ;;  %v2696_v6 = vld [vmem:[%s4931_s1 + $0x548] sm:$0xf]  ;;  %v2969_v33 = vor.u32 %v3277_v1, %v2968_v0  ;;  %v2522_v58 = vld [vmem:[%s4931_s1 + $0x3f8] sm:$0xf0]  ;;  %v2397_v0 = vor.u32 %v3131_v51, %v2394_v52 }
  0xa5   :  { %1820 = vmatpush.bf16.msra.mxu2 %v2281_v9  ;;  %v3209_v7 = vld [vmem:[%s4931_s1 + $0x554] sm:$0xf0]  ;;  %v2824_v8 = vld [vmem:[%s4931_s1 + $0x648] sm:$0xf]  ;;  %v2569_v11 = vor.u32 %v3177_v5, %v2568_v29  ;;  %v3063_v1 = vld [vmem:[%s4931_s1 + $0xcc] sm:$0xf] }
  0xa6   :  { %1833 = vmatpush.bf16.msra.mxu3 %v2409_v12  ;;  %1795 = vmatmul.bf16.vlgmr.msra.gmra.mxu0 %v3627_v21  ;;  %v2728_v21 = vld [vmem:[%s4931_s1 + $0x588] sm:$0xf]  ;;  %v3241_v38 = vld [vmem:[%s4931_s1 + $0x654] sm:$0xf0]  ;;  %v3095_v29 = vld [vmem:[%s4931_s1 + $0x1cc] sm:$0xf] }
  0xa7   :  { %1839 = vmatpush.bf16.msrb.mxu0 %v2649_v13  ;;  %1808 = vmatmul.bf16.vlgmr.msra.gmra.mxu1 %v3638_v26  ;;  %v3217_v26 = vld [vmem:[%s4931_s1 + $0x594] sm:$0xf0]  ;;  %v2952_v9 = vld [vmem:[%s4931_s1 + $0x748] sm:$0xf]  ;;  %v2697_v13 = vor.u32 %v3209_v7, %v2696_v6  ;;  %v3127_v5 = vld [vmem:[%s4931_s1 + $0x2cc] sm:$0xf] }
  0xa8   :  { %1852 = vmatpush.bf16.msrb.mxu1 %v2777_v14  ;;  %1821 = vmatmul.bf16.vlgmr.msra.gmra.mxu2 %v3625_v20  ;;  %v2873_v20 = vor.u32 %v3253_v42, %v2872_v41  ;;  %v2729_v55 = vor.u32 %v3217_v26, %v2728_v21  ;;  %v3273_v10 = vld [vmem:[%s4931_s1 + $0x754] sm:$0xf0]  ;;  %v2825_v14 = vor.u32 %v3241_v38, %v2824_v8  ;;  %v2680_v17 = vld [vmem:[%s4931_s1 + $0x528] sm:$0xf]  ;;  %v3067_v21 = vld [vmem:[%s4931_s1 + $0xec] sm:$0xf] }
  0xa9   :  { %1865 = vmatpush.bf16.msrb.mxu2 %v2905_v15  ;;  %1834 = vmatmul.bf16.vlgmr.msra.gmra.mxu3 %v3629_v22  ;;  %v3001_v22 = vor.u32 %v3285_v44, %v3000_v43  ;;  %v2552_v15 = vld [vmem:[%s4931_s1 + $0x428] sm:$0xf]  ;;  %v3173_v16 = vld [vmem:[%s4931_s1 + $0x434] sm:$0xf0]  ;;  %v2953_v23 = vor.u32 %v3273_v10, %v2952_v9  ;;  %v3099_v26 = vld [vmem:[%s4931_s1 + $0x1ec] sm:$0xf] }
  0xaa   :  { %1878 = vmatpush.bf16.msrb.mxu3 %v3033_v19  ;;  %v3205_v24 = vld [vmem:[%s4931_s1 + $0x534] sm:$0xf0]  ;;  %v2808_v25 = vld [vmem:[%s4931_s1 + $0x628] sm:$0xf]  ;;  %v2269_v62 = vor.u32 %v3099_v26, %v2266_v50  ;;  %v2378_v6 = vld [vmem:[%s4931_s1 + $0x2d8] sm:$0xf0] }
  0xab   :  { %1840 = vmatpush.bf16.msrb.mxu0 %v2633_v30  ;;  %v3237_v27 = vld [vmem:[%s4931_s1 + $0x634] sm:$0xf0]  ;;  %v2936_v28 = vld [vmem:[%s4931_s1 + $0x728] sm:$0xf]  ;;  %v2681_v37 = vor.u32 %v3205_v24, %v2680_v17  ;;  %v2381_v10 = vor.u32 %v3127_v5, %v2378_v6  ;;  %v3123_v17 = vld [vmem:[%s4931_s1 + $0x2ac] sm:$0xf] }
  0xac   :  { %1853 = vmatpush.bf16.msrb.mxu1 %v2761_v31  ;;  %v3269_v30 = vld [vmem:[%s4931_s1 + $0x734] sm:$0xf0]  ;;  %v2536_v35 = vld [vmem:[%s4931_s1 + $0x408] sm:$0xf]  ;;  %v2202_v50 = vld [vmem:[%s4931_s1 + $0x178] sm:$0xf0] }
  0xad   :  { %1866 = vmatpush.bf16.msrb.mxu2 %v2889_v34  ;;  %v2553_v34 = vor.u32 %v3173_v16, %v2552_v15  ;;  %v3169_v36 = vld [vmem:[%s4931_s1 + $0x414] sm:$0xf0]  ;;  %v2664_v40 = vld [vmem:[%s4931_s1 + $0x508] sm:$0xf]  ;;  %v2937_v44 = vor.u32 %v3269_v30, %v2936_v28  ;;  %v2234_v16 = vld [vmem:[%s4931_s1 + $0x1b8] sm:$0xf0] }
  0xae   :  { %1879 = vmatpush.bf16.msrb.mxu3 %v3017_v39  ;;  %v2809_v39 = vor.u32 %v3237_v27, %v2808_v25  ;;  %v3201_v41 = vld [vmem:[%s4931_s1 + $0x514] sm:$0xf0]  ;;  %v2792_v42 = vld [vmem:[%s4931_s1 + $0x608] sm:$0xf]  ;;  %v2537_v49 = vor.u32 %v3169_v36, %v2536_v35  ;;  %v4599_v25 = vld [vmem:[#allocation1 + $0x3f] sm:$0xff] }
  0xaf   :  { %1841 = vmatpush.bf16.msrb.mxu0 %v2617_v45  ;;  %v3233_v45 = vld [vmem:[%s4931_s1 + $0x614] sm:$0xf0]  ;;  %v4596_v24 = vld [vmem:[#allocation1 + $0x24] sm:$0xff]  ;;  %v4602_v28 = vld [vmem:[#allocation1 + $0x2d] sm:$0xff] }
  0xb0   :  { %1854 = vmatpush.bf16.msrb.mxu1 %v2745_v46  ;;  %v2920_v46 = vld [vmem:[%s4931_s1 + $0x708] sm:$0xf]  ;;  %v4578_v15 = vld [vmem:[#allocation1 + $0x36] sm:$0xff]  ;;  %v3087_v36 = vld [vmem:[%s4931_s1 + $0x18c] sm:$0xf] }
  0xb1   :  { %1867 = vmatpush.bf16.msrb.mxu2 %v2873_v20  ;;  %v1601_v19 = vpop.f32.mrf.mxu1  ;;  %v3265_v20 = vld [vmem:[%s4931_s1 + $0x714] sm:$0xf0]  ;;  %v2090_v35 = vld [vmem:[%s4931_s1 + $0x98] sm:$0xf0]  ;;  %v3115_v51 = vld [vmem:[%s4931_s1 + $0x26c] sm:$0xf] }
  0xb2   :  { %1880 = vmatpush.bf16.msrb.mxu3 %v3001_v22  ;;  %v1588_v12 = vpop.f32.mrf.mxu0  ;;  %v2138_v22 = vld [vmem:[%s4931_s1 + $0xf8] sm:$0xf0]  ;;  %v3143_v5 = vld [vmem:[%s4931_s1 + $0x34c] sm:$0xf] }
  0xb3   :  { %1842 = vmatpush.bf16.msrb.mxu0 %v2601_v53  ;;  %v1589_v18 = vadd.f32 %v1588_v12, %v273_v32  ;;  %v2141_v61 = vor.u32 %v3067_v21, %v2138_v22  ;;  %v3159_v32 = vld [vmem:[%s4931_s1 + $0x3cc] sm:$0xf]  ;;  %v2106_v12 = vld [vmem:[%s4931_s1 + $0xb8] sm:$0xf0] }
  0xb4   :  { %1855 = vmatpush.bf16.msrb.mxu1 %v2729_v55  ;;  %v2665_v55 = vor.u32 %v3201_v41, %v2664_v40  ;;  %v3119_v40 = vld [vmem:[%s4931_s1 + $0x28c] sm:$0xf]  ;;  %v2346_v41 = vld [vmem:[%s4931_s1 + $0x298] sm:$0xf0] }
  0xb5   :  { %1868 = vmatpush.bf16.msrb.mxu2 %v2857_v56  ;;  %v1602_v31 = vadd.f32 %v1601_v19, %v1589_v18  ;;  %v2793_v56 = vor.u32 %v3233_v45, %v2792_v42  ;;  %v2362_v18 = vld [vmem:[%s4931_s1 + $0x2b8] sm:$0xf0]  ;;  %v3155_v19 = vld [vmem:[%s4931_s1 + $0x3ac] sm:$0xf] }
  0xb6   :  { %1881 = vmatpush.bf16.msrb.mxu3 %v2985_v60  ;;  %v2921_v60 = vor.u32 %v3265_v20, %v2920_v46  ;;  %v3151_v42 = vld [vmem:[%s4931_s1 + $0x38c] sm:$0xf]  ;;  %v2349_v20 = vor.u32 %v3119_v40, %v2346_v41  ;;  %v2330_v52 = vld [vmem:[%s4931_s1 + $0x278] sm:$0xf0] }
  0xb7   :  { %1843 = vmatpush.bf16.msrb.mxu0 %v2585_v2  ;;  %v1614_v43 = vpop.f32.mrf.mxu2  ;;  %v2122_v2 = vld [vmem:[%s4931_s1 + $0xd8] sm:$0xf0]  ;;  %v3083_v21 = vld [vmem:[%s4931_s1 + $0x16c] sm:$0xf] }
  0xb8   :  { %1856 = vmatpush.bf16.msrb.mxu1 %v2713_v3  ;;  %v1615_v47 = vadd.f32 %v1614_v43, %v1602_v31  ;;  %v2525_v3 = vor.u32 %v3163_v57, %v2522_v58  ;;  %v2125_v8 = vor.u32 %v3063_v1, %v2122_v2  ;;  %v2365_v31 = vor.u32 %v3123_v17, %v2362_v18  ;;  %v2474_v43 = vld [vmem:[%s4931_s1 + $0x398] sm:$0xf0]  ;;  %v3111_v2 = vld [vmem:[%s4931_s1 + $0x24c] sm:$0xf] }
  0xb9   :  { %1869 = vmatpush.bf16.msrb.mxu2 %v2841_v4  ;;  %v1627_v48 = vpop.f32.mrf.mxu3  ;;  %v1603_v59 = vpop.f32.mrf.mxu1  ;;  %v2250_v4 = vld [vmem:[%s4931_s1 + $0x1d8] sm:$0xf0]  ;;  %v2205_v57 = vor.u32 %v3083_v21, %v2202_v50  ;;  %v2333_v58 = vor.u32 %v3115_v51, %v2330_v52  ;;  %v3139_v18 = vld [vmem:[%s4931_s1 + $0x32c] sm:$0xf] }
  0xba   :  { %1882 = vmatpush.bf16.msrb.mxu3 %v2969_v33  ;;  %v4537_v53 = vadd.f32 %v1627_v48, %v1615_v47  ;;  %v1590_v54 = vpop.f32.mrf.mxu0  ;;  %v2506_v33 = vld [vmem:[%s4931_s1 + $0x3d8] sm:$0xf0]  ;;  %v2253_v9 = vor.u32 %v3095_v29, %v2250_v4  ;;  %v3051_v47 = vld [vmem:[%s4931_s1 + $0x6c] sm:$0xf] }
  0xbb   :  { %1844 = vmatpush.bf16.msrb.mxu0 %v2569_v11  ;;  %v3059_v11 = vld [vmem:[%s4931_s1 + $0xac] sm:$0xf]  ;;  %v2074_v48 = vld [vmem:[%s4931_s1 + $0x78] sm:$0xf0] }
  0xbc   :  { %1857 = vmatpush.bf16.msrb.mxu1 %v2697_v13  ;;  %v3091_v13 = vld [vmem:[%s4931_s1 + $0x1ac] sm:$0xf]  ;;  %v2109_v27 = vor.u32 %v3059_v11, %v2106_v12  ;;  %v2186_v1 = vld [vmem:[%s4931_s1 + $0x158] sm:$0xf0] }
  0xbd   :  { %1870 = vmatpush.bf16.msrb.mxu2 %v2825_v14  ;;  %v2509_v14 = vor.u32 %v3159_v32, %v2506_v33  ;;  %v2237_v30 = vor.u32 %v3091_v13, %v2234_v16  ;;  %v3147_v54 = vld [vmem:[%s4931_s1 + $0x36c] sm:$0xf]  ;;  %v2314_v29 = vld [vmem:[%s4931_s1 + $0x258] sm:$0xf0] }
  0xbe   :  { %1883 = vmatpush.bf16.msrb.mxu3 %v2953_v23  ;;  %v2490_v23 = vld [vmem:[%s4931_s1 + $0x3b8] sm:$0xf0]  ;;  %v3047_v59 = vld [vmem:[%s4931_s1 + $0x4c] sm:$0xf] }
  0xbf   :  { %1845 = vmatpush.bf16.msrb.mxu0 %v2553_v34  ;;  %v1616_v7 = vpop.f32.mrf.mxu2  ;;  %v3055_v34 = vld [vmem:[%s4931_s1 + $0x8c] sm:$0xf]  ;;  %v2442_v6 = vld [vmem:[%s4931_s1 + $0x358] sm:$0xf0] }
  0xc0   :  { %1858 = vmatpush.bf16.msrb.mxu1 %v2681_v37  ;;  %v2493_v37 = vor.u32 %v3155_v19, %v2490_v23  ;;  %v3075_v11 = vld [vmem:[%s4931_s1 + $0x12c] sm:$0xf]  ;;  %v2445_v13 = vor.u32 %v3143_v5, %v2442_v6  ;;  %v2298_v17 = vld [vmem:[%s4931_s1 + $0x238] sm:$0xf0] }
  0xc1   :  { %1871 = vmatpush.bf16.msrb.mxu2 %v2809_v39  ;;  %v1629_v38 = vpop.f32.mrf.mxu3  ;;  %v2218_v39 = vld [vmem:[%s4931_s1 + $0x198] sm:$0xf0]  ;;  %v3107_v16 = vld [vmem:[%s4931_s1 + $0x22c] sm:$0xf] }
  0xc2   :  { %1884 = vmatpush.bf16.msrb.mxu3 %v2937_v44  ;;  %v2093_v44 = vor.u32 %v3055_v34, %v2090_v35  ;;  %v2221_v46 = vor.u32 %v3087_v36, %v2218_v39  ;;  %v2317_v38 = vor.u32 %v3111_v2, %v2314_v29  ;;  %v2426_v19 = vld [vmem:[%s4931_s1 + $0x338] sm:$0xf0]  ;;  %v2301_v34 = vor.u32 %v3107_v16, %v2298_v17  ;;  %v3071_v35 = vld [vmem:[%s4931_s1 + $0x10c] sm:$0xf] }
  0xc3   :  { %1846 = vmatpush.bf16.msrb.mxu0 %v2537_v49  ;;  %v1640_v45 = vpop.f32.mrf.mxu0  ;;  %v2477_v49 = vor.u32 %v3151_v42, %v2474_v43  ;;  %v2154_v36 = vld [vmem:[%s4931_s1 + $0x118] sm:$0xf0]  ;;  %v2429_v40 = vor.u32 %v3139_v18, %v2426_v19  ;;  %v3135_v42 = vld [vmem:[%s4931_s1 + $0x30c] sm:$0xf] }
  0xc4   :  { %1859 = vmatpush.bf16.msrb.mxu1 %v2665_v55  ;;  %v1641_v22 = vadd.f32 %v1640_v45, %v4537_v53  ;;  %v1653_v26 = vpop.f32.mrf.mxu1  ;;  %v2458_v53 = vld [vmem:[%s4931_s1 + $0x378] sm:$0xf0]  ;;  %v3195_v45 = vld [vmem:[%s4931_s1 + $0x4ec] sm:$0xf] }
  0xc5   :  { %1872 = vmatpush.bf16.msrb.mxu2 %v2793_v56  ;;  %v2077_v56 = vor.u32 %v3051_v47, %v2074_v48  ;;  %v2282_v41 = vld [vmem:[%s4931_s1 + $0x218] sm:$0xf0]  ;;  %v3259_v21 = vld [vmem:[%s4931_s1 + $0x6ec] sm:$0xf] }
  0xc6   :  { %1885 = vmatpush.bf16.msrb.mxu3 %v2921_v60  ;;  %1847 = vmatmul.bf16.vlgmr.msrb.gmra.mxu0 %v4596_v24  ;;  %v1654_v55 = vadd.f32 %v1653_v26, %v1641_v22  ;;  %v2058_v60 = vld [vmem:[%s4931_s1 + $0x58] sm:$0xf0]  ;;  %v2157_v26 = vor.u32 %v3071_v35, %v2154_v36  ;;  %v3291_v50 = vld [vmem:[%s4931_s1 + $0x7ec] sm:$0xf] }
  0xc7   :  { %1891 = vmatpush.bf16.msra.mxu0 %v2141_v61  ;;  %1860 = vmatmul.bf16.vlgmr.msrb.gmra.mxu1 %v4602_v28  ;;  %v3079_v61 = vld [vmem:[%s4931_s1 + $0x14c] sm:$0xf]  ;;  %v2061_v32 = vor.u32 %v3047_v59, %v2058_v60  ;;  %v2410_v43 = vld [vmem:[%s4931_s1 + $0x318] sm:$0xf0] }
  0xc8   :  { %1904 = vmatpush.bf16.msra.mxu1 %v2269_v62  ;;  %1873 = vmatmul.bf16.vlgmr.msrb.gmra.mxu2 %v4578_v15  ;;  %v2778_v48 = vld [vmem:[%s4931_s1 + $0x5f8] sm:$0xf0]  ;;  %v2413_v52 = vor.u32 %v3135_v42, %v2410_v43  ;;  %v3219_v6 = vld [vmem:[%s4931_s1 + $0x5ac] sm:$0xf] }
  0xc9   :  { %1917 = vmatpush.bf16.msra.mxu2 %v2397_v0  ;;  %1886 = vmatmul.bf16.vlgmr.msrb.gmra.mxu3 %v4599_v25  ;;  %v2461_v0 = vor.u32 %v3147_v54, %v2458_v53  ;;  %v2906_v22 = vld [vmem:[%s4931_s1 + $0x6f8] sm:$0xf0]  ;;  %v3301_v16 = vld [vmem:[#allocation1 + $0x9] sm:$0xff] }
  0xca   :  { %1930 = vmatpush.bf16.msra.mxu3 %v2525_v3  ;;  %v3034_v51 = vld [vmem:[%s4931_s1 + $0x7f8] sm:$0xf0]  ;;  %v3183_v17 = vld [vmem:[%s4931_s1 + $0x48c] sm:$0xf] }
  0xcb   :  { %1892 = vmatpush.bf16.msra.mxu0 %v2125_v8  ;;  %v1666_v62 = vpop.f32.mrf.mxu2  ;;  %v1642_v7 = vpop.f32.mrf.mxu0  ;;  %v2189_v8 = vor.u32 %v3079_v61, %v2186_v1  ;;  %v3037_v59 = vor.u32 %v3291_v50, %v3034_v51  ;;  %v2762_v60 = vld [vmem:[%s4931_s1 + $0x5d8] sm:$0xf0]  ;;  %v3255_v61 = vld [vmem:[%s4931_s1 + $0x6cc] sm:$0xf] }
  0xcc   :  { %1905 = vmatpush.bf16.msra.mxu1 %v2253_v9  ;;  %v1667_v3 = vadd.f32 %v1666_v62, %v1654_v55  ;;  %v1679_v4 = vpop.f32.mrf.mxu3  ;;  %v3043_v9 = vld [vmem:[%s4931_s1 + $0x2c] sm:$0xf]  ;;  %v1655_v12 = vpop.f32.mrf.mxu1  ;;  %v2909_v55 = vor.u32 %v3259_v21, %v2906_v22  ;;  %v2890_v62 = vld [vmem:[%s4931_s1 + $0x6d8] sm:$0xf0]  ;;  %v3298_v7 = vld [vmem:[#allocation1 + $0x12] sm:$0xff] }
  0xcd   :  { %1918 = vmatpush.bf16.msra.mxu2 %v2381_v10  ;;  %v2042_v10 = vld [vmem:[%s4931_s1 + $0x38] sm:$0xf0]  ;;  %v3247_v35 = vld [vmem:[%s4931_s1 + $0x68c] sm:$0xf] }
  0xce   :  { %1931 = vmatpush.bf16.msra.mxu3 %v2509_v14  ;;  %v4678_v33 = vadd.f32 %v1679_v4, %v1667_v3  ;;  %v2170_v14 = vld [vmem:[%s4931_s1 + $0x138] sm:$0xf0]  ;;  %v2045_v23 = vor.u32 %v3043_v9, %v2042_v10  ;;  %v2893_v3 = vor.u32 %v3255_v61, %v2890_v62  ;;  %v3187_v4 = vld [vmem:[%s4931_s1 + $0x4ac] sm:$0xf] }
  0xcf   :  { %1893 = vmatpush.bf16.msra.mxu0 %v2109_v27  ;;  %v3039_v27 = vld [vmem:[%s4931_s1 + $0xc] sm:$0xf]  ;;  %v3018_v1 = vld [vmem:[%s4931_s1 + $0x7d8] sm:$0xf0] }
  0xd0   :  { %1906 = vmatpush.bf16.msra.mxu1 %v2237_v30  ;;  %v2026_v30 = vld [vmem:[%s4931_s1 + $0x18] sm:$0xf0]  ;;  %v3243_v22 = vld [vmem:[%s4931_s1 + $0x66c] sm:$0xf] }
  0xd1   :  { %1919 = vmatpush.bf16.msra.mxu2 %v2365_v31  ;;  %v2173_v31 = vor.u32 %v3075_v11, %v2170_v14  ;;  %v2029_v47 = vor.u32 %v3039_v27, %v2026_v30  ;;  %v2618_v5 = vld [vmem:[%s4931_s1 + $0x4b8] sm:$0xf0]  ;;  %v3283_v11 = vld [vmem:[%s4931_s1 + $0x7ac] sm:$0xf]  ;;  %v274_v30 = vperm.slane %v4438_v63, 1 }
  0xd2   :  { %1932 = vmatpush.bf16.msra.mxu3 %v2493_v37  ;;  %v3103_v37 = vld [vmem:[%s4931_s1 + $0x20c] sm:$0xf]  ;;  %v2874_v9 = vld [vmem:[%s4931_s1 + $0x6b8] sm:$0xf0]  ;;  %v2621_v14 = vor.u32 %v3187_v4, %v2618_v5 }
  0xd3   :  { %1894 = vmatpush.bf16.msra.mxu0 %v2093_v44  ;;  %v1668_v39 = vpop.f32.mrf.mxu2  ;;  %v3299_v10 = vld [vmem:[#allocation1 + $0x1b] sm:$0xff]  ;;  %v3215_v27 = vld [vmem:[%s4931_s1 + $0x58c] sm:$0xf] }
  0xd4   :  { %1907 = vmatpush.bf16.msra.mxu1 %v2221_v46  ;;  %v1681_v44 = vpop.f32.mrf.mxu3  ;;  %v2650_v46 = vld [vmem:[%s4931_s1 + $0x4f8] sm:$0xf0]  ;;  %v3239_v61 = vld [vmem:[%s4931_s1 + $0x64c] sm:$0xf] }
  0xd5   :  { %1920 = vmatpush.bf16.msra.mxu2 %v2349_v20  ;;  %v3227_v20 = vld [vmem:[%s4931_s1 + $0x5ec] sm:$0xf]  ;;  %v2653_v54 = vor.u32 %v3195_v45, %v2650_v46  ;;  %v3002_v12 = vld [vmem:[%s4931_s1 + $0x7b8] sm:$0xf0] }
  0xd6   :  { %1933 = vmatpush.bf16.msra.mxu3 %v2477_v49  ;;  %v2285_v49 = vor.u32 %v3103_v37, %v2282_v41  ;;  %v2781_v53 = vor.u32 %v3227_v20, %v2778_v48  ;;  %v2858_v36 = vld [vmem:[%s4931_s1 + $0x698] sm:$0xf0]  ;;  %v3279_v37 = vld [vmem:[%s4931_s1 + $0x78c] sm:$0xf] }
  0xd7   :  { %1895 = vmatpush.bf16.msra.mxu0 %v2077_v56  ;;  %v3191_v56 = vld [vmem:[%s4931_s1 + $0x4cc] sm:$0xf]  ;;  %v2986_v39 = vld [vmem:[%s4931_s1 + $0x798] sm:$0xf0]  ;;  %v2861_v43 = vor.u32 %v3247_v35, %v2858_v36 }
  0xd8   :  { %1908 = vmatpush.bf16.msra.mxu1 %v2205_v57  ;;  %v2634_v57 = vld [vmem:[%s4931_s1 + $0x4d8] sm:$0xf0]  ;;  %v3179_v44 = vld [vmem:[%s4931_s1 + $0x46c] sm:$0xf]  ;;  %v2989_v48 = vor.u32 %v3279_v37, %v2986_v39 }
  0xd9   :  { %1921 = vmatpush.bf16.msra.mxu2 %v2333_v58  ;;  %v3223_v58 = vld [vmem:[%s4931_s1 + $0x5cc] sm:$0xf]  ;;  %v2637_v2 = vor.u32 %v3191_v56, %v2634_v57  ;;  %v2586_v45 = vld [vmem:[%s4931_s1 + $0x478] sm:$0xf0] }
  0xda   :  { %1934 = vmatpush.bf16.msra.mxu3 %v2461_v0  ;;  %v3287_v0 = vld [vmem:[%s4931_s1 + $0x7cc] sm:$0xf]  ;;  %v2765_v29 = vor.u32 %v3223_v58, %v2762_v60  ;;  %v2714_v21 = vld [vmem:[%s4931_s1 + $0x578] sm:$0xf0] }
  0xdb   :  { %1896 = vmatpush.bf16.msra.mxu0 %v2061_v32  ;;  %v3021_v32 = vor.u32 %v3287_v0, %v3018_v1  ;;  %v3211_v46 = vld [vmem:[%s4931_s1 + $0x56c] sm:$0xf]  ;;  %v2970_v50 = vld [vmem:[%s4931_s1 + $0x778] sm:$0xf0] }
  0xdc   :  { %1909 = vmatpush.bf16.msra.mxu1 %v2189_v8  ;;  %v2746_v8 = vld [vmem:[%s4931_s1 + $0x5b8] sm:$0xf0]  ;;  %v3207_v57 = vld [vmem:[%s4931_s1 + $0x54c] sm:$0xf] }
  0xdd   :  { %1922 = vmatpush.bf16.msra.mxu2 %v2317_v38  ;;  %v3251_v38 = vld [vmem:[%s4931_s1 + $0x6ac] sm:$0xf]  ;;  %v2749_v18 = vor.u32 %v3219_v6, %v2746_v8  ;;  %v2570_v56 = vld [vmem:[%s4931_s1 + $0x458] sm:$0xf0] }
  0xde   :  { %1935 = vmatpush.bf16.msra.mxu3 %v2445_v13  ;;  %v3300_v13 = vld [vmem:[#allocation1] sm:$0xff]  ;;  %v2877_v19 = vor.u32 %v3251_v38, %v2874_v9  ;;  %v2698_v60 = vld [vmem:[%s4931_s1 + $0x558] sm:$0xf0]  ;;  %v3203_v38 = vld [vmem:[%s4931_s1 + $0x52c] sm:$0xf] }
  0xdf   :  { %1897 = vmatpush.bf16.msra.mxu0 %v2045_v23  ;;  %v2602_v23 = vld [vmem:[%s4931_s1 + $0x498] sm:$0xf0]  ;;  %v2701_v6 = vor.u32 %v3207_v57, %v2698_v60  ;;  %v3231_v36 = vld [vmem:[%s4931_s1 + $0x60c] sm:$0xf] }
  0xe0   :  { %1910 = vmatpush.bf16.msra.mxu1 %v2173_v31  ;;  %v3005_v31 = vor.u32 %v3283_v11, %v3002_v12  ;;  %v2826_v62 = vld [vmem:[%s4931_s1 + $0x658] sm:$0xf0]  ;;  %v3235_v12 = vld [vmem:[%s4931_s1 + $0x62c] sm:$0xf] }
  0xe1   :  { %1923 = vmatpush.bf16.msra.mxu2 %v2301_v34  ;;  %v2730_v34 = vld [vmem:[%s4931_s1 + $0x598] sm:$0xf0] }
  0xe2   :  { %1936 = vmatpush.bf16.msra.mxu3 %v2429_v40  ;;  %v2605_v40 = vor.u32 %v3183_v17, %v2602_v23  ;;  %v2733_v42 = vor.u32 %v3215_v27, %v2730_v34  ;;  %v2554_v8 = vld [vmem:[%s4931_s1 + $0x438] sm:$0xf0]  ;;  %v3167_v23 = vld [vmem:[%s4931_s1 + $0x40c] sm:$0xf] }
  0xe3   :  { %1898 = vmatpush.bf16.msra.mxu0 %v2029_v47  ;;  %v1692_v41 = vpop.f32.mrf.mxu0  ;;  %v2682_v11 = vld [vmem:[%s4931_s1 + $0x538] sm:$0xf0] }
  0xe4   :  { %1911 = vmatpush.bf16.msra.mxu1 %v2157_v26  ;;  %v1693_v20 = vadd.f32 %v1692_v41, %v274_v30  ;;  %v1705_v47 = vpop.f32.mrf.mxu1  ;;  %v2842_v26 = vld [vmem:[%s4931_s1 + $0x678] sm:$0xf0]  ;;  %v3199_v30 = vld [vmem:[%s4931_s1 + $0x50c] sm:$0xf] }
  0xe5   :  { %1924 = vmatpush.bf16.msra.mxu2 %v2285_v49  ;;  %v3275_v49 = vld [vmem:[%s4931_s1 + $0x76c] sm:$0xf]  ;;  %v2538_v27 = vld [vmem:[%s4931_s1 + $0x418] sm:$0xf0] }
  0xe6   :  { %1937 = vmatpush.bf16.msra.mxu3 %v2413_v52  ;;  %1899 = vmatmul.bf16.vlgmr.msra.gmra.mxu0 %v3300_v13  ;;  %v1706_v51 = vadd.f32 %v1705_v47, %v1693_v20  ;;  %v2589_v52 = vor.u32 %v3179_v44, %v2586_v45  ;;  %v2810_v13 = vld [vmem:[%s4931_s1 + $0x638] sm:$0xf0] }
  0xe7   :  { %1943 = vmatpush.bf16.msrb.mxu0 %v2653_v54  ;;  %1912 = vmatmul.bf16.vlgmr.msra.gmra.mxu1 %v3301_v16  ;;  %v2717_v54 = vor.u32 %v3211_v46, %v2714_v21  ;;  %v2938_v16 = vld [vmem:[%s4931_s1 + $0x738] sm:$0xf0] }
  0xe8   :  { %1956 = vmatpush.bf16.msrb.mxu1 %v2781_v53  ;;  %1925 = vmatmul.bf16.vlgmr.msra.gmra.mxu2 %v3298_v7  ;;  %v2845_v53 = vor.u32 %v3243_v22, %v2842_v26  ;;  %v3171_v7 = vld [vmem:[%s4931_s1 + $0x42c] sm:$0xf]  ;;  %v2666_v35 = vld [vmem:[%s4931_s1 + $0x518] sm:$0xf0] }
  0xe9   :  { %1969 = vmatpush.bf16.msrb.mxu2 %v2909_v55  ;;  %1938 = vmatmul.bf16.vlgmr.msra.gmra.mxu3 %v3299_v10  ;;  %v3175_v55 = vld [vmem:[%s4931_s1 + $0x44c] sm:$0xf]  ;;  %v2557_v17 = vor.u32 %v3171_v7, %v2554_v8  ;;  %v2794_v37 = vld [vmem:[%s4931_s1 + $0x618] sm:$0xf0] }
  0xea   :  { %1982 = vmatpush.bf16.msrb.mxu3 %v3037_v59  ;;  %v2973_v59 = vor.u32 %v3275_v49, %v2970_v50  ;;  %v2922_v41 = vld [vmem:[%s4931_s1 + $0x718] sm:$0xf0]  ;;  %v2797_v44 = vor.u32 %v3231_v36, %v2794_v37 }
  0xeb   :  { %1944 = vmatpush.bf16.msrb.mxu0 %v2637_v2  ;;  %v1718_v58 = vpop.f32.mrf.mxu2  ;;  %v3271_v2 = vld [vmem:[%s4931_s1 + $0x74c] sm:$0xf]  ;;  %v1694_v5 = vpop.f32.mrf.mxu0 }
  0xec   :  { %1957 = vmatpush.bf16.msrb.mxu1 %v2765_v29  ;;  %v1719_v0 = vadd.f32 %v1718_v58, %v1706_v51  ;;  %v1731_v1 = vpop.f32.mrf.mxu3  ;;  %v2954_v29 = vld [vmem:[%s4931_s1 + $0x758] sm:$0xf0]  ;;  %v1707_v9 = vpop.f32.mrf.mxu1 }
  0xed   :  { %1970 = vmatpush.bf16.msrb.mxu2 %v2893_v3  ;;  %v2573_v3 = vor.u32 %v3175_v55, %v2570_v56  ;;  %v2957_v10 = vor.u32 %v3271_v2, %v2954_v29 }
  0xee   :  { %1983 = vmatpush.bf16.msrb.mxu3 %v3021_v32  ;;  %v1732_v4 = vadd.f32 %v1731_v1, %v1719_v0  ;;  %v2829_v32 = vor.u32 %v3239_v61, %v2826_v62 }
  0xef   :  { %1945 = vmatpush.bf16.msrb.mxu0 %v2621_v14  ;;  %v3267_v14 = vld [vmem:[%s4931_s1 + $0x72c] sm:$0xf] }
  0xf0   :  { %1958 = vmatpush.bf16.msrb.mxu1 %v2749_v18  ;;  %v2685_v18 = vor.u32 %v3203_v38, %v2682_v11  ;;  %v2941_v34 = vor.u32 %v3267_v14, %v2938_v16 }
  0xf1   :  { %1971 = vmatpush.bf16.msrb.mxu2 %v2877_v19  ;;  %v2813_v19 = vor.u32 %v3235_v12, %v2810_v13  ;;  %v276_v12 = vperm.slane %v4438_v63, 3 }
  0xf2   :  { %1984 = vmatpush.bf16.msrb.mxu3 %v3005_v31 }
  0xf3   :  { %1946 = vmatpush.bf16.msrb.mxu0 %v2605_v40  ;;  %v1720_v31 = vpop.f32.mrf.mxu2  ;;  %v3263_v40 = vld [vmem:[%s4931_s1 + $0x70c] sm:$0xf] }
  0xf4   :  { %1959 = vmatpush.bf16.msrb.mxu1 %v2733_v42  ;;  %v1733_v39 = vpop.f32.mrf.mxu3  ;;  %v2541_v42 = vor.u32 %v3167_v23, %v2538_v27  ;;  %v2925_v45 = vor.u32 %v3263_v40, %v2922_v41 }
  0xf5   :  { %1972 = vmatpush.bf16.msrb.mxu2 %v2861_v43  ;;  %v2669_v43 = vor.u32 %v3199_v30, %v2666_v35 }
  0xf6   :  { %1985 = vmatpush.bf16.msrb.mxu3 %v2989_v48 }
  0xf7   :  { %1947 = vmatpush.bf16.msrb.mxu0 %v2589_v52 }
  0xf8   :  { %1960 = vmatpush.bf16.msrb.mxu1 %v2717_v54 }
  0xf9   :  { %1973 = vmatpush.bf16.msrb.mxu2 %v2845_v53 }
  0xfa   :  { %1986 = vmatpush.bf16.msrb.mxu3 %v2973_v59 }
  0xfb   :  { %1948 = vmatpush.bf16.msrb.mxu0 %v2573_v3 }
  0xfc   :  { %1961 = vmatpush.bf16.msrb.mxu1 %v2701_v6 }
  0xfd   :  { %1974 = vmatpush.bf16.msrb.mxu2 %v2829_v32 }
  0xfe   :  { %1987 = vmatpush.bf16.msrb.mxu3 %v2957_v10 }
  0xff   :  { %1949 = vmatpush.bf16.msrb.mxu0 %v2557_v17 }
 0x100   :  { %1962 = vmatpush.bf16.msrb.mxu1 %v2685_v18 }
 0x101   :  { %1975 = vmatpush.bf16.msrb.mxu2 %v2813_v19 }
 0x102   :  { %1988 = vmatpush.bf16.msrb.mxu3 %v2941_v34 }
 0x103   :  { %1950 = vmatpush.bf16.msrb.mxu0 %v2541_v42  ;;  %v1744_v46 = vpop.f32.mrf.mxu0 }
 0x104   :  { %1963 = vmatpush.bf16.msrb.mxu1 %v2669_v43  ;;  %v1745_v20 = vadd.f32 %v1744_v46, %v1732_v4  ;;  %v1757_v47 = vpop.f32.mrf.mxu1 }
 0x105   :  { %1976 = vmatpush.bf16.msrb.mxu2 %v2797_v44 }
 0x106   :  { %1989 = vmatpush.bf16.msrb.mxu3 %v2925_v45  ;;  %1951 = vmatmul.bf16.vlgmr.msrb.gmra.mxu0 %v4596_v24  ;;  %v1758_v48 = vadd.f32 %v1757_v47, %v1745_v20 }
 0x107   :  { %1964 = vmatmul.bf16.vlgmr.msrb.gmra.mxu1 %v4602_v28 }
 0x108   :  { %1977 = vmatmul.bf16.vlgmr.msrb.gmra.mxu2 %v4578_v15  ;;  %v275_v15 = vperm.slane %v4438_v63, 2 }
 0x109   :  { %1990 = vmatmul.bf16.vlgmr.msrb.gmra.mxu3 %v4599_v25 }
 0x10b   :  { %v1770_v21 = vpop.f32.mrf.mxu2  ;;  %v1746_v50 = vpop.f32.mrf.mxu0 }
 0x10c   :  { %v1771_v22 = vadd.f32 %v1770_v21, %v1758_v48  ;;  %v1783_v26 = vpop.f32.mrf.mxu3  ;;  %v1759_v51 = vpop.f32.mrf.mxu1 }
 0x10e   :  { %v1784_v49 = vadd.f32 %v1783_v26, %v1771_v22 }
 0x110   :  { %v1999_v52 = vrot.slane %v1784_v49, 6 }
 0x112   :  { %v2003_v24 = vsel %vm2002_vm0, %v4678_v33, %v1999_v52 }
 0x113   :  { %v1772_v54 = vpop.f32.mrf.mxu2 }
 0x114   :  { %v1785_v28 = vpop.f32.mrf.mxu3 }
 0x123   :  { %v1796_v53 = vpop.f32.mrf.mxu0 }
 0x124   :  { %v1797_v25 = vadd.f32 %v1796_v53, %v275_v15  ;;  %v1809_v55 = vpop.f32.mrf.mxu1 }
 0x126   :  { %v1810_v56 = vadd.f32 %v1809_v55, %v1797_v25 }
 0x12b   :  { %v1822_v57 = vpop.f32.mrf.mxu2  ;;  %v1798_v61 = vpop.f32.mrf.mxu0 }
 0x12c   :  { %v1823_v58 = vadd.f32 %v1822_v57, %v1810_v56  ;;  %v1835_v59 = vpop.f32.mrf.mxu3  ;;  %v1811_v62 = vpop.f32.mrf.mxu1 }
 0x12e   :  { %v1836_v60 = vadd.f32 %v1835_v59, %v1823_v58 }
 0x133   :  { %v1824_v0 = vpop.f32.mrf.mxu2 }
 0x134   :  { %v1837_v1 = vpop.f32.mrf.mxu3 }
 0x143   :  { %v1848_v2 = vpop.f32.mrf.mxu0 }
 0x144   :  { %v1861_v29 = vpop.f32.mrf.mxu1  ;;  %v1849_v18 = vadd.f32 %v1848_v2, %v1836_v60 }
 0x146   :  { %v1862_v23 = vadd.f32 %v1861_v29, %v1849_v18 }
 0x14b   :  { %v1874_v3 = vpop.f32.mrf.mxu2  ;;  %v1850_v4 = vpop.f32.mrf.mxu0 }
 0x14c   :  { %v1887_v33 = vpop.f32.mrf.mxu3  ;;  %v1863_v5 = vpop.f32.mrf.mxu1  ;;  %v1875_v35 = vadd.f32 %v1874_v3, %v1862_v23 }
 0x14e   :  { %v1888_v39 = vadd.f32 %v1887_v33, %v1875_v35 }
 0x150   :  { %v2000_v44 = vrot.slane %v1888_v39, 4 }
 0x153   :  { %v1876_v6 = vpop.f32.mrf.mxu2 }
 0x154   :  { %v1889_v32 = vpop.f32.mrf.mxu3 }
 0x163   :  { %v1900_v7 = vpop.f32.mrf.mxu0 }
 0x164   :  { %v1913_v8 = vpop.f32.mrf.mxu1  ;;  %v1901_v16 = vadd.f32 %v1900_v7, %v276_v12 }
 0x166   :  { %v1914_v17 = vadd.f32 %v1913_v8, %v1901_v16 }
 0x16b   :  { %v1926_v38 = vpop.f32.mrf.mxu2  ;;  %v1902_v10 = vpop.f32.mrf.mxu0 }
 0x16c   :  { %v1939_v9 = vpop.f32.mrf.mxu3  ;;  %v1915_v11 = vpop.f32.mrf.mxu1  ;;  %v1927_v19 = vadd.f32 %v1926_v38, %v1914_v17 }
 0x16e   :  { %v1940_v27 = vadd.f32 %v1939_v9, %v1927_v19 }
 0x173   :  { %v1928_v13 = vpop.f32.mrf.mxu2 }
 0x174   :  { %v1941_v14 = vpop.f32.mrf.mxu3 }
 0x183   :  { %v1952_v30 = vpop.f32.mrf.mxu0 }
 0x184   :  { %v1965_v31 = vpop.f32.mrf.mxu1  ;;  %v1953_v34 = vadd.f32 %v1952_v30, %v1940_v27 }
 0x186   :  { %v1966_v36 = vadd.f32 %v1965_v31, %v1953_v34 }
 0x18b   :  { %v1978_v37 = vpop.f32.mrf.mxu2  ;;  %v1954_v42 = vpop.f32.mrf.mxu0 }
 0x18c   :  { %v1979_v40 = vadd.f32 %v1978_v37, %v1966_v36  ;;  %v1991_v41 = vpop.f32.mrf.mxu3  ;;  %v1967_v43 = vpop.f32.mrf.mxu1 }
 0x18e   :  { %v1992_v63 = vadd.f32 %v1991_v41, %v1979_v40 }
 0x190   :  { %v2001_v45 = vrot.slane %v1992_v63, 2 }
 0x192   :  { %v2005_v46 = vsel %vm2004_vm1, %v2000_v44, %v2001_v45 }
 0x193   :  { %v2007_v20 = vsel %vm2006_vm2, %v2003_v24, %v2005_v46  ;;  %v1980_v47 = vpop.f32.mrf.mxu2 }
 0x194   :  { %2009 = vst [vmem:[%s4934_s3] sm:$0xff] %v2007_v20  ;;  %v1993_v48 = vpop.f32.mrf.mxu3 }

</bundles_post_ra>
